<compile_context>
chip_gen: v5e
topology: v5e:2x2
jax: 0.10.0
libtpu: 0.0.40
codegen_flags: <defaults>
</compile_context>

<pallas_src>
import functools

import jax
import jax.numpy as jnp
from jax.experimental import pallas as pl
from jax.experimental.pallas import tpu as pltpu

LANES = 128
EPS = 1e-5


def _round_up(x, m):
    return (x + m - 1) // m * m


def _vmem_capacity_bytes():
    try:
        return int(pltpu.get_tpu_info().vmem_capacity_bytes)
    except Exception:
        return 64 * 1024 * 1024  # conservative (v7x-sized) fallback


_VMEM_BYTES = _vmem_capacity_bytes()
# Generation-dependent knobs: bigger elementwise tiles on 128 MiB parts
# (v5e/v6e), smaller on v7x (64 MiB); VMEM limit leaves headroom for Mosaic
# scratch and double-buffering.
_ROW_CAP = 8192 if _VMEM_BYTES >= 96 * 1024 * 1024 else 4096
_VMEM_LIMIT = min(int(0.6 * _VMEM_BYTES), 100 * 1024 * 1024)

_COMPILER_PARAMS = pltpu.CompilerParams(
    dimension_semantics=("parallel",),
    vmem_limit_bytes=_VMEM_LIMIT,
)


def _pick_m_tile(m, cap):
    """Largest multiple-of-8 divisor of m <= cap, preferring >= 2 grid steps."""
    target = min(cap, m)
    if m >= 16:
        target = min(target, m // 2)  # keep grid >= 2 (pipelining / megacore)
    best = None
    for t in range(8, target + 1, 8):
        if m % t == 0:
            best = t
    return best if best is not None else m


# ----------------------------- Pallas kernels --------------------------------
def _conv3x3_kernel(x_ref, w_ref, scale_ref, shift_ref, z_ref, stats_ref,
                    b_ref, *, pre_relu):
    """3x3 conv (stride 1, pad 1) over one image, with a fused per-channel
    scale/shift [+ReLU] on the input (the previous layer's BN+ReLU) and
    per-channel sum / sum-of-squares partials for the following BatchNorm.

    x_ref:     (H, W, Cp)        bf16  unpadded input tile (batch dim squeezed)
    w_ref:     (3, 3*Cp, Cp)     bf16  resident weights; K index = dx*Cp + cin
    scale_ref: (1, Cp)           f32   resident pre-activation scale
    shift_ref: (1, Cp)           f32   resident pre-activation shift
    z_ref:     (H, W, Cp)        bf16  conv output tile
    stats_ref: (8, Cp)           f32   rows 0/1 = sum(z), sum(z*z); rows 2..7 = 0
    b_ref:     (H+2, W, 3*Cp)    bf16  VMEM dx-im2col scratch (spatial zero pad
                                       lives here, never in HBM)
    """
    h, w, cp = x_ref.shape

    # Fused pre-activation: y = relu(x*scale + shift) (identity for conv1).
    scale = scale_ref[...].reshape(1, 1, cp)
    shift = shift_ref[...].reshape(1, 1, cp)
    y = x_ref[...].astype(jnp.float32) * scale + shift
    if pre_relu:
        y = jnp.maximum(y, 0.0)
    y = y.astype(jnp.bfloat16)

    # dx-im2col with in-VMEM spatial zero padding:
    #   B[r, x, dx*Cp:(dx+1)*Cp] = ypad[r, x+dx]   (ypad = y zero-padded by 1).
    zrow = jnp.zeros((1, w, 3 * cp), jnp.bfloat16)
    zcol = jnp.zeros((h, 1, cp), jnp.bfloat16)
    b_ref[0:1, :, :] = zrow                                   # padded top row
    b_ref[h + 1:h + 2, :, :] = zrow                           # padded bottom row
    # dx = 1 tap: aligned full-width copy.
    b_ref[1:h + 1, :, cp:2 * cp] = y
    # dx = 0 tap: shift right by one column; column 0 is zero padding.
    b_ref[1:h + 1, 0:1, 0:cp] = zcol
    b_ref[1:h + 1, 1:w, 0:cp] = y[:, 0:w - 1, :]
    # dx = 2 tap: shift left by one column; column W-1 is zero padding.
    b_ref[1:h + 1, 0:w - 1, 2 * cp:3 * cp] = y[:, 1:w, :]
    b_ref[1:h + 1, w - 1:w, 2 * cp:3 * cp] = zcol

    # Three wide-K MXU matmuls (one per dy), chained fp32 accumulation.  The dy
    # slice is a free major-dim offset; the reshape is layout-preserving when W
    # is a multiple of the sublane packing (true for the demo shapes).
    acc = None
    for dy in range(3):
        lhs = b_ref[dy:dy + h, :, :].reshape(h * w, 3 * cp)
        contrib = jnp.dot(lhs, w_ref[dy], preferred_element_type=jnp.float32)
        acc = contrib if acc is None else acc + contrib

    z_ref[...] = acc.reshape(h, w, cp).astype(z_ref.dtype)

    # Per-channel partial stats for the following training-mode BatchNorm.
    stats_ref[0:1, :] = jnp.sum(acc, axis=0, keepdims=True)
    stats_ref[1:2, :] = jnp.sum(acc * acc, axis=0, keepdims=True)
    stats_ref[2:8, :] = jnp.zeros((6, cp), jnp.float32)


def _bn_act_kernel(z_ref, scale_ref, shift_ref, *rest, apply_relu, has_residual):
    """Elementwise y = z*scale + shift [+ residual] [ReLU], tiled over M."""
    if has_residual:
        res_ref, o_ref = rest
    else:
        (o_ref,) = rest

    y = z_ref[...].astype(jnp.float32) * scale_ref[...] + shift_ref[...]
    if has_residual:
        y = y + res_ref[...].astype(jnp.float32)
    if apply_relu:
        y = jnp.maximum(y, 0.0)
    o_ref[...] = y.astype(o_ref.dtype)


# ------------------------------ JAX wrappers ----------------------------------
def conv3x3_stats(x_nhwc, w_k, scale, shift, *, pre_relu):
    """Fused (scale/shift[/ReLU]) -> 3x3 conv (stride 1, pad 1) -> BN partials.

    x_nhwc: (N, H, W, Cp) bf16 unpadded activations
    w_k:    (3, 3*Cp, Cp) bf16 per-dy weights with dx folded into K
    scale/shift: (1, Cp) f32 pre-activation affine (identity for the first conv)
    Returns (z, sums): z (N,H,W,Cp) bf16 conv output, sums (2,Cp) f32 channel
    sum / sum-of-squares for the subsequent training-mode BatchNorm.
    """
    n, h, w, cp = x_nhwc.shape
    kernel = functools.partial(_conv3x3_kernel, pre_relu=pre_relu)

    z, partial = pl.pallas_call(
        kernel,
        grid=(n,),
        in_specs=[
            pl.BlockSpec((None, h, w, cp), lambda i: (i, 0, 0, 0)),
            pl.BlockSpec((3, 3 * cp, cp), lambda i: (0, 0, 0)),   # resident
            pl.BlockSpec((1, cp), lambda i: (0, 0)),              # resident
            pl.BlockSpec((1, cp), lambda i: (0, 0)),              # resident
        ],
        out_specs=[
            pl.BlockSpec((None, h, w, cp), lambda i: (i, 0, 0, 0)),
            pl.BlockSpec((None, 8, cp), lambda i: (i, 0, 0)),
        ],
        out_shape=[
            jax.ShapeDtypeStruct((n, h, w, cp), jnp.bfloat16),
            jax.ShapeDtypeStruct((n, 8, cp), jnp.float32),
        ],
        scratch_shapes=[pltpu.VMEM((h + 2, w, 3 * cp), jnp.bfloat16)],
        compiler_params=_COMPILER_PARAMS,
    )(x_nhwc, w_k, scale, shift)

    sums = jnp.sum(partial[:, :2, :], axis=0)  # (2, Cp) cross-image reduction
    return z, sums


def _bn_coeffs(sums, gamma_p, beta_p, count):
    """Training-mode BatchNorm2d (batch stats, biased var, eps=1e-5) folded
    into per-channel scale/shift."""
    mean = sums[0] / count
    var = jnp.maximum(sums[1] / count - mean * mean, 0.0)
    inv = gamma_p * jax.lax.rsqrt(var + EPS)
    scale = inv.reshape(1, -1).astype(jnp.float32)
    shift = (beta_p - mean * inv).reshape(1, -1).astype(jnp.float32)
    return scale, shift


def bn_act(z_nhwc, scale, shift, *, relu, residual=None, out_dtype=jnp.float32):
    """Elementwise BN scale/shift (+optional residual, +optional ReLU)."""
    n, h, w, cp = z_nhwc.shape
    m = n * h * w

    z2 = z_nhwc.reshape(m, cp)
    args = [z2, scale, shift]
    has_residual = residual is not None
    if has_residual:
        args.append(residual.reshape(m, cp))

    tm = _pick_m_tile(m, _ROW_CAP)
    tile_spec = pl.BlockSpec((tm, cp), lambda i: (i, 0))
    const_spec = pl.BlockSpec((1, cp), lambda i: (0, 0))
    in_specs = [tile_spec, const_spec, const_spec]
    if has_residual:
        in_specs.append(tile_spec)

    kernel = functools.partial(_bn_act_kernel, apply_relu=relu,
                               has_residual=has_residual)
    out = pl.pallas_call(
        kernel,
        grid=(m // tm,),
        in_specs=in_specs,
        out_specs=tile_spec,
        out_shape=jax.ShapeDtypeStruct((m, cp), out_dtype),
        compiler_params=_COMPILER_PARAMS,
    )(*args)
    return out.reshape(n, h, w, cp)


def init_params(key, channels):
    """ResnetBlock params; conv weights stored pre-transformed as (3, 3*Cp, Cp)
    bf16 matrices (dx folded into K, matching the kernel's dx-im2col layout),
    BN affine params zero-padded to Cp."""
    cp = _round_up(channels, LANES)
    k1, k2, k3, k4 = jax.random.split(key, 4)

    def conv_w(k):
        w = 0.1 * jax.random.normal(k, (channels, channels, 3, 3), jnp.float32)
        # (Cout, Cin, dy, dx) -> (dy, dx, Cin, Cout), pad channels to Cp, then
        # fold dx into K: K index = dx*Cp + cin.
        taps = jnp.transpose(w, (2, 3, 1, 0))
        taps = jnp.pad(taps, ((0, 0), (0, 0),
                              (0, cp - channels), (0, cp - channels)))
        return taps.reshape(3, 3 * cp, cp).astype(jnp.bfloat16)

    def bn_p(k):
        kg, kb = jax.random.split(k)
        g = 1.0 + 0.1 * jax.random.normal(kg, (channels,), jnp.float32)
        b = 0.1 * jax.random.normal(kb, (channels,), jnp.float32)
        # Padded channels get gamma=0 / beta=0 so they stay exactly zero.
        return jnp.pad(g, (0, cp - channels)), jnp.pad(b, (0, cp - channels))

    w1 = conv_w(k1)
    g1, be1 = bn_p(k2)
    w2 = conv_w(k3)
    g2, be2 = bn_p(k4)
    # Conv bias intentionally omitted: a per-channel constant before
    # training-mode BatchNorm is exactly cancelled by the mean subtraction.
    return dict(w1=w1, g1=g1, be1=be1, w2=w2, g2=g2, be2=be2)


def resnet_block_forward(x_nchw, params):
    """ResnetBlock.forward: relu(bn2(conv2(relu(bn1(conv1(x))))) + x)."""
    n, c, h, w = x_nchw.shape
    cp = _round_up(c, LANES)

    # NCHW -> NHWC (channels on lanes), zero-pad channels to 128 lanes, bf16.
    x = jnp.transpose(x_nchw, (0, 2, 3, 1))
    x = jnp.pad(x, ((0, 0), (0, 0), (0, 0), (0, cp - c))).astype(jnp.bfloat16)

    count = float(n * h * w)
    ident_scale = jnp.ones((1, cp), jnp.float32)
    ident_shift = jnp.zeros((1, cp), jnp.float32)

    # conv1 (+ BN1 batch-stat partials)
    z1, s1 = conv3x3_stats(x, params["w1"], ident_scale, ident_shift,
                           pre_relu=False)
    scale1, shift1 = _bn_coeffs(s1, params["g1"], params["be1"], count)

    # conv2 with BN1+ReLU fused into its input path (+ BN2 stat partials)
    z2, s2 = conv3x3_stats(z1, params["w2"], scale1, shift1, pre_relu=True)
    scale2, shift2 = _bn_coeffs(s2, params["g2"], params["be2"], count)

    # BN2 -> +x -> ReLU (fused elementwise pass)
    out = bn_act(z2, scale2, shift2, relu=True, residual=x,
                 out_dtype=jnp.float32)

    # Drop padded channels, NHWC -> NCHW.
    return jnp.transpose(out[..., :c], (0, 3, 1, 2))


if __name__ == "__main__":
    key = jax.random.PRNGKey(0)
    kx, kp = jax.random.split(key)

    # NOTE: C=32 is padded to Cp=128 lanes for lane-dense layouts; real ResNet
    # channel widths (>=128) use the MXU / HBM bandwidth far more efficiently.
    N, C, H, W = 2, 32, 16, 16
    x = jax.random.normal(kx, (N, C, H, W), jnp.float32)
    params = init_params(kp, C)

    out = jax.jit(resnet_block_forward)(x, params)
    out = jax.block_until_ready(out)

    assert out.shape == (N, C, H, W), out.shape
    assert out.dtype == jnp.float32
    assert bool(jnp.all(jnp.isfinite(out)))
    assert bool(jnp.all(out >= 0.0))  # final ReLU
    print("KERNEL_OK")
</pallas_src>

<mosaic_0001>
module attributes {stable_mosaic.version = 11 : i64} {
  func.func @_conv3x3_kernel(%arg0: i32, %arg1: memref<1x16x16x128xbf16, #tpu.memory_space<vmem>>, %arg2: memref<3x384x128xbf16, #tpu.memory_space<vmem>>, %arg3: memref<1x128xf32, #tpu.memory_space<vmem>>, %arg4: memref<1x128xf32, #tpu.memory_space<vmem>>, %arg5: memref<1x16x16x128xbf16, #tpu.memory_space<vmem>>, %arg6: memref<1x8x128xf32, #tpu.memory_space<vmem>>, %arg7: memref<18x16x384xbf16, #tpu.memory_space<vmem>>) attributes {dimension_semantics = [#tpu.dimension_semantics<parallel>], iteration_bounds = array<i64: 2>, scalar_prefetch = 0 : i64, scratch_operands = 1 : i64, tpu.core_type = #tpu.core_type<tc>, window_params = [{transform_indices = @transform_0, window_bounds = array<i64: 1, 16, 16, 128>}, {pipeline_mode = #tpu.pipeline_mode<synchronous>, transform_indices = @transform_1, window_bounds = array<i64: 3, 384, 128>}, {pipeline_mode = #tpu.pipeline_mode<synchronous>, transform_indices = @transform_2, window_bounds = array<i64: 1, 128>}, {pipeline_mode = #tpu.pipeline_mode<synchronous>, transform_indices = @transform_3, window_bounds = array<i64: 1, 128>}, {transform_indices = @transform_4, window_bounds = array<i64: 1, 16, 16, 128>}, {transform_indices = @transform_5, window_bounds = array<i64: 1, 8, 128>}]} {
    %c0 = arith.constant 0 : index
    %c0_0 = arith.constant 0 : index
    %0 = vector.load %arg3[%c0, %c0_0] : memref<1x128xf32, #tpu.memory_space<vmem>>, vector<1x128xf32>
    %1 = vector.shape_cast %0 : vector<1x128xf32> to vector<1x1x128xf32>
    %c0_1 = arith.constant 0 : index
    %c0_2 = arith.constant 0 : index
    %2 = vector.load %arg4[%c0_1, %c0_2] : memref<1x128xf32, #tpu.memory_space<vmem>>, vector<1x128xf32>
    %3 = vector.shape_cast %2 : vector<1x128xf32> to vector<1x1x128xf32>
    %c0_3 = arith.constant 0 : index
    %c0_4 = arith.constant 0 : index
    %c0_5 = arith.constant 0 : index
    %c0_6 = arith.constant 0 : index
    %4 = vector.load %arg1[%c0_3, %c0_4, %c0_5, %c0_6] : memref<1x16x16x128xbf16, #tpu.memory_space<vmem>>, vector<1x16x16x128xbf16>
    %5 = vector.shape_cast %4 : vector<1x16x16x128xbf16> to vector<16x16x128xbf16>
    %6 = arith.extf %5 : vector<16x16x128xbf16> to vector<16x16x128xf32>
    %7 = vector.broadcast %1 : vector<1x1x128xf32> to vector<16x16x128xf32>
    %8 = arith.mulf %6, %7 : vector<16x16x128xf32>
    %9 = vector.broadcast %3 : vector<1x1x128xf32> to vector<16x16x128xf32>
    %10 = arith.addf %8, %9 : vector<16x16x128xf32>
    %11 = arith.truncf %10 : vector<16x16x128xf32> to vector<16x16x128xbf16>
    %cst = arith.constant 0.000000e+00 : bf16
    %12 = vector.broadcast %cst : bf16 to vector<1x16x384xbf16>
    %cst_7 = arith.constant 0.000000e+00 : bf16
    %13 = vector.broadcast %cst_7 : bf16 to vector<16x1x128xbf16>
    %c0_8 = arith.constant 0 : index
    %c0_9 = arith.constant 0 : index
    %c0_10 = arith.constant 0 : index
    %14 = vector.load %arg7[%c0_8, %c0_9, %c0_10] : memref<18x16x384xbf16, #tpu.memory_space<vmem>>, vector<1x16x384xbf16>
    tpu.vector_store %arg7[%c0_8, %c0_9, %c0_10], %12 {strides = array<i32>} : memref<18x16x384xbf16, #tpu.memory_space<vmem>>, vector<1x16x384xbf16>,
    %c17 = arith.constant 17 : index
    %c0_11 = arith.constant 0 : index
    %c0_12 = arith.constant 0 : index
    %15 = vector.load %arg7[%c17, %c0_11, %c0_12] : memref<18x16x384xbf16, #tpu.memory_space<vmem>>, vector<1x16x384xbf16>
    tpu.vector_store %arg7[%c17, %c0_11, %c0_12], %12 {strides = array<i32>} : memref<18x16x384xbf16, #tpu.memory_space<vmem>>, vector<1x16x384xbf16>,
    %c1 = arith.constant 1 : index
    %c0_13 = arith.constant 0 : index
    %c128 = arith.constant 128 : index
    %16 = vector.load %arg7[%c1, %c0_13, %c128] : memref<18x16x384xbf16, #tpu.memory_space<vmem>>, vector<16x16x128xbf16>
    tpu.vector_store %arg7[%c1, %c0_13, %c128], %11 {strides = array<i32>} : memref<18x16x384xbf16, #tpu.memory_space<vmem>>, vector<16x16x128xbf16>,
    %c1_14 = arith.constant 1 : index
    %c0_15 = arith.constant 0 : index
    %c0_16 = arith.constant 0 : index
    %17 = vector.load %arg7[%c1_14, %c0_15, %c0_16] : memref<18x16x384xbf16, #tpu.memory_space<vmem>>, vector<16x1x128xbf16>
    tpu.vector_store %arg7[%c1_14, %c0_15, %c0_16], %13 {strides = array<i32>} : memref<18x16x384xbf16, #tpu.memory_space<vmem>>, vector<16x1x128xbf16>,
    %18 = vector.extract_strided_slice %11 {offsets = [0, 0, 0], sizes = [16, 15, 128], strides = [1, 1, 1]} : vector<16x16x128xbf16> to vector<16x15x128xbf16>
    %c1_17 = arith.constant 1 : index
    %c1_18 = arith.constant 1 : index
    %c0_19 = arith.constant 0 : index
    %19 = vector.load %arg7[%c1_17, %c1_18, %c0_19] : memref<18x16x384xbf16, #tpu.memory_space<vmem>>, vector<16x15x128xbf16>
    tpu.vector_store %arg7[%c1_17, %c1_18, %c0_19], %18 {strides = array<i32>} : memref<18x16x384xbf16, #tpu.memory_space<vmem>>, vector<16x15x128xbf16>,
    %20 = vector.extract_strided_slice %11 {offsets = [0, 1, 0], sizes = [16, 15, 128], strides = [1, 1, 1]} : vector<16x16x128xbf16> to vector<16x15x128xbf16>
    %c1_20 = arith.constant 1 : index
    %c0_21 = arith.constant 0 : index
    %c256 = arith.constant 256 : index
    %21 = vector.load %arg7[%c1_20, %c0_21, %c256] : memref<18x16x384xbf16, #tpu.memory_space<vmem>>, vector<16x15x128xbf16>
    tpu.vector_store %arg7[%c1_20, %c0_21, %c256], %20 {strides = array<i32>} : memref<18x16x384xbf16, #tpu.memory_space<vmem>>, vector<16x15x128xbf16>,
    %c1_22 = arith.constant 1 : index
    %c15 = arith.constant 15 : index
    %c256_23 = arith.constant 256 : index
    %22 = vector.load %arg7[%c1_22, %c15, %c256_23] : memref<18x16x384xbf16, #tpu.memory_space<vmem>>, vector<16x1x128xbf16>
    tpu.vector_store %arg7[%c1_22, %c15, %c256_23], %13 {strides = array<i32>} : memref<18x16x384xbf16, #tpu.memory_space<vmem>>, vector<16x1x128xbf16>,
    %c0_24 = arith.constant 0 : index
    %c0_25 = arith.constant 0 : index
    %c0_26 = arith.constant 0 : index
    %23 = vector.load %arg7[%c0_24, %c0_25, %c0_26] : memref<18x16x384xbf16, #tpu.memory_space<vmem>>, vector<16x16x384xbf16>
    %24 = vector.shape_cast %23 : vector<16x16x384xbf16> to vector<256x384xbf16>
    %c0_27 = arith.constant 0 : index
    %c0_28 = arith.constant 0 : index
    %c0_29 = arith.constant 0 : index
    %25 = vector.load %arg2[%c0_27, %c0_28, %c0_29] : memref<3x384x128xbf16, #tpu.memory_space<vmem>>, vector<1x384x128xbf16>
    %26 = vector.shape_cast %25 : vector<1x384x128xbf16> to vector<384x128xbf16>
    %cst_30 = arith.constant dense<0.000000e+00> : vector<256x128xf32>
    %27 = tpu.matmul %24, %26, %cst_30 {dimension_numbers = #tpu.dot_dimension_numbers<[1], [0], [0], [1], [0, 0, 1, 1], [], []>} : vector<256x384xbf16>, vector<384x128xbf16>, vector<256x128xf32> -> vector<256x128xf32>
    %c1_31 = arith.constant 1 : index
    %c0_32 = arith.constant 0 : index
    %c0_33 = arith.constant 0 : index
    %28 = vector.load %arg7[%c1_31, %c0_32, %c0_33] : memref<18x16x384xbf16, #tpu.memory_space<vmem>>, vector<16x16x384xbf16>
    %29 = vector.shape_cast %28 : vector<16x16x384xbf16> to vector<256x384xbf16>
    %c1_34 = arith.constant 1 : index
    %c0_35 = arith.constant 0 : index
    %c0_36 = arith.constant 0 : index
    %30 = vector.load %arg2[%c1_34, %c0_35, %c0_36] : memref<3x384x128xbf16, #tpu.memory_space<vmem>>, vector<1x384x128xbf16>
    %31 = vector.shape_cast %30 : vector<1x384x128xbf16> to vector<384x128xbf16>
    %cst_37 = arith.constant dense<0.000000e+00> : vector<256x128xf32>
    %32 = tpu.matmul %29, %31, %cst_37 {dimension_numbers = #tpu.dot_dimension_numbers<[1], [0], [0], [1], [0, 0, 1, 1], [], []>} : vector<256x384xbf16>, vector<384x128xbf16>, vector<256x128xf32> -> vector<256x128xf32>
    %33 = arith.addf %27, %32 : vector<256x128xf32>
    %c2 = arith.constant 2 : index
    %c0_38 = arith.constant 0 : index
    %c0_39 = arith.constant 0 : index
    %34 = vector.load %arg7[%c2, %c0_38, %c0_39] : memref<18x16x384xbf16, #tpu.memory_space<vmem>>, vector<16x16x384xbf16>
    %35 = vector.shape_cast %34 : vector<16x16x384xbf16> to vector<256x384xbf16>
    %c2_40 = arith.constant 2 : index
    %c0_41 = arith.constant 0 : index
    %c0_42 = arith.constant 0 : index
    %36 = vector.load %arg2[%c2_40, %c0_41, %c0_42] : memref<3x384x128xbf16, #tpu.memory_space<vmem>>, vector<1x384x128xbf16>
    %37 = vector.shape_cast %36 : vector<1x384x128xbf16> to vector<384x128xbf16>
    %cst_43 = arith.constant dense<0.000000e+00> : vector<256x128xf32>
    %38 = tpu.matmul %35, %37, %cst_43 {dimension_numbers = #tpu.dot_dimension_numbers<[1], [0], [0], [1], [0, 0, 1, 1], [], []>} : vector<256x384xbf16>, vector<384x128xbf16>, vector<256x128xf32> -> vector<256x128xf32>
    %39 = arith.addf %33, %38 : vector<256x128xf32>
    %40 = vector.shape_cast %39 : vector<256x128xf32> to vector<16x16x128xf32>
    %41 = arith.truncf %40 : vector<16x16x128xf32> to vector<16x16x128xbf16>
    %c0_44 = arith.constant 0 : index
    %c0_45 = arith.constant 0 : index
    %c0_46 = arith.constant 0 : index
    %c0_47 = arith.constant 0 : index
    %42 = vector.load %arg5[%c0_44, %c0_45, %c0_46, %c0_47] : memref<1x16x16x128xbf16, #tpu.memory_space<vmem>>, vector<1x16x16x128xbf16>
    %43 = vector.shape_cast %42 : vector<1x16x16x128xbf16> to vector<16x16x128xbf16>
    %44 = vector.shape_cast %41 : vector<16x16x128xbf16> to vector<1x16x16x128xbf16>
    tpu.vector_store %arg5[%c0_44, %c0_45, %c0_46, %c0_47], %44 {strides = array<i32>} : memref<1x16x16x128xbf16, #tpu.memory_space<vmem>>, vector<1x16x16x128xbf16>,
    %cst_48 = arith.constant dense<0.000000e+00> : vector<128xf32>
    %45 = vector.multi_reduction <add>, %39, %cst_48 [0] : vector<256x128xf32> to vector<128xf32>
    %46 = vector.shape_cast %45 : vector<128xf32> to vector<1x128xf32>
    %c0_49 = arith.constant 0 : index
    %c0_50 = arith.constant 0 : index
    %c0_51 = arith.constant 0 : index
    %47 = vector.load %arg6[%c0_49, %c0_50, %c0_51] : memref<1x8x128xf32, #tpu.memory_space<vmem>>, vector<1x1x128xf32>
    %48 = vector.shape_cast %47 : vector<1x1x128xf32> to vector<1x128xf32>
    %49 = vector.shape_cast %46 : vector<1x128xf32> to vector<1x1x128xf32>
    tpu.vector_store %arg6[%c0_49, %c0_50, %c0_51], %49 {strides = array<i32>} : memref<1x8x128xf32, #tpu.memory_space<vmem>>, vector<1x1x128xf32>,
    %50 = arith.mulf %39, %39 : vector<256x128xf32>
    %cst_52 = arith.constant dense<0.000000e+00> : vector<128xf32>
    %51 = vector.multi_reduction <add>, %50, %cst_52 [0] : vector<256x128xf32> to vector<128xf32>
    %52 = vector.shape_cast %51 : vector<128xf32> to vector<1x128xf32>
    %c0_53 = arith.constant 0 : index
    %c1_54 = arith.constant 1 : index
    %c0_55 = arith.constant 0 : index
    %53 = vector.load %arg6[%c0_53, %c1_54, %c0_55] : memref<1x8x128xf32, #tpu.memory_space<vmem>>, vector<1x1x128xf32>
    %54 = vector.shape_cast %53 : vector<1x1x128xf32> to vector<1x128xf32>
    %55 = vector.shape_cast %52 : vector<1x128xf32> to vector<1x1x128xf32>
    tpu.vector_store %arg6[%c0_53, %c1_54, %c0_55], %55 {strides = array<i32>} : memref<1x8x128xf32, #tpu.memory_space<vmem>>, vector<1x1x128xf32>,
    %cst_56 = arith.constant 0.000000e+00 : f32
    %56 = vector.broadcast %cst_56 : f32 to vector<6x128xf32>
    %c0_57 = arith.constant 0 : index
    %c2_58 = arith.constant 2 : index
    %c0_59 = arith.constant 0 : index
    %57 = vector.load %arg6[%c0_57, %c2_58, %c0_59] : memref<1x8x128xf32, #tpu.memory_space<vmem>>, vector<1x6x128xf32>
    %58 = vector.shape_cast %57 : vector<1x6x128xf32> to vector<6x128xf32>
    %59 = vector.shape_cast %56 : vector<6x128xf32> to vector<1x6x128xf32>
    tpu.vector_store %arg6[%c0_57, %c2_58, %c0_59], %59 {strides = array<i32>} : memref<1x8x128xf32, #tpu.memory_space<vmem>>, vector<1x6x128xf32>,
    return
  }
  func.func @transform_0(%arg0: i32) -> (i32, i32, i32, i32) {
    %c0_i32 = arith.constant 0 : i32
    %c0_i32_0 = arith.constant 0 : i32
    %c0_i32_1 = arith.constant 0 : i32
    %c0_i32_2 = arith.constant 0 : i32
    return %arg0, %c0_i32, %c0_i32_0, %c0_i32_1 : i32, i32, i32, i32
  }
  func.func @transform_1(%arg0: i32) -> (i32, i32, i32) {
    %c0_i32 = arith.constant 0 : i32
    %c0_i32_0 = arith.constant 0 : i32
    %c0_i32_1 = arith.constant 0 : i32
    %c0_i32_2 = arith.constant 0 : i32
    return %c0_i32, %c0_i32_0, %c0_i32_1 : i32, i32, i32
  }
  func.func @transform_2(%arg0: i32) -> (i32, i32) {
    %c0_i32 = arith.constant 0 : i32
    %c0_i32_0 = arith.constant 0 : i32
    %c0_i32_1 = arith.constant 0 : i32
    return %c0_i32, %c0_i32_0 : i32, i32
  }
  func.func @transform_3(%arg0: i32) -> (i32, i32) {
    %c0_i32 = arith.constant 0 : i32
    %c0_i32_0 = arith.constant 0 : i32
    %c0_i32_1 = arith.constant 0 : i32
    return %c0_i32, %c0_i32_0 : i32, i32
  }
  func.func @transform_4(%arg0: i32) -> (i32, i32, i32, i32) {
    %c0_i32 = arith.constant 0 : i32
    %c0_i32_0 = arith.constant 0 : i32
    %c0_i32_1 = arith.constant 0 : i32
    %c0_i32_2 = arith.constant 0 : i32
    return %arg0, %c0_i32, %c0_i32_0, %c0_i32_1 : i32, i32, i32, i32
  }
  func.func @transform_5(%arg0: i32) -> (i32, i32, i32) {
    %c0_i32 = arith.constant 0 : i32
    %c0_i32_0 = arith.constant 0 : i32
    %c0_i32_1 = arith.constant 0 : i32
    return %arg0, %c0_i32, %c0_i32_0 : i32, i32, i32
  }
}

module attributes {stable_mosaic.version = 11 : i64} {
  func.func @_conv3x3_kernel(%arg0: i32, %arg1: memref<1x16x16x128xbf16, #tpu.memory_space<vmem>>, %arg2: memref<3x384x128xbf16, #tpu.memory_space<vmem>>, %arg3: memref<1x128xf32, #tpu.memory_space<vmem>>, %arg4: memref<1x128xf32, #tpu.memory_space<vmem>>, %arg5: memref<1x16x16x128xbf16, #tpu.memory_space<vmem>>, %arg6: memref<1x8x128xf32, #tpu.memory_space<vmem>>, %arg7: memref<18x16x384xbf16, #tpu.memory_space<vmem>>) attributes {dimension_semantics = [#tpu.dimension_semantics<parallel>], iteration_bounds = array<i64: 2>, scalar_prefetch = 0 : i64, scratch_operands = 1 : i64, tpu.core_type = #tpu.core_type<tc>, window_params = [{transform_indices = @transform_0, window_bounds = array<i64: 1, 16, 16, 128>}, {pipeline_mode = #tpu.pipeline_mode<synchronous>, transform_indices = @transform_1, window_bounds = array<i64: 3, 384, 128>}, {pipeline_mode = #tpu.pipeline_mode<synchronous>, transform_indices = @transform_2, window_bounds = array<i64: 1, 128>}, {pipeline_mode = #tpu.pipeline_mode<synchronous>, transform_indices = @transform_3, window_bounds = array<i64: 1, 128>}, {transform_indices = @transform_4, window_bounds = array<i64: 1, 16, 16, 128>}, {transform_indices = @transform_5, window_bounds = array<i64: 1, 8, 128>}]} {
    %c0 = arith.constant 0 : index
    %c0_0 = arith.constant 0 : index
    %0 = vector.load %arg3[%c0, %c0_0] : memref<1x128xf32, #tpu.memory_space<vmem>>, vector<1x128xf32>
    %1 = vector.shape_cast %0 : vector<1x128xf32> to vector<1x1x128xf32>
    %c0_1 = arith.constant 0 : index
    %c0_2 = arith.constant 0 : index
    %2 = vector.load %arg4[%c0_1, %c0_2] : memref<1x128xf32, #tpu.memory_space<vmem>>, vector<1x128xf32>
    %3 = vector.shape_cast %2 : vector<1x128xf32> to vector<1x1x128xf32>
    %c0_3 = arith.constant 0 : index
    %c0_4 = arith.constant 0 : index
    %c0_5 = arith.constant 0 : index
    %c0_6 = arith.constant 0 : index
    %4 = vector.load %arg1[%c0_3, %c0_4, %c0_5, %c0_6] : memref<1x16x16x128xbf16, #tpu.memory_space<vmem>>, vector<1x16x16x128xbf16>
    %5 = vector.shape_cast %4 : vector<1x16x16x128xbf16> to vector<16x16x128xbf16>
    %6 = arith.extf %5 : vector<16x16x128xbf16> to vector<16x16x128xf32>
    %7 = vector.broadcast %1 : vector<1x1x128xf32> to vector<16x16x128xf32>
    %8 = arith.mulf %6, %7 : vector<16x16x128xf32>
    %9 = vector.broadcast %3 : vector<1x1x128xf32> to vector<16x16x128xf32>
    %10 = arith.addf %8, %9 : vector<16x16x128xf32>
    %cst = arith.constant 0.000000e+00 : f32
    %11 = vector.broadcast %cst : f32 to vector<16x16x128xf32>
    %12 = arith.maximumf %10, %11 : vector<16x16x128xf32>
    %13 = arith.truncf %12 : vector<16x16x128xf32> to vector<16x16x128xbf16>
    %cst_7 = arith.constant 0.000000e+00 : bf16
    %14 = vector.broadcast %cst_7 : bf16 to vector<1x16x384xbf16>
    %cst_8 = arith.constant 0.000000e+00 : bf16
    %15 = vector.broadcast %cst_8 : bf16 to vector<16x1x128xbf16>
    %c0_9 = arith.constant 0 : index
    %c0_10 = arith.constant 0 : index
    %c0_11 = arith.constant 0 : index
    %16 = vector.load %arg7[%c0_9, %c0_10, %c0_11] : memref<18x16x384xbf16, #tpu.memory_space<vmem>>, vector<1x16x384xbf16>
    tpu.vector_store %arg7[%c0_9, %c0_10, %c0_11], %14 {strides = array<i32>} : memref<18x16x384xbf16, #tpu.memory_space<vmem>>, vector<1x16x384xbf16>,
    %c17 = arith.constant 17 : index
    %c0_12 = arith.constant 0 : index
    %c0_13 = arith.constant 0 : index
    %17 = vector.load %arg7[%c17, %c0_12, %c0_13] : memref<18x16x384xbf16, #tpu.memory_space<vmem>>, vector<1x16x384xbf16>
    tpu.vector_store %arg7[%c17, %c0_12, %c0_13], %14 {strides = array<i32>} : memref<18x16x384xbf16, #tpu.memory_space<vmem>>, vector<1x16x384xbf16>,
    %c1 = arith.constant 1 : index
    %c0_14 = arith.constant 0 : index
    %c128 = arith.constant 128 : index
    %18 = vector.load %arg7[%c1, %c0_14, %c128] : memref<18x16x384xbf16, #tpu.memory_space<vmem>>, vector<16x16x128xbf16>
    tpu.vector_store %arg7[%c1, %c0_14, %c128], %13 {strides = array<i32>} : memref<18x16x384xbf16, #tpu.memory_space<vmem>>, vector<16x16x128xbf16>,
    %c1_15 = arith.constant 1 : index
    %c0_16 = arith.constant 0 : index
    %c0_17 = arith.constant 0 : index
    %19 = vector.load %arg7[%c1_15, %c0_16, %c0_17] : memref<18x16x384xbf16, #tpu.memory_space<vmem>>, vector<16x1x128xbf16>
    tpu.vector_store %arg7[%c1_15, %c0_16, %c0_17], %15 {strides = array<i32>} : memref<18x16x384xbf16, #tpu.memory_space<vmem>>, vector<16x1x128xbf16>,
    %20 = vector.extract_strided_slice %13 {offsets = [0, 0, 0], sizes = [16, 15, 128], strides = [1, 1, 1]} : vector<16x16x128xbf16> to vector<16x15x128xbf16>
    %c1_18 = arith.constant 1 : index
    %c1_19 = arith.constant 1 : index
    %c0_20 = arith.constant 0 : index
    %21 = vector.load %arg7[%c1_18, %c1_19, %c0_20] : memref<18x16x384xbf16, #tpu.memory_space<vmem>>, vector<16x15x128xbf16>
    tpu.vector_store %arg7[%c1_18, %c1_19, %c0_20], %20 {strides = array<i32>} : memref<18x16x384xbf16, #tpu.memory_space<vmem>>, vector<16x15x128xbf16>,
    %22 = vector.extract_strided_slice %13 {offsets = [0, 1, 0], sizes = [16, 15, 128], strides = [1, 1, 1]} : vector<16x16x128xbf16> to vector<16x15x128xbf16>
    %c1_21 = arith.constant 1 : index
    %c0_22 = arith.constant 0 : index
    %c256 = arith.constant 256 : index
    %23 = vector.load %arg7[%c1_21, %c0_22, %c256] : memref<18x16x384xbf16, #tpu.memory_space<vmem>>, vector<16x15x128xbf16>
    tpu.vector_store %arg7[%c1_21, %c0_22, %c256], %22 {strides = array<i32>} : memref<18x16x384xbf16, #tpu.memory_space<vmem>>, vector<16x15x128xbf16>,
    %c1_23 = arith.constant 1 : index
    %c15 = arith.constant 15 : index
    %c256_24 = arith.constant 256 : index
    %24 = vector.load %arg7[%c1_23, %c15, %c256_24] : memref<18x16x384xbf16, #tpu.memory_space<vmem>>, vector<16x1x128xbf16>
    tpu.vector_store %arg7[%c1_23, %c15, %c256_24], %15 {strides = array<i32>} : memref<18x16x384xbf16, #tpu.memory_space<vmem>>, vector<16x1x128xbf16>,
    %c0_25 = arith.constant 0 : index
    %c0_26 = arith.constant 0 : index
    %c0_27 = arith.constant 0 : index
    %25 = vector.load %arg7[%c0_25, %c0_26, %c0_27] : memref<18x16x384xbf16, #tpu.memory_space<vmem>>, vector<16x16x384xbf16>
    %26 = vector.shape_cast %25 : vector<16x16x384xbf16> to vector<256x384xbf16>
    %c0_28 = arith.constant 0 : index
    %c0_29 = arith.constant 0 : index
    %c0_30 = arith.constant 0 : index
    %27 = vector.load %arg2[%c0_28, %c0_29, %c0_30] : memref<3x384x128xbf16, #tpu.memory_space<vmem>>, vector<1x384x128xbf16>
    %28 = vector.shape_cast %27 : vector<1x384x128xbf16> to vector<384x128xbf16>
    %cst_31 = arith.constant dense<0.000000e+00> : vector<256x128xf32>
    %29 = tpu.matmul %26, %28, %cst_31 {dimension_numbers = #tpu.dot_dimension_numbers<[1], [0], [0], [1], [0, 0, 1, 1], [], []>} : vector<256x384xbf16>, vector<384x128xbf16>, vector<256x128xf32> -> vector<256x128xf32>
    %c1_32 = arith.constant 1 : index
    %c0_33 = arith.constant 0 : index
    %c0_34 = arith.constant 0 : index
    %30 = vector.load %arg7[%c1_32, %c0_33, %c0_34] : memref<18x16x384xbf16, #tpu.memory_space<vmem>>, vector<16x16x384xbf16>
    %31 = vector.shape_cast %30 : vector<16x16x384xbf16> to vector<256x384xbf16>
    %c1_35 = arith.constant 1 : index
    %c0_36 = arith.constant 0 : index
    %c0_37 = arith.constant 0 : index
    %32 = vector.load %arg2[%c1_35, %c0_36, %c0_37] : memref<3x384x128xbf16, #tpu.memory_space<vmem>>, vector<1x384x128xbf16>
    %33 = vector.shape_cast %32 : vector<1x384x128xbf16> to vector<384x128xbf16>
    %cst_38 = arith.constant dense<0.000000e+00> : vector<256x128xf32>
    %34 = tpu.matmul %31, %33, %cst_38 {dimension_numbers = #tpu.dot_dimension_numbers<[1], [0], [0], [1], [0, 0, 1, 1], [], []>} : vector<256x384xbf16>, vector<384x128xbf16>, vector<256x128xf32> -> vector<256x128xf32>
    %35 = arith.addf %29, %34 : vector<256x128xf32>
    %c2 = arith.constant 2 : index
    %c0_39 = arith.constant 0 : index
    %c0_40 = arith.constant 0 : index
    %36 = vector.load %arg7[%c2, %c0_39, %c0_40] : memref<18x16x384xbf16, #tpu.memory_space<vmem>>, vector<16x16x384xbf16>
    %37 = vector.shape_cast %36 : vector<16x16x384xbf16> to vector<256x384xbf16>
    %c2_41 = arith.constant 2 : index
    %c0_42 = arith.constant 0 : index
    %c0_43 = arith.constant 0 : index
    %38 = vector.load %arg2[%c2_41, %c0_42, %c0_43] : memref<3x384x128xbf16, #tpu.memory_space<vmem>>, vector<1x384x128xbf16>
    %39 = vector.shape_cast %38 : vector<1x384x128xbf16> to vector<384x128xbf16>
    %cst_44 = arith.constant dense<0.000000e+00> : vector<256x128xf32>
    %40 = tpu.matmul %37, %39, %cst_44 {dimension_numbers = #tpu.dot_dimension_numbers<[1], [0], [0], [1], [0, 0, 1, 1], [], []>} : vector<256x384xbf16>, vector<384x128xbf16>, vector<256x128xf32> -> vector<256x128xf32>
    %41 = arith.addf %35, %40 : vector<256x128xf32>
    %42 = vector.shape_cast %41 : vector<256x128xf32> to vector<16x16x128xf32>
    %43 = arith.truncf %42 : vector<16x16x128xf32> to vector<16x16x128xbf16>
    %c0_45 = arith.constant 0 : index
    %c0_46 = arith.constant 0 : index
    %c0_47 = arith.constant 0 : index
    %c0_48 = arith.constant 0 : index
    %44 = vector.load %arg5[%c0_45, %c0_46, %c0_47, %c0_48] : memref<1x16x16x128xbf16, #tpu.memory_space<vmem>>, vector<1x16x16x128xbf16>
    %45 = vector.shape_cast %44 : vector<1x16x16x128xbf16> to vector<16x16x128xbf16>
    %46 = vector.shape_cast %43 : vector<16x16x128xbf16> to vector<1x16x16x128xbf16>
    tpu.vector_store %arg5[%c0_45, %c0_46, %c0_47, %c0_48], %46 {strides = array<i32>} : memref<1x16x16x128xbf16, #tpu.memory_space<vmem>>, vector<1x16x16x128xbf16>,
    %cst_49 = arith.constant dense<0.000000e+00> : vector<128xf32>
    %47 = vector.multi_reduction <add>, %41, %cst_49 [0] : vector<256x128xf32> to vector<128xf32>
    %48 = vector.shape_cast %47 : vector<128xf32> to vector<1x128xf32>
    %c0_50 = arith.constant 0 : index
    %c0_51 = arith.constant 0 : index
    %c0_52 = arith.constant 0 : index
    %49 = vector.load %arg6[%c0_50, %c0_51, %c0_52] : memref<1x8x128xf32, #tpu.memory_space<vmem>>, vector<1x1x128xf32>
    %50 = vector.shape_cast %49 : vector<1x1x128xf32> to vector<1x128xf32>
    %51 = vector.shape_cast %48 : vector<1x128xf32> to vector<1x1x128xf32>
    tpu.vector_store %arg6[%c0_50, %c0_51, %c0_52], %51 {strides = array<i32>} : memref<1x8x128xf32, #tpu.memory_space<vmem>>, vector<1x1x128xf32>,
    %52 = arith.mulf %41, %41 : vector<256x128xf32>
    %cst_53 = arith.constant dense<0.000000e+00> : vector<128xf32>
    %53 = vector.multi_reduction <add>, %52, %cst_53 [0] : vector<256x128xf32> to vector<128xf32>
    %54 = vector.shape_cast %53 : vector<128xf32> to vector<1x128xf32>
    %c0_54 = arith.constant 0 : index
    %c1_55 = arith.constant 1 : index
    %c0_56 = arith.constant 0 : index
    %55 = vector.load %arg6[%c0_54, %c1_55, %c0_56] : memref<1x8x128xf32, #tpu.memory_space<vmem>>, vector<1x1x128xf32>
    %56 = vector.shape_cast %55 : vector<1x1x128xf32> to vector<1x128xf32>
    %57 = vector.shape_cast %54 : vector<1x128xf32> to vector<1x1x128xf32>
    tpu.vector_store %arg6[%c0_54, %c1_55, %c0_56], %57 {strides = array<i32>} : memref<1x8x128xf32, #tpu.memory_space<vmem>>, vector<1x1x128xf32>,
    %cst_57 = arith.constant 0.000000e+00 : f32
    %58 = vector.broadcast %cst_57 : f32 to vector<6x128xf32>
    %c0_58 = arith.constant 0 : index
    %c2_59 = arith.constant 2 : index
    %c0_60 = arith.constant 0 : index
    %59 = vector.load %arg6[%c0_58, %c2_59, %c0_60] : memref<1x8x128xf32, #tpu.memory_space<vmem>>, vector<1x6x128xf32>
    %60 = vector.shape_cast %59 : vector<1x6x128xf32> to vector<6x128xf32>
    %61 = vector.shape_cast %58 : vector<6x128xf32> to vector<1x6x128xf32>
    tpu.vector_store %arg6[%c0_58, %c2_59, %c0_60], %61 {strides = array<i32>} : memref<1x8x128xf32, #tpu.memory_space<vmem>>, vector<1x6x128xf32>,
    return
  }
  func.func @transform_0(%arg0: i32) -> (i32, i32, i32, i32) {
    %c0_i32 = arith.constant 0 : i32
    %c0_i32_0 = arith.constant 0 : i32
    %c0_i32_1 = arith.constant 0 : i32
    %c0_i32_2 = arith.constant 0 : i32
    return %arg0, %c0_i32, %c0_i32_0, %c0_i32_1 : i32, i32, i32, i32
  }
  func.func @transform_1(%arg0: i32) -> (i32, i32, i32) {
    %c0_i32 = arith.constant 0 : i32
    %c0_i32_0 = arith.constant 0 : i32
    %c0_i32_1 = arith.constant 0 : i32
    %c0_i32_2 = arith.constant 0 : i32
    return %c0_i32, %c0_i32_0, %c0_i32_1 : i32, i32, i32
  }
  func.func @transform_2(%arg0: i32) -> (i32, i32) {
    %c0_i32 = arith.constant 0 : i32
    %c0_i32_0 = arith.constant 0 : i32
    %c0_i32_1 = arith.constant 0 : i32
    return %c0_i32, %c0_i32_0 : i32, i32
  }
  func.func @transform_3(%arg0: i32) -> (i32, i32) {
    %c0_i32 = arith.constant 0 : i32
    %c0_i32_0 = arith.constant 0 : i32
    %c0_i32_1 = arith.constant 0 : i32
    return %c0_i32, %c0_i32_0 : i32, i32
  }
  func.func @transform_4(%arg0: i32) -> (i32, i32, i32, i32) {
    %c0_i32 = arith.constant 0 : i32
    %c0_i32_0 = arith.constant 0 : i32
    %c0_i32_1 = arith.constant 0 : i32
    %c0_i32_2 = arith.constant 0 : i32
    return %arg0, %c0_i32, %c0_i32_0, %c0_i32_1 : i32, i32, i32, i32
  }
  func.func @transform_5(%arg0: i32) -> (i32, i32, i32) {
    %c0_i32 = arith.constant 0 : i32
    %c0_i32_0 = arith.constant 0 : i32
    %c0_i32_1 = arith.constant 0 : i32
    return %arg0, %c0_i32, %c0_i32_0 : i32, i32, i32
  }
}

module attributes {stable_mosaic.version = 11 : i64} {
  func.func @_bn_act_kernel(%arg0: i32, %arg1: memref<256x128xbf16, #tpu.memory_space<vmem>>, %arg2: memref<1x128xf32, #tpu.memory_space<vmem>>, %arg3: memref<1x128xf32, #tpu.memory_space<vmem>>, %arg4: memref<256x128xbf16, #tpu.memory_space<vmem>>, %arg5: memref<256x128xf32, #tpu.memory_space<vmem>>) attributes {dimension_semantics = [#tpu.dimension_semantics<parallel>], iteration_bounds = array<i64: 2>, scalar_prefetch = 0 : i64, scratch_operands = 0 : i64, tpu.core_type = #tpu.core_type<tc>, window_params = [{transform_indices = @transform_0, window_bounds = array<i64: 256, 128>}, {pipeline_mode = #tpu.pipeline_mode<synchronous>, transform_indices = @transform_1, window_bounds = array<i64: 1, 128>}, {pipeline_mode = #tpu.pipeline_mode<synchronous>, transform_indices = @transform_2, window_bounds = array<i64: 1, 128>}, {transform_indices = @transform_3, window_bounds = array<i64: 256, 128>}, {transform_indices = @transform_4, window_bounds = array<i64: 256, 128>}]} {
    %c0 = arith.constant 0 : index
    %c0_0 = arith.constant 0 : index
    %0 = vector.load %arg1[%c0, %c0_0] : memref<256x128xbf16, #tpu.memory_space<vmem>>, vector<256x128xbf16>
    %1 = arith.extf %0 : vector<256x128xbf16> to vector<256x128xf32>
    %c0_1 = arith.constant 0 : index
    %c0_2 = arith.constant 0 : index
    %2 = vector.load %arg2[%c0_1, %c0_2] : memref<1x128xf32, #tpu.memory_space<vmem>>, vector<1x128xf32>
    %3 = vector.broadcast %2 : vector<1x128xf32> to vector<256x128xf32>
    %4 = arith.mulf %1, %3 : vector<256x128xf32>
    %c0_3 = arith.constant 0 : index
    %c0_4 = arith.constant 0 : index
    %5 = vector.load %arg3[%c0_3, %c0_4] : memref<1x128xf32, #tpu.memory_space<vmem>>, vector<1x128xf32>
    %6 = vector.broadcast %5 : vector<1x128xf32> to vector<256x128xf32>
    %7 = arith.addf %4, %6 : vector<256x128xf32>
    %c0_5 = arith.constant 0 : index
    %c0_6 = arith.constant 0 : index
    %8 = vector.load %arg4[%c0_5, %c0_6] : memref<256x128xbf16, #tpu.memory_space<vmem>>, vector<256x128xbf16>
    %9 = arith.extf %8 : vector<256x128xbf16> to vector<256x128xf32>
    %10 = arith.addf %7, %9 : vector<256x128xf32>
    %cst = arith.constant 0.000000e+00 : f32
    %11 = vector.broadcast %cst : f32 to vector<256x128xf32>
    %12 = arith.maximumf %10, %11 : vector<256x128xf32>
    %c0_7 = arith.constant 0 : index
    %c0_8 = arith.constant 0 : index
    %13 = vector.load %arg5[%c0_7, %c0_8] : memref<256x128xf32, #tpu.memory_space<vmem>>, vector<256x128xf32>
    tpu.vector_store %arg5[%c0_7, %c0_8], %12 {strides = array<i32>} : memref<256x128xf32, #tpu.memory_space<vmem>>, vector<256x128xf32>,
    return
  }
  func.func @transform_0(%arg0: i32) -> (i32, i32) {
    %c0_i32 = arith.constant 0 : i32
    %c0_i32_0 = arith.constant 0 : i32
    return %arg0, %c0_i32 : i32, i32
  }
  func.func @transform_1(%arg0: i32) -> (i32, i32) {
    %c0_i32 = arith.constant 0 : i32
    %c0_i32_0 = arith.constant 0 : i32
    %c0_i32_1 = arith.constant 0 : i32
    return %c0_i32, %c0_i32_0 : i32, i32
  }
  func.func @transform_2(%arg0: i32) -> (i32, i32) {
    %c0_i32 = arith.constant 0 : i32
    %c0_i32_0 = arith.constant 0 : i32
    %c0_i32_1 = arith.constant 0 : i32
    return %c0_i32, %c0_i32_0 : i32, i32
  }
  func.func @transform_3(%arg0: i32) -> (i32, i32) {
    %c0_i32 = arith.constant 0 : i32
    %c0_i32_0 = arith.constant 0 : i32
    return %arg0, %c0_i32 : i32, i32
  }
  func.func @transform_4(%arg0: i32) -> (i32, i32) {
    %c0_i32 = arith.constant 0 : i32
    %c0_i32_0 = arith.constant 0 : i32
    return %arg0, %c0_i32 : i32, i32
  }
}

</mosaic_0001>

<bundles_post_ra>
// kernel: resnet_block_forward.5
= control target key start
LH: loop header
LB: loop body
LE: loop exit
PB: predicated region body
PF: predicated region fallthrough
CT: control target
= control target key end

     0   :  { %s801_s15 = smov 0   ;;  %s969_s0 = inlined_call_operand.vmem [shape: bf16[512,128], index: 0, kind: input, shape index: {}]   ;;  %s970_s1 = inlined_call_operand.vmem [shape: f32[1,128], index: 1, kind: input, shape index: {}]   ;;  %s971_s2 = inlined_call_operand.vmem [shape: f32[1,128], index: 2, kind: input, shape index: {}]   ;;  %s972_s3 = inlined_call_operand.vmem [shape: bf16[512,128], index: 3, kind: input, shape index: {}]   ;;  %s973_s4 = inlined_call_operand.vmem [shape: f32[512,128], index: 4, kind: output, shape index: {}]  }
   0x1 LB: > { %s587_s16 = sadd.s32 4294967295, %s774_s15   ;;  %p591_p0 = scmp.ge.s32.totalorder %s774_s15, 1  ;;  %s774_s15 = sphi %s801_s15, %s14_s15  }
   0x2   : > { %p174_p1 = scmp.lt.s32.totalorder %s774_s15, 3 }
   0x4   : > { %p175_p2 = pnand %p591_p0, %p174_p1 }
   0x5   : > { %s592_s17 = sshll.u32 (!%p175_p2), %s587_s16, 5 }
   0x6   : > { %178 = sbr.rel (%p175_p2) target bundleno = 69 (0x45), region = 36  ;;  %p206_p3 = scmp.lt.s32.totalorder (!%p175_p2), %s592_s17, 63 }
   0xb   : > { %s975_s17 = smov (!%p206_p3, %s592_s17), 63  ;;  %v825_v0 = vld [vmem:[%s970_s1] ss:$0 sm:$0xff] }
   0xc   : > { %s593_s18 = sshll.u32 %s975_s17, 2  ;;  %v830_v1 = vld [vmem:[%s971_s2] ss:$0 sm:$0xff]  ;;  %s597_s29 = sshll.u32 %s975_s17, 3 }
   0xd   : > { %s815_s21 = scalar_lea.vmem %s969_s0, %s593_s18  ;;  %s820_s24 = scalar_lea.vmem %s972_s3, %s593_s18 }
   0xe   : > { %v601_v2 = vld [vmem:[%s815_s21] sm:$0xff]   ;;  %v728_v4 = vld [vmem:[%s815_s21 + $0x8] sm:$0xff]   ;;  %v729_v10 = vld [vmem:[%s815_s21 + $0x10] sm:$0xff]   ;;  %s856_s6 = scalar_lea.vmem %s973_s4, %s597_s29 }
   0xf   : > { %v665_v3 = vld [vmem:[%s820_s24] sm:$0xff]   ;;  %v602_v5 = vunpack.c.l.bf16 %v601_v2  ;;  %v603_v7 = vunpack.c.h.bf16 %v601_v2  ;;  %v743_v9 = vld [vmem:[%s820_s24 + $0x8] sm:$0xff]   ;;  %v744_v11 = vld [vmem:[%s820_s24 + $0x10] sm:$0xff]   ;;  %v606_v12 = vunpack.c.l.bf16 %v728_v4  ;;  %v607_v14 = vunpack.c.h.bf16 %v728_v4 }
  0x10   : > { %v666_v6 = vunpack.c.l.bf16 %v665_v3  ;;  %v667_v8 = vunpack.c.h.bf16 %v665_v3  ;;  %v670_v13 = vunpack.c.l.bf16 %v743_v9  ;;  %v671_v15 = vunpack.c.h.bf16 %v743_v9  ;;  %v730_v16 = vld [vmem:[%s815_s21 + $0x18] sm:$0xff]   ;;  %v731_v42 = vld [vmem:[%s815_s21 + $0x20] sm:$0xff]   ;;  %v732_v52 = vld [vmem:[%s815_s21 + $0x28] sm:$0xff]  }
  0x11   : > { %v291_v17 = vmul.f32 %v825_v0, %v602_v5  ;;  %v292_v18 = vmul.f32 %v825_v0, %v603_v7  ;;  %v610_v19 = vunpack.c.l.bf16 %v729_v10  ;;  %v674_v20 = vunpack.c.l.bf16 %v744_v11  ;;  %v745_v21 = vld [vmem:[%s820_s24 + $0x18] sm:$0xff]   ;;  %v746_v47 = vld [vmem:[%s820_s24 + $0x20] sm:$0xff]   ;;  %v747_v57 = vld [vmem:[%s820_s24 + $0x28] sm:$0xff]  }
  0x12   : > { %v293_v22 = vmul.f32 %v825_v0, %v606_v12  ;;  %v294_v23 = vmul.f32 %v825_v0, %v607_v14  ;;  %v611_v24 = vunpack.c.h.bf16 %v729_v10  ;;  %v675_v25 = vunpack.c.h.bf16 %v744_v11  ;;  %v733_v62 = vld [vmem:[%s815_s21 + $0x30] sm:$0xff]   ;;  %v734_v14 = vld [vmem:[%s815_s21 + $0x38] sm:$0xff]  }
  0x13   : > { %v327_v26 = vadd.f32 %v830_v1, %v291_v17  ;;  %v328_v27 = vadd.f32 %v830_v1, %v292_v18  ;;  %v295_v28 = vmul.f32 %v825_v0, %v610_v19  ;;  %v614_v29 = vunpack.c.l.bf16 %v730_v16  ;;  %v748_v5 = vld [vmem:[%s820_s24 + $0x30] sm:$0xff]  }
  0x14   : > { %v329_v30 = vadd.f32 %v830_v1, %v293_v22  ;;  %v330_v31 = vadd.f32 %v830_v1, %v294_v23  ;;  %v296_v32 = vmul.f32 %v825_v0, %v611_v24  ;;  %v678_v33 = vunpack.c.l.bf16 %v745_v21  ;;  %v749_v23 = vld [vmem:[%s820_s24 + $0x38] sm:$0xff]  }
  0x15   : > { %v423_v34 = vadd.f32 %v666_v6, %v327_v26  ;;  %v424_v35 = vadd.f32 %v667_v8, %v328_v27  ;;  %v331_v36 = vadd.f32 %v830_v1, %v295_v28  ;;  %v297_v37 = vmul.f32 %v825_v0, %v614_v29 }
  0x16   : > { %v425_v38 = vadd.f32 %v670_v13, %v329_v30  ;;  %v426_v39 = vadd.f32 %v671_v15, %v330_v31  ;;  %v332_v40 = vadd.f32 %v830_v1, %v296_v32  ;;  %v615_v41 = vunpack.c.h.bf16 %v730_v16  ;;  %v735_v32 = vld [vmem:[%s815_s21 + $0x40] sm:$0xff]  }
  0x17   : > { %v455_v43 = vmax.f32 %v423_v34, 0.0  ;;  %v456_v44 = vmax.f32 %v424_v35, 0.0  ;;  %v427_v45 = vadd.f32 %v674_v20, %v331_v36  ;;  %v333_v46 = vadd.f32 %v830_v1, %v297_v37  ;;  %v750_v37 = vld [vmem:[%s820_s24 + $0x40] sm:$0xff]  }
  0x18   : > { %v457_v48 = vmax.f32 %v425_v38, 0.0  ;;  %v458_v49 = vmax.f32 %v426_v39, 0.0  ;;  %v428_v50 = vadd.f32 %v675_v25, %v332_v40  ;;  %v298_v51 = vmul.f32 %v825_v0, %v615_v41 }
  0x19   : > { %487 = vst [vmem:[%s856_s6] sm:$0xff] %v455_v43  ;;  %v459_v53 = vmax.f32 %v427_v45, 0.0  ;;  %v429_v54 = vadd.f32 %v678_v33, %v333_v46  ;;  %v679_v55 = vunpack.c.h.bf16 %v745_v21  ;;  %v618_v56 = vunpack.c.l.bf16 %v731_v42  ;;  %v736_v46 = vld [vmem:[%s815_s21 + $0x48] sm:$0xff]  }
  0x1a   : > { %488 = vst [vmem:[%s856_s6 + $0x8] sm:$0xff] %v456_v44  ;;  %v460_v58 = vmax.f32 %v428_v50, 0.0  ;;  %v334_v59 = vadd.f32 %v830_v1, %v298_v51  ;;  %v682_v60 = vunpack.c.l.bf16 %v746_v47  ;;  %v619_v61 = vunpack.c.h.bf16 %v731_v42 }
  0x1b   : > { %489 = vst [vmem:[%s856_s6 + $0x10] sm:$0xff] %v457_v48  ;;  %v461_v63 = vmax.f32 %v429_v54, 0.0  ;;  %v299_v2 = vmul.f32 %v825_v0, %v618_v56  ;;  %v683_v3 = vunpack.c.h.bf16 %v746_v47  ;;  %v622_v4 = vunpack.c.l.bf16 %v732_v52  ;;  %v751_v47 = vld [vmem:[%s820_s24 + $0x48] sm:$0xff]   ;;  %v737_v56 = vld [vmem:[%s815_s21 + $0x50] sm:$0xff]  }
  0x1c   : > { %490 = vst [vmem:[%s856_s6 + $0x18] sm:$0xff] %v458_v49  ;;  %v430_v6 = vadd.f32 %v679_v55, %v334_v59  ;;  %v300_v7 = vmul.f32 %v825_v0, %v619_v61  ;;  %v686_v8 = vunpack.c.l.bf16 %v747_v57  ;;  %v623_v9 = vunpack.c.h.bf16 %v732_v52  ;;  %v752_v61 = vld [vmem:[%s820_s24 + $0x50] sm:$0xff]  }
  0x1d   : > { %491 = vst [vmem:[%s856_s6 + $0x20] sm:$0xff] %v459_v53  ;;  %v335_v10 = vadd.f32 %v830_v1, %v299_v2  ;;  %v301_v11 = vmul.f32 %v825_v0, %v622_v4  ;;  %v687_v12 = vunpack.c.h.bf16 %v747_v57  ;;  %v626_v13 = vunpack.c.l.bf16 %v733_v62 }
  0x1e   : > { %492 = vst [vmem:[%s856_s6 + $0x28] sm:$0xff] %v460_v58  ;;  %v462_v15 = vmax.f32 %v430_v6, 0.0  ;;  %v336_v16 = vadd.f32 %v830_v1, %v300_v7  ;;  %v302_v17 = vmul.f32 %v825_v0, %v623_v9  ;;  %v690_v18 = vunpack.c.l.bf16 %v748_v5 }
  0x1f   : > { %493 = vst [vmem:[%s856_s6 + $0x30] sm:$0xff] %v461_v63  ;;  %v431_v19 = vadd.f32 %v682_v60, %v335_v10  ;;  %v337_v20 = vadd.f32 %v830_v1, %v301_v11  ;;  %v303_v21 = vmul.f32 %v825_v0, %v626_v13  ;;  %v627_v22 = vunpack.c.h.bf16 %v733_v62 }
  0x20   : > { %494 = vst [vmem:[%s856_s6 + $0x38] sm:$0xff] %v462_v15  ;;  %v432_v24 = vadd.f32 %v683_v3, %v336_v16  ;;  %v338_v25 = vadd.f32 %v830_v1, %v302_v17  ;;  %v691_v26 = vunpack.c.h.bf16 %v748_v5  ;;  %v630_v27 = vunpack.c.l.bf16 %v734_v14  ;;  %v753_v17 = vld [vmem:[%s820_s24 + $0x58] sm:$0xff]  }
  0x21   : > { %v463_v28 = vmax.f32 %v431_v19, 0.0  ;;  %v433_v29 = vadd.f32 %v686_v8, %v337_v20  ;;  %v339_v30 = vadd.f32 %v830_v1, %v303_v21  ;;  %v304_v31 = vmul.f32 %v825_v0, %v627_v22 }
  0x22   : > { %v464_v33 = vmax.f32 %v432_v24, 0.0  ;;  %v434_v34 = vadd.f32 %v687_v12, %v338_v25  ;;  %v305_v35 = vmul.f32 %v825_v0, %v630_v27  ;;  %v694_v36 = vunpack.c.l.bf16 %v749_v23  ;;  %v738_v12 = vld [vmem:[%s815_s21 + $0x58] sm:$0xff]  }
  0x23   : > { %495 = vst [vmem:[%s856_s6 + $0x40] sm:$0xff] %v463_v28  ;;  %v465_v38 = vmax.f32 %v433_v29, 0.0  ;;  %v435_v39 = vadd.f32 %v690_v18, %v339_v30  ;;  %v340_v40 = vadd.f32 %v830_v1, %v304_v31  ;;  %v631_v41 = vunpack.c.h.bf16 %v734_v14  ;;  %v754_v31 = vld [vmem:[%s820_s24 + $0x60] sm:$0xff]  }
  0x24   : > { %496 = vst [vmem:[%s856_s6 + $0x48] sm:$0xff] %v464_v33  ;;  %v466_v42 = vmax.f32 %v434_v34, 0.0  ;;  %v341_v43 = vadd.f32 %v830_v1, %v305_v35  ;;  %v695_v44 = vunpack.c.h.bf16 %v749_v23  ;;  %v634_v45 = vunpack.c.l.bf16 %v735_v32 }
  0x25   : > { %497 = vst [vmem:[%s856_s6 + $0x50] sm:$0xff] %v465_v38  ;;  %v467_v48 = vmax.f32 %v435_v39, 0.0  ;;  %v436_v49 = vadd.f32 %v691_v26, %v340_v40  ;;  %v306_v50 = vmul.f32 %v825_v0, %v631_v41  ;;  %v698_v51 = vunpack.c.l.bf16 %v750_v37  ;;  %v739_v26 = vld [vmem:[%s815_s21 + $0x60] sm:$0xff]   ;;  %v740_v40 = vld [vmem:[%s815_s21 + $0x68] sm:$0xff]  }
  0x26   : > { %498 = vst [vmem:[%s856_s6 + $0x58] sm:$0xff] %v466_v42  ;;  %v437_v52 = vadd.f32 %v694_v36, %v341_v43  ;;  %v307_v53 = vmul.f32 %v825_v0, %v634_v45  ;;  %v635_v54 = vunpack.c.h.bf16 %v735_v32  ;;  %v699_v55 = vunpack.c.h.bf16 %v750_v37  ;;  %v755_v41 = vld [vmem:[%s820_s24 + $0x68] sm:$0xff]  }
  0x27   : > { %499 = vst [vmem:[%s856_s6 + $0x60] sm:$0xff] %v467_v48  ;;  %v468_v57 = vmax.f32 %v436_v49, 0.0  ;;  %v342_v58 = vadd.f32 %v830_v1, %v306_v50  ;;  %v638_v59 = vunpack.c.l.bf16 %v736_v46  ;;  %v702_v60 = vunpack.c.l.bf16 %v751_v47  ;;  %v741_v50 = vld [vmem:[%s815_s21 + $0x70] sm:$0xff]  }
  0x28   : > { %v469_v62 = vmax.f32 %v437_v52, 0.0  ;;  %v343_v63 = vadd.f32 %v830_v1, %v307_v53  ;;  %v308_v2 = vmul.f32 %v825_v0, %v635_v54  ;;  %v639_v3 = vunpack.c.h.bf16 %v736_v46 }
  0x29   : > { %500 = vst [vmem:[%s856_s6 + $0x68] sm:$0xff] %v468_v57  ;;  %v438_v4 = vadd.f32 %v695_v44, %v342_v58  ;;  %v309_v5 = vmul.f32 %v825_v0, %v638_v59  ;;  %v703_v6 = vunpack.c.h.bf16 %v751_v47  ;;  %v642_v7 = vunpack.c.l.bf16 %v737_v56  ;;  %v756_v59 = vld [vmem:[%s820_s24 + $0x70] sm:$0xff]  }
  0x2a   : > { %501 = vst [vmem:[%s856_s6 + $0x70] sm:$0xff] %v469_v62  ;;  %v439_v8 = vadd.f32 %v698_v51, %v343_v63  ;;  %v344_v9 = vadd.f32 %v830_v1, %v308_v2  ;;  %v310_v10 = vmul.f32 %v825_v0, %v639_v3  ;;  %v706_v11 = vunpack.c.l.bf16 %v752_v61 }
  0x2b   : > { %v470_v13 = vmax.f32 %v438_v4, 0.0  ;;  %v345_v14 = vadd.f32 %v830_v1, %v309_v5  ;;  %v311_v15 = vmul.f32 %v825_v0, %v642_v7  ;;  %v643_v16 = vunpack.c.h.bf16 %v737_v56 }
  0x2c   : > { %v471_v18 = vmax.f32 %v439_v8, 0.0  ;;  %v440_v19 = vadd.f32 %v699_v55, %v344_v9  ;;  %v346_v20 = vadd.f32 %v830_v1, %v310_v10  ;;  %v707_v21 = vunpack.c.h.bf16 %v752_v61 }
  0x2d   : > { %502 = vst [vmem:[%s856_s6 + $0x78] sm:$0xff] %v470_v13  ;;  %v441_v22 = vadd.f32 %v702_v60, %v345_v14  ;;  %v347_v23 = vadd.f32 %v830_v1, %v311_v15  ;;  %v312_v24 = vmul.f32 %v825_v0, %v643_v16  ;;  %v646_v25 = vunpack.c.l.bf16 %v738_v12 }
  0x2e   : > { %503 = vst [vmem:[%s856_s6 + $0x80] sm:$0xff] %v471_v18  ;;  %v472_v27 = vmax.f32 %v440_v19, 0.0  ;;  %v442_v28 = vadd.f32 %v703_v6, %v346_v20  ;;  %v710_v29 = vunpack.c.l.bf16 %v753_v17  ;;  %v647_v30 = vunpack.c.h.bf16 %v738_v12  ;;  %v742_v6 = vld [vmem:[%s815_s21 + $0x78] sm:$0xff]  }
  0x2f   : > { %v473_v32 = vmax.f32 %v441_v22, 0.0  ;;  %v443_v33 = vadd.f32 %v706_v11, %v347_v23  ;;  %v348_v34 = vadd.f32 %v830_v1, %v312_v24  ;;  %v313_v35 = vmul.f32 %v825_v0, %v646_v25  ;;  %v757_v11 = vld [vmem:[%s820_s24 + $0x78] sm:$0xff]  }
  0x30   : > { %504 = vst [vmem:[%s856_s6 + $0x88] sm:$0xff] %v472_v27  ;;  %v474_v36 = vmax.f32 %v442_v28, 0.0  ;;  %v314_v37 = vmul.f32 %v825_v0, %v647_v30  ;;  %v711_v38 = vunpack.c.h.bf16 %v753_v17  ;;  %v650_v39 = vunpack.c.l.bf16 %v739_v26 }
  0x31   : > { %505 = vst [vmem:[%s856_s6 + $0x90] sm:$0xff] %v473_v32  ;;  %v475_v42 = vmax.f32 %v443_v33, 0.0  ;;  %v444_v43 = vadd.f32 %v707_v21, %v348_v34  ;;  %v349_v44 = vadd.f32 %v830_v1, %v313_v35  ;;  %v714_v45 = vunpack.c.l.bf16 %v754_v31 }
  0x32   : > { %506 = vst [vmem:[%s856_s6 + $0x98] sm:$0xff] %v474_v36  ;;  %v350_v46 = vadd.f32 %v830_v1, %v314_v37  ;;  %v315_v47 = vmul.f32 %v825_v0, %v650_v39  ;;  %v651_v48 = vunpack.c.h.bf16 %v739_v26  ;;  %v715_v49 = vunpack.c.h.bf16 %v754_v31 }
  0x33   : > { %507 = vst [vmem:[%s856_s6 + $0xa0] sm:$0xff] %v475_v42  ;;  %v476_v51 = vmax.f32 %v444_v43, 0.0  ;;  %v445_v52 = vadd.f32 %v710_v29, %v349_v44  ;;  %v654_v53 = vunpack.c.l.bf16 %v740_v40  ;;  %v718_v54 = vunpack.c.l.bf16 %v755_v41 }
  0x34   : > { %v446_v55 = vadd.f32 %v711_v38, %v350_v46  ;;  %v351_v56 = vadd.f32 %v830_v1, %v315_v47  ;;  %v316_v57 = vmul.f32 %v825_v0, %v651_v48  ;;  %v655_v58 = vunpack.c.h.bf16 %v740_v40 }
  0x35   : > { %508 = vst [vmem:[%s856_s6 + $0xa8] sm:$0xff] %v476_v51  ;;  %v477_v60 = vmax.f32 %v445_v52, 0.0  ;;  %v317_v61 = vmul.f32 %v825_v0, %v654_v53  ;;  %v719_v62 = vunpack.c.h.bf16 %v755_v41  ;;  %v658_v63 = vunpack.c.l.bf16 %v741_v50 }
  0x36   : > { %v478_v2 = vmax.f32 %v446_v55, 0.0  ;;  %v447_v3 = vadd.f32 %v714_v45, %v351_v56  ;;  %v352_v4 = vadd.f32 %v830_v1, %v316_v57  ;;  %v318_v5 = vmul.f32 %v825_v0, %v655_v58 }
  0x37   : > { %509 = vst [vmem:[%s856_s6 + $0xb0] sm:$0xff] %v477_v60  ;;  %v353_v7 = vadd.f32 %v830_v1, %v317_v61  ;;  %v319_v8 = vmul.f32 %v825_v0, %v658_v63  ;;  %v722_v9 = vunpack.c.l.bf16 %v756_v59  ;;  %v659_v10 = vunpack.c.h.bf16 %v741_v50 }
  0x38   : > { %510 = vst [vmem:[%s856_s6 + $0xb8] sm:$0xff] %v478_v2  ;;  %v479_v12 = vmax.f32 %v447_v3, 0.0  ;;  %v448_v13 = vadd.f32 %v715_v49, %v352_v4  ;;  %v354_v14 = vadd.f32 %v830_v1, %v318_v5  ;;  %v723_v15 = vunpack.c.h.bf16 %v756_v59 }
  0x39   : > { %v449_v16 = vadd.f32 %v718_v54, %v353_v7  ;;  %v355_v17 = vadd.f32 %v830_v1, %v319_v8  ;;  %v320_v18 = vmul.f32 %v825_v0, %v659_v10  ;;  %v662_v19 = vunpack.c.l.bf16 %v742_v6 }
  0x3a   : > { %511 = vst [vmem:[%s856_s6 + $0xc0] sm:$0xff] %v479_v12  ;;  %v480_v20 = vmax.f32 %v448_v13, 0.0  ;;  %v450_v21 = vadd.f32 %v719_v62, %v354_v14  ;;  %v726_v22 = vunpack.c.l.bf16 %v757_v11  ;;  %v663_v23 = vunpack.c.h.bf16 %v742_v6 }
  0x3b   : > { %v481_v24 = vmax.f32 %v449_v16, 0.0  ;;  %v451_v25 = vadd.f32 %v722_v9, %v355_v17  ;;  %v356_v26 = vadd.f32 %v830_v1, %v320_v18  ;;  %v321_v27 = vmul.f32 %v825_v0, %v662_v19 }
  0x3c   : > { %512 = vst [vmem:[%s856_s6 + $0xc8] sm:$0xff] %v480_v20  ;;  %v482_v28 = vmax.f32 %v450_v21, 0.0  ;;  %v322_v29 = vmul.f32 %v825_v0, %v663_v23  ;;  %v727_v30 = vunpack.c.h.bf16 %v757_v11 }
  0x3d   : > { %513 = vst [vmem:[%s856_s6 + $0xd0] sm:$0xff] %v481_v24  ;;  %v483_v31 = vmax.f32 %v451_v25, 0.0  ;;  %v452_v32 = vadd.f32 %v723_v15, %v356_v26  ;;  %v357_v33 = vadd.f32 %v830_v1, %v321_v27 }
  0x3e   : > { %514 = vst [vmem:[%s856_s6 + $0xd8] sm:$0xff] %v482_v28  ;;  %v358_v34 = vadd.f32 %v830_v1, %v322_v29 }
  0x3f   : > { %515 = vst [vmem:[%s856_s6 + $0xe0] sm:$0xff] %v483_v31  ;;  %v484_v35 = vmax.f32 %v452_v32, 0.0  ;;  %v453_v36 = vadd.f32 %v726_v22, %v357_v33 }
  0x40   : > { %v454_v37 = vadd.f32 %v727_v30, %v358_v34 }
  0x41   : > { %516 = vst [vmem:[%s856_s6 + $0xe8] sm:$0xff] %v484_v35  ;;  %v485_v38 = vmax.f32 %v453_v36, 0.0 }
  0x42   : > { %v486_v39 = vmax.f32 %v454_v37, 0.0 }
  0x43   : > { %517 = vst [vmem:[%s856_s6 + $0xf0] sm:$0xff] %v485_v38 }
  0x44   : > { %518 = vst [vmem:[%s856_s6 + $0xf8] sm:$0xff] %v486_v39 }
  0x45 PF: > { %s14_s15 = sadd.s32 1, %s774_s15  }
  0x46   : > { %p11_p4 = scmp.ge.s32.totalorder %s14_s15, 4  }
  0x48   :  { %13 = sbr.rel (!%p11_p4) target bundleno = 1 (0x1), region = 69 }

// kernel: resnet_block_forward.3
= control target key start
LH: loop header
LB: loop body
LE: loop exit
PB: predicated region body
PF: predicated region fallthrough
CT: control target
= control target key end

     0   :  { %s5223_s18 = smov 0   ;;  %s6484_s0 = inlined_call_operand.vmem [shape: bf16[2,16,16,128], index: 0, kind: input, shape index: {}]   ;;  %s6485_s1 = inlined_call_operand.vmem [shape: bf16[3,384,128], index: 1, kind: input, shape index: {}]   ;;  %s6486_s2 = inlined_call_operand.vmem [shape: f32[1,128], index: 2, kind: input, shape index: {}]   ;;  %s6487_s3 = inlined_call_operand.vmem [shape: f32[1,128], index: 3, kind: input, shape index: {}]   ;;  %s6488_s4 = inlined_call_operand.vmem [shape: bf16[2,16,16,128], index: 4, kind: output, shape index: {0}]   ;;  %s6489_s5 = inlined_call_operand.vmem [shape: f32[2,8,128], index: 5, kind: output, shape index: {1}]  }
   0x1 LB: > { %s3781_s19 = sadd.s32 4294967295, %s5189_s18   ;;  %p3785_p0 = scmp.ge.s32.totalorder %s5189_s18, 1  ;;  %s5189_s18 = sphi %s5223_s18, %s16_s18  }
   0x2   : > { %p190_p1 = scmp.lt.s32.totalorder %s5189_s18, 3 }
   0x4   : > { %p191_p2 = pnand %p3785_p0, %p190_p1 }
   0x6   : > { %194 = sbr.rel (%p191_p2) target bundleno = 796 (0x31c), region = 36 }
   0xb   : > { %v4882_v0 = vld [vmem:[%s6485_s1 + $0xf8] sm:$0xff]  ;;  %p222_p3 = scmp.lt.s32.totalorder %s3781_s19, 1  ;;  %vm447_vm0 = vcmask 1040384   ;;  %vm448_vm1 = vsmask.f32 256  ;;  %v4881_v1 = vld [vmem:[%s6485_s1 + $0xf0] sm:$0xff] }
   0xc   : > { %1775 = vmatpush.bf16.msra.mxu0 %v4882_v0  ;;  %5145 = vmatpush.bf16.msra.mxu1 %v4882_v0  ;;  %v5243_v2 = vld [vmem:[%s6486_s2] ss:$0 sm:$0xff]  ;;  %vm5246_vm2 = vmand %vm447_vm0, %vm448_vm1  ;;  %v450_v4 = vld [vmem:[#allocation2 + $0x18] sm:$0x1]  ;;  %vm498_vm3 = vsmask.f32 4368 }
   0xd   : > { %s6623_s19 = smov (!%p222_p3, %s3781_s19), 1  ;;  %5146 = vmatpush.bf16.msra.mxu2 %v4882_v0  ;;  %5147 = vmatpush.bf16.msra.mxu3 %v4882_v0  ;;  %v5260_v5 = vld [vmem:[%s6487_s3] ss:$0 sm:$0xff]  ;;  %v451_v6 = vsel %vm5246_vm2, 0, %v450_v4  ;;  %v462_v7 = vld [vmem:[#allocation2 + $0x78] sm:$0x1]  ;;  %vm5333_vm6 = vmor %vm448_vm1, %vm498_vm3 }
   0xe   : > { %s4753_s24 = sshll.u32 %s6623_s19, 7  ;;  %v4880_v8 = vld [vmem:[%s6485_s1 + $0xe8] sm:$0xff]  ;;  %452 = vst [vmem:[#allocation2 + $0x18] sm:$0x1] %v451_v6  ;;  %v463_v11 = vsel %vm5246_vm2, 0, %v462_v7  ;;  %vm788_vm4 = vcmask 1043456  }
   0xf   : > { %s5255_s29 = scalar_lea.vmem %s6484_s0, %s4753_s24  ;;  %vm789_vm5 = vsmask.f32 7938  ;;  %464 = vst [vmem:[#allocation2 + $0x78] sm:$0x1] %v463_v11  ;;  %v474_v17 = vld [vmem:[#allocation2 + $0xd8] sm:$0x1]  ;;  %s6424_s25 = scalar_lea.vmem %s6488_s4, %s4753_s24 }
  0x10   : > { %1776 = vmatpush.bf16.msra.mxu0 %v4881_v1  ;;  %5148 = vmatpush.bf16.msra.mxu1 %v4881_v1  ;;  %v4972_v9 = vld [vmem:[%s5255_s29] sm:$0xff]   ;;  %v475_v21 = vsel %vm5246_vm2, 0, %v474_v17  ;;  %v486_v23 = vld [vmem:[#allocation2 + $0x138] sm:$0x1]  ;;  %v5291_v37 = vld [vmem:[%s5255_s29 + $0x8] sm:$0xff]   ;;  %vm1099_vm12 = vcmask 1043459  }
  0x11   : > { %v5118_v10 = vld [vmem:[%s5255_s29 + $0x20] sm:$0xff]   ;;  %5149 = vmatpush.bf16.msra.mxu2 %v4881_v1  ;;  %5150 = vmatpush.bf16.msra.mxu3 %v4881_v1  ;;  %v4973_v12 = vunpack.c.l.bf16 %v4972_v9  ;;  %v4974_v13 = vunpack.c.h.bf16 %v4972_v9  ;;  %476 = vst [vmem:[#allocation2 + $0xd8] sm:$0x1] %v475_v21  ;;  %v487_v36 = vsel %vm5246_vm2, 0, %v486_v23  ;;  %v4878_v46 = vld [vmem:[%s6485_s1 + $0xd8] sm:$0xff]  ;;  %v4977_v50 = vunpack.c.l.bf16 %v5291_v37  ;;  %v4877_v55 = vld [vmem:[%s6485_s1 + $0xd0] sm:$0xff] }
  0x12   : > { %v4989_v14 = vunpack.c.l.bf16 %v5118_v10  ;;  %v4990_v15 = vunpack.c.h.bf16 %v5118_v10  ;;  %v5122_v16 = vld [vmem:[%s5255_s29 + $0x40] sm:$0xff]   ;;  %488 = vst [vmem:[#allocation2 + $0x138] sm:$0x1] %v487_v36  ;;  %vm5346_vm7 = vmand %vm788_vm4, %vm789_vm5  ;;  %vm855_vm8 = vsmask.f32 3328  ;;  %s3790_s24 = sshll.u32 %s6623_s19, 3 }
  0x13   : > { %v5126_v18 = vld [vmem:[%s5255_s29 + $0x60] sm:$0xff]   ;;  %v5005_v19 = vunpack.c.l.bf16 %v5122_v16  ;;  %v5006_v20 = vunpack.c.h.bf16 %v5122_v16  ;;  %v306_v24 = vmul.f32 %v5243_v2, %v4973_v12  ;;  %v307_v25 = vmul.f32 %v5243_v2, %v4974_v13  ;;  %vm5921_vm11 = vmand %vm788_vm4, %vm855_vm8  ;;  %v1036_v61 = vld [vmem:[#allocation2 + $0x2c] sm:$0xf]  ;;  %s6472_s28 = scalar_lea.vmem %s6489_s5, %s3790_s24 }
  0x14   : > { %v5021_v22 = vunpack.c.l.bf16 %v5126_v18  ;;  %v314_v26 = vmul.f32 %v5243_v2, %v4989_v14  ;;  %v315_v27 = vmul.f32 %v5243_v2, %v4990_v15  ;;  %1777 = vmatpush.bf16.msra.mxu0 %v4880_v8  ;;  %5151 = vmatpush.bf16.msra.mxu1 %v4880_v8  ;;  %v4879_v28 = vld [vmem:[%s6485_s1 + $0xe0] sm:$0xff]  ;;  %v5022_v31 = vunpack.c.h.bf16 %v5126_v18 }
  0x15   : > { %v322_v29 = vmul.f32 %v5243_v2, %v5005_v19  ;;  %v323_v30 = vmul.f32 %v5243_v2, %v5006_v20  ;;  %5152 = vmatpush.bf16.msra.mxu2 %v4880_v8  ;;  %5153 = vmatpush.bf16.msra.mxu3 %v4880_v8  ;;  %v341_v33 = vadd.f32 %v5260_v5, %v306_v24  ;;  %v791_v56 = vld [vmem:[#allocation2 + $0x18] sm:$0xf]  ;;  %v453_v24 = vld [vmem:[#allocation2 + $0x30] sm:$0x1]  ;;  %vm856_vm9 = vsmask.f32 7440 }
  0x16   : > { %v330_v32 = vmul.f32 %v5243_v2, %v5021_v22  ;;  %v342_v34 = vadd.f32 %v5260_v5, %v307_v25  ;;  %v349_v35 = vadd.f32 %v5260_v5, %v314_v26  ;;  %v350_v38 = vadd.f32 %v5260_v5, %v315_v27  ;;  %v807_v13 = vld [vmem:[#allocation2 + $0x78] sm:$0xf]  ;;  %v4876_v25 = vld [vmem:[%s6485_s1 + $0xc8] sm:$0xff]  ;;  %vm5903_vm10 = vmor %vm855_vm8, %vm856_vm9 }
  0x17   : > { %v357_v39 = vadd.f32 %v5260_v5, %v322_v29  ;;  %v358_v40 = vadd.f32 %v5260_v5, %v323_v30  ;;  %v5297_v41 = vmul.f32 %v5243_v2, %v5022_v31  ;;  %v5299_v42 = vpack.c.bf16 %v341_v33, %v341_v33  ;;  %v5119_v29 = vld [vmem:[%s5255_s29 + $0x28] sm:$0xff]   ;;  %v5395_v33 = vld [vmem:[#allocation2 + $0x90] sm:$0x1] }
  0x18   : > { %v5301_v43 = vpack.c.bf16 %v342_v34, %v342_v34  ;;  %v5303_v44 = vpack.c.bf16 %v349_v35, %v349_v35  ;;  %v5306_v45 = vadd.f32 %v5260_v5, %v330_v32  ;;  %1778 = vmatpush.bf16.msra.mxu0 %v4879_v28  ;;  %5154 = vmatpush.bf16.msra.mxu1 %v4879_v28  ;;  %v823_v19 = vld [vmem:[#allocation2 + $0xd8] sm:$0xf]  ;;  %v4978_v35 = vunpack.c.h.bf16 %v5291_v37  ;;  %v4875_v37 = vld [vmem:[%s6485_s1 + $0xc0] sm:$0xff] }
  0x19   : > { %v5311_v47 = vpack.c.bf16 %v350_v38, %v350_v38  ;;  %v5313_v48 = vpack.c.bf16 %v357_v39, %v357_v39  ;;  %v5315_v49 = vpack.c.bf16 %v358_v40, %v358_v40  ;;  %5155 = vmatpush.bf16.msra.mxu2 %v4879_v28  ;;  %5156 = vmatpush.bf16.msra.mxu3 %v4879_v28  ;;  %v501_v51 = vshrl.u32 %v5299_v42, 16 }
  0x1a   : > { %v504_v52 = vshll.u32 %v5299_v42, 16  ;;  %v6538_v53 = vshrl.u32 %v5301_v43, 16  ;;  %v512_v54 = vshll.u32 %v5301_v43, 16  ;;  %415 = vst [vmem:[#allocation2 + $0x1c] sm:$0xf] %v5299_v42  ;;  %v6517_v57 = vshrl.u32 %v5303_v44, 16 }
  0x1b   : > { %416 = vst [vmem:[#allocation2 + $0x28] sm:$0xf] %v5301_v43  ;;  %v6512_v58 = vshll.u32 %v5303_v44, 16  ;;  %v6519_v59 = vshrl.u32 %v5311_v47, 16  ;;  %v6522_v60 = vshll.u32 %v5311_v47, 16  ;;  %v503_v62 = vrot.slane %v501_v51, 7 }
  0x1c   : > { %v511_v63 = vrot.slane %v6538_v53, 7  ;;  %423 = vst [vmem:[#allocation2 + $0x7c] sm:$0xf] %v5303_v44  ;;  %v6503_v0 = vshrl.u32 %v5313_v48, 16  ;;  %v6501_v1 = vshll.u32 %v5313_v48, 16  ;;  %1779 = vmatpush.bf16.msra.mxu0 %v4878_v46  ;;  %5157 = vmatpush.bf16.msra.mxu1 %v4878_v46  ;;  %v567_v6 = vrot.slane %v6517_v57, 7 }
  0x1d   : > { %v575_v7 = vrot.slane %v6519_v59, 7  ;;  %424 = vst [vmem:[#allocation2 + $0x88] sm:$0xf] %v5311_v47  ;;  %v6504_v8 = vshrl.u32 %v5315_v49, 16  ;;  %v6505_v9 = vshll.u32 %v5315_v49, 16  ;;  %5158 = vmatpush.bf16.msra.mxu2 %v4878_v46  ;;  %5159 = vmatpush.bf16.msra.mxu3 %v4878_v46  ;;  %v506_v10 = vor.u32 %v504_v52, %v503_v62  ;;  %v5410_v46 = vld [vmem:[%s5255_s29 + $0x48] sm:$0xff]  }
  0x1e   : > { %v507_v11 = vrot.slane %v503_v62, 4  ;;  %v514_v12 = vor.u32 %v512_v54, %v511_v63  ;;  %v631_v14 = vrot.slane %v6503_v0, 7  ;;  %431 = vst [vmem:[#allocation2 + $0xdc] sm:$0xf] %v5313_v48  ;;  %v570_v15 = vor.u32 %v6512_v58, %v567_v6  ;;  %v4954_v42 = vld [vmem:[%s6485_s1 + $0x1b8] sm:$0xff] }
  0x1f   : > { %v571_v16 = vrot.slane %v567_v6, 4  ;;  %v578_v17 = vor.u32 %v6522_v60, %v575_v7  ;;  %v639_v18 = vrot.slane %v6504_v8, 7  ;;  %432 = vst [vmem:[#allocation2 + $0xe8] sm:$0xf] %v5315_v49  ;;  %v792_v21 = vsel %vm5346_vm7, %v506_v10, %v791_v56 }
  0x20   : > { %v515_v20 = vsel %vm5333_vm6, %v507_v11, %v514_v12  ;;  %v634_v22 = vor.u32 %v6501_v1, %v631_v14  ;;  %v635_v23 = vrot.slane %v631_v14, 4  ;;  %1780 = vmatpush.bf16.msra.mxu0 %v4877_v55  ;;  %5160 = vmatpush.bf16.msra.mxu1 %v4877_v55  ;;  %793 = vst [vmem:[#allocation2 + $0x18] sm:$0xf] %v792_v21  ;;  %v454_v38 = vsel %vm5246_vm2, 0, %v453_v24  ;;  %v4810_v11 = vld [vmem:[%s6485_s1 + $0x38] sm:$0xff] }
  0x21   : > { %v579_v26 = vsel %vm5333_vm6, %v571_v16, %v578_v17  ;;  %v808_v27 = vsel %vm5346_vm7, %v570_v15, %v807_v13  ;;  %v642_v28 = vor.u32 %v6505_v9, %v639_v18  ;;  %5161 = vmatpush.bf16.msra.mxu2 %v4877_v55  ;;  %5162 = vmatpush.bf16.msra.mxu3 %v4877_v55  ;;  %v4994_v62 = vunpack.c.h.bf16 %v5119_v29  ;;  %v839_v13 = vld [vmem:[#allocation2 + $0x138] sm:$0xf] }
  0x22   : > { %794 = vst [vmem:[#allocation2 + $0x24] sm:$0xf] %v515_v20  ;;  %v824_v30 = vsel %vm5346_vm7, %v634_v22, %v823_v19  ;;  %v366_v31 = vadd.f32 %v5260_v5, %v5297_v41  ;;  %v5393_v32 = vpack.c.bf16 %v5306_v45, %v5306_v45  ;;  %v308_v36 = vmul.f32 %v5243_v2, %v4977_v50  ;;  %v4898_v50 = vld [vmem:[%s6485_s1 + $0x178] sm:$0xff] }
  0x23   : > { %809 = vst [vmem:[#allocation2 + $0x78] sm:$0xf] %v808_v27  ;;  %v643_v34 = vsel %vm5333_vm6, %v635_v23, %v642_v28  ;;  %v4993_v45 = vunpack.c.l.bf16 %v5119_v29  ;;  %v309_v55 = vmul.f32 %v5243_v2, %v4978_v35  ;;  %v466_v63 = vsel %vm5246_vm2, 0, %v5395_v33  ;;  %v4890_v14 = vld [vmem:[%s6485_s1 + $0x138] sm:$0xff] }
  0x24   : > { %810 = vst [vmem:[#allocation2 + $0x84] sm:$0xf] %v579_v26  ;;  %v5405_v39 = vpack.c.bf16 %v366_v31, %v366_v31  ;;  %v6491_v40 = vshrl.u32 %v5393_v32, 16  ;;  %v6490_v41 = vshll.u32 %v5393_v32, 16  ;;  %1781 = vmatpush.bf16.msra.mxu0 %v4876_v25  ;;  %5163 = vmatpush.bf16.msra.mxu1 %v4876_v25  ;;  %v343_v56 = vadd.f32 %v5260_v5, %v308_v36  ;;  %v4818_v15 = vld [vmem:[%s6485_s1 + $0x78] sm:$0xff]  ;;  %v4897_v36 = vld [vmem:[%s6485_s1 + $0x170] sm:$0xff] }
  0x25   : > { %825 = vst [vmem:[#allocation2 + $0xd8] sm:$0xf] %v824_v30  ;;  %5164 = vmatpush.bf16.msra.mxu2 %v4876_v25  ;;  %5165 = vmatpush.bf16.msra.mxu3 %v4876_v25  ;;  %v316_v12 = vmul.f32 %v5243_v2, %v4993_v45  ;;  %v344_v16 = vadd.f32 %v5260_v5, %v309_v55  ;;  %v5009_v19 = vunpack.c.l.bf16 %v5410_v46  ;;  %v477_v45 = vld [vmem:[#allocation2 + $0xf0] sm:$0x1]  ;;  %vm1100_vm13 = vsmask.f32 7950 }
  0x26   : > { %826 = vst [vmem:[#allocation2 + $0xe4] sm:$0xf] %v643_v34  ;;  %v695_v6 = vrot.slane %v6491_v40, 7  ;;  %v6492_v7 = vshrl.u32 %v5405_v39, 16  ;;  %v6493_v10 = vshll.u32 %v5405_v39, 16  ;;  %v5439_v17 = vpack.c.bf16 %v343_v56, %v343_v56  ;;  %vm5941_vm14 = vmand %vm1099_vm12, %vm1100_vm13 }
  0x27   : > { %439 = vst [vmem:[#allocation2 + $0x13c] sm:$0xf] %v5393_v32  ;;  %v317_v18 = vmul.f32 %v5243_v2, %v4994_v62  ;;  %v3841_v20 = vld [vmem:[#allocation2 + $0x18] sm:$0xf]  ;;  %v351_v24 = vadd.f32 %v5260_v5, %v316_v12  ;;  %v5449_v26 = vpack.c.bf16 %v344_v16, %v344_v16  ;;  %v5127_v12 = vld [vmem:[%s5255_s29 + $0x68] sm:$0xff]  }
  0x28   : > { %v698_v21 = vor.u32 %v6490_v41, %v695_v6  ;;  %v699_v22 = vrot.slane %v695_v6, 4  ;;  %v703_v23 = vrot.slane %v6492_v7, 7  ;;  %440 = vst [vmem:[#allocation2 + $0x148] sm:$0xf] %v5405_v39  ;;  %1782 = vmatpush.bf16.msra.mxu0 %v4875_v37  ;;  %5166 = vmatpush.bf16.msra.mxu1 %v4875_v37  ;;  %v6537_v27 = vshrl.u32 %v5439_v17, 16 }
  0x29   : > { %v4828_v25 = vld [vmem:[#allocation2 + $0x20] sm:$0xf0]  ;;  %455 = vst [vmem:[#allocation2 + $0x30] sm:$0x1] %v454_v38  ;;  %v6536_v28 = vshll.u32 %v5439_v17, 16  ;;  %v352_v29 = vadd.f32 %v5260_v5, %v317_v18  ;;  %5167 = vmatpush.bf16.msra.mxu2 %v4875_v37  ;;  %5168 = vmatpush.bf16.msra.mxu3 %v4875_v37  ;;  %v4809_v38 = vld [vmem:[%s6485_s1 + $0x30] sm:$0xff]  ;;  %v5468_v62 = vpack.c.bf16 %v351_v24, %v351_v24 }
  0x2a   : > { %v3842_v30 = vor.u32 %v4828_v25, %v3841_v20  ;;  %v3889_v31 = vld [vmem:[#allocation2 + $0x78] sm:$0xf]  ;;  %v706_v34 = vor.u32 %v6493_v10, %v703_v23  ;;  %v840_v35 = vsel %vm5346_vm7, %v698_v21, %v839_v13  ;;  %417 = vst [vmem:[#allocation2 + $0x34] sm:$0xf] %v5439_v17  ;;  %v519_v55 = vrot.slane %v6537_v27, 7  ;;  %v4889_v20 = vld [vmem:[%s6485_s1 + $0x130] sm:$0xff] }
  0x2b   : > { %v4840_v37 = vld [vmem:[#allocation2 + $0x80] sm:$0xf0]  ;;  %841 = vst [vmem:[#allocation2 + $0x138] sm:$0xf] %v840_v35  ;;  %v6534_v56 = vshrl.u32 %v5449_v26, 16  ;;  %v5470_v6 = vpack.c.bf16 %v352_v29, %v352_v29  ;;  %v4808_v35 = vld [vmem:[%s6485_s1 + $0x28] sm:$0xff] }
  0x2c   : > { %1783 = vmatmul.bf16.vlgmr.msra.gmra.mxu0 %v3842_v30  ;;  %v3890_v13 = vor.u32 %v4840_v37, %v3889_v31  ;;  %v3937_v16 = vld [vmem:[#allocation2 + $0xd8] sm:$0xf]  ;;  %v707_v18 = vsel %vm5333_vm6, %v699_v22, %v706_v34  ;;  %1864 = vmatpush.bf16.msrb.mxu1 %v4890_v14  ;;  %418 = vst [vmem:[#allocation2 + $0x40] sm:$0xf] %v5449_v26  ;;  %v523_v24 = vrot.slane %v519_v55, 4  ;;  %v4896_v31 = vld [vmem:[%s6485_s1 + $0x168] sm:$0xff] }
  0x2d   : > { %1953 = vmatpush.bf16.msrb.mxu2 %v4898_v50  ;;  %2442 = vmatpush.bf16.msrb.mxu3 %v4810_v11  ;;  %v6535_v50 = vshll.u32 %v5449_v26, 16  ;;  %v5010_v11 = vunpack.c.h.bf16 %v5410_v46  ;;  %v4852_v21 = vld [vmem:[#allocation2 + $0xe0] sm:$0xf0]  ;;  %842 = vst [vmem:[#allocation2 + $0x144] sm:$0xf] %v707_v18  ;;  %v522_v23 = vor.u32 %v6536_v28, %v519_v55  ;;  %v527_v14 = vrot.slane %v6534_v56, 7 }
  0x2e   : > { %2531 = vmatpush.bf16.msrb.mxu0 %v4818_v15  ;;  %v324_v22 = vmul.f32 %v5243_v2, %v5009_v19  ;;  %1803 = vmatmul.bf16.vlgmr.msra.gmra.mxu1 %v3890_v13  ;;  %v3938_v25 = vor.u32 %v4852_v21, %v3937_v16  ;;  %467 = vst [vmem:[#allocation2 + $0x90] sm:$0x1] %v466_v63  ;;  %v6507_v46 = vshrl.u32 %v5468_v62, 16  ;;  %v6506_v15 = vshll.u32 %v5468_v62, 16  ;;  %v5493_v30 = vld [vmem:[#allocation2 + $0x150] sm:$0x1] }
  0x2f   : > { %v6508_v29 = vshrl.u32 %v5470_v6, 16  ;;  %v530_v19 = vor.u32 %v6535_v50, %v527_v14  ;;  %v6509_v33 = vshll.u32 %v5470_v6, 16  ;;  %425 = vst [vmem:[#allocation2 + $0x94] sm:$0xf] %v5468_v62  ;;  %v325_v63 = vmul.f32 %v5243_v2, %v5010_v11  ;;  %v4888_v14 = vld [vmem:[%s6485_s1 + $0x128] sm:$0xff]  ;;  %v4803_v50 = vld [vmem:[%s6485_s1] sm:$0xff] }
  0x30   : > { %v478_v34 = vsel %vm5246_vm2, 0, %v477_v45  ;;  %1823 = vmatmul.bf16.vlgmr.msra.gmra.mxu2 %v3938_v25  ;;  %v583_v37 = vrot.slane %v6507_v46, 7  ;;  %426 = vst [vmem:[#allocation2 + $0xa0] sm:$0xf] %v5470_v6  ;;  %v359_v45 = vadd.f32 %v5260_v5, %v324_v22  ;;  %v5025_v13 = vunpack.c.l.bf16 %v5127_v12  ;;  %1865 = vmatpush.bf16.msrb.mxu1 %v4889_v20  ;;  %v5116_v25 = vld [vmem:[%s5255_s29 + $0x10] sm:$0xff]  }
  0x31   : > { %1954 = vmatpush.bf16.msrb.mxu2 %v4897_v36  ;;  %2443 = vmatpush.bf16.msrb.mxu3 %v4809_v38  ;;  %v4817_v36 = vld [vmem:[%s6485_s1 + $0x70] sm:$0xff]  ;;  %v591_v55 = vrot.slane %v6508_v29, 7  ;;  %v531_v16 = vsel %vm5333_vm6, %v523_v24, %v530_v19  ;;  %v360_v11 = vadd.f32 %v5260_v5, %v325_v63  ;;  %479 = vst [vmem:[#allocation2 + $0xf0] sm:$0x1] %v478_v34  ;;  %v5026_v21 = vunpack.c.h.bf16 %v5127_v12  ;;  %v4816_v12 = vld [vmem:[%s6485_s1 + $0x68] sm:$0xff] }
  0x32   : > { %v795_v38 = vld [vmem:[#allocation2 + $0x30] sm:$0xf]  ;;  %2532 = vmatpush.bf16.msrb.mxu0 %v4817_v36  ;;  %v3985_v41 = vld [vmem:[#allocation2 + $0x138] sm:$0xf]  ;;  %v586_v20 = vor.u32 %v6506_v15, %v583_v37  ;;  %v587_v22 = vrot.slane %v583_v37, 4  ;;  %v332_v34 = vmul.f32 %v5243_v2, %v5025_v13  ;;  %v4895_v37 = vld [vmem:[%s6485_s1 + $0x160] sm:$0xff] }
  0x33   : > { %v796_v18 = vsel %vm5346_vm7, %v522_v23, %v795_v38  ;;  %v594_v24 = vor.u32 %v6509_v33, %v591_v55  ;;  %v5530_v23 = vpack.c.bf16 %v359_v45, %v359_v45  ;;  %v5535_v19 = vld [vmem:[#allocation2 + $0x48] sm:$0x1]  ;;  %798 = vst [vmem:[#allocation2 + $0x3c] sm:$0xf] %v531_v16  ;;  %v5537_v63 = vpack.c.bf16 %v360_v11, %v360_v11  ;;  %v4807_v55 = vld [vmem:[%s6485_s1 + $0x20] sm:$0xff] }
  0x34   : > { %797 = vst [vmem:[#allocation2 + $0x30] sm:$0xf] %v796_v18  ;;  %v333_v36 = vmul.f32 %v5243_v2, %v5026_v21  ;;  %v490_v38 = vsel %vm5246_vm2, 0, %v5493_v30  ;;  %v4864_v45 = vld [vmem:[#allocation2 + $0x140] sm:$0xf0]  ;;  %1866 = vmatpush.bf16.msrb.mxu1 %v4888_v14  ;;  %v4981_v30 = vunpack.c.l.bf16 %v5116_v25  ;;  %v367_v7 = vadd.f32 %v5260_v5, %v332_v34 }
  0x35   : > { %1955 = vmatpush.bf16.msrb.mxu2 %v4896_v31  ;;  %v595_v16 = vsel %vm5333_vm6, %v587_v22, %v594_v24  ;;  %v6495_v13 = vshrl.u32 %v5530_v23, 16  ;;  %v6494_v18 = vshll.u32 %v5530_v23, 16  ;;  %433 = vst [vmem:[#allocation2 + $0xf4] sm:$0xf] %v5530_v23  ;;  %2444 = vmatpush.bf16.msrb.mxu3 %v4808_v35  ;;  %v3986_v31 = vor.u32 %v4864_v45, %v3985_v41  ;;  %v811_v11 = vld [vmem:[#allocation2 + $0x90] sm:$0xf] }
  0x36   : > { %814 = vst [vmem:[#allocation2 + $0x9c] sm:$0xf] %v595_v16  ;;  %v6496_v21 = vshrl.u32 %v5537_v63, 16  ;;  %v6500_v40 = vshll.u32 %v5537_v63, 16  ;;  %2533 = vmatpush.bf16.msrb.mxu0 %v4816_v12  ;;  %v812_v22 = vsel %vm5346_vm7, %v586_v20, %v811_v11  ;;  %v368_v35 = vadd.f32 %v5260_v5, %v333_v36  ;;  %v492_v15 = vld [vmem:[#allocation2 + $0x168] sm:$0x1] }
  0x37   : > { %v647_v24 = vrot.slane %v6495_v13, 7  ;;  %434 = vst [vmem:[#allocation2 + $0x100] sm:$0xf] %v5537_v63  ;;  %v4982_v41 = vunpack.c.h.bf16 %v5116_v25  ;;  %1843 = vmatmul.bf16.vlgmr.msra.gmra.mxu3 %v3986_v31  ;;  %v5566_v45 = vpack.c.bf16 %v367_v7, %v367_v7  ;;  %v310_v12 = vmul.f32 %v5243_v2, %v4981_v30  ;;  %v5120_v7 = vld [vmem:[%s5255_s29 + $0x30] sm:$0xff]   ;;  %v495_v27 = vld [vmem:[#allocation2 + $0x180] sm:$0x1] }
  0x38   : > { %813 = vst [vmem:[#allocation2 + $0x90] sm:$0xf] %v812_v22  ;;  %v655_v14 = vrot.slane %v6496_v21, 7  ;;  %v457_v20 = vsel %vm5246_vm2, 0, %v5535_v19  ;;  %v827_v16 = vld [vmem:[#allocation2 + $0xf0] sm:$0xf]  ;;  %v5574_v25 = vpack.c.bf16 %v368_v35, %v368_v35 }
  0x39   : > { %1956 = vmatpush.bf16.msrb.mxu2 %v4895_v37  ;;  %v650_v34 = vor.u32 %v6494_v18, %v647_v24  ;;  %v651_v36 = vrot.slane %v647_v24, 4  ;;  %491 = vst [vmem:[#allocation2 + $0x150] sm:$0x1] %v490_v38  ;;  %2445 = vmatpush.bf16.msrb.mxu3 %v4807_v55  ;;  %v311_v31 = vmul.f32 %v5243_v2, %v4982_v41  ;;  %v6497_v30 = vshrl.u32 %v5566_v45, 16 }
  0x3a   : > { %v658_v37 = vor.u32 %v6500_v40, %v655_v14  ;;  %v6499_v19 = vshll.u32 %v5566_v45, 16  ;;  %441 = vst [vmem:[#allocation2 + $0x154] sm:$0xf] %v5566_v45  ;;  %v345_v22 = vadd.f32 %v5260_v5, %v310_v12  ;;  %v4831_v24 = vld [vmem:[#allocation2 + $0x38] sm:$0xf0]  ;;  %v6498_v55 = vshrl.u32 %v5574_v25, 16 }
  0x3b   : > { %v3853_v11 = vld [vmem:[#allocation2 + $0x30] sm:$0xf]  ;;  %v828_v38 = vsel %vm5346_vm7, %v650_v34, %v827_v16  ;;  %v6502_v35 = vshll.u32 %v5574_v25, 16  ;;  %442 = vst [vmem:[#allocation2 + $0x160] sm:$0xf] %v5574_v25  ;;  %v346_v41 = vadd.f32 %v5260_v5, %v311_v31  ;;  %v711_v12 = vrot.slane %v6497_v30, 7 }
  0x3c   : > { %v3854_v14 = vor.u32 %v4831_v24, %v3853_v11  ;;  %v659_v10 = vsel %vm5333_vm6, %v651_v36, %v658_v37  ;;  %829 = vst [vmem:[#allocation2 + $0xf0] sm:$0xf] %v828_v38  ;;  %v5594_v18 = vpack.c.bf16 %v345_v22, %v345_v22  ;;  %v468_v34 = vld [vmem:[#allocation2 + $0xa8] sm:$0x1]  ;;  %v719_v13 = vrot.slane %v6498_v55, 7  ;;  %v5124_v38 = vld [vmem:[%s5255_s29 + $0x50] sm:$0xff]  }
  0x3d   : > { %v4843_v16 = vld [vmem:[#allocation2 + $0x98] sm:$0xf0]  ;;  %830 = vst [vmem:[#allocation2 + $0xfc] sm:$0xf] %v659_v10  ;;  %v5598_v21 = vpack.c.bf16 %v346_v41, %v346_v41  ;;  %v4997_v31 = vunpack.c.l.bf16 %v5120_v7  ;;  %v4998_v11 = vunpack.c.h.bf16 %v5120_v7  ;;  %v714_v36 = vor.u32 %v6499_v19, %v711_v12  ;;  %v480_v10 = vld [vmem:[#allocation2 + $0x108] sm:$0x1] }
  0x3e   : > { %1788 = vmatmul.bf16.gmra.mxu0 %v3854_v14  ;;  %v715_v37 = vrot.slane %v711_v12, 4  ;;  %458 = vst [vmem:[#allocation2 + $0x48] sm:$0x1] %v457_v20  ;;  %v6529_v22 = vshrl.u32 %v5594_v18, 16  ;;  %v6523_v24 = vshll.u32 %v5594_v18, 16  ;;  %v722_v41 = vor.u32 %v6502_v35, %v719_v13  ;;  %v5128_v12 = vld [vmem:[%s5255_s29 + $0x70] sm:$0xff]  }
  0x3f   : > { %v3901_v30 = vld [vmem:[#allocation2 + $0x90] sm:$0xf]  ;;  %v6530_v55 = vshrl.u32 %v5598_v21, 16  ;;  %v6533_v7 = vshll.u32 %v5598_v21, 16  ;;  %419 = vst [vmem:[#allocation2 + $0x4c] sm:$0xf] %v5594_v18  ;;  %v318_v14 = vmul.f32 %v5243_v2, %v4997_v31  ;;  %v319_v1 = vmul.f32 %v5243_v2, %v4998_v11 }
  0x40   : > { %v3902_v20 = vor.u32 %v4843_v16, %v3901_v30  ;;  %v843_v19 = vld [vmem:[#allocation2 + $0x150] sm:$0xf]  ;;  %v535_v40 = vrot.slane %v6529_v22, 7  ;;  %420 = vst [vmem:[#allocation2 + $0x58] sm:$0xf] %v5598_v21  ;;  %v469_v13 = vsel %vm5246_vm2, 0, %v468_v34  ;;  %v723_v35 = vsel %vm5333_vm6, %v715_v37, %v722_v41 }
  0x41   : > { %v844_v0 = vsel %vm5346_vm7, %v714_v36, %v843_v19  ;;  %v543_v30 = vrot.slane %v6530_v55, 7  ;;  %v353_v16 = vadd.f32 %v5260_v5, %v318_v14  ;;  %470 = vst [vmem:[#allocation2 + $0xa8] sm:$0x1] %v469_v13  ;;  %v4887_v31 = vld [vmem:[%s6485_s1 + $0x120] sm:$0xff]  ;;  %v4894_v34 = vld [vmem:[%s6485_s1 + $0x158] sm:$0xff]  ;;  %v354_v37 = vadd.f32 %v5260_v5, %v319_v1 }
  0x42   : > { %v4806_v11 = vld [vmem:[%s6485_s1 + $0x18] sm:$0xff]  ;;  %1808 = vmatmul.bf16.gmra.mxu1 %v3902_v20  ;;  %845 = vst [vmem:[#allocation2 + $0x150] sm:$0xf] %v844_v0  ;;  %v538_v19 = vor.u32 %v6523_v24, %v535_v40  ;;  %v539_v36 = vrot.slane %v535_v40, 4  ;;  %v5013_v41 = vunpack.c.l.bf16 %v5124_v38  ;;  %v4815_v14 = vld [vmem:[%s6485_s1 + $0x60] sm:$0xff]  ;;  %v5014_v0 = vunpack.c.h.bf16 %v5124_v38  ;;  %1957 = vmatpush.bf16.msrb.mxu2 %v4894_v34 }
  0x43   : > { %v3949_v13 = vld [vmem:[#allocation2 + $0xf0] sm:$0xf]  ;;  %846 = vst [vmem:[#allocation2 + $0x15c] sm:$0xf] %v723_v35  ;;  %v546_v8 = vor.u32 %v6533_v7, %v543_v30  ;;  %v5642_v9 = vpack.c.bf16 %v353_v16, %v353_v16  ;;  %v481_v20 = vsel %vm5246_vm2, 0, %v480_v10  ;;  %1867 = vmatpush.bf16.msrb.mxu1 %v4887_v31  ;;  %v4886_v1 = vld [vmem:[%s6485_s1 + $0x118] sm:$0xff]  ;;  %v5652_v35 = vpack.c.bf16 %v354_v37, %v354_v37 }
  0x44   : > { %v5650_v40 = vld [vmem:[%s5255_s29 + $0x18] sm:$0xff]   ;;  %v326_v30 = vmul.f32 %v5243_v2, %v5013_v41  ;;  %482 = vst [vmem:[#allocation2 + $0x108] sm:$0x1] %v481_v20  ;;  %v5029_v16 = vunpack.c.l.bf16 %v5128_v12  ;;  %v5030_v38 = vunpack.c.h.bf16 %v5128_v12  ;;  %2446 = vmatpush.bf16.msrb.mxu3 %v4806_v11  ;;  %2534 = vmatpush.bf16.msrb.mxu0 %v4815_v14  ;;  %v4893_v10 = vld [vmem:[%s6485_s1 + $0x150] sm:$0xff] }
  0x45   : > { %v4855_v46 = vld [vmem:[#allocation2 + $0xf8] sm:$0xf0]  ;;  %v4805_v31 = vld [vmem:[%s6485_s1 + $0x10] sm:$0xff]  ;;  %v547_v37 = vsel %vm5333_vm6, %v539_v36, %v546_v8  ;;  %v799_v29 = vld [vmem:[#allocation2 + $0x48] sm:$0xf]  ;;  %v6510_v41 = vshrl.u32 %v5642_v9, 16  ;;  %v4986_v58 = vunpack.c.h.bf16 %v5650_v40 }
  0x46   : > { %v3950_v34 = vor.u32 %v4855_v46, %v3949_v13  ;;  %v6513_v20 = vshll.u32 %v5642_v9, 16  ;;  %427 = vst [vmem:[#allocation2 + $0xac] sm:$0xf] %v5642_v9  ;;  %v800_v12 = vsel %vm5346_vm7, %v538_v19, %v799_v29  ;;  %v6511_v11 = vshrl.u32 %v5652_v35, 16  ;;  %v4814_v8 = vld [vmem:[%s6485_s1 + $0x58] sm:$0xff]  ;;  %1958 = vmatpush.bf16.msrb.mxu2 %v4893_v10 }
  0x47   : > { %802 = vst [vmem:[#allocation2 + $0x54] sm:$0xf] %v547_v37  ;;  %v6514_v14 = vshll.u32 %v5652_v35, 16  ;;  %v327_v46 = vmul.f32 %v5243_v2, %v5014_v0  ;;  %v599_v36 = vrot.slane %v6510_v41, 7  ;;  %v361_v13 = vadd.f32 %v5260_v5, %v326_v30  ;;  %1868 = vmatpush.bf16.msrb.mxu1 %v4886_v1 }
  0x48   : > { %1828 = vmatmul.bf16.gmra.mxu2 %v3950_v34  ;;  %801 = vst [vmem:[#allocation2 + $0x48] sm:$0xf] %v800_v12  ;;  %v334_v29 = vmul.f32 %v5243_v2, %v5029_v16  ;;  %v335_v19 = vmul.f32 %v5243_v2, %v5030_v38  ;;  %v607_v37 = vrot.slane %v6511_v11, 7  ;;  %v815_v33 = vld [vmem:[#allocation2 + $0xa8] sm:$0xf]  ;;  %v493_v34 = vsel %vm5246_vm2, 0, %v492_v15  ;;  %2447 = vmatpush.bf16.msrb.mxu3 %v4805_v31 }
  0x49   : > { %428 = vst [vmem:[#allocation2 + $0xb8] sm:$0xf] %v5652_v35  ;;  %v362_v0 = vadd.f32 %v5260_v5, %v327_v46  ;;  %v4985_v12 = vunpack.c.l.bf16 %v5650_v40  ;;  %v3997_v30 = vld [vmem:[#allocation2 + $0x150] sm:$0xf]  ;;  %v602_v16 = vor.u32 %v6513_v20, %v599_v36  ;;  %v603_v38 = vrot.slane %v599_v36, 4  ;;  %2535 = vmatpush.bf16.msrb.mxu0 %v4814_v8  ;;  %v5121_v31 = vld [vmem:[%s5255_s29 + $0x38] sm:$0xff]  }
  0x4a   : > { %v5688_v41 = vpack.c.bf16 %v361_v13, %v361_v13  ;;  %v369_v11 = vadd.f32 %v5260_v5, %v334_v29  ;;  %494 = vst [vmem:[#allocation2 + $0x168] sm:$0x1] %v493_v34  ;;  %v4867_v46 = vld [vmem:[#allocation2 + $0x158] sm:$0xf0]  ;;  %v610_v15 = vor.u32 %v6514_v14, %v607_v37  ;;  %v370_v10 = vadd.f32 %v5260_v5, %v335_v19  ;;  %v459_v34 = vld [vmem:[#allocation2 + $0x60] sm:$0x1] }
  0x4b   : > { %v5693_v1 = vpack.c.bf16 %v362_v0, %v362_v0  ;;  %v3998_v20 = vor.u32 %v4867_v46, %v3997_v30  ;;  %v816_v36 = vsel %vm5346_vm7, %v602_v16, %v815_v33  ;;  %v831_v40 = vld [vmem:[#allocation2 + $0x108] sm:$0xf]  ;;  %v312_v46 = vmul.f32 %v5243_v2, %v4985_v12 }
  0x4c   : > { %v6515_v13 = vshrl.u32 %v5688_v41, 16  ;;  %v6518_v29 = vshll.u32 %v5688_v41, 16  ;;  %435 = vst [vmem:[#allocation2 + $0x10c] sm:$0xf] %v5688_v41  ;;  %v611_v37 = vsel %vm5333_vm6, %v603_v38, %v610_v15  ;;  %v5707_v0 = vpack.c.bf16 %v369_v11, %v369_v11 }
  0x4d   : > { %817 = vst [vmem:[#allocation2 + $0xa8] sm:$0xf] %v816_v36  ;;  %v6516_v19 = vshrl.u32 %v5693_v1, 16  ;;  %v6521_v8 = vshll.u32 %v5693_v1, 16  ;;  %1848 = vmatmul.bf16.gmra.mxu3 %v3998_v20  ;;  %v5711_v16 = vpack.c.bf16 %v370_v10, %v370_v10  ;;  %v313_v38 = vmul.f32 %v5243_v2, %v4986_v58 }
  0x4e   : > { %v4834_v33 = vld [vmem:[#allocation2 + $0x50] sm:$0xf0]  ;;  %818 = vst [vmem:[#allocation2 + $0xb4] sm:$0xf] %v611_v37  ;;  %v663_v30 = vrot.slane %v6515_v13, 7  ;;  %v6520_v11 = vshrl.u32 %v5707_v0, 16  ;;  %v5001_v20 = vunpack.c.l.bf16 %v5121_v31  ;;  %v5002_v14 = vunpack.c.h.bf16 %v5121_v31 }
  0x4f   : > { %v3865_v15 = vld [vmem:[#allocation2 + $0x48] sm:$0xf]  ;;  %v671_v36 = vrot.slane %v6516_v19, 7  ;;  %436 = vst [vmem:[#allocation2 + $0x118] sm:$0xf] %v5693_v1  ;;  %v6524_v12 = vshll.u32 %v5707_v0, 16  ;;  %v348_v59 = vadd.f32 %v5260_v5, %v313_v38 }
  0x50   : > { %v3866_v37 = vor.u32 %v4834_v33, %v3865_v15  ;;  %v666_v13 = vor.u32 %v6518_v29, %v663_v30  ;;  %v667_v10 = vrot.slane %v663_v30, 4  ;;  %443 = vst [vmem:[#allocation2 + $0x16c] sm:$0xf] %v5707_v0  ;;  %v727_v19 = vrot.slane %v6520_v11, 7  ;;  %v471_v33 = vld [vmem:[#allocation2 + $0xc0] sm:$0x1] }
  0x51   : > { %v674_v58 = vor.u32 %v6521_v8, %v671_v36  ;;  %v6525_v57 = vshrl.u32 %v5711_v16, 16  ;;  %v6526_v31 = vshll.u32 %v5711_v16, 16  ;;  %v847_v30 = vld [vmem:[#allocation2 + $0x168] sm:$0xf]  ;;  %444 = vst [vmem:[#allocation2 + $0x178] sm:$0xf] %v5711_v16  ;;  %v347_v29 = vadd.f32 %v5260_v5, %v312_v46 }
  0x52   : > { %1793 = vmatmul.bf16.gmra.mxu0 %v3866_v37  ;;  %v832_v15 = vsel %vm5346_vm7, %v666_v13, %v831_v40  ;;  %v460_v36 = vsel %vm5246_vm2, 0, %v459_v34  ;;  %v5125_v11 = vld [vmem:[%s5255_s29 + $0x58] sm:$0xff]   ;;  %v730_v37 = vor.u32 %v6524_v12, %v727_v19  ;;  %v731_v60 = vrot.slane %v727_v19, 4 }
  0x53   : > { %v675_v8 = vsel %vm5333_vm6, %v667_v10, %v674_v58  ;;  %833 = vst [vmem:[#allocation2 + $0x108] sm:$0xf] %v832_v15  ;;  %v735_v13 = vrot.slane %v6525_v57, 7  ;;  %v5743_v46 = vpack.c.bf16 %v347_v29, %v347_v29  ;;  %v5745_v38 = vpack.c.bf16 %v348_v59, %v348_v59  ;;  %v5749_v10 = vld [vmem:[#allocation2 + $0x120] sm:$0x1]  ;;  %v5761_v57 = vld [vmem:[%s5255_s29 + $0x78] sm:$0xff]  }
  0x54   : > { %v3913_v40 = vld [vmem:[#allocation2 + $0xa8] sm:$0xf]  ;;  %834 = vst [vmem:[#allocation2 + $0x114] sm:$0xf] %v675_v8  ;;  %v320_v34 = vmul.f32 %v5243_v2, %v5001_v20  ;;  %v321_v24 = vmul.f32 %v5243_v2, %v5002_v14  ;;  %v848_v15 = vsel %vm5346_vm7, %v730_v37, %v847_v30  ;;  %v472_v29 = vsel %vm5246_vm2, 0, %v471_v33 }
  0x55   : > { %v4846_v58 = vld [vmem:[#allocation2 + $0xb0] sm:$0xf0]  ;;  %v738_v19 = vor.u32 %v6526_v31, %v735_v13  ;;  %461 = vst [vmem:[#allocation2 + $0x60] sm:$0x1] %v460_v36  ;;  %v5017_v8 = vunpack.c.l.bf16 %v5125_v11  ;;  %v6527_v20 = vshrl.u32 %v5743_v46, 16  ;;  %v6531_v14 = vshll.u32 %v5743_v46, 16 }
  0x56   : > { %v3914_v59 = vor.u32 %v4846_v58, %v3913_v40  ;;  %849 = vst [vmem:[#allocation2 + $0x168] sm:$0xf] %v848_v15  ;;  %v6528_v12 = vshrl.u32 %v5745_v38, 16  ;;  %v6532_v30 = vshll.u32 %v5745_v38, 16  ;;  %v355_v33 = vadd.f32 %v5260_v5, %v320_v34  ;;  %v4892_v34 = vld [vmem:[%s6485_s1 + $0x148] sm:$0xff] }
  0x57   : > { %v739_v13 = vsel %vm5333_vm6, %v731_v60, %v738_v19  ;;  %421 = vst [vmem:[#allocation2 + $0x64] sm:$0xf] %v5743_v46  ;;  %v356_v36 = vadd.f32 %v5260_v5, %v321_v24  ;;  %v551_v37 = vrot.slane %v6527_v20, 7  ;;  %v5018_v58 = vunpack.c.h.bf16 %v5125_v11  ;;  %v4885_v60 = vld [vmem:[%s6485_s1 + $0x110] sm:$0xff]  ;;  %v4804_v19 = vld [vmem:[%s6485_s1 + $0x8] sm:$0xff]  ;;  %1959 = vmatpush.bf16.msrb.mxu2 %v4892_v34 }
  0x58   : > { %1813 = vmatmul.bf16.gmra.mxu1 %v3914_v59  ;;  %850 = vst [vmem:[#allocation2 + $0x174] sm:$0xf] %v739_v13  ;;  %v559_v40 = vrot.slane %v6528_v12, 7  ;;  %v328_v15 = vmul.f32 %v5243_v2, %v5017_v8  ;;  %v5781_v5 = vpack.c.bf16 %v355_v33, %v355_v33  ;;  %v484_v11 = vsel %vm5246_vm2, 0, %v5749_v10  ;;  %v4813_v8 = vld [vmem:[%s6485_s1 + $0x50] sm:$0xff]  ;;  %v4884_v59 = vld [vmem:[%s6485_s1 + $0x108] sm:$0xff]  ;;  %2448 = vmatpush.bf16.msrb.mxu3 %v4804_v19 }
  0x59   : > { %422 = vst [vmem:[#allocation2 + $0x70] sm:$0xf] %v5745_v38  ;;  %v5783_v24 = vpack.c.bf16 %v356_v36, %v356_v36  ;;  %v5033_v2 = vunpack.c.l.bf16 %v5761_v57  ;;  %v554_v33 = vor.u32 %v6531_v14, %v551_v37  ;;  %v555_v36 = vrot.slane %v551_v37, 4  ;;  %v5181_v31 = vld [vmem:[%s6486_s2] ss:$0 sm:$0xff]  ;;  %1869 = vmatpush.bf16.msrb.mxu1 %v4885_v60  ;;  %2536 = vmatpush.bf16.msrb.mxu0 %v4813_v8 }
  0x5a   : > { %v3961_v13 = vld [vmem:[#allocation2 + $0x108] sm:$0xf]  ;;  %v562_v10 = vor.u32 %v6532_v30, %v559_v40  ;;  %473 = vst [vmem:[#allocation2 + $0xc0] sm:$0x1] %v472_v29  ;;  %v329_v20 = vmul.f32 %v5181_v31, %v5018_v58  ;;  %v4891_v12 = vld [vmem:[%s6485_s1 + $0x140] sm:$0xff]  ;;  %v613_v55 = vshrl.u32 %v5781_v5, 16 }
  0x5b   : > { %v4858_v22 = vld [vmem:[#allocation2 + $0x110] sm:$0xf0]  ;;  %v616_v14 = vshll.u32 %v5781_v5, 16  ;;  %v621_v37 = vshrl.u32 %v5783_v24, 16  ;;  %v624_v40 = vshll.u32 %v5783_v24, 16  ;;  %v336_v28 = vmul.f32 %v5181_v31, %v5033_v2  ;;  %1960 = vmatpush.bf16.msrb.mxu2 %v4891_v12 }
  0x5c   : > { %v3962_v29 = vor.u32 %v4858_v22, %v3961_v13  ;;  %v563_v58 = vsel %vm5333_vm6, %v555_v36, %v562_v10  ;;  %v803_v60 = vld [vmem:[#allocation2 + $0x60] sm:$0xf]  ;;  %429 = vst [vmem:[#allocation2 + $0xc4] sm:$0xf] %v5781_v5  ;;  %v4812_v22 = vld [vmem:[%s6485_s1 + $0x48] sm:$0xff]  ;;  %v615_v13 = vrot.slane %v613_v55, 7  ;;  %2449 = vmatpush.bf16.msrb.mxu3 %v4803_v50 }
  0x5d   : > { %v5182_v30 = vld [vmem:[%s6487_s3] ss:$0 sm:$0xff]  ;;  %v4009_v34 = vld [vmem:[#allocation2 + $0x168] sm:$0xf]  ;;  %v804_v19 = vsel %vm5346_vm7, %v554_v33, %v803_v60  ;;  %806 = vst [vmem:[#allocation2 + $0x6c] sm:$0xf] %v563_v58  ;;  %1870 = vmatpush.bf16.msrb.mxu1 %v4884_v59  ;;  %2537 = vmatpush.bf16.msrb.mxu0 %v4812_v22 }
  0x5e   : > { %v363_v7 = vadd.f32 %v5182_v30, %v328_v15  ;;  %v364_v56 = vadd.f32 %v5182_v30, %v329_v20  ;;  %v623_v15 = vrot.slane %v621_v37, 7  ;;  %v5034_v20 = vunpack.c.h.bf16 %v5761_v57  ;;  %1833 = vmatmul.bf16.gmra.mxu2 %v3962_v29  ;;  %805 = vst [vmem:[#allocation2 + $0x60] sm:$0xf] %v804_v19 }
  0x5f   : > { %v4870_v53 = vld [vmem:[#allocation2 + $0x170] sm:$0xf0]  ;;  %v618_v33 = vor.u32 %v616_v14, %v615_v13  ;;  %v619_v58 = vrot.slane %v615_v13, 4  ;;  %430 = vst [vmem:[#allocation2 + $0xd0] sm:$0xf] %v5783_v24  ;;  %v371_v59 = vadd.f32 %v5182_v30, %v336_v28  ;;  %v496_v28 = vsel %vm5246_vm2, 0, %v495_v27  ;;  %3223 = vmatpush.bf16.msra.mxu2 %v4954_v42 }
  0x60   : > { %v5831_v36 = vpack.c.bf16 %v363_v7, %v363_v7  ;;  %v5833_v10 = vpack.c.bf16 %v364_v56, %v364_v56  ;;  %v626_v60 = vor.u32 %v624_v40, %v623_v15  ;;  %v337_v57 = vmul.f32 %v5181_v31, %v5034_v20  ;;  %v4883_v7 = vld [vmem:[%s6485_s1 + $0x100] sm:$0xff]  ;;  %485 = vst [vmem:[#allocation2 + $0x120] sm:$0x1] %v484_v11 }
  0x61   : > { %v4010_v56 = vor.u32 %v4870_v53, %v4009_v34  ;;  %v819_v13 = vld [vmem:[#allocation2 + $0xc0] sm:$0xf]  ;;  %1871 = vmatpush.bf16.msrb.mxu1 %v4883_v7  ;;  %497 = vst [vmem:[#allocation2 + $0x180] sm:$0x1] %v496_v28 }
  0x62   : > { %v6544_v2 = vshrl.u32 %v5831_v36, 16  ;;  %v6543_v8 = vshll.u32 %v5831_v36, 16  ;;  %v6545_v29 = vshrl.u32 %v5833_v10, 16  ;;  %v627_v19 = vsel %vm5333_vm6, %v619_v58, %v626_v60  ;;  %437 = vst [vmem:[#allocation2 + $0x124] sm:$0xf] %v5831_v36  ;;  %v4811_v53 = vld [vmem:[%s6485_s1 + $0x40] sm:$0xff] }
  0x63   : > { %v688_v31 = vshll.u32 %v5833_v10, 16  ;;  %v372_v15 = vadd.f32 %v5182_v30, %v337_v57  ;;  %1853 = vmatmul.bf16.gmra.mxu3 %v4010_v56  ;;  %v820_v12 = vsel %vm5346_vm7, %v618_v33, %v819_v13  ;;  %822 = vst [vmem:[#allocation2 + $0xcc] sm:$0xf] %v627_v19  ;;  %v5861_v30 = vpack.c.bf16 %v371_v59, %v371_v59 }
  0x64   : > { %v679_v50 = vrot.slane %v6544_v2, 7  ;;  %v687_v11 = vrot.slane %v6545_v29, 7  ;;  %821 = vst [vmem:[#allocation2 + $0xc0] sm:$0xf] %v820_v12  ;;  %v4837_v34 = vld [vmem:[#allocation2 + $0x68] sm:$0xf0]  ;;  %2538 = vmatpush.bf16.msrb.mxu0 %v4811_v53 }
  0x65   : > { %v5863_v22 = vpack.c.bf16 %v372_v15, %v372_v15  ;;  %438 = vst [vmem:[#allocation2 + $0x130] sm:$0xf] %v5833_v10  ;;  %v3877_v60 = vld [vmem:[#allocation2 + $0x60] sm:$0xf]  ;;  %v6540_v3 = vshrl.u32 %v5861_v30, 16  ;;  %v6539_v27 = vshll.u32 %v5861_v30, 16 }
  0x66   : > { %v682_v20 = vor.u32 %v6543_v8, %v679_v50  ;;  %v683_v33 = vrot.slane %v679_v50, 4  ;;  %v690_v58 = vor.u32 %v688_v31, %v687_v11  ;;  %v3878_v57 = vor.u32 %v4837_v34, %v3877_v60  ;;  %445 = vst [vmem:[#allocation2 + $0x184] sm:$0xf] %v5861_v30 }
  0x67   : > { %v6541_v56 = vshrl.u32 %v5863_v22, 16  ;;  %v6542_v19 = vshll.u32 %v5863_v22, 16  ;;  %v835_v13 = vld [vmem:[#allocation2 + $0x120] sm:$0xf]  ;;  %v743_v59 = vrot.slane %v6540_v3, 7  ;;  %v858_v15 = vrot.slane %v501_v51, 4 }
  0x68   : > { %v691_v7 = vsel %vm5333_vm6, %v683_v33, %v690_v58  ;;  %1798 = vmatmul.bf16.gmra.mxu0 %v3878_v57  ;;  %v836_v53 = vsel %vm5346_vm7, %v682_v20, %v835_v13  ;;  %446 = vst [vmem:[#allocation2 + $0x190] sm:$0xf] %v5863_v22  ;;  %v859_v50 = vrot.slane %v504_v52, 5  ;;  %v862_v51 = vrot.slane %v512_v54, 5  ;;  %v4962_v52 = vld [vmem:[%s6485_s1 + $0x1f8] sm:$0xff] }
  0x69   : > { %838 = vst [vmem:[#allocation2 + $0x12c] sm:$0xf] %v691_v7  ;;  %v751_v12 = vrot.slane %v6541_v56, 7  ;;  %v746_v28 = vor.u32 %v6539_v27, %v743_v59  ;;  %v747_v34 = vrot.slane %v743_v59, 4  ;;  %v6552_v60 = vshrl.u32 %v5301_v43, 16  ;;  %v4826_v13 = vld [vmem:[%s6485_s1 + $0xb8] sm:$0xff]  ;;  %3312 = vmatpush.bf16.msra.mxu3 %v4962_v52 }
  0x6a   : > { %v4849_v11 = vld [vmem:[#allocation2 + $0xc8] sm:$0xf0]  ;;  %837 = vst [vmem:[#allocation2 + $0x120] sm:$0xf] %v836_v53  ;;  %v860_v58 = vor.u32 %v859_v50, %v858_v15  ;;  %v4970_v43 = vld [vmem:[%s6485_s1 + $0x238] sm:$0xff]  ;;  %v6555_v59 = vshrl.u32 %v5439_v17, 16  ;;  %2620 = vmatpush.bf16.msra.mxu1 %v4826_v13 }
  0x6b   : > { %v3925_v33 = vld [vmem:[#allocation2 + $0xc0] sm:$0xf]  ;;  %v754_v20 = vor.u32 %v6542_v19, %v751_v12  ;;  %v864_v57 = vrot.slane %v6552_v60, 4  ;;  %3401 = vmatpush.bf16.msra.mxu0 %v4970_v43  ;;  %v6560_v52 = vshrl.u32 %v5449_v26, 16  ;;  %v4213_v3 = vld [vmem:[#allocation2 + $0xa8] sm:$0xf] }
  0x6c   : > { %v3926_v7 = vor.u32 %v4849_v11, %v3925_v33  ;;  %v867_v15 = vrot.slane %v6555_v59, 4  ;;  %v851_v12 = vld [vmem:[#allocation2 + $0x180] sm:$0xf]  ;;  %v861_v50 = vrot.slane %v860_v58, 4  ;;  %v5191_v33 = vmov 0  }
  0x6d   : > { %v755_v53 = vsel %vm5333_vm6, %v747_v34, %v754_v20  ;;  %v865_v11 = vor.u32 %v864_v57, %v862_v51  ;;  %405 = vst [vmem:[#allocation2] sm:$0xff] %v5191_v33  ;;  %v852_v60 = vsel %vm5346_vm7, %v746_v28, %v851_v12  ;;  %v6558_v34 = vshll.u32 %v5439_v17, 16  ;;  %v1076_v56 = vld [vmem:[#allocation2 + $0x11c] sm:$0xf]  ;;  %v4795_v54 = vld [vmem:[#allocation2 + $0x140] sm:$0xf0] }
  0x6e   : > { %1818 = vmatmul.bf16.gmra.mxu1 %v3926_v7  ;;  %854 = vst [vmem:[#allocation2 + $0x18c] sm:$0xf] %v755_v53  ;;  %v6559_v58 = vshll.u32 %v5449_v26, 16  ;;  %v863_v4 = vsel %vm5903_vm10, %v861_v50, %v862_v51  ;;  %v873_v7 = vrot.slane %v6560_v52, 4  ;;  %v6561_v12 = vshll.u32 %v5598_v21, 16 }
  0x6f   : > { %v868_v20 = vrot.slane %v6558_v34, 5  ;;  %853 = vst [vmem:[#allocation2 + $0x180] sm:$0xf] %v852_v60  ;;  %v866_v28 = vrot.slane %v865_v11, 4  ;;  %v6562_v60 = vshrl.u32 %v5598_v21, 16 }
  0x70   : > { %v871_v57 = vrot.slane %v6559_v58, 5  ;;  %v4861_v42 = vld [vmem:[#allocation2 + $0x128] sm:$0xf0]  ;;  %1034 = vst [vmem:[#allocation2 + $0x20] sm:$0xf] %v863_v4  ;;  %v880_v34 = vrot.slane %v6561_v12, 5 }
  0x71   : > { %v869_v59 = vor.u32 %v868_v20, %v867_v15  ;;  %v3973_v53 = vld [vmem:[#allocation2 + $0x120] sm:$0xf]  ;;  %v1037_v17 = vsel %vm5921_vm11, %v866_v28, %v1036_v61  ;;  %407 = vst [vmem:[#allocation2 + $0xc] sm:$0xff] %v5191_v33  ;;  %v882_v58 = vrot.slane %v6562_v60, 4  ;;  %v1040_v50 = vld [vmem:[#allocation2 + $0x44] sm:$0xf] }
  0x72   : > { %v874_v43 = vor.u32 %v873_v7, %v871_v57  ;;  %v3974_v51 = vor.u32 %v4861_v42, %v3973_v53  ;;  %1038 = vst [vmem:[#allocation2 + $0x2c] sm:$0xf] %v1037_v17  ;;  %v4827_v42 = vld [vmem:[#allocation2 + $0x1c] sm:$0xf]  ;;  %v3843_v28 = vld [vmem:[#allocation2 + $0x24] sm:$0xf0] }
  0x73   : > { %v870_v13 = vrot.slane %v869_v59, 4  ;;  %406 = vst [vmem:[#allocation2 + $0x8] sm:$0xf] %v5191_v33  ;;  %v883_v61 = vor.u32 %v882_v58, %v880_v34  ;;  %v6565_v60 = vshrl.u32 %v5594_v18, 16 }
  0x74   : > { %v875_v26 = vrot.slane %v874_v43, 4  ;;  %1838 = vmatmul.bf16.gmra.mxu2 %v3974_v51  ;;  %408 = vst [vmem:[#allocation2 + $0x14] sm:$0xf] %v5191_v33  ;;  %v4755_v21 = vld [vmem:[#allocation2 + $0x4] sm:$0xf]  ;;  %v3846_v43 = vor.u32 %v4827_v42, %v3843_v28  ;;  %v6566_v51 = vshll.u32 %v5594_v18, 16 }
  0x75   : > { %v872_v15 = vsel %vm5903_vm10, %v870_v13, %v871_v57  ;;  %v4873_v11 = vld [vmem:[#allocation2 + $0x188] sm:$0xf0]  ;;  %410 = vst [vmem:[#allocation2 + $0x198] sm:$0xff] %v5191_v33  ;;  %v884_v17 = vrot.slane %v883_v61, 4  ;;  %v876_v58 = vrot.slane %v6565_v60, 4 }
  0x76   : > { %v4021_v20 = vld [vmem:[#allocation2 + $0x180] sm:$0xf]  ;;  %411 = vst [vmem:[#allocation2 + $0x1a0] sm:$0xf] %v5191_v33  ;;  %v1041_v7 = vsel %vm5921_vm11, %v875_v26, %v1040_v50  ;;  %v877_v13 = vrot.slane %v6566_v51, 5 }
  0x77   : > { %v4022_v4 = vor.u32 %v4873_v11, %v4021_v20  ;;  %412 = vst [vmem:[#allocation2 + $0x1a4] sm:$0xff] %v5191_v33  ;;  %v6567_v11 = vshll.u32 %v5745_v38, 16  ;;  %v6568_v20 = vshrl.u32 %v5745_v38, 16  ;;  %v4129_v42 = vld [vmem:[#allocation2] sm:$0xf] }
  0x78   : > { %413 = vst [vmem:[#allocation2 + $0x1ac] sm:$0xf] %v5191_v33  ;;  %v4131_v59 = vld [vmem:[#allocation2 + $0xc] sm:$0xf0]  ;;  %v1044_v33 = vld [vmem:[#allocation2 + $0x5c] sm:$0xf]  ;;  %v878_v26 = vor.u32 %v877_v13, %v876_v58 }
  0x79   : > { %1858 = vmatmul.bf16.gmra.mxu3 %v4022_v4  ;;  %v1102_v57 = vld [vmem:[#allocation2 + $0x2c] sm:$0x8]  ;;  %v4134_v53 = vor.u32 %v4755_v21, %v4131_v59  ;;  %1039 = vst [vmem:[#allocation2 + $0x38] sm:$0xf] %v872_v15  ;;  %v1045_v50 = vsel %vm5921_vm11, %v884_v17, %v1044_v33  ;;  %v889_v61 = vrot.slane %v6567_v11, 5  ;;  %v891_v21 = vrot.slane %v6568_v20, 4 }
  0x7a   : > { %v1103_v12 = vsel %vm5941_vm14, 0, %v1102_v57  ;;  %1042 = vst [vmem:[#allocation2 + $0x44] sm:$0xf] %v1041_v7  ;;  %v879_v15 = vrot.slane %v878_v26, 4  ;;  %v3849_v4 = vld [vmem:[#allocation2 + $0x20] sm:$0xf] }
  0x7b   : > { %1104 = vst [vmem:[#allocation2 + $0x2c] sm:$0x8] %v1103_v12  ;;  %2539 = vmatmul.bf16.vlgmr.msrb.gmra.mxu0 %v4134_v53  ;;  %v4756_v28 = vld [vmem:[#allocation2 + $0x8] sm:$0xf0]  ;;  %v892_v59 = vor.u32 %v891_v21, %v889_v61  ;;  %v4758_v12 = vld [vmem:[#allocation2 + $0x1c] sm:$0xf] }
  0x7c   : > { %1046 = vst [vmem:[#allocation2 + $0x5c] sm:$0xf] %v1045_v50  ;;  %v881_v18 = vsel %vm5903_vm10, %v879_v15, %v880_v34  ;;  %v4143_v60 = vld [vmem:[#allocation2 + $0x24] sm:$0xf0]  ;;  %v1048_v38 = vld [vmem:[#allocation2 + $0x74] sm:$0xf]  ;;  %v4130_v58 = vor.u32 %v4756_v28, %v4129_v42 }
  0x7d   : > { %1043 = vst [vmem:[#allocation2 + $0x50] sm:$0xf] %v881_v18  ;;  %v4830_v33 = vld [vmem:[#allocation2 + $0x34] sm:$0xf]  ;;  %v3855_v26 = vld [vmem:[#allocation2 + $0x3c] sm:$0xf0]  ;;  %v4146_v50 = vor.u32 %v4758_v12, %v4143_v60 }
  0x7e   : > { %1872 = vmatmul.bf16.vlgmr.msrb.gmra.mxu1 %v3846_v43  ;;  %v893_v43 = vrot.slane %v892_v59, 4  ;;  %v6569_v15 = vshrl.u32 %v5743_v46, 16  ;;  %v6570_v20 = vshll.u32 %v5743_v46, 16  ;;  %v4961_v42 = vld [vmem:[%s6485_s1 + $0x1f0] sm:$0xff]  ;;  %v3858_v28 = vor.u32 %v4830_v33, %v3855_v26  ;;  %v4141_v33 = vld [vmem:[#allocation2 + $0x18] sm:$0xf] }
  0x7f   : > { %v4969_v46 = vld [vmem:[%s6485_s1 + $0x230] sm:$0xff]  ;;  %3313 = vmatpush.bf16.msra.mxu3 %v4961_v42  ;;  %v6571_v12 = vshll.u32 %v5311_v47, 16  ;;  %v4759_v26 = vld [vmem:[#allocation2 + $0x20] sm:$0xf0] }
  0x80   : > { %v1049_v13 = vsel %vm5921_vm11, %v893_v43, %v1048_v38  ;;  %v885_v11 = vrot.slane %v6569_v15, 4  ;;  %v886_v21 = vrot.slane %v6570_v20, 5  ;;  %3402 = vmatpush.bf16.msra.mxu0 %v4969_v46  ;;  %v6572_v38 = vshrl.u32 %v5311_v47, 16  ;;  %v4761_v15 = vld [vmem:[#allocation2 + $0x34] sm:$0xf] }
  0x81   : > { %v1105_v7 = vld [vmem:[#allocation2 + $0x44] sm:$0x8]  ;;  %1050 = vst [vmem:[#allocation2 + $0x74] sm:$0xf] %v1049_v13  ;;  %v898_v60 = vrot.slane %v6571_v12, 5  ;;  %v4142_v20 = vor.u32 %v4759_v26, %v4141_v33  ;;  %v6574_v46 = vshll.u32 %v5303_v44, 16 }
  0x82   : > { %v4829_v57 = vld [vmem:[#allocation2 + $0x28] sm:$0xf0]  ;;  %v1106_v53 = vsel %vm5941_vm14, 0, %v1105_v7  ;;  %v4825_v7 = vld [vmem:[%s6485_s1 + $0xb0] sm:$0xff]  ;;  %v887_v18 = vor.u32 %v886_v21, %v885_v11  ;;  %v4155_v11 = vld [vmem:[#allocation2 + $0x3c] sm:$0xf0] }
  0x83   : > { %v3850_v17 = vor.u32 %v4829_v57, %v3849_v4  ;;  %1107 = vst [vmem:[#allocation2 + $0x44] sm:$0x8] %v1106_v53  ;;  %v1108_v51 = vld [vmem:[#allocation2 + $0x5c] sm:$0x8]  ;;  %v4953_v4 = vld [vmem:[%s6485_s1 + $0x1b0] sm:$0xff]  ;;  %2621 = vmatpush.bf16.msra.mxu1 %v4825_v7  ;;  %v4158_v42 = vor.u32 %v4761_v15, %v4155_v11 }
  0x84   : > { %v1109_v34 = vsel %vm5941_vm14, 0, %v1108_v51  ;;  %3224 = vmatpush.bf16.msra.mxu2 %v4953_v4  ;;  %v888_v59 = vrot.slane %v887_v18, 4  ;;  %v3861_v57 = vld [vmem:[#allocation2 + $0x38] sm:$0xf]  ;;  %v4833_v4 = vld [vmem:[#allocation2 + $0x4c] sm:$0xf] }
  0x85   : > { %1961 = vmatmul.bf16.vlgmr.msrb.gmra.mxu2 %v3850_v17  ;;  %1110 = vst [vmem:[#allocation2 + $0x5c] sm:$0x8] %v1109_v34  ;;  %v3867_v47 = vld [vmem:[#allocation2 + $0x54] sm:$0xf0]  ;;  %v895_v18 = vrot.slane %v6574_v46, 5  ;;  %v6578_v46 = vshll.u32 %v5468_v62, 16 }
  0x86   : > { %v890_v17 = vsel %vm5903_vm10, %v888_v59, %v889_v61  ;;  %v1052_v61 = vld [vmem:[#allocation2 + $0x8c] sm:$0xf]  ;;  %v3870_v59 = vor.u32 %v4833_v4, %v3867_v47  ;;  %v4762_v15 = vld [vmem:[#allocation2 + $0x38] sm:$0xf0]  ;;  %v4836_v47 = vld [vmem:[#allocation2 + $0x64] sm:$0xf] }
  0x87   : > { %1047 = vst [vmem:[#allocation2 + $0x68] sm:$0xf] %v890_v17  ;;  %v3873_v17 = vld [vmem:[#allocation2 + $0x50] sm:$0xf] }
  0x88   : > { %v1111_v43 = vld [vmem:[#allocation2 + $0x74] sm:$0x8] }
  0x89   : > { %2450 = vmatmul.bf16.vlgmr.msrb.gmra.mxu3 %v4130_v58  ;;  %v900_v58 = vrot.slane %v6572_v38, 4  ;;  %v1112_v51 = vsel %vm5941_vm14, 0, %v1111_v43 }
  0x8a   : > { %v4832_v53 = vld [vmem:[#allocation2 + $0x40] sm:$0xf0]  ;;  %1113 = vst [vmem:[#allocation2 + $0x74] sm:$0x8] %v1112_v51  ;;  %v6575_v51 = vshll.u32 %v5470_v6, 16 }
  0x8b   : > { %2544 = vmatmul.bf16.gmra.mxu0 %v4146_v50  ;;  %v3862_v13 = vor.u32 %v4832_v53, %v3861_v57  ;;  %v901_v34 = vor.u32 %v900_v58, %v898_v60 }
  0x8c   : > { %v4835_v43 = vld [vmem:[#allocation2 + $0x58] sm:$0xf0] }
  0x8d   : > { %v902_v50 = vrot.slane %v901_v34, 4  ;;  %v3874_v33 = vor.u32 %v4835_v43, %v3873_v17  ;;  %v4968_v43 = vld [vmem:[%s6485_s1 + $0x228] sm:$0xff] }
  0x8e   : > { %1877 = vmatmul.bf16.gmra.mxu1 %v3858_v28  ;;  %v6573_v28 = vshrl.u32 %v5303_v44, 16  ;;  %v907_v44 = vrot.slane %v6575_v51, 5  ;;  %3403 = vmatpush.bf16.msra.mxu0 %v4968_v43 }
  0x8f   : > { %v1053_v21 = vsel %vm5921_vm11, %v902_v50, %v1052_v61  ;;  %v4153_v50 = vld [vmem:[#allocation2 + $0x30] sm:$0xf]  ;;  %v4764_v61 = vld [vmem:[#allocation2 + $0x4c] sm:$0xf] }
  0x90   : > { %1054 = vst [vmem:[#allocation2 + $0x8c] sm:$0xf] %v1053_v21  ;;  %v894_v7 = vrot.slane %v6573_v28, 4  ;;  %v4154_v21 = vor.u32 %v4762_v15, %v4153_v50  ;;  %v6579_v50 = vshll.u32 %v5652_v35, 16 }
  0x91   : > { %v4838_v51 = vld [vmem:[#allocation2 + $0x70] sm:$0xf0] }
  0x92   : > { %v896_v57 = vor.u32 %v895_v18, %v894_v7  ;;  %v904_v18 = vrot.slane %v6578_v46, 5  ;;  %v916_v15 = vrot.slane %v6579_v50, 5 }
  0x94   : > { %v897_v53 = vrot.slane %v896_v57, 4  ;;  %v4960_v57 = vld [vmem:[%s6485_s1 + $0x1e8] sm:$0xff] }
  0x95   : > { %1966 = vmatmul.bf16.gmra.mxu2 %v3862_v13  ;;  %v6576_v13 = vshrl.u32 %v5470_v6, 16  ;;  %v6577_v6 = vshrl.u32 %v5468_v62, 16  ;;  %3314 = vmatpush.bf16.msra.mxu3 %v4960_v57  ;;  %v6581_v57 = vshrl.u32 %v5642_v9, 16 }
  0x96   : > { %v899_v12 = vsel %vm5903_vm10, %v897_v53, %v898_v60  ;;  %v1056_v60 = vld [vmem:[#allocation2 + $0xa4] sm:$0xf]  ;;  %v4824_v53 = vld [vmem:[%s6485_s1 + $0xa8] sm:$0xff] }
  0x97   : > { %v1114_v38 = vld [vmem:[#allocation2 + $0x8c] sm:$0x8]  ;;  %1051 = vst [vmem:[#allocation2 + $0x80] sm:$0xf] %v899_v12  ;;  %v909_v34 = vrot.slane %v6576_v13, 4  ;;  %v903_v7 = vrot.slane %v6577_v6, 4  ;;  %2622 = vmatpush.bf16.msra.mxu1 %v4824_v53 }
  0x98   : > { %v1115_v58 = vsel %vm5941_vm14, 0, %v1114_v38  ;;  %v1060_v6 = vld [vmem:[#allocation2 + $0xbc] sm:$0xf]  ;;  %v912_v53 = vrot.slane %v6581_v57, 4 }
  0x99   : > { %2455 = vmatmul.bf16.gmra.mxu3 %v4142_v20  ;;  %1116 = vst [vmem:[#allocation2 + $0x8c] sm:$0x8] %v1115_v58  ;;  %v910_v26 = vor.u32 %v909_v34, %v907_v44  ;;  %v4167_v20 = vld [vmem:[#allocation2 + $0x54] sm:$0xf0]  ;;  %v905_v62 = vor.u32 %v904_v18, %v903_v7  ;;  %v3885_v58 = vld [vmem:[#allocation2 + $0x68] sm:$0xf] }
  0x9a   : > { %v4170_v28 = vor.u32 %v4764_v61, %v4167_v20  ;;  %v3886_v20 = vor.u32 %v4838_v51, %v3885_v58  ;;  %v4839_v18 = vld [vmem:[#allocation2 + $0x7c] sm:$0xf] }
  0x9b   : > { %2549 = vmatmul.bf16.gmra.mxu0 %v4158_v42  ;;  %v911_v11 = vrot.slane %v910_v26, 4  ;;  %v3879_v42 = vld [vmem:[#allocation2 + $0x6c] sm:$0xf0]  ;;  %v906_v38 = vrot.slane %v905_v62, 4 }
  0x9c   : > { %v3882_v17 = vor.u32 %v4836_v47, %v3879_v42  ;;  %v4179_v42 = vld [vmem:[#allocation2 + $0x6c] sm:$0xf0] }
  0x9d   : > { %v1057_v4 = vsel %vm5921_vm11, %v911_v11, %v1056_v60  ;;  %v908_v13 = vsel %vm5903_vm10, %v906_v38, %v907_v44  ;;  %v6580_v11 = vshrl.u32 %v5652_v35, 16  ;;  %v4767_v44 = vld [vmem:[#allocation2 + $0x64] sm:$0xf] }
  0x9e   : > { %1882 = vmatmul.bf16.gmra.mxu1 %v3870_v59  ;;  %1058 = vst [vmem:[#allocation2 + $0xa4] sm:$0xf] %v1057_v4  ;;  %v4952_v59 = vld [vmem:[%s6485_s1 + $0x1a8] sm:$0xff]  ;;  %v4765_v4 = vld [vmem:[#allocation2 + $0x50] sm:$0xf0]  ;;  %v4182_v35 = vor.u32 %v4767_v44, %v4179_v42 }
  0x9f   : > { %3225 = vmatpush.bf16.msra.mxu2 %v4952_v59  ;;  %1055 = vst [vmem:[#allocation2 + $0x98] sm:$0xf] %v908_v13  ;;  %v918_v61 = vrot.slane %v6580_v11, 4  ;;  %v3891_v59 = vld [vmem:[#allocation2 + $0x84] sm:$0xf0] }
  0xa0   : > { %v3894_v38 = vor.u32 %v4839_v18, %v3891_v59  ;;  %v4177_v44 = vld [vmem:[#allocation2 + $0x60] sm:$0xf]  ;;  %v4768_v42 = vld [vmem:[#allocation2 + $0x68] sm:$0xf0]  ;;  %v1064_v18 = vld [vmem:[#allocation2 + $0xd4] sm:$0xf] }
  0xa1   : > { %v919_v60 = vor.u32 %v918_v61, %v916_v15  ;;  %v4178_v59 = vor.u32 %v4768_v42, %v4177_v44  ;;  %v6583_v42 = vshll.u32 %v5315_v49, 16 }
  0xa3   : > { %v920_v47 = vrot.slane %v919_v60, 4  ;;  %v927_v60 = vrot.slane %v621_v37, 4  ;;  %v4842_v37 = vld [vmem:[#allocation2 + $0x94] sm:$0xf] }
  0xa5   : > { %1971 = vmatmul.bf16.gmra.mxu2 %v3874_v33  ;;  %v1117_v34 = vld [vmem:[#allocation2 + $0xa4] sm:$0x8]  ;;  %v1061_v46 = vsel %vm5921_vm11, %v920_v47, %v1060_v6 }
  0xa6   : > { %v1118_v26 = vsel %vm5941_vm14, 0, %v1117_v34  ;;  %1062 = vst [vmem:[#allocation2 + $0xbc] sm:$0xf] %v1061_v46  ;;  %v3897_v34 = vld [vmem:[#allocation2 + $0x80] sm:$0xf] }
  0xa7   : > { %1119 = vst [vmem:[#allocation2 + $0xa4] sm:$0x8] %v1118_v26  ;;  %v4841_v26 = vld [vmem:[#allocation2 + $0x88] sm:$0xf0]  ;;  %v4191_v46 = vld [vmem:[#allocation2 + $0x84] sm:$0xf0] }
  0xa9   : > { %2460 = vmatmul.bf16.gmra.mxu3 %v4154_v21  ;;  %v6023_v12 = vpop.f32.mrf.mxu0  ;;  %v4165_v21 = vld [vmem:[#allocation2 + $0x48] sm:$0xf] }
  0xaa   : > { %v4166_v7 = vor.u32 %v4765_v4, %v4165_v21  ;;  %v3898_v4 = vor.u32 %v4841_v26, %v3897_v34 }
  0xab   : > { %2554 = vmatmul.bf16.gmra.mxu0 %v4170_v28  ;;  %v6027_v33 = vpop.f32.mrf.mxu1 }
  0xad   : > { %v1120_v61 = vld [vmem:[#allocation2 + $0xbc] sm:$0x8] }
  0xae   : > { %1887 = vmatmul.bf16.gmra.mxu1 %v3882_v17  ;;  %v6582_v17 = vshll.u32 %v5642_v9, 16  ;;  %v1121_v9 = vsel %vm5941_vm14, 0, %v1120_v61  ;;  %v3909_v61 = vld [vmem:[#allocation2 + $0x98] sm:$0xf] }
  0xaf   : > { %1122 = vst [vmem:[#allocation2 + $0xbc] sm:$0x8] %v1121_v9  ;;  %v4844_v9 = vld [vmem:[#allocation2 + $0xa0] sm:$0xf0] }
  0xb0   : > { %v913_v43 = vrot.slane %v6582_v17, 5  ;;  %v921_v17 = vrot.slane %v613_v55, 4  ;;  %v4967_v55 = vld [vmem:[%s6485_s1 + $0x220] sm:$0xff] }
  0xb1   : > { %v6035_v28 = vpop.f32.mrf.mxu0  ;;  %3404 = vmatpush.bf16.msra.mxu0 %v4967_v55  ;;  %v3915_v55 = vld [vmem:[#allocation2 + $0xb4] sm:$0xf0] }
  0xb2   : > { %v914_v58 = vor.u32 %v913_v43, %v912_v53  ;;  %v922_v43 = vrot.slane %v616_v14, 5 }
  0xb3   : > { %v6043_v62 = vpop.f32.mrf.mxu1  ;;  %v6045_v51 = vpop.f32.mrf.mxu2 }
  0xb4   : > { %v915_v13 = vrot.slane %v914_v58, 4  ;;  %v4959_v58 = vld [vmem:[%s6485_s1 + $0x1e0] sm:$0xff]  ;;  %v923_v14 = vor.u32 %v922_v43, %v921_v17  ;;  %v4773_v17 = vld [vmem:[#allocation2 + $0x94] sm:$0xf] }
  0xb5   : > { %1976 = vmatmul.bf16.gmra.mxu2 %v3886_v20  ;;  %v925_v20 = vrot.slane %v624_v40, 5  ;;  %v3903_v40 = vld [vmem:[#allocation2 + $0x9c] sm:$0xf0]  ;;  %3315 = vmatpush.bf16.msra.mxu3 %v4959_v58 }
  0xb6   : > { %v917_v11 = vsel %vm5903_vm10, %v915_v13, %v916_v15  ;;  %v4823_v13 = vld [vmem:[%s6485_s1 + $0xa0] sm:$0xff]  ;;  %v3906_v26 = vor.u32 %v4842_v37, %v3903_v40  ;;  %v924_v5 = vrot.slane %v923_v14, 4 }
  0xb7   : > { %1059 = vst [vmem:[#allocation2 + $0xb0] sm:$0xf] %v917_v11  ;;  %v928_v47 = vor.u32 %v927_v60, %v925_v20  ;;  %2623 = vmatpush.bf16.msra.mxu1 %v4823_v13  ;;  %v4771_v37 = vld [vmem:[#allocation2 + $0x80] sm:$0xf0]  ;;  %v4203_v43 = vld [vmem:[#allocation2 + $0x9c] sm:$0xf0] }
  0xb8   : > { %v926_v60 = vsel %vm5903_vm10, %v924_v5, %v925_v20  ;;  %v4206_v14 = vor.u32 %v4773_v17, %v4203_v43  ;;  %v6585_v5 = vshrl.u32 %v5313_v48, 16  ;;  %v6587_v17 = vshll.u32 %v5537_v63, 16 }
  0xb9   : > { %2465 = vmatmul.bf16.gmra.mxu3 %v4166_v7  ;;  %v929_v15 = vrot.slane %v928_v47, 4  ;;  %v4770_v7 = vld [vmem:[#allocation2 + $0x7c] sm:$0xf]  ;;  %1063 = vst [vmem:[#allocation2 + $0xc8] sm:$0xf] %v926_v60 }
  0xba   : > { %v6057_v21 = vpop.f32.mrf.mxu3  ;;  %v4194_v57 = vor.u32 %v4770_v7, %v4191_v46  ;;  %v6584_v7 = vshrl.u32 %v5315_v49, 16  ;;  %v943_v43 = vrot.slane %v6587_v17, 5 }
  0xbb   : > { %2559 = vmatmul.bf16.gmra.mxu0 %v4182_v35  ;;  %v6047_v50 = vpop.f32.mrf.mxu0  ;;  %v6061_v35 = vpop.f32.mrf.mxu2  ;;  %v1065_v24 = vsel %vm5921_vm11, %v929_v15, %v1064_v18  ;;  %v934_v15 = vrot.slane %v6583_v42, 5  ;;  %v3910_v18 = vor.u32 %v4844_v9, %v3909_v61  ;;  %v930_v61 = vrot.slane %v6585_v5, 4  ;;  %v4774_v5 = vld [vmem:[#allocation2 + $0x98] sm:$0xf0] }
  0xbc   : > { %1066 = vst [vmem:[#allocation2 + $0xd4] sm:$0xf] %v1065_v24  ;;  %v936_v46 = vrot.slane %v6584_v7, 4  ;;  %v4189_v24 = vld [vmem:[#allocation2 + $0x78] sm:$0xf]  ;;  %v6586_v9 = vshll.u32 %v5313_v48, 16 }
  0xbd   : > { %v4190_v58 = vor.u32 %v4771_v37, %v4189_v24  ;;  %v4847_v24 = vld [vmem:[#allocation2 + $0xb8] sm:$0xf0] }
  0xbe   : > { %1892 = vmatmul.bf16.gmra.mxu1 %v3894_v38  ;;  %v4951_v38 = vld [vmem:[%s6485_s1 + $0x1a0] sm:$0xff]  ;;  %v931_v60 = vrot.slane %v6586_v9, 5  ;;  %v4776_v9 = vld [vmem:[#allocation2 + $0xac] sm:$0xf] }
  0xbf   : > { %v6059_v6 = vpop.f32.mrf.mxu1  ;;  %3226 = vmatpush.bf16.msra.mxu2 %v4951_v38  ;;  %v1068_v38 = vld [vmem:[#allocation2 + $0xec] sm:$0xf] }
  0xc0   : > { %v932_v42 = vor.u32 %v931_v60, %v930_v61  ;;  %v4215_v60 = vld [vmem:[#allocation2 + $0xb4] sm:$0xf0] }
  0xc2   : > { %v6080_v34 = vpop.f32.mrf.mxu3 }
  0xc3   : > { %v6065_v53 = vpop.f32.mrf.mxu0 }
  0xc5   : > { %1981 = vmatmul.bf16.gmra.mxu2 %v3898_v4  ;;  %v1123_v4 = vld [vmem:[#allocation2 + $0xd4] sm:$0x8] }
  0xc6   : > { %v1124_v44 = vsel %vm5941_vm14, 0, %v1123_v4 }
  0xc7   : > { %v6085_v11 = vpop.f32.mrf.mxu1  ;;  %1125 = vst [vmem:[#allocation2 + $0xd4] sm:$0x8] %v1124_v44 }
  0xc9   : > { %2470 = vmatmul.bf16.gmra.mxu3 %v4178_v59  ;;  %v937_v59 = vor.u32 %v936_v46, %v934_v15  ;;  %v933_v46 = vrot.slane %v932_v42, 4 }
  0xcb   : > { %2564 = vmatmul.bf16.gmra.mxu0 %v4194_v57  ;;  %v6089_v47 = vpop.f32.mrf.mxu2  ;;  %v938_v20 = vrot.slane %v937_v59, 4  ;;  %v3921_v59 = vld [vmem:[#allocation2 + $0xb0] sm:$0xf]  ;;  %v935_v37 = vsel %vm5903_vm10, %v933_v46, %v934_v15 }
  0xcc   : > { %1067 = vst [vmem:[#allocation2 + $0xe0] sm:$0xf] %v935_v37  ;;  %v4848_v37 = vld [vmem:[#allocation2 + $0xc4] sm:$0xf] }
  0xcd   : > { %v1069_v13 = vsel %vm5921_vm11, %v938_v20, %v1068_v38  ;;  %v6588_v38 = vshrl.u32 %v5537_v63, 16 }
  0xce   : > { %1897 = vmatmul.bf16.gmra.mxu1 %v3906_v26  ;;  %v4845_v26 = vld [vmem:[#allocation2 + $0xac] sm:$0xf]  ;;  %1070 = vst [vmem:[#allocation2 + $0xec] sm:$0xf] %v1069_v13  ;;  %v3922_v13 = vor.u32 %v4847_v24, %v3921_v59  ;;  %v3927_v59 = vld [vmem:[#allocation2 + $0xcc] sm:$0xf0]  ;;  %v4218_v24 = vor.u32 %v4776_v9, %v4215_v60 }
  0xcf   : > { %v6097_v40 = vpop.f32.mrf.mxu0  ;;  %v3918_v44 = vor.u32 %v4845_v26, %v3915_v55 }
  0xd0   : > { %v6099_v57 = vpop.f32.mrf.mxu3 }
  0xd3   : > { %v6109_v4 = vpop.f32.mrf.mxu2  ;;  %v3945_v2 = vld [vmem:[#allocation2 + $0xe0] sm:$0xf] }
  0xd5   : > { %1986 = vmatmul.bf16.gmra.mxu2 %v3910_v18  ;;  %v6103_v49 = vpop.f32.mrf.mxu1  ;;  %v1126_v20 = vld [vmem:[#allocation2 + $0xec] sm:$0x8] }
  0xd6   : > { %v1127_v48 = vsel %vm5941_vm14, 0, %v1126_v20 }
  0xd7   : > { %v6111_v7 = vpop.f32.mrf.mxu0  ;;  %1128 = vst [vmem:[#allocation2 + $0xec] sm:$0x8] %v1127_v48  ;;  %v6590_v48 = vshrl.u32 %v5530_v23, 16 }
  0xd8   : > { %v6113_v18 = vpop.f32.mrf.mxu3 }
  0xd9   : > { %2475 = vmatmul.bf16.gmra.mxu3 %v4190_v58  ;;  %v945_v58 = vrot.slane %v6588_v38, 4  ;;  %v939_v17 = vrot.slane %v6590_v48, 4  ;;  %v6591_v38 = vshll.u32 %v5530_v23, 16  ;;  %v4822_v23 = vld [vmem:[%s6485_s1 + $0x98] sm:$0xff] }
  0xda   : > { %2624 = vmatpush.bf16.msra.mxu1 %v4822_v23 }
  0xdb   : > { %2569 = vmatmul.bf16.gmra.mxu0 %v4206_v14  ;;  %v946_v55 = vor.u32 %v945_v58, %v943_v43  ;;  %v4201_v14 = vld [vmem:[#allocation2 + $0x90] sm:$0xf]  ;;  %v940_v58 = vrot.slane %v6591_v38, 5 }
  0xdc   : > { %v4202_v42 = vor.u32 %v4774_v5, %v4201_v14  ;;  %v3930_v14 = vor.u32 %v4848_v37, %v3927_v59 }
  0xdd   : > { %v6123_v26 = vpop.f32.mrf.mxu1  ;;  %v947_v15 = vrot.slane %v946_v55, 4  ;;  %v4958_v55 = vld [vmem:[%s6485_s1 + $0x1d8] sm:$0xff]  ;;  %v941_v5 = vor.u32 %v940_v58, %v939_v17  ;;  %v6592_v17 = vshll.u32 %v5693_v1, 16  ;;  %v6593_v58 = vshrl.u32 %v5693_v1, 16 }
  0xde   : > { %1902 = vmatmul.bf16.gmra.mxu1 %v3918_v44  ;;  %v1072_v44 = vld [vmem:[#allocation2 + $0x104] sm:$0xf]  ;;  %3316 = vmatpush.bf16.msra.mxu3 %v4958_v55 }
  0xdf   : > { %v1073_v46 = vsel %vm5921_vm11, %v947_v15, %v1072_v44  ;;  %v942_v9 = vrot.slane %v941_v5, 4  ;;  %v4966_v44 = vld [vmem:[%s6485_s1 + $0x218] sm:$0xff]  ;;  %v952_v38 = vrot.slane %v6592_v17, 5 }
  0xe0   : > { %1074 = vst [vmem:[#allocation2 + $0x104] sm:$0xf] %v1073_v46  ;;  %v4850_v46 = vld [vmem:[#allocation2 + $0xd0] sm:$0xf0]  ;;  %3405 = vmatpush.bf16.msra.mxu0 %v4966_v44  ;;  %v4779_v44 = vld [vmem:[#allocation2 + $0xc4] sm:$0xf] }
  0xe1   : > { %v6125_v61 = vpop.f32.mrf.mxu2  ;;  %v944_v59 = vsel %vm5903_vm10, %v942_v9, %v943_v43  ;;  %v4777_v43 = vld [vmem:[#allocation2 + $0xb0] sm:$0xf0] }
  0xe2   : > { %1071 = vst [vmem:[#allocation2 + $0xf8] sm:$0xf] %v944_v59  ;;  %v4227_v59 = vld [vmem:[#allocation2 + $0xcc] sm:$0xf0] }
  0xe5   : > { %1991 = vmatmul.bf16.gmra.mxu2 %v3922_v13  ;;  %v6129_v63 = vpop.f32.mrf.mxu0  ;;  %v4950_v13 = vld [vmem:[%s6485_s1 + $0x198] sm:$0xff] }
  0xe6   : > { %v6131_v20 = vpop.f32.mrf.mxu3  ;;  %3227 = vmatpush.bf16.msra.mxu2 %v4950_v13  ;;  %v954_v13 = vrot.slane %v6593_v58, 4 }
  0xe7   : > { %6589 = vst [vmem:[#allocation3_spill] sm:$0xff] %v6131_v20 }
  0xe9   : > { %2480 = vmatmul.bf16.gmra.mxu3 %v4202_v42  ;;  %v6145_v60 = vpop.f32.mrf.mxu2  ;;  %v3933_v42 = vld [vmem:[#allocation2 + $0xc8] sm:$0xf] }
  0xea   : > { %v3934_v55 = vor.u32 %v4850_v46, %v3933_v42  ;;  %v3939_v42 = vld [vmem:[#allocation2 + $0xe4] sm:$0xf0]  ;;  %v4230_v46 = vor.u32 %v4779_v44, %v4227_v59  ;;  %v4853_v44 = vld [vmem:[#allocation2 + $0xe8] sm:$0xf0] }
  0xeb   : > { %v6143_v15 = vpop.f32.mrf.mxu1  ;;  %2574 = vmatmul.bf16.gmra.mxu0 %v4218_v24  ;;  %v1129_v24 = vld [vmem:[#allocation2 + $0x104] sm:$0x8] }
  0xec   : > { %v1130_v48 = vsel %vm5941_vm14, 0, %v1129_v24  ;;  %v4214_v24 = vor.u32 %v4777_v43, %v4213_v3 }
  0xed   : > { %v6153_v37 = vpop.f32.mrf.mxu0  ;;  %1131 = vst [vmem:[#allocation2 + $0x104] sm:$0x8] %v1130_v48  ;;  %v4851_v48 = vld [vmem:[#allocation2 + $0xdc] sm:$0xf] }
  0xee   : > { %1907 = vmatmul.bf16.gmra.mxu1 %v3930_v14  ;;  %v955_v14 = vor.u32 %v954_v13, %v952_v38  ;;  %v6163_v5 = vpop.f32.mrf.mxu3  ;;  %v6595_v13 = vshrl.u32 %v5688_v41, 16 }
  0xef   : > { %6594 = vst [vmem:[#allocation4_spill] sm:$0xff] %v6163_v5  ;;  %v6601_v5 = vshll.u32 %v5831_v36, 16 }
  0xf0   : > { %v956_v23 = vrot.slane %v955_v14, 4  ;;  %v948_v19 = vrot.slane %v6595_v13, 4  ;;  %v6596_v14 = vshll.u32 %v5688_v41, 16  ;;  %v4225_v13 = vld [vmem:[#allocation2 + $0xc0] sm:$0xf] }
  0xf1   : > { %v958_v20 = vrot.slane %v6601_v5, 5  ;;  %v4821_v5 = vld [vmem:[%s6485_s1 + $0x90] sm:$0xff] }
  0xf2   : > { %v1077_v17 = vsel %vm5921_vm11, %v956_v23, %v1076_v56  ;;  %v949_v8 = vrot.slane %v6596_v14, 5  ;;  %2625 = vmatpush.bf16.msra.mxu1 %v4821_v5 }
  0xf3   : > { %v6165_v9 = vpop.f32.mrf.mxu1  ;;  %1078 = vst [vmem:[#allocation2 + $0x11c] sm:$0xf] %v1077_v17 }
  0xf4   : > { %v950_v3 = vor.u32 %v949_v8, %v948_v19  ;;  %v961_v8 = vrot.slane %v688_v31, 5  ;;  %v6598_v19 = vshrl.u32 %v5833_v10, 16 }
  0xf5   : > { %1996 = vmatmul.bf16.gmra.mxu2 %v3934_v55  ;;  %v3942_v55 = vor.u32 %v4851_v48, %v3939_v42  ;;  %v3946_v42 = vor.u32 %v4853_v44, %v3945_v2 }
  0xf6   : > { %v951_v23 = vrot.slane %v950_v3, 4 }
  0xf7   : > { %v6169_v1 = vpop.f32.mrf.mxu2 }
  0xf8   : > { %v6171_v58 = vpop.f32.mrf.mxu0  ;;  %v953_v59 = vsel %vm5903_vm10, %v951_v23, %v952_v38  ;;  %v4780_v38 = vld [vmem:[#allocation2 + $0xc8] sm:$0xf0]  ;;  %v4782_v23 = vld [vmem:[#allocation2 + $0xdc] sm:$0xf] }
  0xf9   : > { %2485 = vmatmul.bf16.gmra.mxu3 %v4214_v24  ;;  %1075 = vst [vmem:[#allocation2 + $0x110] sm:$0xf] %v953_v59  ;;  %v963_v24 = vrot.slane %v6598_v19, 4  ;;  %v4239_v59 = vld [vmem:[#allocation2 + $0xe4] sm:$0xf0] }
  0xfa   : > { %v1132_v17 = vld [vmem:[#allocation2 + $0x11c] sm:$0x8]  ;;  %v4854_v19 = vld [vmem:[#allocation2 + $0xf4] sm:$0xf]  ;;  %v4242_v2 = vor.u32 %v4782_v23, %v4239_v59 }
  0xfb   : > { %v1873_v43 = vpop.f32.mrf.mxu1  ;;  %2579 = vmatmul.bf16.gmra.mxu0 %v4230_v46  ;;  %v1133_v41 = vsel %vm5941_vm14, 0, %v1132_v17  ;;  %v964_v46 = vor.u32 %v963_v24, %v961_v8  ;;  %v1080_v17 = vld [vmem:[#allocation2 + $0x134] sm:$0xf] }
  0xfc   : > { %v6177_v56 = vpop.f32.mrf.mxu3  ;;  %1134 = vst [vmem:[#allocation2 + $0x11c] sm:$0x8] %v1133_v41  ;;  %v1874_v31 = vadd.f32 %v1873_v43, %v6023_v12  ;;  %v3951_v41 = vld [vmem:[#allocation2 + $0xfc] sm:$0xf0]  ;;  %v4957_v12 = vld [vmem:[%s6485_s1 + $0x1d0] sm:$0xff] }
  0xfd   : > { %6597 = vst [vmem:[#allocation5_spill] sm:$0xff] %v6177_v56  ;;  %v4226_v56 = vor.u32 %v4780_v38, %v4225_v13  ;;  %v4949_v13 = vld [vmem:[%s6485_s1 + $0x190] sm:$0xff]  ;;  %v3954_v43 = vor.u32 %v4854_v19, %v3951_v41  ;;  %3317 = vmatpush.bf16.msra.mxu3 %v4957_v12  ;;  %v6602_v41 = vshll.u32 %v5405_v39, 16 }
  0xfe   : > { %1912 = vmatmul.bf16.gmra.mxu1 %v3942_v55  ;;  %v965_v55 = vrot.slane %v964_v46, 4  ;;  %v6600_v46 = vshrl.u32 %v5831_v36, 16  ;;  %3228 = vmatpush.bf16.msra.mxu2 %v4949_v13 }
  0xff   : > { %v6181_v29 = vpop.f32.mrf.mxu2 }
 0x100   : > { %v6189_v48 = vpop.f32.mrf.mxu0  ;;  %v1081_v10 = vsel %vm5921_vm11, %v965_v55, %v1080_v17 }
 0x101   : > { %1082 = vst [vmem:[#allocation2 + $0x134] sm:$0xf] %v1081_v10  ;;  %v3957_v10 = vld [vmem:[#allocation2 + $0xf8] sm:$0xf] }
 0x103   : > { %v1875_v14 = vpop.f32.mrf.mxu1 }
 0x104   : > { %v6191_v3 = vpop.f32.mrf.mxu3  ;;  %v1876_v17 = vadd.f32 %v1875_v14, %v6035_v28 }
 0x105   : > { %6599 = vst [vmem:[#allocation6_spill] sm:$0xff] %v6191_v3  ;;  %2001 = vmatmul.bf16.gmra.mxu2 %v3946_v42  ;;  %v957_v3 = vrot.slane %v6600_v46, 4 }
 0x107   : > { %v959_v38 = vor.u32 %v958_v20, %v957_v3  ;;  %v4856_v20 = vld [vmem:[#allocation2 + $0x100] sm:$0xf0] }
 0x108   : > { %v1962_v44 = vpop.f32.mrf.mxu2  ;;  %v6196_v24 = vpop.f32.mrf.mxu0  ;;  %v3958_v13 = vor.u32 %v4856_v20, %v3957_v10 }
 0x109   : > { %2490 = vmatmul.bf16.gmra.mxu3 %v4226_v56  ;;  %v1963_v42 = vadd.f32 %v1962_v44, %v1874_v31  ;;  %v960_v59 = vrot.slane %v959_v38, 4  ;;  %v4965_v56 = vld [vmem:[%s6485_s1 + $0x210] sm:$0xff]  ;;  %v6603_v44 = vshrl.u32 %v5405_v39, 16  ;;  %v4783_v38 = vld [vmem:[#allocation2 + $0xe0] sm:$0xf0] }
 0x10a   : > { %v1135_v31 = vld [vmem:[#allocation2 + $0x134] sm:$0x8]  ;;  %3406 = vmatpush.bf16.msra.mxu0 %v4965_v56 }
 0x10b   : > { %v1878_v55 = vpop.f32.mrf.mxu1  ;;  %2584 = vmatmul.bf16.gmra.mxu0 %v4242_v2  ;;  %v962_v3 = vsel %vm5903_vm10, %v960_v59, %v961_v8  ;;  %v1136_v19 = vsel %vm5941_vm14, 0, %v1135_v31  ;;  %v970_v2 = vrot.slane %v6602_v41, 5  ;;  %v972_v46 = vrot.slane %v6603_v44, 4  ;;  %v4785_v56 = vld [vmem:[#allocation2 + $0xf4] sm:$0xf] }
 0x10c   : > { %v2451_v23 = vpop.f32.mrf.mxu3  ;;  %1079 = vst [vmem:[#allocation2 + $0x128] sm:$0xf] %v962_v3  ;;  %v4251_v3 = vld [vmem:[#allocation2 + $0xfc] sm:$0xf0]  ;;  %v1084_v31 = vld [vmem:[#allocation2 + $0x14c] sm:$0xf] }
 0x10d   : > { %v2452_v36 = vadd.f32 %v2451_v23, %v1963_v42  ;;  %1137 = vst [vmem:[#allocation2 + $0x134] sm:$0x8] %v1136_v19  ;;  %v973_v12 = vor.u32 %v972_v46, %v970_v2  ;;  %v4857_v19 = vld [vmem:[#allocation2 + $0x10c] sm:$0xf]  ;;  %v4254_v10 = vor.u32 %v4785_v56, %v4251_v3  ;;  %v3969_v3 = vld [vmem:[#allocation2 + $0x110] sm:$0xf] }
 0x10e   : > { %1917 = vmatmul.bf16.gmra.mxu1 %v3954_v43  ;;  %v4237_v43 = vld [vmem:[#allocation2 + $0xd8] sm:$0xf] }
 0x10f   : > { %v6224_v28 = vadd.f32 %v6171_v58, %v2452_v36  ;;  %v974_v59 = vrot.slane %v973_v12, 4  ;;  %v4238_v41 = vor.u32 %v4783_v38, %v4237_v43  ;;  %v1879_v36 = vadd.f32 %v1878_v55, %v6047_v50 }
 0x110   : > { %v1964_v14 = vpop.f32.mrf.mxu2  ;;  %v6226_v42 = vpop.f32.mrf.mxu0 }
 0x111   : > { %v1965_v8 = vadd.f32 %v1964_v14, %v1876_v17  ;;  %v1085_v58 = vsel %vm5921_vm11, %v974_v59, %v1084_v31  ;;  %v3963_v17 = vld [vmem:[#allocation2 + $0x114] sm:$0xf0]  ;;  %v6604_v14 = vshrl.u32 %v5393_v32, 16  ;;  %v4859_v31 = vld [vmem:[#allocation2 + $0x118] sm:$0xf0] }
 0x112   : > { %1086 = vst [vmem:[#allocation2 + $0x14c] sm:$0xf] %v1085_v58  ;;  %v3966_v38 = vor.u32 %v4857_v19, %v3963_v17  ;;  %v6607_v19 = vshrl.u32 %v5574_v25, 16 }
 0x113   : > { %v1880_v23 = vpop.f32.mrf.mxu1 }
 0x114   : > { %v2453_v5 = vpop.f32.mrf.mxu3  ;;  %v981_v17 = vrot.slane %v6607_v19, 4  ;;  %v6608_v19 = vshrl.u32 %v5566_v45, 16 }
 0x115   : > { %v2454_v39 = vadd.f32 %v2453_v5, %v1965_v8  ;;  %2006 = vmatmul.bf16.gmra.mxu2 %v3958_v13  ;;  %v966_v8 = vrot.slane %v6604_v14, 4  ;;  %v6605_v13 = vshll.u32 %v5393_v32, 16 }
 0x117   : > { %v6232_v20 = vadd.f32 %v6189_v48, %v2454_v39  ;;  %v967_v12 = vrot.slane %v6605_v13, 5  ;;  %v1881_v48 = vadd.f32 %v1880_v23, %v6065_v53  ;;  %v4786_v13 = vld [vmem:[#allocation2 + $0xf8] sm:$0xf0] }
 0x118   : > { %v1967_v44 = vpop.f32.mrf.mxu2  ;;  %v6234_v46 = vpop.f32.mrf.mxu0 }
 0x119   : > { %2495 = vmatmul.bf16.gmra.mxu3 %v4238_v41  ;;  %v1968_v43 = vadd.f32 %v1967_v44, %v1879_v36  ;;  %v968_v50 = vor.u32 %v967_v12, %v966_v8  ;;  %v1138_v58 = vld [vmem:[#allocation2 + $0x14c] sm:$0x8]  ;;  %v6606_v41 = vshll.u32 %v5574_v25, 16  ;;  %v4249_v8 = vld [vmem:[#allocation2 + $0xf0] sm:$0xf] }
 0x11a   : > { %v1139_v32 = vsel %vm5941_vm14, 0, %v1138_v58  ;;  %v4263_v25 = vld [vmem:[#allocation2 + $0x114] sm:$0xf0] }
 0x11b   : > { %v1883_v55 = vpop.f32.mrf.mxu1  ;;  %2589 = vmatmul.bf16.gmra.mxu0 %v4254_v10  ;;  %v969_v5 = vrot.slane %v968_v50, 4  ;;  %v979_v36 = vrot.slane %v6606_v41, 5  ;;  %1140 = vst [vmem:[#allocation2 + $0x14c] sm:$0x8] %v1139_v32 }
 0x11c   : > { %v2456_v59 = vpop.f32.mrf.mxu3 }
 0x11d   : > { %v2457_v56 = vadd.f32 %v2456_v59, %v1968_v43  ;;  %v971_v39 = vsel %vm5903_vm10, %v969_v5, %v970_v2  ;;  %v3970_v2 = vor.u32 %v4859_v31, %v3969_v3  ;;  %v982_v14 = vor.u32 %v981_v17, %v979_v36  ;;  %v4788_v59 = vld [vmem:[#allocation2 + $0x10c] sm:$0xf]  ;;  %v1088_v5 = vld [vmem:[#allocation2 + $0x164] sm:$0xf]  ;;  %v3975_v31 = vld [vmem:[#allocation2 + $0x12c] sm:$0xf0] }
 0x11e   : > { %1922 = vmatmul.bf16.gmra.mxu1 %v3966_v38  ;;  %1083 = vst [vmem:[#allocation2 + $0x140] sm:$0xf] %v971_v39  ;;  %v4860_v3 = vld [vmem:[#allocation2 + $0x124] sm:$0xf]  ;;  %v4266_v58 = vor.u32 %v4788_v59, %v4263_v25  ;;  %v975_v17 = vrot.slane %v6608_v19, 4  ;;  %v4964_v59 = vld [vmem:[%s6485_s1 + $0x208] sm:$0xff] }
 0x11f   : > { %v6250_v10 = vadd.f32 %v6196_v24, %v2457_v56  ;;  %v983_v43 = vrot.slane %v982_v14, 4  ;;  %v4250_v24 = vor.u32 %v4786_v13, %v4249_v8  ;;  %v3981_v25 = vld [vmem:[#allocation2 + $0x128] sm:$0xf]  ;;  %3407 = vmatpush.bf16.msra.mxu0 %v4964_v59 }
 0x120   : > { %v1969_v53 = vpop.f32.mrf.mxu2  ;;  %v6252_v23 = vpop.f32.mrf.mxu0 }
 0x121   : > { %v1970_v44 = vadd.f32 %v1969_v53, %v1881_v48  ;;  %v1089_v56 = vsel %vm5921_vm11, %v983_v43, %v1088_v5  ;;  %v1884_v48 = vadd.f32 %v1883_v55, %v6097_v40  ;;  %v6609_v53 = vshll.u32 %v5566_v45, 16  ;;  %v4948_v40 = vld [vmem:[%s6485_s1 + $0x188] sm:$0xff]  ;;  %v4862_v5 = vld [vmem:[#allocation2 + $0x130] sm:$0xf0] }
 0x122   : > { %1090 = vst [vmem:[#allocation2 + $0x164] sm:$0xf] %v1089_v56  ;;  %v3978_v55 = vor.u32 %v4860_v3, %v3975_v31  ;;  %3229 = vmatpush.bf16.msra.mxu2 %v4948_v40  ;;  %v6610_v56 = vshll.u32 %v5711_v16, 16  ;;  %v6611_v3 = vshrl.u32 %v5711_v16, 16  ;;  %v4275_v16 = vld [vmem:[#allocation2 + $0x12c] sm:$0xf0] }
 0x123   : > { %v1885_v12 = vpop.f32.mrf.mxu1 }
 0x124   : > { %v2458_v38 = vpop.f32.mrf.mxu3  ;;  %v1886_v50 = vadd.f32 %v1885_v12, %v6111_v7  ;;  %v990_v31 = vrot.slane %v6611_v3, 4 }
 0x125   : > { %v2459_v39 = vadd.f32 %v2458_v38, %v1970_v44  ;;  %2011 = vmatmul.bf16.gmra.mxu2 %v3970_v2  ;;  %v976_v44 = vrot.slane %v6609_v53, 5  ;;  %v4820_v38 = vld [vmem:[%s6485_s1 + $0x88] sm:$0xff] }
 0x126   : > { %2626 = vmatpush.bf16.msra.mxu1 %v4820_v38  ;;  %v4863_v38 = vld [vmem:[#allocation2 + $0x13c] sm:$0xf] }
 0x127   : > { %v6259_v32 = vadd.f32 %v6226_v42, %v2459_v39  ;;  %v4956_v42 = vld [vmem:[%s6485_s1 + $0x1c8] sm:$0xff]  ;;  %v977_v14 = vor.u32 %v976_v44, %v975_v17  ;;  %v3982_v17 = vor.u32 %v4862_v5, %v3981_v25 }
 0x128   : > { %v1972_v41 = vpop.f32.mrf.mxu2  ;;  %v6261_v7 = vpop.f32.mrf.mxu0  ;;  %3318 = vmatpush.bf16.msra.mxu3 %v4956_v42  ;;  %v4261_v44 = vld [vmem:[#allocation2 + $0x108] sm:$0xf] }
 0x129   : > { %2500 = vmatmul.bf16.gmra.mxu3 %v4250_v24  ;;  %v1973_v2 = vadd.f32 %v1972_v41, %v1884_v48  ;;  %v978_v45 = vrot.slane %v977_v14, 4  ;;  %v1141_v24 = vld [vmem:[#allocation2 + $0x164] sm:$0x8]  ;;  %v988_v48 = vrot.slane %v6610_v56, 5 }
 0x12b   : > { %v1888_v8 = vpop.f32.mrf.mxu1  ;;  %2594 = vmatmul.bf16.gmra.mxu0 %v4266_v58  ;;  %v980_v39 = vsel %vm5903_vm10, %v978_v45, %v979_v36  ;;  %v991_v53 = vor.u32 %v990_v31, %v988_v48 }
 0x12c   : > { %v2461_v13 = vpop.f32.mrf.mxu3  ;;  %v1889_v12 = vadd.f32 %v1888_v8, %v6129_v63  ;;  %1087 = vst [vmem:[#allocation2 + $0x158] sm:$0xf] %v980_v39  ;;  %v1142_v63 = vsel %vm5941_vm14, 0, %v1141_v24  ;;  %v4791_v8 = vld [vmem:[#allocation2 + $0x124] sm:$0xf] }
 0x12d   : > { %v2462_v43 = vadd.f32 %v2461_v13, %v1973_v2  ;;  %1143 = vst [vmem:[#allocation2 + $0x164] sm:$0x8] %v1142_v63  ;;  %v4789_v2 = vld [vmem:[#allocation2 + $0x110] sm:$0xf0]  ;;  %v992_v42 = vrot.slane %v991_v53, 4  ;;  %v4278_v59 = vor.u32 %v4791_v8, %v4275_v16  ;;  %v6613_v63 = vshll.u32 %v5707_v0, 16 }
 0x12e   : > { %1927 = vmatmul.bf16.gmra.mxu1 %v3978_v55  ;;  %v1092_v13 = vld [vmem:[#allocation2 + $0x17c] sm:$0xf]  ;;  %v6615_v8 = vshrl.u32 %v5863_v22, 16 }
 0x12f   : > { %v6289_v58 = vadd.f32 %v6234_v46, %v2462_v43  ;;  %v4262_v46 = vor.u32 %v4789_v2, %v4261_v44  ;;  %v1093_v43 = vsel %vm5921_vm11, %v992_v42, %v1092_v13  ;;  %v985_v56 = vrot.slane %v6613_v63, 5  ;;  %v4865_v2 = vld [vmem:[#allocation2 + $0x148] sm:$0xf0]  ;;  %v4794_v63 = vld [vmem:[#allocation2 + $0x13c] sm:$0xf] }
 0x130   : > { %v1974_v41 = vpop.f32.mrf.mxu2  ;;  %v6291_v19 = vpop.f32.mrf.mxu0  ;;  %1094 = vst [vmem:[#allocation2 + $0x17c] sm:$0xf] %v1093_v43  ;;  %v999_v16 = vrot.slane %v6615_v8, 4 }
 0x131   : > { %v1975_v36 = vadd.f32 %v1974_v41, %v1886_v50  ;;  %v3987_v50 = vld [vmem:[#allocation2 + $0x144] sm:$0xf0] }
 0x132   : > { %v3990_v31 = vor.u32 %v4863_v38, %v3987_v50  ;;  %v4273_v50 = vld [vmem:[#allocation2 + $0x120] sm:$0xf] }
 0x133   : > { %v1890_v40 = vpop.f32.mrf.mxu1 }
 0x134   : > { %v2463_v55 = vpop.f32.mrf.mxu3  ;;  %v1891_v14 = vadd.f32 %v1890_v40, %v6153_v37  ;;  %v6612_v37 = vshrl.u32 %v5707_v0, 16 }
 0x135   : > { %v2464_v45 = vadd.f32 %v2463_v55, %v1975_v36  ;;  %2016 = vmatmul.bf16.gmra.mxu2 %v3982_v17 }
 0x136   : > { %v984_v24 = vrot.slane %v6612_v37, 4 }
 0x137   : > { %v6297_v25 = vadd.f32 %v6252_v23, %v2464_v45  ;;  %v3993_v23 = vld [vmem:[#allocation2 + $0x140] sm:$0xf]  ;;  %v1144_v42 = vld [vmem:[#allocation2 + $0x17c] sm:$0x8] }
 0x138   : > { %v1977_v5 = vpop.f32.mrf.mxu2  ;;  %v6299_v39 = vpop.f32.mrf.mxu0  ;;  %v986_v41 = vor.u32 %v985_v56, %v984_v24  ;;  %v1145_v0 = vsel %vm5941_vm14, 0, %v1144_v42  ;;  %v4287_v56 = vld [vmem:[#allocation2 + $0x144] sm:$0xf0] }
 0x139   : > { %2505 = vmatmul.bf16.gmra.mxu3 %v4262_v46  ;;  %v1978_v3 = vadd.f32 %v1977_v5, %v1889_v12  ;;  %v6614_v12 = vshll.u32 %v5863_v22, 16  ;;  %1146 = vst [vmem:[#allocation2 + $0x17c] sm:$0x8] %v1145_v0  ;;  %v6617_v0 = vshll.u32 %v5861_v30, 16 }
 0x13a   : > { %v987_v53 = vrot.slane %v986_v41, 4 }
 0x13b   : > { %v1893_v36 = vpop.f32.mrf.mxu1  ;;  %2599 = vmatmul.bf16.gmra.mxu0 %v4278_v59  ;;  %v997_v55 = vrot.slane %v6614_v12, 5  ;;  %v4792_v59 = vld [vmem:[#allocation2 + $0x128] sm:$0xf0]  ;;  %v994_v12 = vrot.slane %v6617_v0, 5 }
 0x13c   : > { %v2466_v17 = vpop.f32.mrf.mxu3  ;;  %v989_v40 = vsel %vm5903_vm10, %v987_v53, %v988_v48  ;;  %v3994_v48 = vor.u32 %v4865_v2, %v3993_v23  ;;  %v1894_v41 = vadd.f32 %v1893_v36, %v6027_v33  ;;  %v4290_v53 = vor.u32 %v4794_v63, %v4287_v56  ;;  %v4947_v33 = vld [vmem:[%s6485_s1 + $0x180] sm:$0xff] }
 0x13d   : > { %v2467_v44 = vadd.f32 %v2466_v17, %v1978_v3  ;;  %1091 = vst [vmem:[#allocation2 + $0x170] sm:$0xf] %v989_v40  ;;  %v1000_v38 = vor.u32 %v999_v16, %v997_v55  ;;  %v1096_v3 = vld [vmem:[#allocation2 + $0x194] sm:$0xf]  ;;  %v6616_v40 = vshrl.u32 %v5861_v30, 16  ;;  %v4955_v36 = vld [vmem:[%s6485_s1 + $0x1c0] sm:$0xff]  ;;  %3230 = vmatpush.bf16.msra.mxu2 %v4947_v33 }
 0x13e   : > { %1932 = vmatmul.bf16.gmra.mxu1 %v3990_v31  ;;  %v4274_v31 = vor.u32 %v4792_v59, %v4273_v50  ;;  %v4866_v17 = vld [vmem:[#allocation2 + $0x154] sm:$0xf]  ;;  %3319 = vmatpush.bf16.msra.mxu3 %v4955_v36  ;;  %v4005_v50 = vld [vmem:[#allocation2 + $0x158] sm:$0xf]  ;;  %v4868_v59 = vld [vmem:[#allocation2 + $0x160] sm:$0xf0] }
 0x13f   : > { %v6314_v13 = vadd.f32 %v6261_v7, %v2467_v44  ;;  %v1001_v37 = vrot.slane %v1000_v38, 4  ;;  %v993_v42 = vrot.slane %v6616_v40, 4  ;;  %v4963_v38 = vld [vmem:[%s6485_s1 + $0x200] sm:$0xff]  ;;  %v4869_v40 = vld [vmem:[#allocation2 + $0x16c] sm:$0xf] }
 0x140   : > { %v1979_v45 = vpop.f32.mrf.mxu2  ;;  %v6316_v46 = vpop.f32.mrf.mxu0  ;;  %3408 = vmatpush.bf16.msra.mxu0 %v4963_v38 }
 0x141   : > { %v1980_v43 = vadd.f32 %v1979_v45, %v1891_v14  ;;  %v1097_v7 = vsel %vm5921_vm11, %v1001_v37, %v1096_v3  ;;  %v3999_v14 = vld [vmem:[#allocation2 + $0x15c] sm:$0xf0]  ;;  %v995_v8 = vor.u32 %v994_v12, %v993_v42  ;;  %v4011_v42 = vld [vmem:[#allocation2 + $0x174] sm:$0xf0] }
 0x142   : > { %1098 = vst [vmem:[#allocation2 + $0x194] sm:$0xf] %v1097_v7  ;;  %v4014_v36 = vor.u32 %v4869_v40, %v4011_v42 }
 0x143   : > { %v1895_v5 = vpop.f32.mrf.mxu1 }
 0x144   : > { %v2468_v24 = vpop.f32.mrf.mxu3  ;;  %v1896_v63 = vadd.f32 %v1895_v5, %v6043_v62  ;;  %v4299_v62 = vld [vmem:[#allocation2 + $0x15c] sm:$0xf0] }
 0x145   : > { %v2469_v22 = vadd.f32 %v2468_v24, %v1980_v43  ;;  %2021 = vmatmul.bf16.gmra.mxu2 %v3994_v48  ;;  %v996_v43 = vrot.slane %v995_v8, 4  ;;  %v4819_v48 = vld [vmem:[%s6485_s1 + $0x80] sm:$0xff] }
 0x146   : > { %2627 = vmatpush.bf16.msra.mxu1 %v4819_v48 }
 0x147   : > { %v6322_v44 = vadd.f32 %v6291_v19, %v2469_v22  ;;  %v4002_v19 = vor.u32 %v4866_v17, %v3999_v14  ;;  %v998_v37 = vsel %vm5903_vm10, %v996_v43, %v997_v55  ;;  %v4285_v17 = vld [vmem:[#allocation2 + $0x138] sm:$0xf]  ;;  %v4017_v43 = vld [vmem:[#allocation2 + $0x170] sm:$0xf] }
 0x148   : > { %v1982_v23 = vpop.f32.mrf.mxu2  ;;  %v2565_v2 = vpop.f32.mrf.mxu0  ;;  %1095 = vst [vmem:[#allocation2 + $0x188] sm:$0xf] %v998_v37  ;;  %v4798_v37 = vld [vmem:[#allocation2 + $0x158] sm:$0xf0] }
 0x149   : > { %2510 = vmatmul.bf16.gmra.mxu3 %v4274_v31  ;;  %v1983_v27 = vadd.f32 %v1982_v23, %v1894_v41  ;;  %v1147_v24 = vld [vmem:[#allocation2 + $0x194] sm:$0x8]  ;;  %v4006_v41 = vor.u32 %v4868_v59, %v4005_v50  ;;  %v4286_v23 = vor.u32 %v4795_v54, %v4285_v17  ;;  %v4297_v59 = vld [vmem:[#allocation2 + $0x150] sm:$0xf]  ;;  %v4872_v54 = vld [vmem:[#allocation2 + $0x184] sm:$0xf] }
 0x14a   : > { %v1148_v56 = vsel %vm5941_vm14, 0, %v1147_v24 }
 0x14b   : > { %v1898_v16 = vpop.f32.mrf.mxu1  ;;  %2604 = vmatmul.bf16.gmra.mxu0 %v4290_v53  ;;  %1149 = vst [vmem:[#allocation2 + $0x194] sm:$0x8] %v1148_v56  ;;  %v4797_v53 = vld [vmem:[#allocation2 + $0x154] sm:$0xf]  ;;  %v4800_v56 = vld [vmem:[#allocation2 + $0x16c] sm:$0xf] }
 0x14c   : > { %v2471_v45 = vpop.f32.mrf.mxu3  ;;  %v1899_v52 = vadd.f32 %v1898_v16, %v6059_v6 }
 0x14d   : > { %v2472_v30 = vadd.f32 %v2471_v45, %v1983_v27 }
 0x14e   : > { %1937 = vmatmul.bf16.gmra.mxu1 %v4002_v19 }
 0x14f   : > { %v6346_v3 = vadd.f32 %v6299_v39, %v2472_v30  ;;  %v4302_v39 = vor.u32 %v4797_v53, %v4299_v62  ;;  %v4871_v30 = vld [vmem:[#allocation2 + $0x178] sm:$0xf0]  ;;  %v4029_v42 = vld [vmem:[#allocation2 + $0x188] sm:$0xf] }
 0x150   : > { %v1984_v22 = vpop.f32.mrf.mxu2  ;;  %v2567_v31 = vpop.f32.mrf.mxu0  ;;  %v4018_v50 = vor.u32 %v4871_v30, %v4017_v43 }
 0x151   : > { %v1985_v7 = vadd.f32 %v1984_v22, %v1896_v63  ;;  %v4311_v22 = vld [vmem:[#allocation2 + $0x174] sm:$0xf0] }
 0x153   : > { %v1900_v55 = vpop.f32.mrf.mxu1 }
 0x154   : > { %v2473_v14 = vpop.f32.mrf.mxu3  ;;  %v1901_v6 = vadd.f32 %v1900_v55, %v6085_v11  ;;  %v4314_v11 = vor.u32 %v4800_v56, %v4311_v22 }
 0x155   : > { %v2474_v5 = vadd.f32 %v2473_v14, %v1985_v7  ;;  %2026 = vmatmul.bf16.gmra.mxu2 %v4006_v41  ;;  %v4298_v41 = vor.u32 %v4798_v37, %v4297_v59  ;;  %v4023_v14 = vld [vmem:[#allocation2 + $0x18c] sm:$0xf0]  ;;  %v4137_v37 = vld [vmem:[#allocation2 + $0x8] sm:$0xf] }
 0x157   : > { %v6350_v0 = vadd.f32 %v6316_v46, %v2474_v5  ;;  %v4026_v5 = vor.u32 %v4872_v54, %v4023_v14  ;;  %v4465_v14 = vld [vmem:[#allocation2 + $0x30] sm:$0xf] }
 0x158   : > { %v1987_v12 = vpop.f32.mrf.mxu2  ;;  %v2570_v27 = vpop.f32.mrf.mxu0 }
 0x159   : > { %2515 = vmatmul.bf16.gmra.mxu3 %v4286_v23  ;;  %v1988_v33 = vadd.f32 %v1987_v12, %v1899_v52 }
 0x15b   : > { %v1903_v19 = vpop.f32.mrf.mxu1  ;;  %2609 = vmatmul.bf16.gmra.mxu0 %v4302_v39  ;;  %v4874_v39 = vld [vmem:[#allocation2 + $0x190] sm:$0xf0] }
 0x15c   : > { %v2476_v8 = vpop.f32.mrf.mxu3  ;;  %v1904_v17 = vadd.f32 %v1903_v19, %v6103_v49  ;;  %v4030_v19 = vor.u32 %v4874_v39, %v4029_v42 }
 0x15d   : > { %v2477_v45 = vadd.f32 %v2476_v8, %v1988_v33  ;;  %v4309_v8 = vld [vmem:[#allocation2 + $0x168] sm:$0xf] }
 0x15e   : > { %1942 = vmatmul.bf16.gmra.mxu1 %v4014_v36 }
 0x15f   : > { %v6353_v16 = vadd.f32 %v2565_v2, %v2477_v45  ;;  %v4801_v45 = vld [vmem:[#allocation2 + $0x170] sm:$0xf0] }
 0x160   : > { %v1989_v48 = vpop.f32.mrf.mxu2  ;;  %v2572_v38 = vpop.f32.mrf.mxu0 }
 0x161   : > { %v1990_v46 = vadd.f32 %v1989_v48, %v1901_v6  ;;  %v4473_v6 = vld [vmem:[#allocation2 + $0x38] sm:$0xf]  ;;  %v4901_v48 = vld [vmem:[#allocation2 + $0x40] sm:$0xf0] }
 0x163   : > { %v1905_v24 = vpop.f32.mrf.mxu1 }
 0x164   : > { %v2478_v63 = vpop.f32.mrf.mxu3  ;;  %v1906_v12 = vadd.f32 %v1905_v24, %v6123_v26  ;;  %v4474_v26 = vor.u32 %v4901_v48, %v4473_v6 }
 0x165   : > { %v2479_v7 = vadd.f32 %v2478_v63, %v1990_v46  ;;  %2031 = vmatmul.bf16.gmra.mxu2 %v4018_v50  ;;  %v4310_v50 = vor.u32 %v4801_v45, %v4309_v8  ;;  %v4757_v63 = vld [vmem:[#allocation2 + $0x10] sm:$0xf0]  ;;  %v4149_v45 = vld [vmem:[#allocation2 + $0x20] sm:$0xf] }
 0x167   : > { %v6356_v2 = vadd.f32 %v2567_v31, %v2479_v7  ;;  %v4138_v7 = vor.u32 %v4757_v63, %v4137_v37  ;;  %v4477_v63 = vld [vmem:[#allocation2 + $0x48] sm:$0xf] }
 0x168   : > { %v1992_v55 = vpop.f32.mrf.mxu2  ;;  %v2575_v53 = vpop.f32.mrf.mxu0 }
 0x169   : > { %2520 = vmatmul.bf16.gmra.mxu3 %v4298_v41  ;;  %v1993_v62 = vadd.f32 %v1992_v55, %v1904_v17 }
 0x16b   : > { %v1908_v23 = vpop.f32.mrf.mxu1  ;;  %2614 = vmatmul.bf16.gmra.mxu0 %v4314_v11  ;;  %v4900_v11 = vld [vmem:[#allocation2 + $0x38] sm:$0xf0] }
 0x16c   : > { %v2481_v52 = vpop.f32.mrf.mxu3  ;;  %v1909_v59 = vadd.f32 %v1908_v23, %v6143_v15  ;;  %v4466_v23 = vor.u32 %v4900_v11, %v4465_v14 }
 0x16d   : > { %v2482_v40 = vadd.f32 %v2481_v52, %v1993_v62  ;;  %v4899_v52 = vld [vmem:[#allocation2 + $0x34] sm:$0xf] }
 0x16e   : > { %1947 = vmatmul.bf16.gmra.mxu1 %v4026_v5 }
 0x16f   : > { %v6359_v49 = vadd.f32 %v2570_v27, %v2482_v40  ;;  %v4467_v40 = vld [vmem:[#allocation2 + $0x3c] sm:$0xf0] }
 0x170   : > { %v1994_v33 = vpop.f32.mrf.mxu2  ;;  %v2577_v36 = vpop.f32.mrf.mxu0 }
 0x171   : > { %v1995_v31 = vadd.f32 %v1994_v33, %v1906_v12  ;;  %v4485_v12 = vld [vmem:[#allocation2 + $0x50] sm:$0xf]  ;;  %v4904_v33 = vld [vmem:[#allocation2 + $0x58] sm:$0xf0] }
 0x173   : > { %v1910_v43 = vpop.f32.mrf.mxu1 }
 0x174   : > { %v2483_v30 = vpop.f32.mrf.mxu3  ;;  %v1911_v55 = vadd.f32 %v1910_v43, %v6165_v9  ;;  %v4486_v9 = vor.u32 %v4904_v33, %v4485_v12 }
 0x175   : > { %v2484_v46 = vadd.f32 %v2483_v30, %v1995_v31  ;;  %2036 = vmatmul.bf16.gmra.mxu2 %v4030_v19  ;;  %v4470_v19 = vor.u32 %v4899_v52, %v4467_v40  ;;  %v4760_v30 = vld [vmem:[#allocation2 + $0x28] sm:$0xf0]  ;;  %v4161_v40 = vld [vmem:[#allocation2 + $0x38] sm:$0xf] }
 0x177   : > { %v6362_v27 = vadd.f32 %v2572_v38, %v2484_v46  ;;  %v4150_v46 = vor.u32 %v4760_v30, %v4149_v45  ;;  %v4489_v30 = vld [vmem:[#allocation2 + $0x60] sm:$0xf] }
 0x178   : > { %v1997_v24 = vpop.f32.mrf.mxu2  ;;  %v2580_v56 = vpop.f32.mrf.mxu0 }
 0x179   : > { %2525 = vmatmul.bf16.gmra.mxu3 %v4310_v50  ;;  %v1998_v22 = vadd.f32 %v1997_v24, %v1909_v59 }
 0x17b   : > { %v1913_v41 = vpop.f32.mrf.mxu1  ;;  %3409 = vmatmul.bf16.vlgmr.msra.gmra.mxu0 %v4474_v26  ;;  %v4903_v26 = vld [vmem:[#allocation2 + $0x50] sm:$0xf0] }
 0x17c   : > { %v2486_v17 = vpop.f32.mrf.mxu3  ;;  %v1914_v8 = vadd.f32 %v1913_v41, %v6045_v51  ;;  %v4478_v41 = vor.u32 %v4903_v26, %v4477_v63 }
 0x17d   : > { %v2487_v54 = vadd.f32 %v2486_v17, %v1998_v22  ;;  %v4902_v17 = vld [vmem:[#allocation2 + $0x4c] sm:$0xf] }
 0x17e   : > { %2628 = vmatmul.bf16.vlgmr.msra.gmra.mxu1 %v4138_v7 }
 0x17f   : > { %v6365_v15 = vadd.f32 %v2575_v53, %v2487_v54  ;;  %v4479_v54 = vld [vmem:[#allocation2 + $0x54] sm:$0xf0] }
 0x180   : > { %v1999_v62 = vpop.f32.mrf.mxu2  ;;  %v2582_v5 = vpop.f32.mrf.mxu0 }
 0x181   : > { %v2000_v38 = vadd.f32 %v1999_v62, %v1911_v55  ;;  %v4497_v55 = vld [vmem:[#allocation2 + $0x68] sm:$0xf]  ;;  %v4907_v62 = vld [vmem:[#allocation2 + $0x70] sm:$0xf0] }
 0x183   : > { %v1915_v42 = vpop.f32.mrf.mxu1 }
 0x184   : > { %v2488_v39 = vpop.f32.mrf.mxu3  ;;  %v1916_v24 = vadd.f32 %v1915_v42, %v6061_v35  ;;  %v4498_v35 = vor.u32 %v4907_v62, %v4497_v55 }
 0x185   : > { %v2489_v31 = vadd.f32 %v2488_v39, %v2000_v38  ;;  %3231 = vmatmul.bf16.vlgmr.msra.gmra.mxu2 %v4466_v23  ;;  %v4482_v23 = vor.u32 %v4902_v17, %v4479_v54  ;;  %v4763_v39 = vld [vmem:[#allocation2 + $0x40] sm:$0xf0]  ;;  %v4173_v54 = vld [vmem:[#allocation2 + $0x50] sm:$0xf] }
 0x187   : > { %v6368_v53 = vadd.f32 %v2577_v36, %v2489_v31  ;;  %v4162_v31 = vor.u32 %v4763_v39, %v4161_v40  ;;  %v4501_v39 = vld [vmem:[#allocation2 + $0x78] sm:$0xf] }
 0x188   : > { %v2002_v43 = vpop.f32.mrf.mxu2  ;;  %v2585_v6 = vpop.f32.mrf.mxu0 }
 0x189   : > { %3320 = vmatmul.bf16.vlgmr.msra.gmra.mxu3 %v4470_v19  ;;  %v2003_v48 = vadd.f32 %v2002_v43, %v1914_v8 }
 0x18b   : > { %v1918_v50 = vpop.f32.mrf.mxu1  ;;  %3414 = vmatmul.bf16.gmra.mxu0 %v4486_v9  ;;  %v4906_v9 = vld [vmem:[#allocation2 + $0x68] sm:$0xf0] }
 0x18c   : > { %v2491_v59 = vpop.f32.mrf.mxu3  ;;  %v1919_v52 = vadd.f32 %v1918_v50, %v6089_v47  ;;  %v4490_v50 = vor.u32 %v4906_v9, %v4489_v30 }
 0x18d   : > { %v2492_v37 = vadd.f32 %v2491_v59, %v2003_v48  ;;  %v4905_v59 = vld [vmem:[#allocation2 + $0x64] sm:$0xf] }
 0x18e   : > { %2633 = vmatmul.bf16.gmra.mxu1 %v4150_v46 }
 0x18f   : > { %v6371_v51 = vadd.f32 %v2580_v56, %v2492_v37  ;;  %v4491_v37 = vld [vmem:[#allocation2 + $0x6c] sm:$0xf0] }
 0x190   : > { %v2004_v22 = vpop.f32.mrf.mxu2  ;;  %v2587_v7 = vpop.f32.mrf.mxu0 }
 0x191   : > { %v2005_v36 = vadd.f32 %v2004_v22, %v1916_v24  ;;  %v4509_v24 = vld [vmem:[#allocation2 + $0x80] sm:$0xf]  ;;  %v4910_v22 = vld [vmem:[#allocation2 + $0x88] sm:$0xf0] }
 0x193   : > { %v1920_v14 = vpop.f32.mrf.mxu1 }
 0x194   : > { %v2493_v11 = vpop.f32.mrf.mxu3  ;;  %v1921_v43 = vadd.f32 %v1920_v14, %v6109_v4  ;;  %v4510_v4 = vor.u32 %v4910_v22, %v4509_v24 }
 0x195   : > { %v2494_v38 = vadd.f32 %v2493_v11, %v2005_v36  ;;  %3236 = vmatmul.bf16.gmra.mxu2 %v4478_v41  ;;  %v4494_v41 = vor.u32 %v4905_v59, %v4491_v37  ;;  %v4766_v11 = vld [vmem:[#allocation2 + $0x58] sm:$0xf0]  ;;  %v4185_v37 = vld [vmem:[#allocation2 + $0x68] sm:$0xf] }
 0x197   : > { %v6374_v56 = vadd.f32 %v2582_v5, %v2494_v38  ;;  %v4174_v38 = vor.u32 %v4766_v11, %v4173_v54  ;;  %v4513_v11 = vld [vmem:[#allocation2 + $0x90] sm:$0xf] }
 0x198   : > { %v2007_v42 = vpop.f32.mrf.mxu2  ;;  %v2590_v12 = vpop.f32.mrf.mxu0 }
 0x199   : > { %3325 = vmatmul.bf16.gmra.mxu3 %v4482_v23  ;;  %v2008_v33 = vadd.f32 %v2007_v42, %v1919_v52 }
 0x19b   : > { %v1923_v19 = vpop.f32.mrf.mxu1  ;;  %3419 = vmatmul.bf16.gmra.mxu0 %v4498_v35  ;;  %v4909_v35 = vld [vmem:[#allocation2 + $0x80] sm:$0xf0] }
 0x19c   : > { %v2496_v8 = vpop.f32.mrf.mxu3  ;;  %v1924_v17 = vadd.f32 %v1923_v19, %v6125_v61  ;;  %v4502_v19 = vor.u32 %v4909_v35, %v4501_v39 }
 0x19d   : > { %v2497_v45 = vadd.f32 %v2496_v8, %v2008_v33  ;;  %v4908_v8 = vld [vmem:[#allocation2 + $0x7c] sm:$0xf] }
 0x19e   : > { %2638 = vmatmul.bf16.gmra.mxu1 %v4162_v31 }
 0x19f   : > { %v6377_v47 = vadd.f32 %v2585_v6, %v2497_v45  ;;  %v4503_v45 = vld [vmem:[#allocation2 + $0x84] sm:$0xf0] }
 0x1a0   : > { %v2009_v48 = vpop.f32.mrf.mxu2  ;;  %v2592_v46 = vpop.f32.mrf.mxu0 }
 0x1a1   : > { %v2010_v5 = vadd.f32 %v2009_v48, %v1921_v43  ;;  %v4521_v43 = vld [vmem:[#allocation2 + $0x98] sm:$0xf]  ;;  %v4913_v48 = vld [vmem:[#allocation2 + $0xa0] sm:$0xf0] }
 0x1a3   : > { %v1925_v63 = vpop.f32.mrf.mxu1 }
 0x1a4   : > { %v2498_v26 = vpop.f32.mrf.mxu3  ;;  %v1926_v42 = vadd.f32 %v1925_v63, %v6145_v60  ;;  %v4522_v60 = vor.u32 %v4913_v48, %v4521_v43 }
 0x1a5   : > { %v2499_v36 = vadd.f32 %v2498_v26, %v2010_v5  ;;  %3241 = vmatmul.bf16.gmra.mxu2 %v4490_v50  ;;  %v4506_v50 = vor.u32 %v4908_v8, %v4503_v45  ;;  %v4769_v26 = vld [vmem:[#allocation2 + $0x70] sm:$0xf0]  ;;  %v4197_v45 = vld [vmem:[#allocation2 + $0x80] sm:$0xf] }
 0x1a7   : > { %v6380_v6 = vadd.f32 %v2587_v7, %v2499_v36  ;;  %v4186_v36 = vor.u32 %v4769_v26, %v4185_v37  ;;  %v4525_v26 = vld [vmem:[#allocation2 + $0xa8] sm:$0xf] }
 0x1a8   : > { %v2012_v14 = vpop.f32.mrf.mxu2  ;;  %v2595_v55 = vpop.f32.mrf.mxu0 }
 0x1a9   : > { %3330 = vmatmul.bf16.gmra.mxu3 %v4494_v41  ;;  %v2013_v62 = vadd.f32 %v2012_v14, %v1924_v17 }
 0x1ab   : > { %v1928_v23 = vpop.f32.mrf.mxu1  ;;  %3424 = vmatmul.bf16.gmra.mxu0 %v4510_v4  ;;  %v4912_v4 = vld [vmem:[#allocation2 + $0x98] sm:$0xf0] }
 0x1ac   : > { %v2501_v52 = vpop.f32.mrf.mxu3  ;;  %v1929_v59 = vadd.f32 %v1928_v23, %v6169_v1  ;;  %v4514_v23 = vor.u32 %v4912_v4, %v4513_v11 }
 0x1ad   : > { %v2502_v40 = vadd.f32 %v2501_v52, %v2013_v62  ;;  %v4911_v52 = vld [vmem:[#allocation2 + $0x94] sm:$0xf] }
 0x1ae   : > { %2643 = vmatmul.bf16.gmra.mxu1 %v4174_v38 }
 0x1af   : > { %v6383_v61 = vadd.f32 %v2590_v12, %v2502_v40  ;;  %v4515_v40 = vld [vmem:[#allocation2 + $0x9c] sm:$0xf0] }
 0x1b0   : > { %v2014_v33 = vpop.f32.mrf.mxu2  ;;  %v2597_v31 = vpop.f32.mrf.mxu0 }
 0x1b1   : > { %v2015_v7 = vadd.f32 %v2014_v33, %v1926_v42  ;;  %v4533_v42 = vld [vmem:[#allocation2 + $0xb0] sm:$0xf]  ;;  %v4916_v33 = vld [vmem:[#allocation2 + $0xb8] sm:$0xf0] }
 0x1b3   : > { %v1930_v30 = vpop.f32.mrf.mxu1 }
 0x1b4   : > { %v2503_v9 = vpop.f32.mrf.mxu3  ;;  %v1931_v14 = vadd.f32 %v1930_v30, %v6181_v29  ;;  %v4534_v29 = vor.u32 %v4916_v33, %v4533_v42 }
 0x1b5   : > { %v2504_v5 = vadd.f32 %v2503_v9, %v2015_v7  ;;  %3246 = vmatmul.bf16.gmra.mxu2 %v4502_v19  ;;  %v4518_v19 = vor.u32 %v4911_v52, %v4515_v40  ;;  %v4772_v9 = vld [vmem:[#allocation2 + $0x88] sm:$0xf0]  ;;  %v4209_v40 = vld [vmem:[#allocation2 + $0x98] sm:$0xf] }
 0x1b7   : > { %v6386_v12 = vadd.f32 %v2592_v46, %v2504_v5  ;;  %v4198_v5 = vor.u32 %v4772_v9, %v4197_v45  ;;  %v4537_v9 = vld [vmem:[#allocation2 + $0xc0] sm:$0xf] }
 0x1b8   : > { %v2017_v63 = vpop.f32.mrf.mxu2  ;;  %v2600_v24 = vpop.f32.mrf.mxu0 }
 0x1b9   : > { %3335 = vmatmul.bf16.gmra.mxu3 %v4506_v50  ;;  %v2018_v22 = vadd.f32 %v2017_v63, %v1929_v59 }
 0x1bb   : > { %v1933_v41 = vpop.f32.mrf.mxu1  ;;  %3429 = vmatmul.bf16.gmra.mxu0 %v4522_v60  ;;  %v4915_v60 = vld [vmem:[#allocation2 + $0xb0] sm:$0xf0] }
 0x1bc   : > { %v2506_v17 = vpop.f32.mrf.mxu3  ;;  %v1934_v8 = vadd.f32 %v1933_v41, %v6057_v21  ;;  %v4526_v41 = vor.u32 %v4915_v60, %v4525_v26 }
 0x1bd   : > { %v2507_v54 = vadd.f32 %v2506_v17, %v2018_v22  ;;  %v4914_v17 = vld [vmem:[#allocation2 + $0xac] sm:$0xf] }
 0x1be   : > { %2648 = vmatmul.bf16.gmra.mxu1 %v4186_v36 }
 0x1bf   : > { %v6389_v1 = vadd.f32 %v2595_v55, %v2507_v54  ;;  %v4527_v54 = vld [vmem:[#allocation2 + $0xb4] sm:$0xf0] }
 0x1c0   : > { %v2019_v62 = vpop.f32.mrf.mxu2  ;;  %v2602_v38 = vpop.f32.mrf.mxu0 }
 0x1c1   : > { %v2020_v46 = vadd.f32 %v2019_v62, %v1931_v14  ;;  %v4545_v14 = vld [vmem:[#allocation2 + $0xc8] sm:$0xf]  ;;  %v4919_v62 = vld [vmem:[#allocation2 + $0xd0] sm:$0xf0] }
 0x1c3   : > { %v1935_v39 = vpop.f32.mrf.mxu1 }
 0x1c4   : > { %v2508_v35 = vpop.f32.mrf.mxu3  ;;  %v1936_v63 = vadd.f32 %v1935_v39, %v6080_v34  ;;  %v4546_v34 = vor.u32 %v4919_v62, %v4545_v14  ;;  %v4778_v14 = vld [vmem:[#allocation2 + $0xb8] sm:$0xf0] }
 0x1c5   : > { %v2509_v7 = vadd.f32 %v2508_v35, %v2020_v46  ;;  %3251 = vmatmul.bf16.gmra.mxu2 %v4514_v23  ;;  %v4530_v23 = vor.u32 %v4914_v17, %v4527_v54  ;;  %v4775_v35 = vld [vmem:[#allocation2 + $0xa0] sm:$0xf0]  ;;  %v6618_v17 = vld [vmem:[#allocation3_spill] sm:$0xff] }
 0x1c7   : > { %v6392_v55 = vadd.f32 %v2597_v31, %v2509_v7  ;;  %v4210_v7 = vor.u32 %v4775_v35, %v4209_v40 }
 0x1c8   : > { %v2022_v30 = vpop.f32.mrf.mxu2  ;;  %v2605_v43 = vpop.f32.mrf.mxu0 }
 0x1c9   : > { %3340 = vmatmul.bf16.gmra.mxu3 %v4518_v19  ;;  %v2023_v48 = vadd.f32 %v2022_v30, %v1934_v8 }
 0x1cb   : > { %v1938_v50 = vpop.f32.mrf.mxu1  ;;  %3434 = vmatmul.bf16.gmra.mxu0 %v4534_v29  ;;  %v4918_v29 = vld [vmem:[#allocation2 + $0xc8] sm:$0xf0] }
 0x1cc   : > { %v2511_v59 = vpop.f32.mrf.mxu3  ;;  %v1939_v52 = vadd.f32 %v1938_v50, %v6099_v57  ;;  %v4538_v50 = vor.u32 %v4918_v29, %v4537_v9  ;;  %v4920_v29 = vld [vmem:[#allocation2 + $0xdc] sm:$0xf] }
 0x1cd   : > { %v2512_v37 = vadd.f32 %v2511_v59, %v2023_v48  ;;  %v4917_v59 = vld [vmem:[#allocation2 + $0xc4] sm:$0xf] }
 0x1ce   : > { %2653 = vmatmul.bf16.gmra.mxu1 %v4198_v5 }
 0x1cf   : > { %v6395_v21 = vadd.f32 %v2600_v24, %v2512_v37  ;;  %v4539_v37 = vld [vmem:[#allocation2 + $0xcc] sm:$0xf0] }
 0x1d0   : > { %v2024_v22 = vpop.f32.mrf.mxu2  ;;  %v2607_v36 = vpop.f32.mrf.mxu0 }
 0x1d1   : > { %v2025_v31 = vadd.f32 %v2024_v22, %v1936_v63  ;;  %v4557_v63 = vld [vmem:[#allocation2 + $0xe0] sm:$0xf]  ;;  %v4922_v22 = vld [vmem:[#allocation2 + $0xe8] sm:$0xf0] }
 0x1d3   : > { %v1940_v11 = vpop.f32.mrf.mxu1 }
 0x1d4   : > { %v2513_v4 = vpop.f32.mrf.mxu3  ;;  %v1941_v30 = vadd.f32 %v1940_v11, %v6113_v18  ;;  %v4558_v18 = vor.u32 %v4922_v22, %v4557_v63  ;;  %v6620_v63 = vld [vmem:[#allocation5_spill] sm:$0xff] }
 0x1d5   : > { %v2514_v46 = vadd.f32 %v2513_v4, %v2025_v31  ;;  %3256 = vmatmul.bf16.gmra.mxu2 %v4526_v41  ;;  %v4542_v41 = vor.u32 %v4917_v59, %v4539_v37  ;;  %v4221_v4 = vld [vmem:[#allocation2 + $0xb0] sm:$0xf]  ;;  %v4925_v59 = vld [vmem:[#allocation2 + $0x100] sm:$0xf0] }
 0x1d7   : > { %v6398_v24 = vadd.f32 %v2602_v38, %v2514_v46 }
 0x1d8   : > { %v2027_v39 = vpop.f32.mrf.mxu2  ;;  %v2610_v42 = vpop.f32.mrf.mxu0 }
 0x1d9   : > { %3345 = vmatmul.bf16.gmra.mxu3 %v4530_v23  ;;  %v2028_v33 = vadd.f32 %v2027_v39, %v1939_v52  ;;  %v4222_v23 = vor.u32 %v4778_v14, %v4221_v4  ;;  %v4921_v39 = vld [vmem:[#allocation2 + $0xe0] sm:$0xf0] }
 0x1db   : > { %v1943_v19 = vpop.f32.mrf.mxu1  ;;  %3439 = vmatmul.bf16.gmra.mxu0 %v4546_v34  ;;  %v4549_v34 = vld [vmem:[#allocation2 + $0xd8] sm:$0xf] }
 0x1dc   : > { %v2516_v8 = vpop.f32.mrf.mxu3  ;;  %v1944_v54 = vadd.f32 %v1943_v19, %v6618_v17  ;;  %v4550_v9 = vor.u32 %v4921_v39, %v4549_v34 }
 0x1dd   : > { %v2517_v45 = vadd.f32 %v2516_v8, %v2028_v33  ;;  %v6619_v33 = vld [vmem:[#allocation4_spill] sm:$0xff] }
 0x1de   : > { %2658 = vmatmul.bf16.gmra.mxu1 %v4210_v7 }
 0x1df   : > { %v6401_v57 = vadd.f32 %v2605_v43, %v2517_v45 }
 0x1e0   : > { %v2029_v48 = vpop.f32.mrf.mxu2  ;;  %v2612_v5 = vpop.f32.mrf.mxu0 }
 0x1e1   : > { %v2030_v38 = vadd.f32 %v2029_v48, %v1941_v30  ;;  %v4551_v30 = vld [vmem:[#allocation2 + $0xe4] sm:$0xf0] }
 0x1e3   : > { %v1945_v26 = vpop.f32.mrf.mxu1 }
 0x1e4   : > { %v2518_v60 = vpop.f32.mrf.mxu3  ;;  %v1946_v7 = vadd.f32 %v1945_v26, %v6619_v33 }
 0x1e5   : > { %v2519_v31 = vadd.f32 %v2518_v60, %v2030_v38  ;;  %3261 = vmatmul.bf16.gmra.mxu2 %v4538_v50  ;;  %v4569_v50 = vld [vmem:[#allocation2 + $0xf8] sm:$0xf]  ;;  %v4554_v60 = vor.u32 %v4920_v29, %v4551_v30  ;;  %v4581_v30 = vld [vmem:[#allocation2 + $0x110] sm:$0xf] }
 0x1e6   : > { %v4570_v26 = vor.u32 %v4925_v59, %v4569_v50 }
 0x1e7   : > { %v6404_v43 = vadd.f32 %v2607_v36, %v2519_v31  ;;  %v4233_v31 = vld [vmem:[#allocation2 + $0xc8] sm:$0xf] }
 0x1e8   : > { %v2032_v11 = vpop.f32.mrf.mxu2  ;;  %v2615_v62 = vpop.f32.mrf.mxu0 }
 0x1e9   : > { %3350 = vmatmul.bf16.gmra.mxu3 %v4542_v41  ;;  %v2033_v46 = vadd.f32 %v2032_v11, %v1944_v54  ;;  %v4781_v41 = vld [vmem:[#allocation2 + $0xd0] sm:$0xf0] }
 0x1ea   : > { %v4234_v14 = vor.u32 %v4781_v41, %v4233_v31 }
 0x1eb   : > { %v1948_v52 = vpop.f32.mrf.mxu1  ;;  %3444 = vmatmul.bf16.gmra.mxu0 %v4558_v18 }
 0x1ec   : > { %v2521_v40 = vpop.f32.mrf.mxu3  ;;  %v1949_v22 = vadd.f32 %v1948_v52, %v6620_v63 }
 0x1ed   : > { %v2522_v35 = vadd.f32 %v2521_v40, %v2033_v46  ;;  %v4924_v40 = vld [vmem:[#allocation2 + $0xf8] sm:$0xf0] }
 0x1ee   : > { %2663 = vmatmul.bf16.gmra.mxu1 %v4222_v23  ;;  %v4561_v23 = vld [vmem:[#allocation2 + $0xf0] sm:$0xf] }
 0x1ef   : > { %v6407_v19 = vadd.f32 %v2610_v42, %v2522_v35  ;;  %v6621_v35 = vld [vmem:[#allocation6_spill] sm:$0xff] }
 0x1f0   : > { %v2034_v8 = vpop.f32.mrf.mxu2  ;;  %v2617_v45 = vpop.f32.mrf.mxu0 }
 0x1f1   : > { %v2035_v36 = vadd.f32 %v2034_v8, %v1946_v7  ;;  %v4562_v7 = vor.u32 %v4924_v40, %v4561_v23  ;;  %v4923_v8 = vld [vmem:[#allocation2 + $0xf4] sm:$0xf]  ;;  %v4926_v40 = vld [vmem:[#allocation2 + $0x10c] sm:$0xf] }
 0x1f3   : > { %v1950_v48 = vpop.f32.mrf.mxu1 }
 0x1f4   : > { %v2523_v38 = vpop.f32.mrf.mxu3  ;;  %v1951_v34 = vadd.f32 %v1950_v48, %v6621_v35  ;;  %v4575_v35 = vld [vmem:[#allocation2 + $0x114] sm:$0xf0] }
 0x1f5   : > { %v2524_v37 = vadd.f32 %v2523_v38, %v2035_v36  ;;  %3266 = vmatmul.bf16.gmra.mxu2 %v4550_v9  ;;  %v4563_v36 = vld [vmem:[#allocation2 + $0xfc] sm:$0xf0]  ;;  %v4928_v38 = vld [vmem:[#allocation2 + $0x118] sm:$0xf0] }
 0x1f6   : > { %v4566_v59 = vor.u32 %v4923_v8, %v4563_v36  ;;  %v4582_v63 = vor.u32 %v4928_v38, %v4581_v30 }
 0x1f7   : > { %v6410_v42 = vadd.f32 %v2612_v5, %v2524_v37  ;;  %v4245_v37 = vld [vmem:[#allocation2 + $0xe0] sm:$0xf] }
 0x1f8   : > { %v2037_v17 = vpop.f32.mrf.mxu2  ;;  %v3410_v54 = vpop.f32.mrf.mxu0 }
 0x1f9   : > { %3355 = vmatmul.bf16.gmra.mxu3 %v4554_v60  ;;  %v2038_v4 = vadd.f32 %v2037_v17, %v1949_v22  ;;  %v4784_v60 = vld [vmem:[#allocation2 + $0xe8] sm:$0xf0]  ;;  %v4573_v17 = vld [vmem:[#allocation2 + $0x108] sm:$0xf] }
 0x1fa   : > { %v4246_v31 = vor.u32 %v4784_v60, %v4245_v37  ;;  %v4787_v37 = vld [vmem:[#allocation2 + $0x100] sm:$0xf0] }
 0x1fb   : > { %v2629_v18 = vpop.f32.mrf.mxu1  ;;  %3449 = vmatmul.bf16.gmra.mxu0 %v4570_v26 }
 0x1fc   : > { %v2526_v11 = vpop.f32.mrf.mxu3  ;;  %v2630_v8 = vadd.f32 %v2629_v18, %v6224_v28 }
 0x1fd   : > { %v2527_v46 = vadd.f32 %v2526_v11, %v2038_v4  ;;  %v4927_v4 = vld [vmem:[#allocation2 + $0x110] sm:$0xf0] }
 0x1fe   : > { %2668 = vmatmul.bf16.gmra.mxu1 %v4234_v14  ;;  %v4574_v23 = vor.u32 %v4927_v4, %v4573_v17 }
 0x1ff   : > { %v6413_v52 = vadd.f32 %v2615_v62, %v2527_v46 }
 0x200   : > { %v2039_v39 = vpop.f32.mrf.mxu2  ;;  %v3412_v33 = vpop.f32.mrf.mxu0 }
 0x201   : > { %v2040_v5 = vadd.f32 %v2039_v39, %v1951_v34 }
 0x203   : > { %v2631_v9 = vpop.f32.mrf.mxu1 }
 0x204   : > { %v2528_v29 = vpop.f32.mrf.mxu3  ;;  %v2632_v38 = vadd.f32 %v2631_v9, %v6232_v20 }
 0x205   : > { %v2529_v50 = vadd.f32 %v2528_v29, %v2040_v5  ;;  %3271 = vmatmul.bf16.gmra.mxu2 %v4562_v7  ;;  %v4593_v5 = vld [vmem:[#allocation2 + $0x128] sm:$0xf]  ;;  %v4931_v7 = vld [vmem:[#allocation2 + $0x130] sm:$0xf0]  ;;  %v4578_v29 = vor.u32 %v4926_v40, %v4575_v35 }
 0x206   : > { %v4594_v60 = vor.u32 %v4931_v7, %v4593_v5  ;;  %v4929_v7 = vld [vmem:[#allocation2 + $0x124] sm:$0xf] }
 0x207   : > { %v6415_v22 = vadd.f32 %v2617_v45, %v2529_v50 }
 0x208   : > { %v3232_v62 = vpop.f32.mrf.mxu2  ;;  %v3415_v48 = vpop.f32.mrf.mxu0 }
 0x209   : > { %3360 = vmatmul.bf16.gmra.mxu3 %v4566_v59  ;;  %v4257_v59 = vld [vmem:[#allocation2 + $0xf8] sm:$0xf] }
 0x20a   : > { %v4258_v28 = vor.u32 %v4787_v37, %v4257_v59  ;;  %v4934_v59 = vld [vmem:[#allocation2 + $0x148] sm:$0xf0] }
 0x20b   : > { %v2634_v41 = vpop.f32.mrf.mxu1  ;;  %3454 = vmatmul.bf16.gmra.mxu0 %v4582_v63 }
 0x20c   : > { %v3321_v26 = vpop.f32.mrf.mxu3 }
 0x20d   : > { %v3322_v14 = vadd.f32 %v3321_v26, %v3232_v62 }
 0x20e   : > { %2673 = vmatmul.bf16.gmra.mxu1 %v4246_v31 }
 0x20f   : > { %v3411_v34 = vadd.f32 %v3410_v54, %v3322_v14  ;;  %v4585_v14 = vld [vmem:[#allocation2 + $0x120] sm:$0xf] }
 0x210   : > { %v3234_v11 = vpop.f32.mrf.mxu2  ;;  %v3417_v46 = vpop.f32.mrf.mxu0 }
 0x211   : > { %v3490_v30 = vadd.f32 %v3411_v34, %v2630_v8  ;;  %v4587_v8 = vld [vmem:[#allocation2 + $0x12c] sm:$0xf0] }
 0x213   : > { %v2636_v39 = vpop.f32.mrf.mxu1  ;;  %v3624_v18 = vmul.f32 %v3490_v30, %v3490_v30 }
 0x214   : > { %v3323_v45 = vpop.f32.mrf.mxu3 }
 0x215   : > { %v3324_v36 = vadd.f32 %v3323_v45, %v3234_v11  ;;  %3276 = vmatmul.bf16.gmra.mxu2 %v4574_v23  ;;  %v4930_v11 = vld [vmem:[#allocation2 + $0x128] sm:$0xf0]  ;;  %v2635_v23 = vadd.f32 %v2634_v41, %v6250_v10  ;;  %v4790_v41 = vld [vmem:[#allocation2 + $0x118] sm:$0xf0] }
 0x216   : > { %v4586_v5 = vor.u32 %v4930_v11, %v4585_v14 }
 0x217   : > { %v3413_v50 = vadd.f32 %v3412_v33, %v3324_v36 }
 0x218   : > { %v3237_v63 = vpop.f32.mrf.mxu2  ;;  %v3420_v62 = vpop.f32.mrf.mxu0 }
 0x219   : > { %v3491_v54 = vadd.f32 %v3413_v50, %v2632_v38  ;;  %3365 = vmatmul.bf16.gmra.mxu3 %v4578_v29  ;;  %v4605_v50 = vld [vmem:[#allocation2 + $0x140] sm:$0xf] }
 0x21b   : > { %v5038_v31 = vpack.c.bf16 %v3491_v54, %v3490_v30  ;;  %v3586_v26 = vadd.f32 %v3491_v54, %v3490_v30  ;;  %v3625_v20 = vmul.f32 %v3491_v54, %v3491_v54  ;;  %v2639_v33 = vpop.f32.mrf.mxu1  ;;  %3459 = vmatmul.bf16.gmra.mxu0 %v4594_v60  ;;  %v2637_v54 = vadd.f32 %v2636_v39, %v6259_v32  ;;  %v4597_v32 = vld [vmem:[#allocation2 + $0x138] sm:$0xf] }
 0x21c   : > { %v3326_v9 = vpop.f32.mrf.mxu3  ;;  %v2640_v39 = vadd.f32 %v2639_v33, %v6289_v58  ;;  %v4793_v33 = vld [vmem:[#allocation2 + $0x130] sm:$0xf0] }
 0x21d   : > { %5039 = vst [vmem:[%s6424_s25] sm:$0xff] %v5038_v31   ;;  %v3656_v17 = vadd.f32 %v3625_v20, %v3624_v18  ;;  %v3327_v4 = vadd.f32 %v3326_v9, %v3237_v63  ;;  %v4590_v63 = vor.u32 %v4929_v7, %v4587_v8 }
 0x21e   : > { %2678 = vmatmul.bf16.gmra.mxu1 %v4258_v28  ;;  %v4606_v28 = vor.u32 %v4934_v59, %v4605_v50 }
 0x21f   : > { %v3416_v40 = vadd.f32 %v3415_v48, %v3327_v4  ;;  %v4269_v48 = vld [vmem:[#allocation2 + $0x110] sm:$0xf] }
 0x220   : > { %v3239_v35 = vpop.f32.mrf.mxu2  ;;  %v3422_v34 = vpop.f32.mrf.mxu0 }
 0x221   : > { %v3492_v45 = vadd.f32 %v3416_v40, %v2635_v23 }
 0x223   : > { %v3587_v36 = vadd.f32 %v3586_v26, %v3492_v45  ;;  %v3626_v29 = vmul.f32 %v3492_v45, %v3492_v45  ;;  %v2641_v30 = vpop.f32.mrf.mxu1  ;;  %v4270_v26 = vor.u32 %v4790_v41, %v4269_v48 }
 0x224   : > { %v3328_v38 = vpop.f32.mrf.mxu3  ;;  %v2642_v41 = vadd.f32 %v2641_v30, %v6297_v25  ;;  %v4609_v25 = vld [vmem:[#allocation2 + $0x150] sm:$0xf] }
 0x225   : > { %v3657_v37 = vadd.f32 %v3656_v17, %v3626_v29  ;;  %v3329_v60 = vadd.f32 %v3328_v38, %v3239_v35  ;;  %3281 = vmatmul.bf16.gmra.mxu2 %v4586_v5  ;;  %v4932_v38 = vld [vmem:[#allocation2 + $0x13c] sm:$0xf] }
 0x227   : > { %v3418_v10 = vadd.f32 %v3417_v46, %v3329_v60  ;;  %v4933_v46 = vld [vmem:[#allocation2 + $0x140] sm:$0xf0] }
 0x228   : > { %v3242_v18 = vpop.f32.mrf.mxu2  ;;  %v3425_v31 = vpop.f32.mrf.mxu0  ;;  %v4598_v29 = vor.u32 %v4933_v46, %v4597_v32 }
 0x229   : > { %v3493_v20 = vadd.f32 %v3418_v10, %v2637_v54  ;;  %3370 = vmatmul.bf16.gmra.mxu3 %v4590_v63  ;;  %v4617_v63 = vld [vmem:[#allocation2 + $0x158] sm:$0xf]  ;;  %v4937_v54 = vld [vmem:[#allocation2 + $0x160] sm:$0xf0] }
 0x22b   : > { %v5043_v9 = vpack.c.bf16 %v3493_v20, %v3492_v45  ;;  %v3588_v4 = vadd.f32 %v3587_v36, %v3493_v20  ;;  %v3627_v14 = vmul.f32 %v3493_v20, %v3493_v20  ;;  %v2644_v11 = vpop.f32.mrf.mxu1  ;;  %3464 = vmatmul.bf16.gmra.mxu0 %v4606_v28  ;;  %v4599_v45 = vld [vmem:[#allocation2 + $0x144] sm:$0xf0]  ;;  %v4618_v28 = vor.u32 %v4937_v54, %v4617_v63  ;;  %v4629_v54 = vld [vmem:[#allocation2 + $0x170] sm:$0xf] }
 0x22c   : > { %v3331_v17 = vpop.f32.mrf.mxu3  ;;  %v4602_v48 = vor.u32 %v4932_v38, %v4599_v45  ;;  %v2645_v30 = vadd.f32 %v2644_v11, %v6314_v13  ;;  %v4935_v45 = vld [vmem:[#allocation2 + $0x154] sm:$0xf]  ;;  %v4796_v11 = vld [vmem:[#allocation2 + $0x148] sm:$0xf0] }
 0x22d   : > { %5130 = vst [vmem:[%s6424_s25 + $0x8] sm:$0xff] %v5043_v9   ;;  %v3658_v23 = vadd.f32 %v3657_v37, %v3627_v14  ;;  %v3332_v40 = vadd.f32 %v3331_v17, %v3242_v18 }
 0x22e   : > { %2683 = vmatmul.bf16.gmra.mxu1 %v4270_v26 }
 0x22f   : > { %v3421_v35 = vadd.f32 %v3420_v62, %v3332_v40  ;;  %v4281_v62 = vld [vmem:[#allocation2 + $0x128] sm:$0xf] }
 0x230   : > { %v3244_v5 = vpop.f32.mrf.mxu2  ;;  %v3427_v7 = vpop.f32.mrf.mxu0  ;;  %v4282_v9 = vor.u32 %v4793_v33, %v4281_v62 }
 0x231   : > { %v3494_v8 = vadd.f32 %v3421_v35, %v2640_v39 }
 0x233   : > { %v3589_v36 = vadd.f32 %v3588_v4, %v3494_v8  ;;  %v3628_v50 = vmul.f32 %v3494_v8, %v3494_v8  ;;  %v2646_v59 = vpop.f32.mrf.mxu1 }
 0x234   : > { %v3333_v60 = vpop.f32.mrf.mxu3 }
 0x235   : > { %v3659_v37 = vadd.f32 %v3658_v23, %v3628_v50  ;;  %v3334_v10 = vadd.f32 %v3333_v60, %v3244_v5  ;;  %3286 = vmatmul.bf16.gmra.mxu2 %v4598_v29 }
 0x237   : > { %v3423_v58 = vadd.f32 %v3422_v34, %v3334_v10  ;;  %v4936_v34 = vld [vmem:[#allocation2 + $0x158] sm:$0xf0] }
 0x238   : > { %v3247_v18 = vpop.f32.mrf.mxu2  ;;  %v3430_v20 = vpop.f32.mrf.mxu0  ;;  %v4610_v38 = vor.u32 %v4936_v34, %v4609_v25  ;;  %v4940_v10 = vld [vmem:[#allocation2 + $0x178] sm:$0xf0] }
 0x239   : > { %v3495_v26 = vadd.f32 %v3423_v58, %v2642_v41  ;;  %3375 = vmatmul.bf16.gmra.mxu3 %v4602_v48  ;;  %v2647_v58 = vadd.f32 %v2646_v59, %v6322_v44  ;;  %v4630_v62 = vor.u32 %v4940_v10, %v4629_v54  ;;  %v4621_v44 = vld [vmem:[#allocation2 + $0x168] sm:$0xf]  ;;  %v4943_v54 = vld [vmem:[#allocation2 + $0x190] sm:$0xf0] }
 0x23b   : > { %v5048_v4 = vpack.c.bf16 %v3495_v26, %v3494_v8  ;;  %v3590_v14 = vadd.f32 %v3589_v36, %v3495_v26  ;;  %v3629_v17 = vmul.f32 %v3495_v26, %v3495_v26  ;;  %v2649_v40 = vpop.f32.mrf.mxu1  ;;  %3469 = vmatmul.bf16.gmra.mxu0 %v4618_v28  ;;  %v4611_v8 = vld [vmem:[#allocation2 + $0x15c] sm:$0xf0] }
 0x23c   : > { %v3336_v23 = vpop.f32.mrf.mxu3  ;;  %v4614_v41 = vor.u32 %v4935_v45, %v4611_v8  ;;  %v2650_v59 = vadd.f32 %v2649_v40, %v6346_v3  ;;  %v4799_v40 = vld [vmem:[#allocation2 + $0x160] sm:$0xf0] }
 0x23d   : > { %5131 = vst [vmem:[%s6424_s25 + $0x10] sm:$0xff] %v5048_v4   ;;  %v3660_v32 = vadd.f32 %v3659_v37, %v3629_v17  ;;  %v3337_v46 = vadd.f32 %v3336_v23, %v3247_v18 }
 0x23e   : > { %2688 = vmatmul.bf16.gmra.mxu1 %v4282_v9 }
 0x23f   : > { %v3426_v39 = vadd.f32 %v3425_v31, %v3337_v46  ;;  %v4293_v31 = vld [vmem:[#allocation2 + $0x140] sm:$0xf] }
 0x240   : > { %v3249_v35 = vpop.f32.mrf.mxu2  ;;  %v3432_v5 = vpop.f32.mrf.mxu0  ;;  %v4294_v26 = vor.u32 %v4796_v11, %v4293_v31 }
 0x241   : > { %v3496_v29 = vadd.f32 %v3426_v39, %v2645_v30 }
 0x243   : > { %v3591_v36 = vadd.f32 %v3590_v14, %v3496_v29  ;;  %v3630_v50 = vmul.f32 %v3496_v29, %v3496_v29  ;;  %v2651_v60 = vpop.f32.mrf.mxu1 }
 0x244   : > { %v3338_v63 = vpop.f32.mrf.mxu3 }
 0x245   : > { %v3661_v37 = vadd.f32 %v3660_v32, %v3630_v50  ;;  %v3339_v48 = vadd.f32 %v3338_v63, %v3249_v35  ;;  %3291 = vmatmul.bf16.gmra.mxu2 %v4610_v38  ;;  %v4938_v38 = vld [vmem:[#allocation2 + $0x16c] sm:$0xf]  ;;  %v4641_v63 = vld [vmem:[#allocation2 + $0x188] sm:$0xf] }
 0x247   : > { %v3428_v13 = vadd.f32 %v3427_v7, %v3339_v48  ;;  %v4939_v7 = vld [vmem:[#allocation2 + $0x170] sm:$0xf0] }
 0x248   : > { %v3252_v33 = vpop.f32.mrf.mxu2  ;;  %v3435_v28 = vpop.f32.mrf.mxu0  ;;  %v4622_v35 = vor.u32 %v4939_v7, %v4621_v44 }
 0x249   : > { %v3497_v18 = vadd.f32 %v3428_v13, %v2647_v58  ;;  %3380 = vmatmul.bf16.gmra.mxu3 %v4614_v41  ;;  %v2652_v41 = vadd.f32 %v2651_v60, %v6350_v0  ;;  %v4642_v58 = vor.u32 %v4943_v54, %v4641_v63  ;;  %v4633_v0 = vld [vmem:[#allocation2 + $0x180] sm:$0xf] }
 0x24b   : > { %v5053_v9 = vpack.c.bf16 %v3497_v18, %v3496_v29  ;;  %v3592_v4 = vadd.f32 %v3591_v36, %v3497_v18  ;;  %v3631_v14 = vmul.f32 %v3497_v18, %v3497_v18  ;;  %v2654_v17 = vpop.f32.mrf.mxu1  ;;  %3474 = vmatmul.bf16.gmra.mxu0 %v4630_v62  ;;  %v4623_v29 = vld [vmem:[#allocation2 + $0x174] sm:$0xf0] }
 0x24c   : > { %v3341_v23 = vpop.f32.mrf.mxu3  ;;  %v4626_v48 = vor.u32 %v4938_v38, %v4623_v29  ;;  %v2655_v60 = vadd.f32 %v2654_v17, %v6353_v16  ;;  %v4802_v17 = vld [vmem:[#allocation2 + $0x178] sm:$0xf0] }
 0x24d   : > { %5132 = vst [vmem:[%s6424_s25 + $0x18] sm:$0xff] %v5053_v9   ;;  %v3662_v32 = vadd.f32 %v3661_v37, %v3631_v14  ;;  %v3342_v46 = vadd.f32 %v3341_v23, %v3252_v33 }
 0x24e   : > { %2693 = vmatmul.bf16.gmra.mxu1 %v4294_v26 }
 0x24f   : > { %v3431_v25 = vadd.f32 %v3430_v20, %v3342_v46  ;;  %v4305_v20 = vld [vmem:[#allocation2 + $0x158] sm:$0xf] }
 0x250   : > { %v3254_v34 = vpop.f32.mrf.mxu2  ;;  %v3437_v30 = vpop.f32.mrf.mxu0  ;;  %v4306_v62 = vor.u32 %v4799_v40, %v4305_v20 }
 0x251   : > { %v3498_v39 = vadd.f32 %v3431_v25, %v2650_v59  ;;  %v4941_v25 = vld [vmem:[#allocation2 + $0x184] sm:$0xf] }
 0x253   : > { %v3593_v45 = vadd.f32 %v3592_v4, %v3498_v39  ;;  %v3632_v8 = vmul.f32 %v3498_v39, %v3498_v39  ;;  %v2656_v36 = vpop.f32.mrf.mxu1 }
 0x254   : > { %v3343_v50 = vpop.f32.mrf.mxu3 }
 0x255   : > { %v3663_v10 = vadd.f32 %v3662_v32, %v3632_v8  ;;  %v3344_v37 = vadd.f32 %v3343_v50, %v3254_v34  ;;  %3296 = vmatmul.bf16.gmra.mxu2 %v4622_v35  ;;  %v4635_v34 = vld [vmem:[#allocation2 + $0x18c] sm:$0xf0]  ;;  %v4946_v8 = vld [vmem:[#allocation2 + $0x1a8] sm:$0xf0] }
 0x256   : > { %v4638_v54 = vor.u32 %v4941_v25, %v4635_v34 }
 0x257   : > { %v3433_v3 = vadd.f32 %v3432_v5, %v3344_v37  ;;  %v4942_v5 = vld [vmem:[#allocation2 + $0x188] sm:$0xf0] }
 0x258   : > { %v3257_v13 = vpop.f32.mrf.mxu2  ;;  %v3440_v31 = vpop.f32.mrf.mxu0  ;;  %v4634_v59 = vor.u32 %v4942_v5, %v4633_v0  ;;  %v4944_v5 = vld [vmem:[#allocation2 + $0x19c] sm:$0xf] }
 0x259   : > { %v3499_v11 = vadd.f32 %v3433_v3, %v2652_v41  ;;  %3385 = vmatmul.bf16.gmra.mxu3 %v4626_v48 }
 0x25b   : > { %v5058_v33 = vpack.c.bf16 %v3499_v11, %v3498_v39  ;;  %v3594_v18 = vadd.f32 %v3593_v45, %v3499_v11  ;;  %v3633_v26 = vmul.f32 %v3499_v11, %v3499_v11  ;;  %v2659_v9 = vpop.f32.mrf.mxu1  ;;  %3479 = vmatmul.bf16.gmra.mxu0 %v4642_v58  ;;  %v4653_v45 = vld [vmem:[#allocation2 + $0x1a0] sm:$0xf] }
 0x25c   : > { %v3346_v4 = vpop.f32.mrf.mxu3  ;;  %v4654_v37 = vor.u32 %v4946_v8, %v4653_v45 }
 0x25d   : > { %5133 = vst [vmem:[%s6424_s25 + $0x20] sm:$0xff] %v5058_v33   ;;  %v3664_v14 = vadd.f32 %v3663_v10, %v3633_v26  ;;  %v3347_v23 = vadd.f32 %v3346_v4, %v3257_v13  ;;  %v2657_v10 = vadd.f32 %v2656_v36, %v6356_v2  ;;  %v4645_v2 = vld [vmem:[#allocation2 + $0x198] sm:$0xf]  ;;  %v2660_v36 = vadd.f32 %v2659_v9, %v6359_v49 }
 0x25e   : > { %2698 = vmatmul.bf16.gmra.mxu1 %v4306_v62 }
 0x25f   : > { %v3436_v32 = vadd.f32 %v3435_v28, %v3347_v23  ;;  %v4317_v28 = vld [vmem:[#allocation2 + $0x170] sm:$0xf] }
 0x260   : > { %v3259_v46 = vpop.f32.mrf.mxu2  ;;  %v3442_v44 = vpop.f32.mrf.mxu0  ;;  %v4318_v20 = vor.u32 %v4802_v17, %v4317_v28 }
 0x261   : > { %v3500_v7 = vadd.f32 %v3436_v32, %v2655_v60  ;;  %v4647_v60 = vld [vmem:[#allocation2 + $0x1a4] sm:$0xf0] }
 0x263   : > { %v3595_v39 = vadd.f32 %v3594_v18, %v3500_v7  ;;  %v3634_v35 = vmul.f32 %v3500_v7, %v3500_v7  ;;  %v2661_v38 = vpop.f32.mrf.mxu1 }
 0x264   : > { %v3348_v29 = vpop.f32.mrf.mxu3 }
 0x265   : > { %v3665_v50 = vadd.f32 %v3664_v14, %v3634_v35  ;;  %v3349_v63 = vadd.f32 %v3348_v29, %v3259_v46  ;;  %3301 = vmatmul.bf16.gmra.mxu2 %v4634_v59  ;;  %v2662_v35 = vadd.f32 %v2661_v38, %v6362_v27 }
 0x267   : > { %v3438_v16 = vadd.f32 %v3437_v30, %v3349_v63  ;;  %v4945_v30 = vld [vmem:[#allocation2 + $0x1a0] sm:$0xf0] }
 0x268   : > { %v3262_v48 = vpop.f32.mrf.mxu2  ;;  %v3445_v41 = vpop.f32.mrf.mxu0  ;;  %v4646_v0 = vor.u32 %v4945_v30, %v4645_v2 }
 0x269   : > { %v3501_v3 = vadd.f32 %v3438_v16, %v2657_v10  ;;  %3390 = vmatmul.bf16.gmra.mxu3 %v4638_v54 }
 0x26b   : > { %v5063_v40 = vpack.c.bf16 %v3501_v3, %v3500_v7  ;;  %v3596_v58 = vadd.f32 %v3595_v39, %v3501_v3  ;;  %v3635_v13 = vmul.f32 %v3501_v3, %v3501_v3  ;;  %v2664_v11 = vpop.f32.mrf.mxu1  ;;  %3484 = vmatmul.bf16.gmra.mxu0 %v4654_v37  ;;  %v4650_v39 = vor.u32 %v4944_v5, %v4647_v60 }
 0x26c   : > { %v3351_v62 = vpop.f32.mrf.mxu3  ;;  %v2665_v28 = vadd.f32 %v2664_v11, %v6365_v15 }
 0x26d   : > { %5134 = vst [vmem:[%s6424_s25 + $0x28] sm:$0xff] %v5063_v40   ;;  %v3666_v33 = vadd.f32 %v3665_v50, %v3635_v13  ;;  %v3352_v18 = vadd.f32 %v3351_v62, %v3262_v48 }
 0x26e   : > { %2703 = vmatmul.bf16.gmra.mxu1 %v4318_v20 }
 0x26f   : > { %v3441_v26 = vadd.f32 %v3440_v31, %v3352_v18 }
 0x270   : > { %v3264_v4 = vpop.f32.mrf.mxu2  ;;  %v3447_v14 = vpop.f32.mrf.mxu0 }
 0x271   : > { %v3502_v23 = vadd.f32 %v3441_v26, %v2660_v36 }
 0x273   : > { %v3597_v32 = vadd.f32 %v3596_v58, %v3502_v23  ;;  %v3636_v46 = vmul.f32 %v3502_v23, %v3502_v23  ;;  %v2666_v7 = vpop.f32.mrf.mxu1 }
 0x274   : > { %v3353_v59 = vpop.f32.mrf.mxu3  ;;  %v2667_v13 = vadd.f32 %v2666_v7, %v6368_v53 }
 0x275   : > { %v3667_v25 = vadd.f32 %v3666_v33, %v3636_v46  ;;  %v3354_v34 = vadd.f32 %v3353_v59, %v3264_v4  ;;  %3306 = vmatmul.bf16.gmra.mxu2 %v4646_v0 }
 0x277   : > { %v3443_v29 = vadd.f32 %v3442_v44, %v3354_v34 }
 0x278   : > { %v3267_v49 = vpop.f32.mrf.mxu2  ;;  %v3450_v31 = vpop.f32.mrf.mxu0 }
 0x279   : > { %v3503_v9 = vadd.f32 %v3443_v29, %v2662_v35  ;;  %3395 = vmatmul.bf16.gmra.mxu3 %v4650_v39 }
 0x27b   : > { %v5068_v45 = vpack.c.bf16 %v3503_v9, %v3502_v23  ;;  %v3598_v8 = vadd.f32 %v3597_v32, %v3503_v9  ;;  %v3637_v50 = vmul.f32 %v3503_v9, %v3503_v9  ;;  %v2669_v63 = vpop.f32.mrf.mxu1 }
 0x27c   : > { %v3356_v54 = vpop.f32.mrf.mxu3  ;;  %v2670_v23 = vadd.f32 %v2669_v63, %v6371_v51 }
 0x27d   : > { %5135 = vst [vmem:[%s6424_s25 + $0x30] sm:$0xff] %v5068_v45   ;;  %v3668_v10 = vadd.f32 %v3667_v25, %v3637_v50  ;;  %v3357_v16 = vadd.f32 %v3356_v54, %v3267_v49 }
 0x27f   : > { %v3446_v17 = vadd.f32 %v3445_v41, %v3357_v16 }
 0x280   : > { %v3269_v37 = vpop.f32.mrf.mxu2  ;;  %v3452_v48 = vpop.f32.mrf.mxu0 }
 0x281   : > { %v3504_v3 = vadd.f32 %v3446_v17, %v2665_v28 }
 0x283   : > { %v3599_v27 = vadd.f32 %v3598_v8, %v3504_v3  ;;  %v3638_v44 = vmul.f32 %v3504_v3, %v3504_v3  ;;  %v2671_v38 = vpop.f32.mrf.mxu1 }
 0x284   : > { %v3358_v20 = vpop.f32.mrf.mxu3  ;;  %v2672_v34 = vadd.f32 %v2671_v38, %v6374_v56 }
 0x285   : > { %v3669_v40 = vadd.f32 %v3668_v10, %v3638_v44  ;;  %v3359_v58 = vadd.f32 %v3358_v20, %v3269_v37 }
 0x287   : > { %v3448_v62 = vadd.f32 %v3447_v14, %v3359_v58 }
 0x288   : > { %v3272_v33 = vpop.f32.mrf.mxu2  ;;  %v3455_v18 = vpop.f32.mrf.mxu0 }
 0x289   : > { %v3505_v2 = vadd.f32 %v3448_v62, %v2667_v13 }
 0x28b   : > { %v5073_v30 = vpack.c.bf16 %v3505_v2, %v3504_v3  ;;  %v3600_v36 = vadd.f32 %v3599_v27, %v3505_v2  ;;  %v3639_v15 = vmul.f32 %v3505_v2, %v3505_v2  ;;  %v2674_v41 = vpop.f32.mrf.mxu1 }
 0x28c   : > { %v3361_v11 = vpop.f32.mrf.mxu3  ;;  %v2675_v54 = vadd.f32 %v2674_v41, %v6377_v47 }
 0x28d   : > { %5136 = vst [vmem:[%s6424_s25 + $0x38] sm:$0xff] %v5073_v30   ;;  %v3670_v26 = vadd.f32 %v3669_v40, %v3639_v15  ;;  %v3362_v4 = vadd.f32 %v3361_v11, %v3272_v33 }
 0x28f   : > { %v3451_v0 = vadd.f32 %v3450_v31, %v3362_v4 }
 0x290   : > { %v3274_v5 = vpop.f32.mrf.mxu2  ;;  %v3457_v60 = vpop.f32.mrf.mxu0 }
 0x291   : > { %v3506_v32 = vadd.f32 %v3451_v0, %v2670_v23 }
 0x293   : > { %v3601_v46 = vadd.f32 %v3600_v36, %v3506_v32  ;;  %v3640_v53 = vmul.f32 %v3506_v32, %v3506_v32  ;;  %v2676_v14 = vpop.f32.mrf.mxu1 }
 0x294   : > { %v3363_v7 = vpop.f32.mrf.mxu3  ;;  %v2677_v38 = vadd.f32 %v2676_v14, %v6380_v6 }
 0x295   : > { %v3671_v59 = vadd.f32 %v3670_v26, %v3640_v53  ;;  %v3364_v25 = vadd.f32 %v3363_v7, %v3274_v5 }
 0x297   : > { %v3453_v39 = vadd.f32 %v3452_v48, %v3364_v25 }
 0x298   : > { %v3277_v35 = vpop.f32.mrf.mxu2  ;;  %v3460_v29 = vpop.f32.mrf.mxu0 }
 0x299   : > { %v3507_v49 = vadd.f32 %v3453_v39, %v2672_v34 }
 0x29b   : > { %v5078_v9 = vpack.c.bf16 %v3507_v49, %v3506_v32  ;;  %v3602_v45 = vadd.f32 %v3601_v46, %v3507_v49  ;;  %v3641_v51 = vmul.f32 %v3507_v49, %v3507_v49  ;;  %v2679_v31 = vpop.f32.mrf.mxu1 }
 0x29c   : > { %v3366_v8 = vpop.f32.mrf.mxu3  ;;  %v2680_v15 = vadd.f32 %v2679_v31, %v6383_v61 }
 0x29d   : > { %5137 = vst [vmem:[%s6424_s25 + $0x40] sm:$0xff] %v5078_v9   ;;  %v3672_v50 = vadd.f32 %v3671_v59, %v3641_v51  ;;  %v3367_v63 = vadd.f32 %v3366_v8, %v3277_v35 }
 0x29f   : > { %v3456_v10 = vadd.f32 %v3455_v18, %v3367_v63 }
 0x2a0   : > { %v3279_v16 = vpop.f32.mrf.mxu2  ;;  %v3462_v17 = vpop.f32.mrf.mxu0 }
 0x2a1   : > { %v3508_v28 = vadd.f32 %v3456_v10, %v2675_v54 }
 0x2a3   : > { %v3603_v37 = vadd.f32 %v3602_v45, %v3508_v28  ;;  %v3642_v56 = vmul.f32 %v3508_v28, %v3508_v28  ;;  %v2681_v48 = vpop.f32.mrf.mxu1 }
 0x2a4   : > { %v3368_v3 = vpop.f32.mrf.mxu3  ;;  %v2682_v46 = vadd.f32 %v2681_v48, %v6386_v12 }
 0x2a5   : > { %v3673_v27 = vadd.f32 %v3672_v50, %v3642_v56  ;;  %v3369_v44 = vadd.f32 %v3368_v3, %v3279_v16 }
 0x2a7   : > { %v3458_v20 = vadd.f32 %v3457_v60, %v3369_v44 }
 0x2a8   : > { %v3282_v40 = vpop.f32.mrf.mxu2  ;;  %v3465_v2 = vpop.f32.mrf.mxu0 }
 0x2a9   : > { %v3509_v58 = vadd.f32 %v3458_v20, %v2677_v38 }
 0x2ab   : > { %v5083_v13 = vpack.c.bf16 %v3509_v58, %v3508_v28  ;;  %v3604_v62 = vadd.f32 %v3603_v37, %v3509_v58  ;;  %v3643_v33 = vmul.f32 %v3509_v58, %v3509_v58  ;;  %v2684_v47 = vpop.f32.mrf.mxu1 }
 0x2ac   : > { %v3371_v18 = vpop.f32.mrf.mxu3  ;;  %v2685_v49 = vadd.f32 %v2684_v47, %v6389_v1 }
 0x2ad   : > { %5138 = vst [vmem:[%s6424_s25 + $0x48] sm:$0xff] %v5083_v13   ;;  %v3674_v30 = vadd.f32 %v3673_v27, %v3643_v33  ;;  %v3372_v36 = vadd.f32 %v3371_v18, %v3282_v40 }
 0x2af   : > { %v3461_v41 = vadd.f32 %v3460_v29, %v3372_v36 }
 0x2b0   : > { %v3284_v11 = vpop.f32.mrf.mxu2  ;;  %v3467_v32 = vpop.f32.mrf.mxu0 }
 0x2b1   : > { %v3510_v26 = vadd.f32 %v3461_v41, %v2680_v15 }
 0x2b3   : > { %v3605_v4 = vadd.f32 %v3604_v62, %v3510_v26  ;;  %v3644_v6 = vmul.f32 %v3510_v26, %v3510_v26  ;;  %v2686_v0 = vpop.f32.mrf.mxu1 }
 0x2b4   : > { %v3373_v23 = vpop.f32.mrf.mxu3  ;;  %v2687_v10 = vadd.f32 %v2686_v0, %v6392_v55 }
 0x2b5   : > { %v3675_v5 = vadd.f32 %v3674_v30, %v3644_v6  ;;  %v3374_v60 = vadd.f32 %v3373_v23, %v3284_v11 }
 0x2b7   : > { %v3463_v53 = vadd.f32 %v3462_v17, %v3374_v60 }
 0x2b8   : > { %v3287_v14 = vpop.f32.mrf.mxu2  ;;  %v3470_v51 = vpop.f32.mrf.mxu0 }
 0x2b9   : > { %v3511_v7 = vadd.f32 %v3463_v53, %v2682_v46 }
 0x2bb   : > { %v5088_v59 = vpack.c.bf16 %v3511_v7, %v3510_v26  ;;  %v3606_v25 = vadd.f32 %v3605_v4, %v3511_v7  ;;  %v3645_v34 = vmul.f32 %v3511_v7, %v3511_v7  ;;  %v2689_v29 = vpop.f32.mrf.mxu1 }
 0x2bc   : > { %v3376_v61 = vpop.f32.mrf.mxu3  ;;  %v2690_v20 = vadd.f32 %v2689_v29, %v6395_v21 }
 0x2bd   : > { %5139 = vst [vmem:[%s6424_s25 + $0x50] sm:$0xff] %v5088_v59   ;;  %v3676_v39 = vadd.f32 %v3675_v5, %v3645_v34  ;;  %v3377_v35 = vadd.f32 %v3376_v61, %v3287_v14 }
 0x2bf   : > { %v3466_v9 = vadd.f32 %v3465_v2, %v3377_v35 }
 0x2c0   : > { %v3289_v45 = vpop.f32.mrf.mxu2  ;;  %v3472_v56 = vpop.f32.mrf.mxu0 }
 0x2c1   : > { %v3512_v31 = vadd.f32 %v3466_v9, %v2685_v49 }
 0x2c3   : > { %v3607_v8 = vadd.f32 %v3606_v25, %v3512_v31  ;;  %v3646_v12 = vmul.f32 %v3512_v31, %v3512_v31  ;;  %v2691_v17 = vpop.f32.mrf.mxu1 }
 0x2c4   : > { %v3378_v50 = vpop.f32.mrf.mxu3  ;;  %v2692_v36 = vadd.f32 %v2691_v17, %v6398_v24 }
 0x2c5   : > { %v3677_v63 = vadd.f32 %v3676_v39, %v3646_v12  ;;  %v3379_v54 = vadd.f32 %v3378_v50, %v3289_v45 }
 0x2c7   : > { %v3468_v16 = vadd.f32 %v3467_v32, %v3379_v54 }
 0x2c8   : > { %v3292_v28 = vpop.f32.mrf.mxu2  ;;  %v3475_v18 = vpop.f32.mrf.mxu0 }
 0x2c9   : > { %v3513_v37 = vadd.f32 %v3468_v16, %v2687_v10 }
 0x2cb   : > { %v5093_v48 = vpack.c.bf16 %v3513_v37, %v3512_v31  ;;  %v3608_v3 = vadd.f32 %v3607_v8, %v3513_v37  ;;  %v3647_v1 = vmul.f32 %v3513_v37, %v3513_v37  ;;  %v2694_v62 = vpop.f32.mrf.mxu1 }
 0x2cc   : > { %v3381_v27 = vpop.f32.mrf.mxu3  ;;  %v2695_v32 = vadd.f32 %v2694_v62, %v6401_v57 }
 0x2cd   : > { %5140 = vst [vmem:[%s6424_s25 + $0x58] sm:$0xff] %v5093_v48   ;;  %v3678_v44 = vadd.f32 %v3677_v63, %v3647_v1  ;;  %v3382_v38 = vadd.f32 %v3381_v27, %v3292_v28 }
 0x2cf   : > { %v3471_v40 = vadd.f32 %v3470_v51, %v3382_v38 }
 0x2d0   : > { %v3294_v58 = vpop.f32.mrf.mxu2  ;;  %v3477_v60 = vpop.f32.mrf.mxu0 }
 0x2d1   : > { %v3514_v13 = vadd.f32 %v3471_v40, %v2690_v20 }
 0x2d3   : > { %v3609_v55 = vadd.f32 %v3608_v3, %v3514_v13  ;;  %v3648_v33 = vmul.f32 %v3514_v13, %v3514_v13  ;;  %v2696_v23 = vpop.f32.mrf.mxu1 }
 0x2d4   : > { %v3383_v47 = vpop.f32.mrf.mxu3  ;;  %v2697_v39 = vadd.f32 %v2696_v23, %v6404_v43 }
 0x2d5   : > { %v3679_v2 = vadd.f32 %v3678_v44, %v3648_v33  ;;  %v3384_v30 = vadd.f32 %v3383_v47, %v3294_v58  ;;  %v5192_v58 = vmov 0.0  }
 0x2d6   : > { %3694 = vst [vmem:[%s6472_s28 + $0x2] sm:$0x3f] %v5192_v58 }
 0x2d7   : > { %v3473_v15 = vadd.f32 %v3472_v56, %v3384_v30 }
 0x2d8   : > { %v3297_v41 = vpop.f32.mrf.mxu2  ;;  %v3480_v29 = vpop.f32.mrf.mxu0 }
 0x2d9   : > { %v3515_v11 = vadd.f32 %v3473_v15, %v2692_v36 }
 0x2db   : > { %v5098_v26 = vpack.c.bf16 %v3515_v11, %v3514_v13  ;;  %v3610_v4 = vadd.f32 %v3609_v55, %v3515_v11  ;;  %v3649_v6 = vmul.f32 %v3515_v11, %v3515_v11  ;;  %v2699_v61 = vpop.f32.mrf.mxu1 }
 0x2dc   : > { %v3386_v21 = vpop.f32.mrf.mxu3  ;;  %v2700_v50 = vadd.f32 %v2699_v61, %v6407_v19 }
 0x2dd   : > { %5141 = vst [vmem:[%s6424_s25 + $0x60] sm:$0xff] %v5098_v26   ;;  %v3680_v0 = vadd.f32 %v3679_v2, %v3649_v6  ;;  %v3387_v5 = vadd.f32 %v3386_v21, %v3297_v41 }
 0x2df   : > { %v3476_v46 = vadd.f32 %v3475_v18, %v3387_v5 }
 0x2e0   : > { %v3299_v53 = vpop.f32.mrf.mxu2  ;;  %v3482_v28 = vpop.f32.mrf.mxu0 }
 0x2e1   : > { %v3516_v14 = vadd.f32 %v3476_v46, %v2695_v32 }
 0x2e3   : > { %v3611_v7 = vadd.f32 %v3610_v4, %v3516_v14  ;;  %v3650_v24 = vmul.f32 %v3516_v14, %v3516_v14  ;;  %v2701_v54 = vpop.f32.mrf.mxu1 }
 0x2e4   : > { %v3388_v59 = vpop.f32.mrf.mxu3  ;;  %v2702_v3 = vadd.f32 %v2701_v54, %v6410_v42 }
 0x2e5   : > { %v3681_v25 = vadd.f32 %v3680_v0, %v3650_v24  ;;  %v3389_v34 = vadd.f32 %v3388_v59, %v3299_v53 }
 0x2e7   : > { %v3478_v35 = vadd.f32 %v3477_v60, %v3389_v34 }
 0x2e8   : > { %v3302_v49 = vpop.f32.mrf.mxu2  ;;  %v3485_v13 = vpop.f32.mrf.mxu0 }
 0x2e9   : > { %v3517_v9 = vadd.f32 %v3478_v35, %v2697_v39 }
 0x2eb   : > { %v5103_v45 = vpack.c.bf16 %v3517_v9, %v3516_v14  ;;  %v3612_v51 = vadd.f32 %v3611_v7, %v3517_v9  ;;  %v3651_v31 = vmul.f32 %v3517_v9, %v3517_v9  ;;  %v2704_v38 = vpop.f32.mrf.mxu1 }
 0x2ec   : > { %v3391_v57 = vpop.f32.mrf.mxu3  ;;  %v2705_v33 = vadd.f32 %v2704_v38, %v6413_v52 }
 0x2ed   : > { %5142 = vst [vmem:[%s6424_s25 + $0x68] sm:$0xff] %v5103_v45   ;;  %v3682_v8 = vadd.f32 %v3681_v25, %v3651_v31  ;;  %v3392_v12 = vadd.f32 %v3391_v57, %v3302_v49 }
 0x2ef   : > { %v3481_v63 = vadd.f32 %v3480_v29, %v3392_v12 }
 0x2f0   : > { %v3304_v10 = vpop.f32.mrf.mxu2  ;;  %v3487_v4 = vpop.f32.mrf.mxu0 }
 0x2f1   : > { %v3518_v16 = vadd.f32 %v3481_v63, %v2700_v50 }
 0x2f3   : > { %v3613_v43 = vadd.f32 %v3612_v51, %v3518_v16  ;;  %v3652_v17 = vmul.f32 %v3518_v16, %v3518_v16  ;;  %v2706_v15 = vpop.f32.mrf.mxu1 }
 0x2f4   : > { %v3393_v37 = vpop.f32.mrf.mxu3  ;;  %v2707_v6 = vadd.f32 %v2706_v15, %v6415_v22 }
 0x2f5   : > { %v3683_v56 = vadd.f32 %v3682_v8, %v3652_v17  ;;  %v3394_v48 = vadd.f32 %v3393_v37, %v3304_v10 }
 0x2f7   : > { %v3483_v1 = vadd.f32 %v3482_v28, %v3394_v48 }
 0x2f8   : > { %v3307_v27 = vpop.f32.mrf.mxu2 }
 0x2f9   : > { %v3519_v44 = vadd.f32 %v3483_v1, %v2702_v3 }
 0x2fb   : > { %v5108_v19 = vpack.c.bf16 %v3519_v44, %v3518_v16  ;;  %v3614_v20 = vadd.f32 %v3613_v43, %v3519_v44  ;;  %v3653_v40 = vmul.f32 %v3519_v44, %v3519_v44 }
 0x2fc   : > { %v3396_v62 = vpop.f32.mrf.mxu3 }
 0x2fd   : > { %5143 = vst [vmem:[%s6424_s25 + $0x70] sm:$0xff] %v5108_v19   ;;  %v3684_v42 = vadd.f32 %v3683_v56, %v3653_v40  ;;  %v3397_v55 = vadd.f32 %v3396_v62, %v3307_v27 }
 0x2ff   : > { %v3486_v47 = vadd.f32 %v3485_v13, %v3397_v55 }
 0x300   : > { %v3309_v2 = vpop.f32.mrf.mxu2 }
 0x301   : > { %v3520_v18 = vadd.f32 %v3486_v47, %v2705_v33 }
 0x303   : > { %v3615_v30 = vadd.f32 %v3614_v20, %v3520_v18  ;;  %v3654_v36 = vmul.f32 %v3520_v18, %v3520_v18 }
 0x304   : > { %v3398_v41 = vpop.f32.mrf.mxu3 }
 0x305   : > { %v3685_v11 = vadd.f32 %v3684_v42, %v3654_v36  ;;  %v3399_v26 = vadd.f32 %v3398_v41, %v3309_v2 }
 0x307   : > { %v3488_v21 = vadd.f32 %v3487_v4, %v3399_v26 }
 0x309   : > { %v3521_v23 = vadd.f32 %v3488_v21, %v2707_v6 }
 0x30b   : > { %v5113_v0 = vpack.c.bf16 %v3521_v23, %v3520_v18  ;;  %v3616_v5 = vadd.f32 %v3615_v30, %v3521_v23  ;;  %v3655_v60 = vmul.f32 %v3521_v23, %v3521_v23 }
 0x30d   : > { %5144 = vst [vmem:[%s6424_s25 + $0x78] sm:$0xff] %v5113_v0   ;;  %v3617_v52 = vrot.slane %v3616_v5, 4  ;;  %v3686_v32 = vadd.f32 %v3685_v11, %v3655_v60 }
 0x30f   : > { %v3618_v46 = vadd.f32 %v3617_v52, %v3616_v5  ;;  %v3687_v53 = vrot.slane %v3686_v32, 4 }
 0x311   : > { %v3619_v14 = vrot.slane %v3618_v46, 2  ;;  %v3688_v7 = vadd.f32 %v3687_v53, %v3686_v32 }
 0x313   : > { %v3620_v24 = vadd.f32 %v3619_v14, %v3618_v46  ;;  %v3689_v59 = vrot.slane %v3688_v7, 2 }
 0x315   : > { %v3621_v25 = vrot.slane %v3620_v24, 1  ;;  %v3690_v34 = vadd.f32 %v3689_v59, %v3688_v7 }
 0x317   : > { %v3622_v61 = vadd.f32 %v3621_v25, %v3620_v24  ;;  %v3691_v22 = vrot.slane %v3690_v34, 1 }
 0x319   : > { %3623 = vst [vmem:[%s6472_s28] sm:$0x1] %v3622_v61  ;;  %v3692_v39 = vadd.f32 %v3691_v22, %v3690_v34 }
 0x31b   : > { %3693 = vst [vmem:[%s6472_s28 + $0x1] sm:$0x1] %v3692_v39 }
 0x31c PF: > { %s16_s18 = sadd.s32 1, %s5189_s18  }
 0x31d   : > { %p13_p4 = scmp.ge.s32.totalorder %s16_s18, 4  }
 0x31f   :  { %15 = sbr.rel (!%p13_p4) target bundleno = 1 (0x1), region = 83 }

// kernel: resnet_block_forward.4
= control target key start
LH: loop header
LB: loop body
LE: loop exit
PB: predicated region body
PF: predicated region fallthrough
CT: control target
= control target key end

     0   :  { %s5255_s18 = smov 0   ;;  %s6524_s0 = inlined_call_operand.vmem [shape: bf16[2,16,16,128], index: 0, kind: input, shape index: {}]   ;;  %s6525_s1 = inlined_call_operand.vmem [shape: bf16[3,384,128], index: 1, kind: input, shape index: {}]   ;;  %s6526_s2 = inlined_call_operand.vmem [shape: f32[1,128], index: 2, kind: input, shape index: {}]   ;;  %s6527_s3 = inlined_call_operand.vmem [shape: f32[1,128], index: 3, kind: input, shape index: {}]   ;;  %s6528_s4 = inlined_call_operand.vmem [shape: bf16[2,16,16,128], index: 4, kind: output, shape index: {0}]   ;;  %s6529_s5 = inlined_call_operand.vmem [shape: f32[2,8,128], index: 5, kind: output, shape index: {1}]  }
   0x1 LB: > { %s3813_s19 = sadd.s32 4294967295, %s5221_s18   ;;  %p3817_p0 = scmp.ge.s32.totalorder %s5221_s18, 1  ;;  %s5221_s18 = sphi %s5255_s18, %s16_s18  }
   0x2   : > { %p190_p1 = scmp.lt.s32.totalorder %s5221_s18, 3 }
   0x4   : > { %p191_p2 = pnand %p3817_p0, %p190_p1 }
   0x6   : > { %194 = sbr.rel (%p191_p2) target bundleno = 803 (0x323), region = 36 }
   0xb   : > { %v4914_v0 = vld [vmem:[%s6525_s1 + $0xf8] sm:$0xff]  ;;  %p222_p3 = scmp.lt.s32.totalorder %s3813_s19, 1  ;;  %vm479_vm0 = vcmask 1040384   ;;  %vm480_vm1 = vsmask.f32 256  ;;  %v4913_v1 = vld [vmem:[%s6525_s1 + $0xf0] sm:$0xff] }
   0xc   : > { %1807 = vmatpush.bf16.msra.mxu0 %v4914_v0  ;;  %5177 = vmatpush.bf16.msra.mxu1 %v4914_v0  ;;  %v5275_v2 = vld [vmem:[%s6526_s2] ss:$0 sm:$0xff]  ;;  %vm5278_vm2 = vmand %vm479_vm0, %vm480_vm1  ;;  %v482_v4 = vld [vmem:[#allocation2 + $0x18] sm:$0x1]  ;;  %vm530_vm3 = vsmask.f32 4368 }
   0xd   : > { %s6663_s19 = smov (!%p222_p3, %s3813_s19), 1  ;;  %5178 = vmatpush.bf16.msra.mxu2 %v4914_v0  ;;  %5179 = vmatpush.bf16.msra.mxu3 %v4914_v0  ;;  %v5292_v5 = vld [vmem:[%s6527_s3] ss:$0 sm:$0xff]  ;;  %v483_v6 = vsel %vm5278_vm2, 0, %v482_v4  ;;  %v494_v7 = vld [vmem:[#allocation2 + $0x78] sm:$0x1]  ;;  %vm5364_vm6 = vmor %vm480_vm1, %vm530_vm3 }
   0xe   : > { %s4785_s24 = sshll.u32 %s6663_s19, 7  ;;  %v4912_v8 = vld [vmem:[%s6525_s1 + $0xe8] sm:$0xff]  ;;  %484 = vst [vmem:[#allocation2 + $0x18] sm:$0x1] %v483_v6  ;;  %v495_v11 = vsel %vm5278_vm2, 0, %v494_v7  ;;  %vm820_vm4 = vcmask 1043456  }
   0xf   : > { %s5287_s29 = scalar_lea.vmem %s6524_s0, %s4785_s24  ;;  %496 = vst [vmem:[#allocation2 + $0x78] sm:$0x1] %v495_v11  ;;  %v506_v17 = vld [vmem:[#allocation2 + $0xd8] sm:$0x1]  ;;  %vm821_vm5 = vsmask.f32 7938  ;;  %s6464_s25 = scalar_lea.vmem %s6528_s4, %s4785_s24 }
  0x10   : > { %1808 = vmatpush.bf16.msra.mxu0 %v4913_v1  ;;  %5180 = vmatpush.bf16.msra.mxu1 %v4913_v1  ;;  %v5004_v9 = vld [vmem:[%s5287_s29] sm:$0xff]   ;;  %v507_v21 = vsel %vm5278_vm2, 0, %v506_v17  ;;  %v518_v23 = vld [vmem:[#allocation2 + $0x138] sm:$0x1]  ;;  %v4909_v54 = vld [vmem:[%s6525_s1 + $0xd0] sm:$0xff]  ;;  %vm1131_vm12 = vcmask 1043459  }
  0x11   : > { %v5150_v10 = vld [vmem:[%s5287_s29 + $0x20] sm:$0xff]   ;;  %5181 = vmatpush.bf16.msra.mxu2 %v4913_v1  ;;  %5182 = vmatpush.bf16.msra.mxu3 %v4913_v1  ;;  %v5005_v12 = vunpack.c.l.bf16 %v5004_v9  ;;  %v5006_v13 = vunpack.c.h.bf16 %v5004_v9  ;;  %508 = vst [vmem:[#allocation2 + $0xd8] sm:$0x1] %v507_v21  ;;  %v519_v36 = vsel %vm5278_vm2, 0, %v518_v23  ;;  %v4910_v45 = vld [vmem:[%s6525_s1 + $0xd8] sm:$0xff]  ;;  %vm5380_vm7 = vmand %vm820_vm4, %vm821_vm5  ;;  %s3822_s24 = sshll.u32 %s6663_s19, 3 }
  0x12   : > { %v5021_v14 = vunpack.c.l.bf16 %v5150_v10  ;;  %v5022_v15 = vunpack.c.h.bf16 %v5150_v10  ;;  %v5154_v16 = vld [vmem:[%s5287_s29 + $0x40] sm:$0xff]   ;;  %520 = vst [vmem:[#allocation2 + $0x138] sm:$0x1] %v519_v36  ;;  %vm887_vm8 = vsmask.f32 3328  ;;  %s6512_s28 = scalar_lea.vmem %s6529_s5, %s3822_s24 }
  0x13   : > { %v5158_v18 = vld [vmem:[%s5287_s29 + $0x60] sm:$0xff]   ;;  %v5037_v19 = vunpack.c.l.bf16 %v5154_v16  ;;  %v5038_v20 = vunpack.c.h.bf16 %v5154_v16  ;;  %v306_v24 = vmul.f32 %v5275_v2, %v5005_v12  ;;  %v307_v25 = vmul.f32 %v5275_v2, %v5006_v13  ;;  %v4908_v12 = vld [vmem:[%s6525_s1 + $0xc8] sm:$0xff]  ;;  %vm5956_vm11 = vmand %vm820_vm4, %vm887_vm8 }
  0x14   : > { %v5053_v22 = vunpack.c.l.bf16 %v5158_v18  ;;  %v314_v26 = vmul.f32 %v5275_v2, %v5021_v14  ;;  %v315_v27 = vmul.f32 %v5275_v2, %v5022_v15  ;;  %1809 = vmatpush.bf16.msra.mxu0 %v4912_v8  ;;  %5183 = vmatpush.bf16.msra.mxu1 %v4912_v8  ;;  %v4911_v28 = vld [vmem:[%s6525_s1 + $0xe0] sm:$0xff]  ;;  %v5054_v31 = vunpack.c.h.bf16 %v5158_v18  ;;  %v5147_v18 = vld [vmem:[%s5287_s29 + $0x8] sm:$0xff]  }
  0x15   : > { %v322_v29 = vmul.f32 %v5275_v2, %v5037_v19  ;;  %v323_v30 = vmul.f32 %v5275_v2, %v5038_v20  ;;  %5184 = vmatpush.bf16.msra.mxu2 %v4912_v8  ;;  %5185 = vmatpush.bf16.msra.mxu3 %v4912_v8  ;;  %v341_v33 = vadd.f32 %v5292_v5, %v306_v24  ;;  %v823_v63 = vld [vmem:[#allocation2 + $0x18] sm:$0xf]  ;;  %vm888_vm9 = vsmask.f32 7440 }
  0x16   : > { %v330_v32 = vmul.f32 %v5275_v2, %v5053_v22  ;;  %v342_v34 = vadd.f32 %v5292_v5, %v307_v25  ;;  %v349_v35 = vadd.f32 %v5292_v5, %v314_v26  ;;  %v350_v37 = vadd.f32 %v5292_v5, %v315_v27  ;;  %v839_v22 = vld [vmem:[#allocation2 + $0x78] sm:$0xf]  ;;  %vm5926_vm10 = vmor %vm887_vm8, %vm888_vm9 }
  0x17   : > { %v357_v38 = vadd.f32 %v5292_v5, %v322_v29  ;;  %v358_v39 = vadd.f32 %v5292_v5, %v323_v30  ;;  %v331_v40 = vmul.f32 %v5275_v2, %v5054_v31  ;;  %v373_v41 = vmax.f32 %v341_v33, 0.0  ;;  %v5412_v33 = vld [vmem:[#allocation2 + $0x30] sm:$0x1] }
  0x18   : > { %v374_v42 = vmax.f32 %v342_v34, 0.0  ;;  %v381_v43 = vmax.f32 %v349_v35, 0.0  ;;  %v5327_v44 = vadd.f32 %v5292_v5, %v330_v32  ;;  %1810 = vmatpush.bf16.msra.mxu0 %v4911_v28  ;;  %5186 = vmatpush.bf16.msra.mxu1 %v4911_v28  ;;  %v382_v46 = vmax.f32 %v350_v37, 0.0 }
  0x19   : > { %v389_v47 = vmax.f32 %v357_v38, 0.0  ;;  %v390_v48 = vmax.f32 %v358_v39, 0.0  ;;  %v5333_v49 = vadd.f32 %v5292_v5, %v331_v40  ;;  %5187 = vmatpush.bf16.msra.mxu2 %v4911_v28  ;;  %5188 = vmatpush.bf16.msra.mxu3 %v4911_v28  ;;  %v5335_v50 = vpack.c.bf16 %v373_v41, %v373_v41  ;;  %v855_v28 = vld [vmem:[#allocation2 + $0xd8] sm:$0xf]  ;;  %v4907_v38 = vld [vmem:[%s6525_s1 + $0xc0] sm:$0xff] }
  0x1a   : > { %v5337_v51 = vpack.c.bf16 %v374_v42, %v374_v42  ;;  %v5339_v52 = vpack.c.bf16 %v381_v43, %v381_v43  ;;  %v397_v53 = vmax.f32 %v5327_v44, 0.0  ;;  %v5345_v55 = vpack.c.bf16 %v382_v46, %v382_v46  ;;  %v5151_v43 = vld [vmem:[%s5287_s29 + $0x28] sm:$0xff]   ;;  %v5430_v44 = vld [vmem:[#allocation2 + $0x90] sm:$0x1] }
  0x1b   : > { %v5347_v56 = vpack.c.bf16 %v389_v47, %v389_v47  ;;  %v5349_v57 = vpack.c.bf16 %v390_v48, %v390_v48  ;;  %v398_v58 = vmax.f32 %v5333_v49, 0.0  ;;  %v533_v59 = vshrl.u32 %v5335_v50, 16  ;;  %447 = vst [vmem:[#allocation2 + $0x1c] sm:$0xf] %v5335_v50  ;;  %v5155_v49 = vld [vmem:[%s5287_s29 + $0x48] sm:$0xff]  }
  0x1c   : > { %v536_v60 = vshll.u32 %v5335_v50, 16  ;;  %v541_v61 = vshrl.u32 %v5337_v51, 16  ;;  %v544_v62 = vshll.u32 %v5337_v51, 16  ;;  %1811 = vmatpush.bf16.msra.mxu0 %v4910_v45  ;;  %5189 = vmatpush.bf16.msra.mxu1 %v4910_v45  ;;  %448 = vst [vmem:[#allocation2 + $0x28] sm:$0xf] %v5337_v51  ;;  %v6552_v0 = vshrl.u32 %v5339_v52, 16 }
  0x1d   : > { %v6551_v1 = vshll.u32 %v5339_v52, 16  ;;  %v6553_v4 = vshrl.u32 %v5345_v55, 16  ;;  %v6556_v6 = vshll.u32 %v5345_v55, 16  ;;  %5190 = vmatpush.bf16.msra.mxu2 %v4910_v45  ;;  %5191 = vmatpush.bf16.msra.mxu3 %v4910_v45  ;;  %v535_v8 = vrot.slane %v533_v59, 7  ;;  %455 = vst [vmem:[#allocation2 + $0x7c] sm:$0xf] %v5339_v52 }
  0x1e   : > { %v543_v9 = vrot.slane %v541_v61, 7  ;;  %v6542_v10 = vshrl.u32 %v5347_v56, 16  ;;  %v6539_v11 = vshll.u32 %v5347_v56, 16  ;;  %v599_v14 = vrot.slane %v6552_v0, 7  ;;  %456 = vst [vmem:[#allocation2 + $0x88] sm:$0xf] %v5345_v55 }
  0x1f   : > { %v607_v15 = vrot.slane %v6553_v4, 7  ;;  %v6544_v16 = vshrl.u32 %v5349_v57, 16  ;;  %v6545_v17 = vshll.u32 %v5349_v57, 16  ;;  %v538_v19 = vor.u32 %v536_v60, %v535_v8  ;;  %463 = vst [vmem:[#allocation2 + $0xdc] sm:$0xf] %v5347_v56  ;;  %v4918_v0 = vld [vmem:[%s6525_s1 + $0x118] sm:$0xff] }
  0x20   : > { %v539_v20 = vrot.slane %v535_v8, 4  ;;  %v546_v21 = vor.u32 %v544_v62, %v543_v9  ;;  %v663_v23 = vrot.slane %v6542_v10, 7  ;;  %1812 = vmatpush.bf16.msra.mxu0 %v4909_v54  ;;  %5192 = vmatpush.bf16.msra.mxu1 %v4909_v54  ;;  %v602_v24 = vor.u32 %v6551_v1, %v599_v14  ;;  %464 = vst [vmem:[#allocation2 + $0xe8] sm:$0xf] %v5349_v57  ;;  %v5002_v51 = vld [vmem:[%s6525_s1 + $0x238] sm:$0xff] }
  0x21   : > { %v603_v25 = vrot.slane %v599_v14, 4  ;;  %v610_v26 = vor.u32 %v6556_v6, %v607_v15  ;;  %v671_v27 = vrot.slane %v6544_v16, 7  ;;  %5193 = vmatpush.bf16.msra.mxu2 %v4909_v54  ;;  %5194 = vmatpush.bf16.msra.mxu3 %v4909_v54  ;;  %v824_v30 = vsel %vm5380_vm7, %v538_v19, %v823_v63  ;;  %v4922_v14 = vld [vmem:[%s6525_s1 + $0x138] sm:$0xff] }
  0x22   : > { %v547_v29 = vsel %vm5364_vm6, %v539_v20, %v546_v21  ;;  %v666_v31 = vor.u32 %v6539_v11, %v663_v23  ;;  %v667_v32 = vrot.slane %v663_v23, 4  ;;  %825 = vst [vmem:[#allocation2 + $0x18] sm:$0xf] %v824_v30  ;;  %v840_v35 = vsel %vm5380_vm7, %v602_v24, %v839_v22  ;;  %v871_v21 = vld [vmem:[#allocation2 + $0x138] sm:$0xf] }
  0x23   : > { %v611_v34 = vsel %vm5364_vm6, %v603_v25, %v610_v26  ;;  %v674_v36 = vor.u32 %v6545_v17, %v671_v27  ;;  %v5420_v37 = vpack.c.bf16 %v397_v53, %v397_v53  ;;  %826 = vst [vmem:[#allocation2 + $0x24] sm:$0xf] %v547_v29  ;;  %v5427_v40 = vpack.c.bf16 %v398_v58, %v398_v58  ;;  %v4930_v58 = vld [vmem:[%s6525_s1 + $0x178] sm:$0xff]  ;;  %v5160_v17 = vld [vmem:[%s5287_s29 + $0x70] sm:$0xff]  }
  0x24   : > { %v856_v39 = vsel %vm5380_vm7, %v666_v31, %v855_v28  ;;  %v5009_v41 = vunpack.c.l.bf16 %v5147_v18  ;;  %v5010_v42 = vunpack.c.h.bf16 %v5147_v18  ;;  %1813 = vmatpush.bf16.msra.mxu0 %v4908_v12  ;;  %5195 = vmatpush.bf16.msra.mxu1 %v4908_v12  ;;  %841 = vst [vmem:[#allocation2 + $0x78] sm:$0xf] %v840_v35  ;;  %v486_v48 = vsel %vm5278_vm2, 0, %v5412_v33  ;;  %v4850_v22 = vld [vmem:[%s6525_s1 + $0x78] sm:$0xff] }
  0x25   : > { %v675_v45 = vsel %vm5364_vm6, %v667_v32, %v674_v36  ;;  %v6531_v46 = vshrl.u32 %v5420_v37, 16  ;;  %v6530_v47 = vshll.u32 %v5420_v37, 16  ;;  %5196 = vmatpush.bf16.msra.mxu2 %v4908_v12  ;;  %5197 = vmatpush.bf16.msra.mxu3 %v4908_v12  ;;  %842 = vst [vmem:[#allocation2 + $0x84] sm:$0xf] %v611_v34  ;;  %v6532_v53 = vshrl.u32 %v5427_v40, 16  ;;  %v4842_v12 = vld [vmem:[%s6525_s1 + $0x38] sm:$0xff] }
  0x26   : > { %v6533_v54 = vshll.u32 %v5427_v40, 16  ;;  %v308_v63 = vmul.f32 %v5275_v2, %v5009_v41  ;;  %v309_v8 = vmul.f32 %v5275_v2, %v5010_v42  ;;  %857 = vst [vmem:[#allocation2 + $0xd8] sm:$0xf] %v856_v39  ;;  %v5025_v15 = vunpack.c.l.bf16 %v5151_v43  ;;  %v4841_v39 = vld [vmem:[%s6525_s1 + $0x30] sm:$0xff] }
  0x27   : > { %v727_v9 = vrot.slane %v6531_v46, 7  ;;  %v5026_v18 = vunpack.c.h.bf16 %v5151_v43  ;;  %v498_v19 = vsel %vm5278_vm2, 0, %v5430_v44  ;;  %858 = vst [vmem:[#allocation2 + $0xe4] sm:$0xf] %v675_v45  ;;  %v735_v20 = vrot.slane %v6532_v53, 7  ;;  %v5152_v46 = vld [vmem:[%s5287_s29 + $0x30] sm:$0xff]  }
  0x28   : > { %v343_v23 = vadd.f32 %v5292_v5, %v308_v63  ;;  %v344_v24 = vadd.f32 %v5292_v5, %v309_v8  ;;  %v5041_v25 = vunpack.c.l.bf16 %v5155_v49  ;;  %1814 = vmatpush.bf16.msra.mxu0 %v4907_v38  ;;  %5198 = vmatpush.bf16.msra.mxu1 %v4907_v38  ;;  %471 = vst [vmem:[#allocation2 + $0x13c] sm:$0xf] %v5420_v37  ;;  %v5042_v29 = vunpack.c.h.bf16 %v5155_v49 }
  0x29   : > { %v730_v26 = vor.u32 %v6530_v47, %v727_v9  ;;  %v731_v27 = vrot.slane %v727_v9, 4  ;;  %v316_v28 = vmul.f32 %v5275_v2, %v5025_v15  ;;  %5199 = vmatpush.bf16.msra.mxu2 %v4907_v38  ;;  %5200 = vmatpush.bf16.msra.mxu3 %v4907_v38  ;;  %v3873_v30 = vld [vmem:[#allocation2 + $0x18] sm:$0xf]  ;;  %v738_v31 = vor.u32 %v6533_v54, %v735_v20  ;;  %v4929_v38 = vld [vmem:[%s6525_s1 + $0x170] sm:$0xff] }
  0x2a   : > { %472 = vst [vmem:[#allocation2 + $0x148] sm:$0xf] %v5427_v40  ;;  %v375_v32 = vmax.f32 %v343_v23, 0.0  ;;  %v376_v33 = vmax.f32 %v344_v24, 0.0  ;;  %v317_v34 = vmul.f32 %v5275_v2, %v5026_v18  ;;  %v4860_v35 = vld [vmem:[#allocation2 + $0x20] sm:$0xf0]  ;;  %v324_v42 = vmul.f32 %v5275_v2, %v5041_v25 }
  0x2b   : > { %v872_v36 = vsel %vm5380_vm7, %v730_v26, %v871_v21  ;;  %487 = vst [vmem:[#allocation2 + $0x30] sm:$0x1] %v486_v48  ;;  %v351_v41 = vadd.f32 %v5292_v5, %v316_v28  ;;  %v3874_v43 = vor.u32 %v4860_v35, %v3873_v30  ;;  %v3921_v45 = vld [vmem:[#allocation2 + $0x78] sm:$0xf]  ;;  %v739_v49 = vsel %vm5364_vm6, %v731_v27, %v738_v31 }
  0x2c   : > { %873 = vst [vmem:[#allocation2 + $0x138] sm:$0xf] %v872_v36  ;;  %1896 = vmatpush.bf16.msrb.mxu1 %v4922_v14  ;;  %2563 = vmatpush.bf16.msrb.mxu0 %v4850_v22  ;;  %v4872_v63 = vld [vmem:[#allocation2 + $0x80] sm:$0xf0]  ;;  %v5487_v8 = vpack.c.bf16 %v376_v33, %v376_v33  ;;  %v352_v48 = vadd.f32 %v5292_v5, %v317_v34  ;;  %v5495_v22 = vld [vmem:[#allocation2 + $0xf0] sm:$0x1]  ;;  %v5062_v4 = vunpack.c.h.bf16 %v5160_v17 }
  0x2d   : > { %1985 = vmatpush.bf16.msrb.mxu2 %v4930_v58  ;;  %2474 = vmatpush.bf16.msrb.mxu3 %v4842_v12  ;;  %v5485_v58 = vpack.c.bf16 %v375_v32, %v375_v32  ;;  %874 = vst [vmem:[#allocation2 + $0x144] sm:$0xf] %v739_v49  ;;  %v383_v9 = vmax.f32 %v351_v41, 0.0  ;;  %v325_v12 = vmul.f32 %v5275_v2, %v5042_v29  ;;  %v3969_v18 = vld [vmem:[#allocation2 + $0xd8] sm:$0xf]  ;;  %v5510_v32 = vld [vmem:[%s5287_s29 + $0x68] sm:$0xff]  }
  0x2e   : > { %1815 = vmatmul.bf16.vlgmr.msra.gmra.mxu0 %v3874_v43  ;;  %v3922_v15 = vor.u32 %v4872_v63, %v3921_v45  ;;  %v359_v14 = vadd.f32 %v5292_v5, %v324_v42  ;;  %v4884_v23 = vld [vmem:[#allocation2 + $0xe0] sm:$0xf0]  ;;  %v6574_v24 = vshrl.u32 %v5487_v8, 16  ;;  %v6575_v25 = vshll.u32 %v5487_v8, 16  ;;  %450 = vst [vmem:[#allocation2 + $0x40] sm:$0xf] %v5487_v8 }
  0x2f   : > { %v549_v20 = vshrl.u32 %v5485_v58, 16  ;;  %v552_v21 = vshll.u32 %v5485_v58, 16  ;;  %449 = vst [vmem:[#allocation2 + $0x34] sm:$0xf] %v5485_v58  ;;  %v5500_v26 = vpack.c.bf16 %v383_v9, %v383_v9  ;;  %v360_v27 = vadd.f32 %v5292_v5, %v325_v12  ;;  %v5523_v42 = vld [vmem:[#allocation2 + $0x150] sm:$0x1] }
  0x30   : > { %1835 = vmatmul.bf16.vlgmr.msra.gmra.mxu1 %v3922_v15  ;;  %v3970_v28 = vor.u32 %v4884_v23, %v3969_v18  ;;  %v384_v30 = vmax.f32 %v352_v48, 0.0  ;;  %499 = vst [vmem:[#allocation2 + $0x90] sm:$0x1] %v498_v19  ;;  %v391_v31 = vmax.f32 %v359_v14, 0.0  ;;  %v559_v33 = vrot.slane %v6574_v24, 7  ;;  %v4921_v43 = vld [vmem:[%s6525_s1 + $0x130] sm:$0xff] }
  0x31   : > { %1986 = vmatpush.bf16.msrb.mxu2 %v4929_v38  ;;  %2475 = vmatpush.bf16.msrb.mxu3 %v4841_v39  ;;  %v551_v29 = vrot.slane %v549_v20, 7  ;;  %v6547_v34 = vshrl.u32 %v5500_v26, 16  ;;  %v6546_v35 = vshll.u32 %v5500_v26, 16  ;;  %457 = vst [vmem:[#allocation2 + $0x94] sm:$0xf] %v5500_v26  ;;  %v392_v36 = vmax.f32 %v360_v27, 0.0 }
  0x32   : > { %1855 = vmatmul.bf16.vlgmr.msra.gmra.mxu2 %v3970_v28  ;;  %v827_v44 = vld [vmem:[#allocation2 + $0x30] sm:$0xf]  ;;  %v5519_v19 = vpack.c.bf16 %v384_v30, %v384_v30  ;;  %v5521_v41 = vpack.c.bf16 %v391_v31, %v391_v31  ;;  %v4928_v45 = vld [vmem:[%s6525_s1 + $0x168] sm:$0xff]  ;;  %v562_v63 = vor.u32 %v6575_v25, %v559_v33  ;;  %v510_v12 = vsel %vm5278_vm2, 0, %v5495_v22  ;;  %1897 = vmatpush.bf16.msrb.mxu1 %v4921_v43  ;;  %v4839_v43 = vld [vmem:[%s6525_s1 + $0x20] sm:$0xff] }
  0x33   : > { %v554_v38 = vor.u32 %v552_v21, %v551_v29  ;;  %v555_v39 = vrot.slane %v551_v29, 4  ;;  %v4017_v49 = vld [vmem:[#allocation2 + $0x138] sm:$0xf]  ;;  %v615_v48 = vrot.slane %v6547_v34, 7  ;;  %v5535_v9 = vpack.c.bf16 %v392_v36, %v392_v36  ;;  %v4840_v15 = vld [vmem:[%s6525_s1 + $0x28] sm:$0xff]  ;;  %v4849_v18 = vld [vmem:[%s6525_s1 + $0x70] sm:$0xff] }
  0x34   : > { %v4896_v14 = vld [vmem:[#allocation2 + $0x140] sm:$0xf0]  ;;  %v6548_v27 = vshrl.u32 %v5519_v19, 16  ;;  %v6549_v28 = vshll.u32 %v5519_v19, 16  ;;  %458 = vst [vmem:[#allocation2 + $0xa0] sm:$0xf] %v5519_v19  ;;  %v5057_v22 = vunpack.c.l.bf16 %v5510_v32  ;;  %2564 = vmatpush.bf16.msrb.mxu0 %v4849_v18 }
  0x35   : > { %v828_v23 = vsel %vm5380_vm7, %v554_v38, %v827_v44  ;;  %1987 = vmatpush.bf16.msrb.mxu2 %v4928_v45  ;;  %v5148_v29 = vld [vmem:[%s5287_s29 + $0x10] sm:$0xff]   ;;  %v4018_v30 = vor.u32 %v4896_v14, %v4017_v49  ;;  %v563_v31 = vsel %vm5364_vm6, %v555_v39, %v562_v63  ;;  %v618_v33 = vor.u32 %v6546_v35, %v615_v48  ;;  %v4920_v38 = vld [vmem:[%s6525_s1 + $0x128] sm:$0xff]  ;;  %v4927_v44 = vld [vmem:[%s6525_s1 + $0x160] sm:$0xff] }
  0x36   : > { %829 = vst [vmem:[#allocation2 + $0x30] sm:$0xf] %v828_v23  ;;  %v619_v36 = vrot.slane %v615_v48, 4  ;;  %2476 = vmatpush.bf16.msrb.mxu3 %v4840_v15  ;;  %v623_v39 = vrot.slane %v6548_v27, 7  ;;  %v6535_v45 = vshrl.u32 %v5521_v41, 16  ;;  %v6534_v49 = vshll.u32 %v5521_v41, 16  ;;  %1898 = vmatpush.bf16.msrb.mxu1 %v4920_v38 }
  0x37   : > { %830 = vst [vmem:[#allocation2 + $0x3c] sm:$0xf] %v563_v31  ;;  %v6537_v63 = vshrl.u32 %v5535_v9, 16  ;;  %1875 = vmatmul.bf16.vlgmr.msra.gmra.mxu3 %v4018_v30  ;;  %v843_v48 = vld [vmem:[#allocation2 + $0x90] sm:$0xf]  ;;  %v6538_v15 = vshll.u32 %v5535_v9, 16  ;;  %v5058_v14 = vunpack.c.h.bf16 %v5510_v32  ;;  %v332_v23 = vmul.f32 %v5275_v2, %v5057_v22 }
  0x38   : > { %511 = vst [vmem:[#allocation2 + $0xf0] sm:$0x1] %v510_v12  ;;  %v522_v31 = vsel %vm5278_vm2, 0, %v5523_v42  ;;  %v626_v47 = vor.u32 %v6549_v28, %v623_v39  ;;  %v844_v18 = vsel %vm5380_vm7, %v618_v33, %v843_v48  ;;  %v679_v12 = vrot.slane %v6535_v45, 7  ;;  %v4848_v32 = vld [vmem:[%s6525_s1 + $0x68] sm:$0xff]  ;;  %v4847_v35 = vld [vmem:[%s6525_s1 + $0x60] sm:$0xff] }
  0x39   : > { %v687_v30 = vrot.slane %v6537_v63, 7  ;;  %465 = vst [vmem:[#allocation2 + $0xf4] sm:$0xf] %v5521_v41  ;;  %1988 = vmatpush.bf16.msrb.mxu2 %v4927_v44  ;;  %v333_v42 = vmul.f32 %v5275_v2, %v5058_v14  ;;  %v367_v22 = vadd.f32 %v5292_v5, %v332_v23  ;;  %v5013_v33 = vunpack.c.l.bf16 %v5148_v29  ;;  %v488_v48 = vld [vmem:[#allocation2 + $0x48] sm:$0x1]  ;;  %2565 = vmatpush.bf16.msrb.mxu0 %v4848_v32  ;;  %v5149_v34 = vld [vmem:[%s5287_s29 + $0x18] sm:$0xff]  }
  0x3a   : > { %845 = vst [vmem:[#allocation2 + $0x90] sm:$0xf] %v844_v18  ;;  %2477 = vmatpush.bf16.msrb.mxu3 %v4839_v43  ;;  %v5014_v39 = vunpack.c.h.bf16 %v5148_v29  ;;  %v627_v53 = vsel %vm5364_vm6, %v619_v36, %v626_v47  ;;  %v682_v38 = vor.u32 %v6534_v49, %v679_v12  ;;  %v683_v44 = vrot.slane %v679_v12, 4  ;;  %v500_v18 = vld [vmem:[#allocation2 + $0xa8] sm:$0x1]  ;;  %v4915_v25 = vld [vmem:[%s6525_s1 + $0x100] sm:$0xff] }
  0x3b   : > { %v690_v54 = vor.u32 %v6538_v15, %v687_v30  ;;  %466 = vst [vmem:[#allocation2 + $0x100] sm:$0xf] %v5535_v9  ;;  %v368_v43 = vadd.f32 %v5292_v5, %v333_v42  ;;  %v399_v14 = vmax.f32 %v367_v22, 0.0  ;;  %v310_v29 = vmul.f32 %v5275_v2, %v5013_v33 }
  0x3c   : > { %846 = vst [vmem:[#allocation2 + $0x9c] sm:$0xf] %v627_v53  ;;  %v311_v23 = vmul.f32 %v5275_v2, %v5014_v39  ;;  %v489_v12 = vsel %vm5278_vm2, 0, %v488_v48  ;;  %v5029_v30 = vunpack.c.l.bf16 %v5152_v46  ;;  %v5030_v32 = vunpack.c.h.bf16 %v5152_v46  ;;  %v5156_v46 = vld [vmem:[%s5287_s29 + $0x50] sm:$0xff]  }
  0x3d   : > { %v3885_v47 = vld [vmem:[#allocation2 + $0x30] sm:$0xf]  ;;  %v691_v36 = vsel %vm5364_vm6, %v683_v44, %v690_v54  ;;  %523 = vst [vmem:[#allocation2 + $0x150] sm:$0x1] %v522_v31  ;;  %v400_v42 = vmax.f32 %v368_v43, 0.0  ;;  %v5606_v22 = vpack.c.bf16 %v399_v14, %v399_v14  ;;  %v345_v33 = vadd.f32 %v5292_v5, %v310_v29  ;;  %2566 = vmatpush.bf16.msrb.mxu0 %v4847_v35 }
  0x3e   : > { %v4863_v53 = vld [vmem:[#allocation2 + $0x38] sm:$0xf0]  ;;  %862 = vst [vmem:[#allocation2 + $0xfc] sm:$0xf] %v691_v36  ;;  %v346_v39 = vadd.f32 %v5292_v5, %v311_v23  ;;  %v318_v54 = vmul.f32 %v5275_v2, %v5029_v30  ;;  %v319_v31 = vmul.f32 %v5275_v2, %v5030_v32  ;;  %v501_v48 = vsel %vm5278_vm2, 0, %v500_v18 }
  0x3f   : > { %v3886_v49 = vor.u32 %v4863_v53, %v3885_v47  ;;  %v859_v45 = vld [vmem:[#allocation2 + $0xf0] sm:$0xf]  ;;  %490 = vst [vmem:[#allocation2 + $0x48] sm:$0x1] %v489_v12  ;;  %v5617_v43 = vpack.c.bf16 %v400_v42, %v400_v42  ;;  %v6536_v14 = vshrl.u32 %v5606_v22, 16  ;;  %v6540_v29 = vshll.u32 %v5606_v22, 16 }
  0x40   : > { %v860_v44 = vsel %vm5380_vm7, %v682_v38, %v859_v45  ;;  %473 = vst [vmem:[#allocation2 + $0x154] sm:$0xf] %v5606_v22  ;;  %v377_v47 = vmax.f32 %v345_v33, 0.0  ;;  %v378_v36 = vmax.f32 %v346_v39, 0.0  ;;  %v353_v12 = vadd.f32 %v5292_v5, %v318_v54 }
  0x41   : > { %1820 = vmatmul.bf16.gmra.mxu0 %v3886_v49  ;;  %v3933_v23 = vld [vmem:[#allocation2 + $0x90] sm:$0xf]  ;;  %861 = vst [vmem:[#allocation2 + $0xf0] sm:$0xf] %v860_v44  ;;  %v354_v18 = vadd.f32 %v5292_v5, %v319_v31  ;;  %v743_v45 = vrot.slane %v6536_v14, 7  ;;  %v6541_v38 = vshrl.u32 %v5617_v43, 16  ;;  %v5045_v32 = vunpack.c.l.bf16 %v5156_v46 }
  0x42   : > { %v6543_v30 = vshll.u32 %v5617_v43, 16  ;;  %474 = vst [vmem:[#allocation2 + $0x160] sm:$0xf] %v5617_v43  ;;  %v5629_v49 = vpack.c.bf16 %v377_v47, %v377_v47  ;;  %v5631_v42 = vpack.c.bf16 %v378_v36, %v378_v36  ;;  %v385_v33 = vmax.f32 %v353_v12, 0.0 }
  0x43   : > { %v4875_v53 = vld [vmem:[#allocation2 + $0x98] sm:$0xf0]  ;;  %v386_v39 = vmax.f32 %v354_v18, 0.0  ;;  %502 = vst [vmem:[#allocation2 + $0xa8] sm:$0x1] %v501_v48  ;;  %v746_v31 = vor.u32 %v6540_v29, %v743_v45  ;;  %v747_v44 = vrot.slane %v743_v45, 4  ;;  %v5046_v45 = vunpack.c.h.bf16 %v5156_v46 }
  0x44   : > { %v3934_v54 = vor.u32 %v4875_v53, %v3933_v23  ;;  %v751_v14 = vrot.slane %v6541_v38, 7  ;;  %v875_v63 = vld [vmem:[#allocation2 + $0x150] sm:$0xf]  ;;  %v6571_v15 = vshrl.u32 %v5629_v49, 16  ;;  %v6560_v11 = vshll.u32 %v5629_v49, 16 }
  0x45   : > { %v6572_v47 = vshrl.u32 %v5631_v42, 16  ;;  %v6573_v36 = vshll.u32 %v5631_v42, 16  ;;  %v4887_v12 = vld [vmem:[#allocation2 + $0xf8] sm:$0xf0]  ;;  %v876_v23 = vsel %vm5380_vm7, %v746_v31, %v875_v63  ;;  %451 = vst [vmem:[#allocation2 + $0x4c] sm:$0xf] %v5629_v49  ;;  %v5646_v18 = vpack.c.bf16 %v385_v33, %v385_v33 }
  0x46   : > { %1840 = vmatmul.bf16.gmra.mxu1 %v3934_v54  ;;  %v754_v48 = vor.u32 %v6543_v30, %v751_v14  ;;  %v5648_v53 = vld [vmem:[#allocation2 + $0x108] sm:$0x1]  ;;  %877 = vst [vmem:[#allocation2 + $0x150] sm:$0xf] %v876_v23  ;;  %v567_v29 = vrot.slane %v6571_v15, 7  ;;  %v5654_v10 = vpack.c.bf16 %v386_v39, %v386_v39  ;;  %v326_v14 = vmul.f32 %v5275_v2, %v5045_v32  ;;  %v4923_v15 = vld [vmem:[%s6525_s1 + $0x140] sm:$0xff] }
  0x47   : > { %v575_v54 = vrot.slane %v6572_v47, 7  ;;  %v831_v38 = vld [vmem:[#allocation2 + $0x48] sm:$0xf]  ;;  %452 = vst [vmem:[#allocation2 + $0x58] sm:$0xf] %v5631_v42  ;;  %v6550_v46 = vshrl.u32 %v5646_v18, 16  ;;  %v327_v23 = vmul.f32 %v5275_v2, %v5046_v45  ;;  %v5017_v35 = vunpack.c.l.bf16 %v5149_v34 }
  0x48   : > { %v3981_v63 = vld [vmem:[#allocation2 + $0xf0] sm:$0xf]  ;;  %v755_v33 = vsel %vm5364_vm6, %v747_v44, %v754_v48  ;;  %v6554_v31 = vshll.u32 %v5646_v18, 16  ;;  %v5663_v30 = vld [vmem:[#allocation2 + $0x168] sm:$0x1]  ;;  %v570_v32 = vor.u32 %v6560_v11, %v567_v29  ;;  %v571_v16 = vrot.slane %v567_v29, 4 }
  0x49   : > { %v3982_v39 = vor.u32 %v4887_v12, %v3981_v63  ;;  %878 = vst [vmem:[#allocation2 + $0x15c] sm:$0xf] %v755_v33  ;;  %v578_v44 = vor.u32 %v6573_v36, %v575_v54  ;;  %v4919_v48 = vld [vmem:[%s6525_s1 + $0x120] sm:$0xff]  ;;  %v4926_v45 = vld [vmem:[%s6525_s1 + $0x158] sm:$0xff]  ;;  %v631_v63 = vrot.slane %v6550_v46, 7  ;;  %v6555_v29 = vshrl.u32 %v5654_v10, 16 }
  0x4a   : > { %v4838_v12 = vld [vmem:[%s6525_s1 + $0x18] sm:$0xff]  ;;  %v6559_v33 = vshll.u32 %v5654_v10, 16  ;;  %v361_v54 = vadd.f32 %v5292_v5, %v326_v14  ;;  %v832_v28 = vsel %vm5380_vm7, %v570_v32, %v831_v38  ;;  %v847_v46 = vld [vmem:[#allocation2 + $0xa8] sm:$0xf]  ;;  %459 = vst [vmem:[#allocation2 + $0xac] sm:$0xf] %v5646_v18  ;;  %v362_v1 = vadd.f32 %v5292_v5, %v327_v23  ;;  %1899 = vmatpush.bf16.msrb.mxu1 %v4919_v48 }
  0x4b   : > { %1860 = vmatmul.bf16.gmra.mxu2 %v3982_v39  ;;  %v579_v27 = vsel %vm5364_vm6, %v571_v16, %v578_v44  ;;  %v513_v14 = vsel %vm5278_vm2, 0, %v5648_v53  ;;  %833 = vst [vmem:[#allocation2 + $0x48] sm:$0xf] %v832_v28  ;;  %v634_v16 = vor.u32 %v6554_v31, %v631_v63  ;;  %v635_v39 = vrot.slane %v631_v63, 4  ;;  %v4925_v23 = vld [vmem:[%s6525_s1 + $0x150] sm:$0xff]  ;;  %2478 = vmatpush.bf16.msrb.mxu3 %v4838_v12 }
  0x4c   : > { %v639_v38 = vrot.slane %v6555_v29, 7  ;;  %v393_v32 = vmax.f32 %v361_v54, 0.0  ;;  %1989 = vmatpush.bf16.msrb.mxu2 %v4926_v45  ;;  %834 = vst [vmem:[#allocation2 + $0x54] sm:$0xf] %v579_v27  ;;  %v394_v53 = vmax.f32 %v362_v1, 0.0  ;;  %v5061_v44 = vunpack.c.l.bf16 %v5160_v17  ;;  %v4837_v48 = vld [vmem:[%s6525_s1 + $0x10] sm:$0xff] }
  0x4d   : > { %v525_v28 = vsel %vm5278_vm2, 0, %v5663_v30  ;;  %v4846_v45 = vld [vmem:[%s6525_s1 + $0x58] sm:$0xff]  ;;  %v4029_v63 = vld [vmem:[#allocation2 + $0x150] sm:$0xf]  ;;  %v848_v17 = vsel %vm5380_vm7, %v634_v16, %v847_v46  ;;  %460 = vst [vmem:[#allocation2 + $0xb8] sm:$0xf] %v5654_v10  ;;  %v335_v54 = vmul.f32 %v5275_v2, %v5062_v4  ;;  %v5018_v31 = vunpack.c.h.bf16 %v5149_v34 }
  0x4e   : > { %v642_v1 = vor.u32 %v6559_v33, %v639_v38  ;;  %v5721_v27 = vpack.c.bf16 %v393_v32, %v393_v32  ;;  %849 = vst [vmem:[#allocation2 + $0xa8] sm:$0xf] %v848_v17  ;;  %v5723_v30 = vpack.c.bf16 %v394_v53, %v394_v53  ;;  %v334_v12 = vmul.f32 %v5275_v2, %v5061_v44  ;;  %v5728_v29 = vld [vmem:[%s5287_s29 + $0x38] sm:$0xff]  }
  0x4f   : > { %514 = vst [vmem:[#allocation2 + $0x108] sm:$0x1] %v513_v14  ;;  %1900 = vmatpush.bf16.msrb.mxu1 %v4918_v0  ;;  %v312_v32 = vmul.f32 %v5275_v2, %v5017_v35  ;;  %2479 = vmatpush.bf16.msrb.mxu3 %v4837_v48  ;;  %v370_v0 = vadd.f32 %v5292_v5, %v335_v54  ;;  %v5034_v17 = vunpack.c.h.bf16 %v5728_v29  ;;  %v6598_v58 = vshrl.u32 %v5631_v42, 16 }
  0x50   : > { %v4899_v6 = vld [vmem:[#allocation2 + $0x158] sm:$0xf0]  ;;  %v643_v38 = vsel %vm5364_vm6, %v635_v39, %v642_v1  ;;  %v6557_v46 = vshrl.u32 %v5721_v27, 16  ;;  %v6563_v16 = vshll.u32 %v5721_v27, 16  ;;  %1990 = vmatpush.bf16.msrb.mxu2 %v4925_v23  ;;  %v6558_v4 = vshrl.u32 %v5723_v30, 16  ;;  %2567 = vmatpush.bf16.msrb.mxu0 %v4846_v45 }
  0x51   : > { %v4030_v53 = vor.u32 %v4899_v6, %v4029_v63  ;;  %850 = vst [vmem:[#allocation2 + $0xb4] sm:$0xf] %v643_v38  ;;  %v6564_v34 = vshll.u32 %v5723_v30, 16  ;;  %v369_v44 = vadd.f32 %v5292_v5, %v334_v12  ;;  %v313_v39 = vmul.f32 %v5275_v2, %v5018_v31  ;;  %v491_v23 = vld [vmem:[#allocation2 + $0x60] sm:$0x1] }
  0x52   : > { %v695_v14 = vrot.slane %v6557_v46, 7  ;;  %467 = vst [vmem:[#allocation2 + $0x10c] sm:$0xf] %v5721_v27  ;;  %v347_v6 = vadd.f32 %v5292_v5, %v312_v32  ;;  %v3897_v63 = vld [vmem:[#allocation2 + $0x48] sm:$0xf]  ;;  %v703_v1 = vrot.slane %v6558_v4, 7  ;;  %v5033_v45 = vunpack.c.l.bf16 %v5728_v29 }
  0x53   : > { %1880 = vmatmul.bf16.gmra.mxu3 %v4030_v53  ;;  %468 = vst [vmem:[#allocation2 + $0x118] sm:$0xf] %v5723_v30  ;;  %v401_v48 = vmax.f32 %v369_v44, 0.0  ;;  %v4866_v35 = vld [vmem:[#allocation2 + $0x50] sm:$0xf0]  ;;  %v402_v54 = vmax.f32 %v370_v0, 0.0  ;;  %v348_v38 = vadd.f32 %v5292_v5, %v313_v39 }
  0x54   : > { %v698_v12 = vor.u32 %v6563_v16, %v695_v14  ;;  %v699_v31 = vrot.slane %v695_v14, 4  ;;  %526 = vst [vmem:[#allocation2 + $0x168] sm:$0x1] %v525_v28  ;;  %v3898_v32 = vor.u32 %v4866_v35, %v3897_v63  ;;  %v706_v53 = vor.u32 %v6564_v34, %v703_v1  ;;  %v503_v1 = vld [vmem:[#allocation2 + $0xc0] sm:$0x1] }
  0x55   : > { %v5754_v46 = vpack.c.bf16 %v401_v48, %v401_v48  ;;  %v379_v44 = vmax.f32 %v347_v6, 0.0  ;;  %v3945_v4 = vld [vmem:[#allocation2 + $0xa8] sm:$0xf]  ;;  %v5756_v33 = vpack.c.bf16 %v402_v54, %v402_v54  ;;  %v380_v29 = vmax.f32 %v348_v38, 0.0 }
  0x56   : > { %v492_v11 = vsel %vm5278_vm2, 0, %v491_v23  ;;  %v320_v14 = vmul.f32 %v5275_v2, %v5033_v45  ;;  %1825 = vmatmul.bf16.gmra.mxu0 %v3898_v32  ;;  %v707_v28 = vsel %vm5364_vm6, %v699_v31, %v706_v53  ;;  %v863_v0 = vld [vmem:[#allocation2 + $0x108] sm:$0xf]  ;;  %vm1132_vm13 = vsmask.f32 7950 }
  0x57   : > { %v6561_v39 = vshrl.u32 %v5754_v46, 16  ;;  %v6565_v63 = vshll.u32 %v5754_v46, 16  ;;  %475 = vst [vmem:[#allocation2 + $0x16c] sm:$0xf] %v5754_v46  ;;  %v5766_v6 = vpack.c.bf16 %v379_v44, %v379_v44  ;;  %v864_v23 = vsel %vm5380_vm7, %v698_v12, %v863_v0  ;;  %v5157_v44 = vld [vmem:[%s5287_s29 + $0x58] sm:$0xff]   ;;  %vm5979_vm14 = vmand %vm1131_vm12, %vm1132_vm13 }
  0x58   : > { %v4878_v48 = vld [vmem:[#allocation2 + $0xb0] sm:$0xf0]  ;;  %866 = vst [vmem:[#allocation2 + $0x114] sm:$0xf] %v707_v28  ;;  %v6562_v45 = vshrl.u32 %v5756_v33, 16  ;;  %v6566_v35 = vshll.u32 %v5756_v33, 16  ;;  %v5772_v31 = vpack.c.bf16 %v380_v29, %v380_v29  ;;  %v355_v16 = vadd.f32 %v5292_v5, %v320_v14 }
  0x59   : > { %v3946_v54 = vor.u32 %v4878_v48, %v3945_v4  ;;  %865 = vst [vmem:[#allocation2 + $0x108] sm:$0xf] %v864_v23  ;;  %v759_v38 = vrot.slane %v6561_v39, 7  ;;  %v6568_v32 = vshrl.u32 %v5766_v6, 16  ;;  %v6567_v53 = vshll.u32 %v5766_v6, 16  ;;  %v5786_v0 = vld [vmem:[%s5287_s29 + $0x78] sm:$0xff]  }
  0x5a   : > { %v767_v12 = vrot.slane %v6562_v45, 7  ;;  %476 = vst [vmem:[#allocation2 + $0x178] sm:$0xf] %v5756_v33  ;;  %v6569_v28 = vshrl.u32 %v5772_v31, 16  ;;  %v6570_v29 = vshll.u32 %v5772_v31, 16  ;;  %v321_v4 = vmul.f32 %v5275_v2, %v5034_v17 }
  0x5b   : > { %1845 = vmatmul.bf16.gmra.mxu1 %v3946_v54  ;;  %v762_v48 = vor.u32 %v6565_v63, %v759_v38  ;;  %v763_v23 = vrot.slane %v759_v38, 4  ;;  %v879_v39 = vld [vmem:[#allocation2 + $0x168] sm:$0xf]  ;;  %493 = vst [vmem:[#allocation2 + $0x60] sm:$0x1] %v492_v11  ;;  %v583_v45 = vrot.slane %v6568_v32, 7 }
  0x5c   : > { %v770_v34 = vor.u32 %v6566_v35, %v767_v12  ;;  %v591_v2 = vrot.slane %v6569_v28, 7  ;;  %453 = vst [vmem:[#allocation2 + $0x64] sm:$0xf] %v5766_v6  ;;  %v356_v17 = vadd.f32 %v5292_v5, %v321_v4  ;;  %v504_v54 = vsel %vm5278_vm2, 0, %v503_v1  ;;  %v5801_v38 = vld [vmem:[#allocation2 + $0x120] sm:$0x1] }
  0x5d   : > { %v880_v11 = vsel %vm5380_vm7, %v762_v48, %v879_v39  ;;  %v586_v14 = vor.u32 %v6567_v53, %v583_v45  ;;  %v587_v63 = vrot.slane %v583_v45, 4  ;;  %454 = vst [vmem:[#allocation2 + $0x70] sm:$0xf] %v5772_v31  ;;  %v387_v12 = vmax.f32 %v355_v16, 0.0  ;;  %v4917_v39 = vld [vmem:[%s6525_s1 + $0x110] sm:$0xff]  ;;  %v4924_v45 = vld [vmem:[%s6525_s1 + $0x148] sm:$0xff] }
  0x5e   : > { %v771_v35 = vsel %vm5364_vm6, %v763_v23, %v770_v34  ;;  %881 = vst [vmem:[#allocation2 + $0x168] sm:$0xf] %v880_v11  ;;  %v594_v5 = vor.u32 %v6570_v29, %v591_v2  ;;  %v388_v1 = vmax.f32 %v356_v17, 0.0  ;;  %v5049_v4 = vunpack.c.l.bf16 %v5157_v44  ;;  %v4836_v16 = vld [vmem:[%s6525_s1 + $0x8] sm:$0xff]  ;;  %v527_v11 = vld [vmem:[#allocation2 + $0x180] sm:$0x1]  ;;  %1901 = vmatpush.bf16.msrb.mxu1 %v4917_v39  ;;  %1991 = vmatpush.bf16.msrb.mxu2 %v4924_v45 }
  0x5f   : > { %v4890_v48 = vld [vmem:[#allocation2 + $0x110] sm:$0xf0]  ;;  %882 = vst [vmem:[#allocation2 + $0x174] sm:$0xf] %v771_v35  ;;  %v5821_v34 = vpack.c.bf16 %v387_v12, %v387_v12  ;;  %v5050_v23 = vunpack.c.h.bf16 %v5157_v44  ;;  %v516_v2 = vsel %vm5278_vm2, 0, %v5801_v38  ;;  %v5065_v17 = vunpack.c.l.bf16 %v5786_v0  ;;  %v4916_v12 = vld [vmem:[%s6525_s1 + $0x108] sm:$0xff]  ;;  %2480 = vmatpush.bf16.msrb.mxu3 %v4836_v16 }
  0x60   : > { %v4845_v53 = vld [vmem:[%s6525_s1 + $0x50] sm:$0xff]  ;;  %v3993_v32 = vld [vmem:[#allocation2 + $0x108] sm:$0xf]  ;;  %v595_v28 = vsel %vm5364_vm6, %v587_v63, %v594_v5  ;;  %v5832_v29 = vpack.c.bf16 %v388_v1, %v388_v1  ;;  %505 = vst [vmem:[#allocation2 + $0xc0] sm:$0x1] %v504_v54  ;;  %v5066_v38 = vunpack.c.h.bf16 %v5786_v0  ;;  %v4835_v0 = vld [vmem:[%s6525_s1] sm:$0xff] }
  0x61   : > { %v5213_v35 = vld [vmem:[%s6526_s2] ss:$0 sm:$0xff]  ;;  %v3994_v63 = vor.u32 %v4890_v48, %v3993_v32  ;;  %838 = vst [vmem:[#allocation2 + $0x6c] sm:$0xf] %v595_v28  ;;  %v6576_v54 = vshrl.u32 %v5821_v34, 16  ;;  %v6577_v5 = vshll.u32 %v5821_v34, 16  ;;  %2568 = vmatpush.bf16.msrb.mxu0 %v4845_v53 }
  0x62   : > { %v328_v44 = vmul.f32 %v5213_v35, %v5049_v4  ;;  %v329_v1 = vmul.f32 %v5213_v35, %v5050_v23  ;;  %v4844_v4 = vld [vmem:[%s6525_s1 + $0x48] sm:$0xff]  ;;  %v835_v39 = vld [vmem:[#allocation2 + $0x60] sm:$0xf]  ;;  %v653_v47 = vshrl.u32 %v5832_v29, 16  ;;  %v656_v32 = vshll.u32 %v5832_v29, 16  ;;  %1902 = vmatpush.bf16.msrb.mxu1 %v4916_v12  ;;  %1992 = vmatpush.bf16.msrb.mxu2 %v4923_v15 }
  0x63   : > { %461 = vst [vmem:[#allocation2 + $0xc4] sm:$0xf] %v5821_v34  ;;  %v5214_v28 = vld [vmem:[%s6527_s3] ss:$0 sm:$0xff]  ;;  %v336_v16 = vmul.f32 %v5213_v35, %v5065_v17  ;;  %1865 = vmatmul.bf16.gmra.mxu2 %v3994_v63  ;;  %v836_v48 = vsel %vm5380_vm7, %v586_v14, %v835_v39  ;;  %v647_v23 = vrot.slane %v6576_v54, 7  ;;  %v337_v24 = vmul.f32 %v5213_v35, %v5066_v38 }
  0x64   : > { %v363_v45 = vadd.f32 %v5214_v28, %v328_v44  ;;  %462 = vst [vmem:[#allocation2 + $0xd0] sm:$0xf] %v5832_v29  ;;  %v364_v36 = vadd.f32 %v5214_v28, %v329_v1  ;;  %v655_v17 = vrot.slane %v653_v47, 7  ;;  %v528_v14 = vsel %vm5278_vm2, 0, %v527_v11  ;;  %v4843_v63 = vld [vmem:[%s6525_s1 + $0x40] sm:$0xff]  ;;  %2481 = vmatpush.bf16.msrb.mxu3 %v4835_v0 }
  0x65   : > { %837 = vst [vmem:[#allocation2 + $0x60] sm:$0xf] %v836_v48  ;;  %v371_v44 = vadd.f32 %v5214_v28, %v336_v16  ;;  %v4041_v1 = vld [vmem:[#allocation2 + $0x168] sm:$0xf]  ;;  %v650_v35 = vor.u32 %v6577_v5, %v647_v23  ;;  %v651_v38 = vrot.slane %v647_v23, 4  ;;  %v372_v48 = vadd.f32 %v5214_v28, %v337_v24  ;;  %2569 = vmatpush.bf16.msrb.mxu0 %v4844_v4 }
  0x66   : > { %v395_v53 = vmax.f32 %v363_v45, 0.0  ;;  %v396_v39 = vmax.f32 %v364_v36, 0.0  ;;  %517 = vst [vmem:[#allocation2 + $0x120] sm:$0x1] %v516_v2  ;;  %v4902_v45 = vld [vmem:[#allocation2 + $0x170] sm:$0xf0]  ;;  %v658_v3 = vor.u32 %v656_v32, %v655_v17  ;;  %1903 = vmatpush.bf16.msrb.mxu1 %v4915_v25 }
  0x67   : > { %v403_v12 = vmax.f32 %v371_v44, 0.0  ;;  %529 = vst [vmem:[#allocation2 + $0x180] sm:$0x1] %v528_v14  ;;  %v890_v16 = vrot.slane %v533_v59, 4  ;;  %v4042_v54 = vor.u32 %v4902_v45, %v4041_v1  ;;  %v851_v5 = vld [vmem:[#allocation2 + $0xc0] sm:$0xf] }
  0x68   : > { %v5877_v11 = vpack.c.bf16 %v395_v53, %v395_v53  ;;  %v5881_v23 = vpack.c.bf16 %v396_v39, %v396_v39  ;;  %v404_v36 = vmax.f32 %v372_v48, 0.0  ;;  %v891_v24 = vrot.slane %v536_v60, 5  ;;  %v4869_v59 = vld [vmem:[#allocation2 + $0x68] sm:$0xf0] }
  0x69   : > { %v659_v15 = vsel %vm5364_vm6, %v651_v38, %v658_v3  ;;  %v852_v2 = vsel %vm5380_vm7, %v650_v35, %v851_v5  ;;  %1885 = vmatmul.bf16.gmra.mxu3 %v4042_v54  ;;  %v5894_v60 = vpack.c.bf16 %v403_v12, %v403_v12  ;;  %2570 = vmatpush.bf16.msrb.mxu0 %v4843_v63 }
  0x6a   : > { %v6583_v0 = vshrl.u32 %v5877_v11, 16  ;;  %v6582_v4 = vshll.u32 %v5877_v11, 16  ;;  %469 = vst [vmem:[#allocation2 + $0x124] sm:$0xf] %v5877_v11  ;;  %v6584_v28 = vshrl.u32 %v5881_v23, 16  ;;  %v720_v50 = vshll.u32 %v5881_v23, 16 }
  0x6b   : > { %853 = vst [vmem:[#allocation2 + $0xc0] sm:$0xf] %v852_v2  ;;  %v5896_v17 = vpack.c.bf16 %v404_v36, %v404_v36  ;;  %v892_v53 = vor.u32 %v891_v24, %v890_v16  ;;  %v6579_v54 = vshrl.u32 %v5894_v60, 16  ;;  %v6578_v39 = vshll.u32 %v5894_v60, 16 }
  0x6c   : > { %854 = vst [vmem:[#allocation2 + $0xcc] sm:$0xf] %v659_v15  ;;  %v711_v5 = vrot.slane %v6583_v0, 7  ;;  %v3909_v44 = vld [vmem:[#allocation2 + $0x60] sm:$0xf]  ;;  %v719_v25 = vrot.slane %v6584_v28, 7 }
  0x6d   : > { %470 = vst [vmem:[#allocation2 + $0x130] sm:$0xf] %v5881_v23  ;;  %v3910_v14 = vor.u32 %v4869_v59, %v3909_v44  ;;  %v867_v38 = vld [vmem:[#allocation2 + $0x120] sm:$0xf]  ;;  %v775_v48 = vrot.slane %v6579_v54, 7  ;;  %v6580_v45 = vshrl.u32 %v5896_v17, 16  ;;  %3433 = vmatpush.bf16.msra.mxu0 %v5002_v51 }
  0x6e   : > { %v714_v1 = vor.u32 %v6582_v4, %v711_v5  ;;  %v715_v35 = vrot.slane %v711_v5, 4  ;;  %477 = vst [vmem:[#allocation2 + $0x184] sm:$0xf] %v5894_v60  ;;  %v722_v63 = vor.u32 %v720_v50, %v719_v25  ;;  %v6581_v3 = vshll.u32 %v5896_v17, 16  ;;  %v883_v12 = vld [vmem:[#allocation2 + $0x180] sm:$0xf] }
  0x6f   : > { %1830 = vmatmul.bf16.gmra.mxu0 %v3910_v14  ;;  %478 = vst [vmem:[#allocation2 + $0x190] sm:$0xf] %v5896_v17  ;;  %v893_v36 = vrot.slane %v892_v53, 4  ;;  %v894_v24 = vrot.slane %v544_v62, 5  ;;  %v778_v2 = vor.u32 %v6578_v39, %v775_v48  ;;  %v779_v59 = vrot.slane %v775_v48, 4  ;;  %v4986_v62 = vld [vmem:[%s6525_s1 + $0x1b8] sm:$0xff] }
  0x70   : > { %v868_v16 = vsel %vm5380_vm7, %v714_v1, %v867_v38  ;;  %v723_v15 = vsel %vm5364_vm6, %v715_v35, %v722_v63  ;;  %v783_v5 = vrot.slane %v6580_v45, 7  ;;  %v4994_v53 = vld [vmem:[%s6525_s1 + $0x1f8] sm:$0xff]  ;;  %v896_v1 = vrot.slane %v541_v61, 4  ;;  %3255 = vmatpush.bf16.msra.mxu2 %v4986_v62  ;;  %v1072_v51 = vld [vmem:[#allocation2 + $0x44] sm:$0xf] }
  0x71   : > { %869 = vst [vmem:[#allocation2 + $0x120] sm:$0xf] %v868_v16  ;;  %v895_v14 = vsel %vm5926_vm10, %v893_v36, %v894_v24  ;;  %v884_v63 = vsel %vm5380_vm7, %v778_v2, %v883_v12  ;;  %3344 = vmatpush.bf16.msra.mxu3 %v4994_v53  ;;  %v4858_v36 = vld [vmem:[%s6525_s1 + $0xb8] sm:$0xff]  ;;  %v899_v61 = vrot.slane %v549_v20, 4  ;;  %v900_v2 = vrot.slane %v552_v21, 5 }
  0x72   : > { %v3957_v25 = vld [vmem:[#allocation2 + $0xc0] sm:$0xf]  ;;  %870 = vst [vmem:[#allocation2 + $0x12c] sm:$0xf] %v723_v15  ;;  %v786_v38 = vor.u32 %v6581_v3, %v783_v5  ;;  %v897_v16 = vor.u32 %v896_v1, %v894_v24  ;;  %v1068_v24 = vld [vmem:[#allocation2 + $0x2c] sm:$0xf]  ;;  %2652 = vmatpush.bf16.msra.mxu1 %v4858_v36 }
  0x73   : > { %v4881_v35 = vld [vmem:[#allocation2 + $0xc8] sm:$0xf0]  ;;  %1066 = vst [vmem:[#allocation2 + $0x20] sm:$0xf] %v895_v14  ;;  %v5223_v15 = vmov 0   ;;  %v6595_v20 = vshll.u32 %v5487_v8, 16  ;;  %v901_v53 = vor.u32 %v900_v2, %v899_v61 }
  0x74   : > { %v3958_v48 = vor.u32 %v4881_v35, %v3957_v25  ;;  %885 = vst [vmem:[#allocation2 + $0x180] sm:$0xf] %v884_v63  ;;  %v787_v13 = vsel %vm5364_vm6, %v779_v59, %v786_v38  ;;  %v898_v5 = vrot.slane %v897_v16, 4  ;;  %v6596_v59 = vshrl.u32 %v5487_v8, 16  ;;  %v4317_v44 = vld [vmem:[#allocation2 + $0x138] sm:$0xf] }
  0x75   : > { %437 = vst [vmem:[#allocation2] sm:$0xff] %v5223_v15  ;;  %v903_v7 = vrot.slane %v6595_v20, 5  ;;  %v6597_v25 = vshll.u32 %v5631_v42, 16  ;;  %v914_v21 = vrot.slane %v6598_v58, 4  ;;  %v902_v8 = vrot.slane %v901_v53, 4 }
  0x76   : > { %1850 = vmatmul.bf16.gmra.mxu1 %v3958_v48  ;;  %886 = vst [vmem:[#allocation2 + $0x18c] sm:$0xf] %v787_v13  ;;  %v905_v62 = vrot.slane %v6596_v59, 4  ;;  %v1069_v35 = vsel %vm5956_vm11, %v898_v5, %v1068_v24  ;;  %v1076_v20 = vld [vmem:[#allocation2 + $0x5c] sm:$0xf] }
  0x77   : > { %439 = vst [vmem:[#allocation2 + $0xc] sm:$0xff] %v5223_v15  ;;  %v5968_v14 = vrot.slane %v6597_v25, 5  ;;  %v904_v42 = vsel %vm5926_vm10, %v902_v8, %v903_v7  ;;  %v4859_v25 = vld [vmem:[#allocation2 + $0x1c] sm:$0xf]  ;;  %v3875_v58 = vld [vmem:[#allocation2 + $0x24] sm:$0xf0] }
  0x78   : > { %v4005_v1 = vld [vmem:[#allocation2 + $0x120] sm:$0xf]  ;;  %438 = vst [vmem:[#allocation2 + $0x8] sm:$0xf] %v5223_v15  ;;  %v906_v38 = vor.u32 %v905_v62, %v903_v7  ;;  %v3878_v8 = vor.u32 %v4859_v25, %v3875_v58 }
  0x79   : > { %v4893_v63 = vld [vmem:[#allocation2 + $0x128] sm:$0xf0]  ;;  %1070 = vst [vmem:[#allocation2 + $0x2c] sm:$0xf] %v1069_v35  ;;  %v915_v48 = vor.u32 %v914_v21, %v5968_v14 }
  0x7a   : > { %v4006_v16 = vor.u32 %v4893_v63, %v4005_v1  ;;  %440 = vst [vmem:[#allocation2 + $0x14] sm:$0xf] %v5223_v15  ;;  %v907_v36 = vrot.slane %v906_v38, 4  ;;  %v6601_v38 = vshrl.u32 %v5629_v49, 16 }
  0x7b   : > { %v4053_v61 = vld [vmem:[#allocation2 + $0x180] sm:$0xf]  ;;  %442 = vst [vmem:[#allocation2 + $0x198] sm:$0xff] %v5223_v15  ;;  %v916_v24 = vrot.slane %v915_v48, 4 }
  0x7c   : > { %1870 = vmatmul.bf16.gmra.mxu2 %v4006_v16  ;;  %443 = vst [vmem:[#allocation2 + $0x1a0] sm:$0xf] %v5223_v15  ;;  %v4787_v13 = vld [vmem:[#allocation2 + $0x4] sm:$0xf]  ;;  %v1073_v5 = vsel %vm5956_vm11, %v907_v36, %v1072_v51  ;;  %v908_v63 = vrot.slane %v6601_v38, 4  ;;  %v6603_v51 = vshll.u32 %v5772_v31, 16 }
  0x7d   : > { %v4905_v2 = vld [vmem:[#allocation2 + $0x188] sm:$0xf0]  ;;  %444 = vst [vmem:[#allocation2 + $0x1a4] sm:$0xff] %v5223_v15  ;;  %v1077_v1 = vsel %vm5956_vm11, %v916_v24, %v1076_v20  ;;  %v3881_v24 = vld [vmem:[#allocation2 + $0x20] sm:$0xf] }
  0x7e   : > { %v4054_v59 = vor.u32 %v4905_v2, %v4053_v61  ;;  %445 = vst [vmem:[#allocation2 + $0x1ac] sm:$0xf] %v5223_v15  ;;  %v4163_v53 = vld [vmem:[#allocation2 + $0xc] sm:$0xf0]  ;;  %v6602_v15 = vshll.u32 %v5629_v49, 16  ;;  %v921_v61 = vrot.slane %v6603_v51, 5 }
  0x7f   : > { %v4166_v7 = vor.u32 %v4787_v13, %v4163_v53  ;;  %1071 = vst [vmem:[#allocation2 + $0x38] sm:$0xf] %v904_v42  ;;  %v6604_v42 = vshrl.u32 %v5772_v31, 16  ;;  %v4161_v2 = vld [vmem:[#allocation2] sm:$0xf]  ;;  %v6606_v51 = vshll.u32 %v5766_v6, 16 }
  0x80   : > { %1890 = vmatmul.bf16.gmra.mxu3 %v4054_v59  ;;  %v1134_v21 = vld [vmem:[#allocation2 + $0x2c] sm:$0x8]  ;;  %1074 = vst [vmem:[#allocation2 + $0x44] sm:$0xf] %v1073_v5  ;;  %v909_v48 = vrot.slane %v6602_v15, 5 }
  0x81   : > { %v1135_v35 = vsel %vm5979_vm14, 0, %v1134_v21  ;;  %2571 = vmatmul.bf16.vlgmr.msrb.gmra.mxu0 %v4166_v7  ;;  %1078 = vst [vmem:[#allocation2 + $0x5c] sm:$0xf] %v1077_v1  ;;  %v923_v13 = vrot.slane %v6604_v42, 4  ;;  %v4788_v20 = vld [vmem:[#allocation2 + $0x8] sm:$0xf0] }
  0x82   : > { %1136 = vst [vmem:[#allocation2 + $0x2c] sm:$0x8] %v1135_v35  ;;  %v910_v16 = vor.u32 %v909_v48, %v908_v63  ;;  %v4790_v53 = vld [vmem:[#allocation2 + $0x1c] sm:$0xf]  ;;  %v4175_v7 = vld [vmem:[#allocation2 + $0x24] sm:$0xf0]  ;;  %v4162_v63 = vor.u32 %v4788_v20, %v4161_v2 }
  0x83   : > { %v924_v25 = vor.u32 %v923_v13, %v921_v61  ;;  %v1080_v38 = vld [vmem:[#allocation2 + $0x74] sm:$0xf]  ;;  %v4178_v15 = vor.u32 %v4790_v53, %v4175_v7  ;;  %v3887_v48 = vld [vmem:[#allocation2 + $0x3c] sm:$0xf0]  ;;  %v918_v42 = vrot.slane %v6606_v51, 5 }
  0x84   : > { %v911_v36 = vrot.slane %v910_v16, 4  ;;  %v6605_v16 = vshrl.u32 %v5766_v6, 16  ;;  %v4985_v13 = vld [vmem:[%s6525_s1 + $0x1b0] sm:$0xff] }
  0x85   : > { %v925_v1 = vrot.slane %v924_v25, 4  ;;  %v4857_v2 = vld [vmem:[%s6525_s1 + $0xb0] sm:$0xff]  ;;  %3256 = vmatpush.bf16.msra.mxu2 %v4985_v13  ;;  %v4865_v13 = vld [vmem:[#allocation2 + $0x4c] sm:$0xf] }
  0x86   : > { %1904 = vmatmul.bf16.vlgmr.msrb.gmra.mxu1 %v3878_v8  ;;  %v913_v49 = vsel %vm5926_vm10, %v911_v36, %v5968_v14  ;;  %v4862_v14 = vld [vmem:[#allocation2 + $0x34] sm:$0xf]  ;;  %v917_v36 = vrot.slane %v6605_v16, 4 }
  0x87   : > { %v1137_v5 = vld [vmem:[#allocation2 + $0x44] sm:$0x8]  ;;  %1075 = vst [vmem:[#allocation2 + $0x50] sm:$0xf] %v913_v49  ;;  %v1081_v8 = vsel %vm5956_vm11, %v925_v1, %v1080_v38  ;;  %v3890_v20 = vor.u32 %v4862_v14, %v3887_v48  ;;  %2653 = vmatpush.bf16.msra.mxu1 %v4857_v2  ;;  %v3893_v49 = vld [vmem:[#allocation2 + $0x38] sm:$0xf] }
  0x88   : > { %v1138_v59 = vsel %vm5979_vm14, 0, %v1137_v5  ;;  %v1140_v31 = vld [vmem:[#allocation2 + $0x5c] sm:$0x8]  ;;  %1082 = vst [vmem:[#allocation2 + $0x74] sm:$0xf] %v1081_v8  ;;  %v5001_v5 = vld [vmem:[%s6525_s1 + $0x230] sm:$0xff]  ;;  %v919_v6 = vor.u32 %v918_v42, %v917_v36 }
  0x89   : > { %v4861_v58 = vld [vmem:[#allocation2 + $0x28] sm:$0xf0]  ;;  %1139 = vst [vmem:[#allocation2 + $0x44] sm:$0x8] %v1138_v59  ;;  %v1141_v35 = vsel %vm5979_vm14, 0, %v1140_v31  ;;  %3434 = vmatpush.bf16.msra.mxu0 %v5001_v5  ;;  %v6608_v1 = vshrl.u32 %v5345_v55, 16 }
  0x8a   : > { %v3882_v21 = vor.u32 %v4861_v58, %v3881_v24  ;;  %1142 = vst [vmem:[#allocation2 + $0x5c] sm:$0x8] %v1141_v35  ;;  %v4993_v24 = vld [vmem:[%s6525_s1 + $0x1f0] sm:$0xff]  ;;  %v920_v59 = vrot.slane %v919_v6, 4  ;;  %v4173_v8 = vld [vmem:[#allocation2 + $0x18] sm:$0xf] }
  0x8b   : > { %3345 = vmatpush.bf16.msra.mxu3 %v4993_v24  ;;  %v932_v35 = vrot.slane %v6608_v1, 4  ;;  %v4793_v14 = vld [vmem:[#allocation2 + $0x34] sm:$0xf]  ;;  %v4187_v48 = vld [vmem:[#allocation2 + $0x3c] sm:$0xf0]  ;;  %v6610_v5 = vshll.u32 %v5339_v52, 16 }
  0x8c   : > { %1993 = vmatmul.bf16.vlgmr.msrb.gmra.mxu2 %v3882_v21  ;;  %v922_v58 = vsel %vm5926_vm10, %v920_v59, %v921_v61  ;;  %v6607_v21 = vshll.u32 %v5345_v55, 16  ;;  %v1084_v61 = vld [vmem:[#allocation2 + $0x8c] sm:$0xf]  ;;  %v4190_v42 = vor.u32 %v4793_v14, %v4187_v48  ;;  %v3899_v24 = vld [vmem:[#allocation2 + $0x54] sm:$0xf0]  ;;  %v6609_v55 = vshrl.u32 %v5339_v52, 16 }
  0x8d   : > { %1079 = vst [vmem:[#allocation2 + $0x68] sm:$0xf] %v922_v58  ;;  %v927_v6 = vrot.slane %v6610_v5, 5  ;;  %v3902_v59 = vor.u32 %v4865_v13, %v3899_v24  ;;  %v6611_v1 = vshll.u32 %v5519_v19, 16  ;;  %v4794_v14 = vld [vmem:[#allocation2 + $0x38] sm:$0xf0] }
  0x8e   : > { %v930_v31 = vrot.slane %v6607_v21, 5  ;;  %v926_v2 = vrot.slane %v6609_v55, 4  ;;  %v4796_v48 = vld [vmem:[#allocation2 + $0x4c] sm:$0xf]  ;;  %v4868_v13 = vld [vmem:[#allocation2 + $0x64] sm:$0xf] }
  0x8f   : > { %v1143_v53 = vld [vmem:[#allocation2 + $0x74] sm:$0x8]  ;;  %v939_v52 = vrot.slane %v6611_v1, 5  ;;  %v3911_v24 = vld [vmem:[#allocation2 + $0x6c] sm:$0xf0] }
  0x90   : > { %2482 = vmatmul.bf16.vlgmr.msrb.gmra.mxu3 %v4162_v63  ;;  %v4864_v25 = vld [vmem:[#allocation2 + $0x40] sm:$0xf0]  ;;  %v1144_v7 = vsel %vm5979_vm14, 0, %v1143_v53  ;;  %v933_v63 = vor.u32 %v932_v35, %v930_v31  ;;  %v6612_v35 = vshrl.u32 %v5519_v19, 16  ;;  %v6613_v19 = vshrl.u32 %v5500_v26, 16 }
  0x91   : > { %2576 = vmatmul.bf16.gmra.mxu0 %v4178_v15  ;;  %1145 = vst [vmem:[#allocation2 + $0x74] sm:$0x8] %v1144_v7  ;;  %v3894_v38 = vor.u32 %v4864_v25, %v3893_v49  ;;  %v4791_v15 = vld [vmem:[#allocation2 + $0x20] sm:$0xf0]  ;;  %v3905_v49 = vld [vmem:[#allocation2 + $0x50] sm:$0xf] }
  0x92   : > { %v934_v16 = vrot.slane %v933_v63, 4  ;;  %v4174_v36 = vor.u32 %v4791_v15, %v4173_v8  ;;  %v4867_v25 = vld [vmem:[#allocation2 + $0x58] sm:$0xf0]  ;;  %v4185_v15 = vld [vmem:[#allocation2 + $0x30] sm:$0xf]  ;;  %v935_v55 = vrot.slane %v6613_v19, 4 }
  0x93   : > { %v3906_v63 = vor.u32 %v4867_v25, %v3905_v49  ;;  %v3914_v25 = vor.u32 %v4868_v13, %v3911_v24  ;;  %v1092_v24 = vld [vmem:[#allocation2 + $0xbc] sm:$0xf] }
  0x94   : > { %v1085_v51 = vsel %vm5956_vm11, %v934_v16, %v1084_v61  ;;  %v4199_v16 = vld [vmem:[#allocation2 + $0x54] sm:$0xf0]  ;;  %v1088_v61 = vld [vmem:[#allocation2 + $0xa4] sm:$0xf] }
  0x95   : > { %1086 = vst [vmem:[#allocation2 + $0x8c] sm:$0xf] %v1085_v51 }
  0x96   : > { %1909 = vmatmul.bf16.gmra.mxu1 %v3890_v20  ;;  %v928_v20 = vor.u32 %v927_v6, %v926_v2  ;;  %v6614_v2 = vshll.u32 %v5500_v26, 16  ;;  %v4984_v6 = vld [vmem:[%s6525_s1 + $0x1a8] sm:$0xff] }
  0x97   : > { %v5000_v26 = vld [vmem:[%s6525_s1 + $0x228] sm:$0xff]  ;;  %3257 = vmatpush.bf16.msra.mxu2 %v4984_v6  ;;  %v6617_v6 = vshrl.u32 %v5646_v18, 16 }
  0x98   : > { %v929_v53 = vrot.slane %v928_v20, 4  ;;  %v936_v5 = vrot.slane %v6614_v2, 5  ;;  %v4992_v20 = vld [vmem:[%s6525_s1 + $0x1e8] sm:$0xff]  ;;  %3435 = vmatpush.bf16.msra.mxu0 %v5000_v26  ;;  %v4871_v2 = vld [vmem:[#allocation2 + $0x7c] sm:$0xf] }
  0x99   : > { %3346 = vmatpush.bf16.msra.mxu3 %v4992_v20  ;;  %v944_v20 = vrot.slane %v6617_v6, 4 }
  0x9a   : > { %v931_v58 = vsel %vm5926_vm10, %v929_v53, %v930_v31  ;;  %v937_v49 = vor.u32 %v936_v5, %v935_v55  ;;  %v3923_v5 = vld [vmem:[#allocation2 + $0x84] sm:$0xf0] }
  0x9b   : > { %1083 = vst [vmem:[#allocation2 + $0x80] sm:$0xf] %v931_v58 }
  0x9c   : > { %1998 = vmatmul.bf16.gmra.mxu2 %v3894_v38  ;;  %v1146_v7 = vld [vmem:[#allocation2 + $0x8c] sm:$0x8]  ;;  %v941_v38 = vrot.slane %v6612_v35, 4  ;;  %v938_v58 = vrot.slane %v937_v49, 4 }
  0x9d   : > { %v1147_v21 = vsel %vm5979_vm14, 0, %v1146_v7  ;;  %v3917_v7 = vld [vmem:[#allocation2 + $0x68] sm:$0xf] }
  0x9e   : > { %1148 = vst [vmem:[#allocation2 + $0x8c] sm:$0x8] %v1147_v21  ;;  %v942_v8 = vor.u32 %v941_v38, %v939_v52  ;;  %v4870_v21 = vld [vmem:[#allocation2 + $0x70] sm:$0xf0]  ;;  %v940_v1 = vsel %vm5926_vm10, %v938_v58, %v939_v52  ;;  %v4799_v52 = vld [vmem:[#allocation2 + $0x64] sm:$0xf]  ;;  %v3926_v58 = vor.u32 %v4871_v2, %v3923_v5 }
  0x9f   : > { %1087 = vst [vmem:[#allocation2 + $0x98] sm:$0xf] %v940_v1  ;;  %v4874_v2 = vld [vmem:[#allocation2 + $0x94] sm:$0xf]  ;;  %v3935_v5 = vld [vmem:[#allocation2 + $0x9c] sm:$0xf0] }
  0xa0   : > { %2487 = vmatmul.bf16.gmra.mxu3 %v4174_v36  ;;  %v943_v31 = vrot.slane %v942_v8, 4  ;;  %v4186_v36 = vor.u32 %v4794_v14, %v4185_v15  ;;  %v6616_v15 = vshrl.u32 %v5654_v10, 16 }
  0xa1   : > { %2581 = vmatmul.bf16.gmra.mxu0 %v4190_v42  ;;  %v4202_v42 = vor.u32 %v4796_v48, %v4199_v16  ;;  %v3918_v16 = vor.u32 %v4870_v21, %v3917_v7 }
  0xa2   : > { %v1089_v51 = vsel %vm5956_vm11, %v943_v31, %v1088_v61  ;;  %v950_v14 = vrot.slane %v6616_v15, 4  ;;  %v4197_v61 = vld [vmem:[#allocation2 + $0x48] sm:$0xf]  ;;  %v3929_v1 = vld [vmem:[#allocation2 + $0x80] sm:$0xf] }
  0xa3   : > { %1090 = vst [vmem:[#allocation2 + $0xa4] sm:$0xf] %v1089_v51  ;;  %v4211_v51 = vld [vmem:[#allocation2 + $0x6c] sm:$0xf0] }
  0xa6   : > { %1914 = vmatmul.bf16.gmra.mxu1 %v3902_v59  ;;  %v4856_v59 = vld [vmem:[%s6525_s1 + $0xa8] sm:$0xff] }
  0xa7   : > { %2654 = vmatpush.bf16.msra.mxu1 %v4856_v59  ;;  %v6618_v59 = vshll.u32 %v5646_v18, 16 }
  0xa9   : > { %v945_v26 = vrot.slane %v6618_v59, 5 }
  0xaa   : > { %v1149_v35 = vld [vmem:[#allocation2 + $0xa4] sm:$0x8] }
  0xab   : > { %v6057_v53 = vpop.f32.mrf.mxu0  ;;  %v1150_v38 = vsel %vm5979_vm14, 0, %v1149_v35  ;;  %v4873_v35 = vld [vmem:[#allocation2 + $0x88] sm:$0xf0] }
  0xac   : > { %2003 = vmatmul.bf16.gmra.mxu2 %v3906_v63  ;;  %v6615_v63 = vshll.u32 %v5654_v10, 16  ;;  %1151 = vst [vmem:[#allocation2 + $0xa4] sm:$0x8] %v1150_v38  ;;  %v4214_v10 = vor.u32 %v4799_v52, %v4211_v51  ;;  %v4209_v52 = vld [vmem:[#allocation2 + $0x60] sm:$0xf] }
  0xad   : > { %v6070_v48 = vpop.f32.mrf.mxu1  ;;  %v4800_v51 = vld [vmem:[#allocation2 + $0x68] sm:$0xf0] }
  0xae   : > { %v948_v8 = vrot.slane %v6615_v63, 5 }
  0xb0   : > { %2492 = vmatmul.bf16.gmra.mxu3 %v4186_v36  ;;  %v951_v31 = vor.u32 %v950_v14, %v948_v8  ;;  %v4797_v36 = vld [vmem:[#allocation2 + $0x50] sm:$0xf0]  ;;  %v957_v14 = vrot.slane %v656_v32, 5 }
  0xb1   : > { %2586 = vmatmul.bf16.gmra.mxu0 %v4202_v42  ;;  %v4198_v19 = vor.u32 %v4797_v36, %v4197_v61  ;;  %v3930_v61 = vor.u32 %v4873_v35, %v3929_v1  ;;  %v4855_v1 = vld [vmem:[%s6525_s1 + $0xa0] sm:$0xff] }
  0xb2   : > { %v952_v42 = vrot.slane %v951_v31, 4  ;;  %2655 = vmatpush.bf16.msra.mxu1 %v4855_v1 }
  0xb3   : > { %v6072_v13 = vpop.f32.mrf.mxu0 }
  0xb4   : > { %v1093_v55 = vsel %vm5956_vm11, %v952_v42, %v1092_v24  ;;  %v4223_v42 = vld [vmem:[#allocation2 + $0x84] sm:$0xf0] }
  0xb5   : > { %1094 = vst [vmem:[#allocation2 + $0xbc] sm:$0xf] %v1093_v55  ;;  %v6080_v49 = vpop.f32.mrf.mxu1  ;;  %v6082_v7 = vpop.f32.mrf.mxu2  ;;  %v1096_v55 = vld [vmem:[#allocation2 + $0xd4] sm:$0xf] }
  0xb6   : > { %1919 = vmatmul.bf16.gmra.mxu1 %v3914_v25  ;;  %v946_v25 = vor.u32 %v945_v26, %v944_v20  ;;  %v6619_v20 = vshrl.u32 %v5821_v34, 16  ;;  %v6620_v26 = vshll.u32 %v5821_v34, 16  ;;  %v4999_v34 = vld [vmem:[%s6525_s1 + $0x220] sm:$0xff] }
  0xb7   : > { %3436 = vmatpush.bf16.msra.mxu0 %v4999_v34 }
  0xb8   : > { %v947_v21 = vrot.slane %v946_v25, 4  ;;  %v953_v59 = vrot.slane %v6619_v20, 4  ;;  %v954_v25 = vrot.slane %v6620_v26, 5  ;;  %v4235_v26 = vld [vmem:[#allocation2 + $0x9c] sm:$0xf0] }
  0xba   : > { %v949_v63 = vsel %vm5926_vm10, %v947_v21, %v948_v8  ;;  %v6094_v31 = vpop.f32.mrf.mxu3  ;;  %v4802_v8 = vld [vmem:[#allocation2 + $0x7c] sm:$0xf]  ;;  %v4991_v21 = vld [vmem:[%s6525_s1 + $0x1e0] sm:$0xff] }
  0xbb   : > { %1091 = vst [vmem:[#allocation2 + $0xb0] sm:$0xf] %v949_v63  ;;  %v955_v63 = vor.u32 %v954_v25, %v953_v59  ;;  %3347 = vmatpush.bf16.msra.mxu3 %v4991_v21  ;;  %v4805_v59 = vld [vmem:[#allocation2 + $0x94] sm:$0xf]  ;;  %v1100_v21 = vld [vmem:[#allocation2 + $0xec] sm:$0xf] }
  0xbc   : > { %2008 = vmatmul.bf16.gmra.mxu2 %v3918_v16  ;;  %v1152_v15 = vld [vmem:[#allocation2 + $0xbc] sm:$0x8]  ;;  %v959_v16 = vrot.slane %v653_v47, 4  ;;  %v4226_v47 = vor.u32 %v4802_v8, %v4223_v42  ;;  %v4238_v34 = vor.u32 %v4805_v59, %v4235_v26 }
  0xbd   : > { %v1153_v18 = vsel %vm5979_vm14, 0, %v1152_v15  ;;  %v6100_v29 = vpop.f32.mrf.mxu2  ;;  %v3938_v15 = vor.u32 %v4874_v2, %v3935_v5  ;;  %v4221_v2 = vld [vmem:[#allocation2 + $0x78] sm:$0xf]  ;;  %v4803_v5 = vld [vmem:[#allocation2 + $0x80] sm:$0xf0] }
  0xbe   : > { %v6084_v38 = vpop.f32.mrf.mxu0  ;;  %1154 = vst [vmem:[#allocation2 + $0xbc] sm:$0x8] %v1153_v18  ;;  %v960_v36 = vor.u32 %v959_v16, %v957_v14  ;;  %v956_v18 = vrot.slane %v955_v63, 4  ;;  %v3941_v16 = vld [vmem:[#allocation2 + $0x98] sm:$0xf]  ;;  %v4222_v1 = vor.u32 %v4803_v5, %v4221_v2 }
  0xc0   : > { %2497 = vmatmul.bf16.gmra.mxu3 %v4198_v19  ;;  %v961_v24 = vrot.slane %v960_v36, 4 }
  0xc1   : > { %2591 = vmatmul.bf16.gmra.mxu0 %v4214_v10  ;;  %v4210_v10 = vor.u32 %v4800_v51, %v4209_v52  ;;  %v958_v52 = vsel %vm5926_vm10, %v956_v18, %v957_v14  ;;  %v3947_v18 = vld [vmem:[#allocation2 + $0xb4] sm:$0xf0] }
  0xc2   : > { %v1097_v32 = vsel %vm5956_vm11, %v961_v24, %v1096_v55  ;;  %v6117_v35 = vpop.f32.mrf.mxu3  ;;  %1095 = vst [vmem:[#allocation2 + $0xc8] sm:$0xf] %v958_v52  ;;  %v6621_v24 = vshll.u32 %v5349_v57, 16  ;;  %v6624_v52 = vshll.u32 %v5347_v56, 16  ;;  %v3953_v5 = vld [vmem:[#allocation2 + $0xb0] sm:$0xf] }
  0xc3   : > { %v6096_v19 = vpop.f32.mrf.mxu1  ;;  %1098 = vst [vmem:[#allocation2 + $0xd4] sm:$0xf] %v1097_v32 }
  0xc4   : > { %v966_v55 = vrot.slane %v6621_v24, 5 }
  0xc6   : > { %1924 = vmatmul.bf16.gmra.mxu1 %v3926_v58  ;;  %v6102_v6 = vpop.f32.mrf.mxu0  ;;  %v4983_v58 = vld [vmem:[%s6525_s1 + $0x1a0] sm:$0xff] }
  0xc7   : > { %3258 = vmatpush.bf16.msra.mxu2 %v4983_v58 }
  0xca   : > { %v1155_v51 = vld [vmem:[#allocation2 + $0xd4] sm:$0x8] }
  0xcb   : > { %v6122_v36 = vpop.f32.mrf.mxu1  ;;  %v1156_v42 = vsel %vm5979_vm14, 0, %v1155_v51  ;;  %v963_v51 = vrot.slane %v6624_v52, 5  ;;  %v4247_v52 = vld [vmem:[#allocation2 + $0xb4] sm:$0xf0] }
  0xcc   : > { %2013 = vmatmul.bf16.gmra.mxu2 %v3930_v61  ;;  %v4876_v61 = vld [vmem:[#allocation2 + $0xa0] sm:$0xf0]  ;;  %1157 = vst [vmem:[#allocation2 + $0xd4] sm:$0x8] %v1156_v42 }
  0xce   : > { %v6126_v8 = vpop.f32.mrf.mxu2 }
  0xd0   : > { %2502 = vmatmul.bf16.gmra.mxu3 %v4210_v10  ;;  %v6622_v10 = vshrl.u32 %v5349_v57, 16 }
  0xd1   : > { %2596 = vmatmul.bf16.gmra.mxu0 %v4226_v47  ;;  %v3942_v47 = vor.u32 %v4876_v61, %v3941_v16  ;;  %v6623_v16 = vshrl.u32 %v5347_v56, 16 }
  0xd2   : > { %v968_v32 = vrot.slane %v6622_v10, 4 }
  0xd3   : > { %v6134_v20 = vpop.f32.mrf.mxu0  ;;  %v962_v61 = vrot.slane %v6623_v16, 4  ;;  %v4806_v16 = vld [vmem:[#allocation2 + $0x98] sm:$0xf0] }
  0xd4   : > { %v969_v14 = vor.u32 %v968_v32, %v966_v55 }
  0xd5   : > { %v964_v24 = vor.u32 %v963_v51, %v962_v61 }
  0xd6   : > { %1929 = vmatmul.bf16.gmra.mxu1 %v3938_v15  ;;  %v6136_v25 = vpop.f32.mrf.mxu3  ;;  %v970_v58 = vrot.slane %v969_v14, 4  ;;  %v4877_v15 = vld [vmem:[#allocation2 + $0xac] sm:$0xf]  ;;  %v6146_v42 = vpop.f32.mrf.mxu2  ;;  %v4879_v14 = vld [vmem:[#allocation2 + $0xb8] sm:$0xf0] }
  0xd7   : > { %v3950_v10 = vor.u32 %v4877_v15, %v3947_v18  ;;  %v4233_v18 = vld [vmem:[#allocation2 + $0x90] sm:$0xf] }
  0xd8   : > { %v1101_v57 = vsel %vm5956_vm11, %v970_v58, %v1100_v21  ;;  %v6140_v63 = vpop.f32.mrf.mxu1  ;;  %v6626_v58 = vshll.u32 %v5535_v9, 16 }
  0xd9   : > { %1102 = vst [vmem:[#allocation2 + $0xec] sm:$0xf] %v1101_v57  ;;  %v3954_v57 = vor.u32 %v4879_v14, %v3953_v5  ;;  %v4880_v14 = vld [vmem:[#allocation2 + $0xc4] sm:$0xf] }
  0xda   : > { %v975_v21 = vrot.slane %v6626_v58, 5  ;;  %v6629_v58 = vshrl.u32 %v5521_v41, 16 }
  0xdb   : > { %v6148_v32 = vpop.f32.mrf.mxu0 }
  0xdc   : > { %2018 = vmatmul.bf16.gmra.mxu2 %v3942_v47  ;;  %v965_v47 = vrot.slane %v964_v24, 4 }
  0xde   : > { %v6150_v2 = vpop.f32.mrf.mxu3  ;;  %v967_v59 = vsel %vm5926_vm10, %v965_v47, %v966_v55  ;;  %v4808_v55 = vld [vmem:[#allocation2 + $0xac] sm:$0xf]  ;;  %v4234_v47 = vor.u32 %v4806_v16, %v4233_v18  ;;  %v4990_v18 = vld [vmem:[%s6525_s1 + $0x1d8] sm:$0xff] }
  0xdf   : > { %6625 = vst [vmem:[#allocation3_spill] sm:$0xff] %v6150_v2  ;;  %3348 = vmatpush.bf16.msra.mxu3 %v4990_v18 }
  0xe0   : > { %2507 = vmatmul.bf16.gmra.mxu3 %v4222_v1  ;;  %v1158_v26 = vld [vmem:[#allocation2 + $0xec] sm:$0x8]  ;;  %1099 = vst [vmem:[#allocation2 + $0xe0] sm:$0xf] %v967_v59  ;;  %v6627_v1 = vshrl.u32 %v5535_v9, 16  ;;  %v6160_v61 = vpop.f32.mrf.mxu1 }
  0xe1   : > { %2601 = vmatmul.bf16.gmra.mxu0 %v4238_v34  ;;  %v1159_v56 = vsel %vm5979_vm14, 0, %v1158_v26  ;;  %v4250_v26 = vor.u32 %v4808_v55, %v4247_v52 }
  0xe2   : > { %v977_v34 = vrot.slane %v6627_v1, 4  ;;  %1160 = vst [vmem:[#allocation2 + $0xec] sm:$0x8] %v1159_v56  ;;  %v3959_v56 = vld [vmem:[#allocation2 + $0xcc] sm:$0xf0]  ;;  %v971_v1 = vrot.slane %v6629_v58, 4 }
  0xe3   : > { %v3962_v55 = vor.u32 %v4880_v14, %v3959_v56  ;;  %v4882_v58 = vld [vmem:[#allocation2 + $0xd0] sm:$0xf0] }
  0xe4   : > { %v978_v15 = vor.u32 %v977_v34, %v975_v21  ;;  %v6630_v34 = vshll.u32 %v5521_v41, 16  ;;  %v4854_v41 = vld [vmem:[%s6525_s1 + $0x98] sm:$0xff] }
  0xe5   : > { %2656 = vmatpush.bf16.msra.mxu1 %v4854_v41 }
  0xe6   : > { %1934 = vmatmul.bf16.gmra.mxu1 %v3950_v10  ;;  %v979_v51 = vrot.slane %v978_v15, 4  ;;  %v6162_v24 = vpop.f32.mrf.mxu2  ;;  %v1104_v10 = vld [vmem:[#allocation2 + $0x104] sm:$0xf]  ;;  %v972_v15 = vrot.slane %v6630_v34, 5  ;;  %v6631_v34 = vshll.u32 %v5723_v30, 16 }
  0xe8   : > { %v1105_v59 = vsel %vm5956_vm11, %v979_v51, %v1104_v10  ;;  %v973_v16 = vor.u32 %v972_v15, %v971_v1  ;;  %v4998_v10 = vld [vmem:[%s6525_s1 + $0x218] sm:$0xff]  ;;  %v984_v15 = vrot.slane %v6631_v34, 5 }
  0xe9   : > { %1106 = vst [vmem:[#allocation2 + $0x104] sm:$0xf] %v1105_v59  ;;  %v3965_v59 = vld [vmem:[#allocation2 + $0xc8] sm:$0xf]  ;;  %3437 = vmatpush.bf16.msra.mxu0 %v4998_v10  ;;  %v4259_v10 = vld [vmem:[#allocation2 + $0xcc] sm:$0xf0] }
  0xea   : > { %v974_v51 = vrot.slane %v973_v16, 4  ;;  %v3966_v16 = vor.u32 %v4882_v58, %v3965_v59  ;;  %v4883_v58 = vld [vmem:[#allocation2 + $0xdc] sm:$0xf] }
  0xec   : > { %2023 = vmatmul.bf16.gmra.mxu2 %v3954_v57  ;;  %v6166_v9 = vpop.f32.mrf.mxu0  ;;  %v6168_v5 = vpop.f32.mrf.mxu3  ;;  %v4982_v57 = vld [vmem:[%s6525_s1 + $0x198] sm:$0xff]  ;;  %v976_v14 = vsel %vm5926_vm10, %v974_v51, %v975_v21  ;;  %v4245_v21 = vld [vmem:[#allocation2 + $0xa8] sm:$0xf]  ;;  %v4809_v51 = vld [vmem:[#allocation2 + $0xb0] sm:$0xf0] }
  0xed   : > { %6628 = vst [vmem:[#allocation4_spill] sm:$0xff] %v6168_v5  ;;  %3259 = vmatpush.bf16.msra.mxu2 %v4982_v57  ;;  %v6632_v57 = vshrl.u32 %v5723_v30, 16  ;;  %v4246_v3 = vor.u32 %v4809_v51, %v4245_v21 }
  0xee   : > { %1103 = vst [vmem:[#allocation2 + $0xf8] sm:$0xf] %v976_v14 }
  0xef   : > { %v986_v18 = vrot.slane %v6632_v57, 4  ;;  %v6634_v57 = vshrl.u32 %v5721_v27, 16 }
  0xf0   : > { %2512 = vmatmul.bf16.gmra.mxu3 %v4234_v47  ;;  %v6188_v47 = vpop.f32.mrf.mxu2  ;;  %v1161_v56 = vld [vmem:[#allocation2 + $0x104] sm:$0x8] }
  0xf1   : > { %2606 = vmatmul.bf16.gmra.mxu0 %v4250_v26  ;;  %v1162_v1 = vsel %vm5979_vm14, 0, %v1161_v56  ;;  %v987_v39 = vor.u32 %v986_v18, %v984_v15  ;;  %v1108_v56 = vld [vmem:[#allocation2 + $0x11c] sm:$0xf]  ;;  %v980_v18 = vrot.slane %v6634_v57, 4 }
  0xf2   : > { %1163 = vst [vmem:[#allocation2 + $0x104] sm:$0x8] %v1162_v1  ;;  %v3971_v1 = vld [vmem:[#allocation2 + $0xe4] sm:$0xf0] }
  0xf3   : > { %v6180_v52 = vpop.f32.mrf.mxu1  ;;  %v988_v14 = vrot.slane %v987_v39, 4  ;;  %v6635_v39 = vshll.u32 %v5721_v27, 16  ;;  %v3974_v21 = vor.u32 %v4883_v58, %v3971_v1 }
  0xf4   : > { %v6190_v26 = vpop.f32.mrf.mxu0  ;;  %v6200_v54 = vpop.f32.mrf.mxu3 }
  0xf5   : > { %6633 = vst [vmem:[#allocation5_spill] sm:$0xff] %v6200_v54  ;;  %v1109_v30 = vsel %vm5956_vm11, %v988_v14, %v1108_v56  ;;  %v981_v4 = vrot.slane %v6635_v39, 5  ;;  %v3977_v14 = vld [vmem:[#allocation2 + $0xe0] sm:$0xf]  ;;  %v4885_v56 = vld [vmem:[#allocation2 + $0xe8] sm:$0xf0] }
  0xf6   : > { %1939 = vmatmul.bf16.gmra.mxu1 %v3962_v55  ;;  %v4811_v55 = vld [vmem:[#allocation2 + $0xc4] sm:$0xf]  ;;  %1110 = vst [vmem:[#allocation2 + $0x11c] sm:$0xf] %v1109_v30  ;;  %v3978_v1 = vor.u32 %v4885_v56, %v3977_v14  ;;  %v4814_v39 = vld [vmem:[#allocation2 + $0xdc] sm:$0xf] }
  0xf7   : > { %v4262_v34 = vor.u32 %v4811_v55, %v4259_v10  ;;  %v4886_v56 = vld [vmem:[#allocation2 + $0xf4] sm:$0xf] }
  0xfb   : > { %v6202_v45 = vpop.f32.mrf.mxu1 }
  0xfc   : > { %2028 = vmatmul.bf16.gmra.mxu2 %v3966_v16  ;;  %v982_v16 = vor.u32 %v981_v4, %v980_v18  ;;  %v993_v4 = vrot.slane %v720_v50, 5  ;;  %v4812_v18 = vld [vmem:[#allocation2 + $0xc8] sm:$0xf0] }
  0xfd   : > { %v1164_v0 = vld [vmem:[#allocation2 + $0x11c] sm:$0x8] }
  0xfe   : > { %v6206_v41 = vpop.f32.mrf.mxu0  ;;  %v983_v10 = vrot.slane %v982_v16, 4  ;;  %v1165_v27 = vsel %vm5979_vm14, 0, %v1164_v0  ;;  %v4271_v16 = vld [vmem:[#allocation2 + $0xe4] sm:$0xf0]  ;;  %v1112_v0 = vld [vmem:[#allocation2 + $0x134] sm:$0xf] }
  0xff   : > { %v6208_v59 = vpop.f32.mrf.mxu2  ;;  %1166 = vst [vmem:[#allocation2 + $0x11c] sm:$0x8] %v1165_v27  ;;  %v4274_v50 = vor.u32 %v4814_v39, %v4271_v16 }
 0x100   : > { %2517 = vmatmul.bf16.gmra.mxu3 %v4246_v3  ;;  %v985_v30 = vsel %vm5926_vm10, %v983_v10, %v984_v15  ;;  %v6637_v3 = vshrl.u32 %v5881_v23, 16  ;;  %v4257_v15 = vld [vmem:[#allocation2 + $0xc0] sm:$0xf] }
 0x101   : > { %2611 = vmatmul.bf16.gmra.mxu0 %v4262_v34  ;;  %1107 = vst [vmem:[#allocation2 + $0x110] sm:$0xf] %v985_v30 }
 0x102   : > { %v995_v34 = vrot.slane %v6637_v3, 4 }
 0x103   : > { %v6214_v51 = vpop.f32.mrf.mxu3  ;;  %v1905_v55 = vpop.f32.mrf.mxu1 }
 0x104   : > { %6636 = vst [vmem:[#allocation6_spill] sm:$0xff] %v6214_v51  ;;  %v996_v57 = vor.u32 %v995_v34, %v993_v4  ;;  %v4258_v51 = vor.u32 %v4812_v18, %v4257_v15  ;;  %v1906_v3 = vadd.f32 %v1905_v55, %v6057_v53  ;;  %v3983_v34 = vld [vmem:[#allocation2 + $0xfc] sm:$0xf0]  ;;  %v4981_v15 = vld [vmem:[%s6525_s1 + $0x190] sm:$0xff] }
 0x105   : > { %v4989_v53 = vld [vmem:[%s6525_s1 + $0x1d0] sm:$0xff]  ;;  %v3986_v18 = vor.u32 %v4886_v56, %v3983_v34  ;;  %3260 = vmatpush.bf16.msra.mxu2 %v4981_v15  ;;  %v6641_v56 = vshll.u32 %v5427_v40, 16 }
 0x106   : > { %1944 = vmatmul.bf16.gmra.mxu1 %v3974_v21  ;;  %v6218_v28 = vpop.f32.mrf.mxu0  ;;  %v997_v21 = vrot.slane %v996_v57, 4  ;;  %v6639_v57 = vshrl.u32 %v5877_v11, 16  ;;  %3349 = vmatpush.bf16.msra.mxu3 %v4989_v53 }
 0x107   : > { %v6226_v58 = vpop.f32.mrf.mxu2  ;;  %v1002_v34 = vrot.slane %v6641_v56, 5  ;;  %v1116_v56 = vld [vmem:[#allocation2 + $0x14c] sm:$0xf] }
 0x108   : > { %v1113_v23 = vsel %vm5956_vm11, %v997_v21, %v1112_v0  ;;  %v989_v54 = vrot.slane %v6639_v57, 4  ;;  %v6642_v57 = vshrl.u32 %v5427_v40, 16 }
 0x109   : > { %1114 = vst [vmem:[#allocation2 + $0x134] sm:$0xf] %v1113_v23  ;;  %v3989_v23 = vld [vmem:[#allocation2 + $0xf8] sm:$0xf] }
 0x10b   : > { %v6228_v10 = vpop.f32.mrf.mxu3  ;;  %v1907_v30 = vpop.f32.mrf.mxu1 }
 0x10c   : > { %6638 = vst [vmem:[#allocation7_spill] sm:$0xff] %v6228_v10  ;;  %2033 = vmatmul.bf16.gmra.mxu2 %v3978_v1  ;;  %v6640_v10 = vshll.u32 %v5877_v11, 16  ;;  %v1908_v0 = vadd.f32 %v1907_v30, %v6072_v13  ;;  %v1004_v13 = vrot.slane %v6642_v57, 4  ;;  %v3995_v57 = vld [vmem:[#allocation2 + $0x114] sm:$0xf0] }
 0x10e   : > { %v6233_v27 = vpop.f32.mrf.mxu0  ;;  %v990_v5 = vrot.slane %v6640_v10, 5  ;;  %v4997_v10 = vld [vmem:[%s6525_s1 + $0x210] sm:$0xff]  ;;  %v1005_v53 = vor.u32 %v1004_v13, %v1002_v34  ;;  %v6643_v13 = vshrl.u32 %v5420_v37, 16 }
 0x10f   : > { %v1994_v14 = vpop.f32.mrf.mxu2  ;;  %3438 = vmatpush.bf16.msra.mxu0 %v4997_v10 }
 0x110   : > { %2522 = vmatmul.bf16.gmra.mxu3 %v4258_v51  ;;  %v1995_v1 = vadd.f32 %v1994_v14, %v1906_v3  ;;  %v991_v55 = vor.u32 %v990_v5, %v989_v54  ;;  %v4853_v51 = vld [vmem:[%s6525_s1 + $0x90] sm:$0xff]  ;;  %v1006_v10 = vrot.slane %v1005_v53, 4 }
 0x111   : > { %2616 = vmatmul.bf16.gmra.mxu0 %v4274_v50  ;;  %v4888_v50 = vld [vmem:[#allocation2 + $0x100] sm:$0xf0]  ;;  %v1167_v5 = vld [vmem:[#allocation2 + $0x134] sm:$0x8]  ;;  %2657 = vmatpush.bf16.msra.mxu1 %v4853_v51 }
 0x112   : > { %v992_v21 = vrot.slane %v991_v55, 4  ;;  %v1168_v14 = vsel %vm5979_vm14, 0, %v1167_v5  ;;  %v3990_v15 = vor.u32 %v4888_v50, %v3989_v23  ;;  %v4269_v55 = vld [vmem:[#allocation2 + $0xd8] sm:$0xf] }
 0x113   : > { %v2483_v39 = vpop.f32.mrf.mxu3  ;;  %v1910_v16 = vpop.f32.mrf.mxu1  ;;  %1169 = vst [vmem:[#allocation2 + $0x134] sm:$0x8] %v1168_v14  ;;  %v4889_v14 = vld [vmem:[#allocation2 + $0x10c] sm:$0xf] }
 0x114   : > { %v2484_v11 = vadd.f32 %v2483_v39, %v1995_v1  ;;  %v994_v54 = vsel %vm5926_vm10, %v992_v21, %v993_v4  ;;  %v4817_v39 = vld [vmem:[#allocation2 + $0xf4] sm:$0xf]  ;;  %v4283_v21 = vld [vmem:[#allocation2 + $0xfc] sm:$0xf0]  ;;  %v1911_v51 = vadd.f32 %v1910_v16, %v6084_v38  ;;  %v3998_v38 = vor.u32 %v4889_v14, %v3995_v57 }
 0x115   : > { %1111 = vst [vmem:[#allocation2 + $0x128] sm:$0xf] %v994_v54 }
 0x116   : > { %1949 = vmatmul.bf16.gmra.mxu1 %v3986_v18  ;;  %v6254_v3 = vpop.f32.mrf.mxu0  ;;  %v6263_v30 = vadd.f32 %v6206_v41, %v2484_v11  ;;  %v4815_v18 = vld [vmem:[#allocation2 + $0xe0] sm:$0xf0]  ;;  %v1117_v41 = vsel %vm5956_vm11, %v1006_v10, %v1116_v56  ;;  %v4286_v11 = vor.u32 %v4817_v39, %v4283_v21  ;;  %v4891_v10 = vld [vmem:[#allocation2 + $0x118] sm:$0xf0] }
 0x117   : > { %v1996_v1 = vpop.f32.mrf.mxu2  ;;  %v4270_v40 = vor.u32 %v4815_v18, %v4269_v55  ;;  %1118 = vst [vmem:[#allocation2 + $0x14c] sm:$0xf] %v1117_v41  ;;  %v6645_v41 = vshll.u32 %v5617_v43, 16 }
 0x118   : > { %v1997_v4 = vadd.f32 %v1996_v1, %v1908_v0  ;;  %v998_v1 = vrot.slane %v6643_v13, 4  ;;  %v4281_v13 = vld [vmem:[#allocation2 + $0xf0] sm:$0xf] }
 0x11b   : > { %v2485_v54 = vpop.f32.mrf.mxu3  ;;  %v1912_v5 = vpop.f32.mrf.mxu1 }
 0x11c   : > { %v2486_v2 = vadd.f32 %v2485_v54, %v1997_v4  ;;  %2038 = vmatmul.bf16.gmra.mxu2 %v3990_v15  ;;  %v6644_v4 = vshll.u32 %v5420_v37, 16 }
 0x11e   : > { %v6268_v0 = vpop.f32.mrf.mxu0  ;;  %v6271_v23 = vadd.f32 %v6218_v28, %v2486_v2  ;;  %v999_v15 = vrot.slane %v6644_v4, 5  ;;  %v1913_v28 = vadd.f32 %v1912_v5, %v6102_v6  ;;  %v4001_v2 = vld [vmem:[#allocation2 + $0x110] sm:$0xf]  ;;  %v1170_v56 = vld [vmem:[#allocation2 + $0x14c] sm:$0x8] }
 0x11f   : > { %v1999_v50 = vpop.f32.mrf.mxu2  ;;  %v4002_v14 = vor.u32 %v4891_v10, %v4001_v2  ;;  %v4820_v4 = vld [vmem:[#allocation2 + $0x10c] sm:$0xf] }
 0x120   : > { %2527 = vmatmul.bf16.gmra.mxu3 %v4270_v40  ;;  %v2000_v53 = vadd.f32 %v1999_v50, %v1911_v51  ;;  %v1000_v55 = vor.u32 %v999_v15, %v998_v1  ;;  %v1171_v40 = vsel %vm5979_vm14, 0, %v1170_v56  ;;  %v6646_v51 = vshrl.u32 %v5617_v43, 16  ;;  %v4818_v1 = vld [vmem:[#allocation2 + $0xf8] sm:$0xf0]  ;;  %v4295_v15 = vld [vmem:[#allocation2 + $0x114] sm:$0xf0] }
 0x121   : > { %2621 = vmatmul.bf16.gmra.mxu0 %v4286_v11  ;;  %v1011_v11 = vrot.slane %v6645_v41, 5  ;;  %1172 = vst [vmem:[#allocation2 + $0x14c] sm:$0x8] %v1171_v40  ;;  %v4282_v43 = vor.u32 %v4818_v1, %v4281_v13  ;;  %v4892_v40 = vld [vmem:[#allocation2 + $0x124] sm:$0xf] }
 0x122   : > { %v1001_v39 = vrot.slane %v1000_v55, 4  ;;  %v1013_v50 = vrot.slane %v6646_v51, 4  ;;  %v4007_v41 = vld [vmem:[#allocation2 + $0x12c] sm:$0xf0]  ;;  %v6647_v51 = vshrl.u32 %v5606_v22, 16 }
 0x123   : > { %v2488_v16 = vpop.f32.mrf.mxu3  ;;  %v1915_v18 = vpop.f32.mrf.mxu1 }
 0x124   : > { %v2489_v21 = vadd.f32 %v2488_v16, %v2000_v53  ;;  %v1003_v54 = vsel %vm5926_vm10, %v1001_v39, %v1002_v34  ;;  %v1014_v57 = vor.u32 %v1013_v50, %v1011_v11  ;;  %v1120_v16 = vld [vmem:[#allocation2 + $0x164] sm:$0xf]  ;;  %v1007_v50 = vrot.slane %v6647_v51, 4 }
 0x125   : > { %1115 = vst [vmem:[#allocation2 + $0x140] sm:$0xf] %v1003_v54 }
 0x126   : > { %1954 = vmatmul.bf16.gmra.mxu1 %v3998_v38  ;;  %v6280_v37 = vpop.f32.mrf.mxu0  ;;  %v6289_v6 = vadd.f32 %v6233_v27, %v2489_v21  ;;  %v1015_v53 = vrot.slane %v1014_v57, 4  ;;  %v4298_v21 = vor.u32 %v4820_v4, %v4295_v15  ;;  %v4852_v15 = vld [vmem:[%s6525_s1 + $0x88] sm:$0xff] }
 0x127   : > { %v2001_v5 = vpop.f32.mrf.mxu2  ;;  %2658 = vmatpush.bf16.msra.mxu1 %v4852_v15 }
 0x128   : > { %v2002_v34 = vadd.f32 %v2001_v5, %v1913_v28  ;;  %v1121_v27 = vsel %vm5956_vm11, %v1015_v53, %v1120_v16  ;;  %v1916_v28 = vadd.f32 %v1915_v18, %v6134_v20  ;;  %v4980_v20 = vld [vmem:[%s6525_s1 + $0x188] sm:$0xff] }
 0x129   : > { %1122 = vst [vmem:[#allocation2 + $0x164] sm:$0xf] %v1121_v27  ;;  %3261 = vmatpush.bf16.msra.mxu2 %v4980_v20  ;;  %v4996_v53 = vld [vmem:[%s6525_s1 + $0x208] sm:$0xff]  ;;  %v6649_v27 = vshll.u32 %v5756_v33, 16  ;;  %v4307_v20 = vld [vmem:[#allocation2 + $0x12c] sm:$0xf0] }
 0x12a   : > { %3439 = vmatpush.bf16.msra.mxu0 %v4996_v53 }
 0x12b   : > { %v2490_v55 = vpop.f32.mrf.mxu3  ;;  %v1917_v38 = vpop.f32.mrf.mxu1 }
 0x12c   : > { %v2491_v39 = vadd.f32 %v2490_v55, %v2002_v34  ;;  %2043 = vmatmul.bf16.gmra.mxu2 %v4002_v14  ;;  %v1918_v54 = vadd.f32 %v1917_v38, %v6148_v32  ;;  %v6648_v32 = vshll.u32 %v5606_v22, 16  ;;  %v4010_v14 = vor.u32 %v4892_v40, %v4007_v41  ;;  %v4013_v55 = vld [vmem:[#allocation2 + $0x128] sm:$0xf]  ;;  %v4894_v38 = vld [vmem:[#allocation2 + $0x130] sm:$0xf0] }
 0x12d   : > { %v4014_v51 = vor.u32 %v4894_v38, %v4013_v55  ;;  %v4895_v55 = vld [vmem:[#allocation2 + $0x13c] sm:$0xf]  ;;  %v4019_v38 = vld [vmem:[#allocation2 + $0x144] sm:$0xf0] }
 0x12e   : > { %v6295_v2 = vpop.f32.mrf.mxu0  ;;  %v6298_v10 = vadd.f32 %v6254_v3, %v2491_v39  ;;  %v1008_v5 = vrot.slane %v6648_v32, 5  ;;  %v4988_v3 = vld [vmem:[%s6525_s1 + $0x1c8] sm:$0xff] }
 0x12f   : > { %v2004_v56 = vpop.f32.mrf.mxu2  ;;  %3350 = vmatpush.bf16.msra.mxu3 %v4988_v3  ;;  %v4293_v32 = vld [vmem:[#allocation2 + $0x108] sm:$0xf] }
 0x130   : > { %2532 = vmatmul.bf16.gmra.mxu3 %v4282_v43  ;;  %v2005_v34 = vadd.f32 %v2004_v56, %v1916_v28  ;;  %v1009_v18 = vor.u32 %v1008_v5, %v1007_v50  ;;  %v1173_v39 = vld [vmem:[#allocation2 + $0x164] sm:$0x8]  ;;  %v6650_v28 = vshrl.u32 %v5756_v33, 16  ;;  %v4821_v5 = vld [vmem:[#allocation2 + $0x110] sm:$0xf0] }
 0x131   : > { %2626 = vmatmul.bf16.gmra.mxu0 %v4298_v21  ;;  %v1020_v21 = vrot.slane %v6649_v27, 5  ;;  %v4294_v33 = vor.u32 %v4821_v5, %v4293_v32  ;;  %v4897_v32 = vld [vmem:[#allocation2 + $0x148] sm:$0xf0] }
 0x132   : > { %v1010_v1 = vrot.slane %v1009_v18, 4  ;;  %v1022_v56 = vrot.slane %v6650_v28, 4 }
 0x133   : > { %v2493_v57 = vpop.f32.mrf.mxu3  ;;  %v1920_v13 = vpop.f32.mrf.mxu1 }
 0x134   : > { %v2494_v22 = vadd.f32 %v2493_v57, %v2005_v34  ;;  %v1921_v4 = vadd.f32 %v1920_v13, %v6166_v9  ;;  %v1012_v16 = vsel %vm5926_vm10, %v1010_v1, %v1011_v11  ;;  %v1174_v9 = vsel %vm5979_vm14, 0, %v1173_v39  ;;  %v4823_v34 = vld [vmem:[#allocation2 + $0x124] sm:$0xf]  ;;  %v1124_v57 = vld [vmem:[#allocation2 + $0x17c] sm:$0xf] }
 0x135   : > { %1119 = vst [vmem:[#allocation2 + $0x158] sm:$0xf] %v1012_v16  ;;  %v1023_v50 = vor.u32 %v1022_v56, %v1020_v21  ;;  %v6651_v16 = vshrl.u32 %v5754_v46, 16  ;;  %v4022_v56 = vor.u32 %v4895_v55, %v4019_v38  ;;  %v4826_v55 = vld [vmem:[#allocation2 + $0x13c] sm:$0xf] }
 0x136   : > { %1959 = vmatmul.bf16.gmra.mxu1 %v4010_v14  ;;  %v6319_v43 = vpop.f32.mrf.mxu0  ;;  %v6328_v40 = vadd.f32 %v6268_v0, %v2494_v22  ;;  %1175 = vst [vmem:[#allocation2 + $0x164] sm:$0x8] %v1174_v9  ;;  %v4310_v22 = vor.u32 %v4823_v34, %v4307_v20  ;;  %v6652_v9 = vshll.u32 %v5754_v46, 16  ;;  %v4319_v38 = vld [vmem:[#allocation2 + $0x144] sm:$0xf0] }
 0x137   : > { %v2006_v41 = vpop.f32.mrf.mxu2  ;;  %v1024_v3 = vrot.slane %v1023_v50, 4  ;;  %v1016_v39 = vrot.slane %v6651_v16, 4 }
 0x138   : > { %v2007_v11 = vadd.f32 %v2006_v41, %v1918_v54  ;;  %v1017_v27 = vrot.slane %v6652_v9, 5 }
 0x139   : > { %v1125_v1 = vsel %vm5956_vm11, %v1024_v3, %v1124_v57 }
 0x13a   : > { %1126 = vst [vmem:[#allocation2 + $0x17c] sm:$0xf] %v1125_v1  ;;  %v1018_v28 = vor.u32 %v1017_v27, %v1016_v39  ;;  %v1128_v27 = vld [vmem:[#allocation2 + $0x194] sm:$0xf] }
 0x13b   : > { %v2495_v18 = vpop.f32.mrf.mxu3  ;;  %v1922_v14 = vpop.f32.mrf.mxu1 }
 0x13c   : > { %v2496_v13 = vadd.f32 %v2495_v18, %v2007_v11  ;;  %2048 = vmatmul.bf16.gmra.mxu2 %v4014_v51  ;;  %v1923_v0 = vadd.f32 %v1922_v14, %v6190_v26  ;;  %v1019_v51 = vrot.slane %v1018_v28, 4  ;;  %v6654_v18 = vshrl.u32 %v5896_v17, 16 }
 0x13d   : > { %v4322_v28 = vor.u32 %v4826_v55, %v4319_v38 }
 0x13e   : > { %v6333_v54 = vpop.f32.mrf.mxu0  ;;  %v6336_v15 = vadd.f32 %v6280_v37, %v2496_v13  ;;  %v4025_v37 = vld [vmem:[#allocation2 + $0x140] sm:$0xf]  ;;  %v1021_v5 = vsel %vm5926_vm10, %v1019_v51, %v1020_v21  ;;  %v1031_v14 = vrot.slane %v6654_v18, 4 }
 0x13f   : > { %v2009_v53 = vpop.f32.mrf.mxu2  ;;  %1123 = vst [vmem:[#allocation2 + $0x170] sm:$0xf] %v1021_v5 }
 0x140   : > { %2537 = vmatmul.bf16.gmra.mxu3 %v4294_v33  ;;  %v2010_v26 = vadd.f32 %v2009_v53, %v1921_v4  ;;  %v6653_v4 = vshll.u32 %v5896_v17, 16  ;;  %v4026_v33 = vor.u32 %v4897_v32, %v4025_v37  ;;  %v4824_v53 = vld [vmem:[#allocation2 + $0x128] sm:$0xf0]  ;;  %v4031_v37 = vld [vmem:[#allocation2 + $0x15c] sm:$0xf0]  ;;  %v6655_v32 = vshrl.u32 %v5894_v60, 16 }
 0x141   : > { %2631 = vmatmul.bf16.gmra.mxu0 %v4310_v22  ;;  %v1176_v34 = vld [vmem:[#allocation2 + $0x17c] sm:$0x8]  ;;  %v4305_v22 = vld [vmem:[#allocation2 + $0x120] sm:$0xf] }
 0x142   : > { %v1177_v46 = vsel %vm5979_vm14, 0, %v1176_v34  ;;  %v1029_v3 = vrot.slane %v6653_v4, 5  ;;  %v4306_v17 = vor.u32 %v4824_v53, %v4305_v22  ;;  %v1025_v5 = vrot.slane %v6655_v32, 4  ;;  %v4900_v22 = vld [vmem:[#allocation2 + $0x160] sm:$0xf0] }
 0x143   : > { %v2498_v41 = vpop.f32.mrf.mxu3  ;;  %v1925_v11 = vpop.f32.mrf.mxu1  ;;  %1178 = vst [vmem:[#allocation2 + $0x17c] sm:$0x8] %v1177_v46  ;;  %v6656_v34 = vshll.u32 %v5894_v60, 16 }
 0x144   : > { %v2499_v50 = vadd.f32 %v2498_v41, %v2010_v26  ;;  %v1032_v1 = vor.u32 %v1031_v14, %v1029_v3 }
 0x145   : > { %v1026_v46 = vrot.slane %v6656_v34, 5  ;;  %v4901_v34 = vld [vmem:[#allocation2 + $0x16c] sm:$0xf] }
 0x146   : > { %1964 = vmatmul.bf16.gmra.mxu1 %v4022_v56  ;;  %v6344_v20 = vpop.f32.mrf.mxu0  ;;  %v6353_v57 = vadd.f32 %v6295_v2, %v2499_v50  ;;  %v1033_v16 = vrot.slane %v1032_v1, 4  ;;  %v1926_v56 = vadd.f32 %v1925_v11, %v6070_v48  ;;  %v4898_v50 = vld [vmem:[#allocation2 + $0x154] sm:$0xf]  ;;  %v4979_v48 = vld [vmem:[%s6525_s1 + $0x180] sm:$0xff]  ;;  %v4037_v1 = vld [vmem:[#allocation2 + $0x158] sm:$0xf] }
 0x147   : > { %v2011_v13 = vpop.f32.mrf.mxu2  ;;  %v1027_v11 = vor.u32 %v1026_v46, %v1025_v5  ;;  %v4034_v4 = vor.u32 %v4898_v50, %v4031_v37  ;;  %3262 = vmatpush.bf16.msra.mxu2 %v4979_v48  ;;  %v4043_v46 = vld [vmem:[#allocation2 + $0x174] sm:$0xf0] }
 0x148   : > { %v2012_v21 = vadd.f32 %v2011_v13, %v1923_v0  ;;  %v1129_v2 = vsel %vm5956_vm11, %v1033_v16, %v1128_v27  ;;  %v4046_v48 = vor.u32 %v4901_v34, %v4043_v46 }
 0x149   : > { %1130 = vst [vmem:[#allocation2 + $0x194] sm:$0xf] %v1129_v2  ;;  %v1028_v13 = vrot.slane %v1027_v11, 4  ;;  %v4038_v2 = vor.u32 %v4900_v22, %v4037_v1  ;;  %v4329_v1 = vld [vmem:[#allocation2 + $0x150] sm:$0xf] }
 0x14a   : > { %v4830_v22 = vld [vmem:[#allocation2 + $0x158] sm:$0xf0] }
 0x14b   : > { %v2500_v39 = vpop.f32.mrf.mxu3  ;;  %v1927_v9 = vpop.f32.mrf.mxu1  ;;  %v1030_v53 = vsel %vm5926_vm10, %v1028_v13, %v1029_v3  ;;  %v4827_v3 = vld [vmem:[#allocation2 + $0x140] sm:$0xf0]  ;;  %v4903_v13 = vld [vmem:[#allocation2 + $0x178] sm:$0xf0] }
 0x14c   : > { %v2501_v26 = vadd.f32 %v2500_v39, %v2012_v21  ;;  %2053 = vmatmul.bf16.gmra.mxu2 %v4026_v33  ;;  %v4851_v21 = vld [vmem:[%s6525_s1 + $0x80] sm:$0xff]  ;;  %v1928_v38 = vadd.f32 %v1927_v9, %v6080_v49  ;;  %1127 = vst [vmem:[#allocation2 + $0x188] sm:$0xf] %v1030_v53  ;;  %v4318_v50 = vor.u32 %v4827_v3, %v4317_v44  ;;  %v4832_v53 = vld [vmem:[#allocation2 + $0x16c] sm:$0xf] }
 0x14d   : > { %v4995_v33 = vld [vmem:[%s6525_s1 + $0x200] sm:$0xff]  ;;  %2659 = vmatpush.bf16.msra.mxu1 %v4851_v21 }
 0x14e   : > { %v6358_v0 = vpop.f32.mrf.mxu0  ;;  %v6361_v41 = vadd.f32 %v6319_v43, %v2501_v26  ;;  %v4987_v43 = vld [vmem:[%s6525_s1 + $0x1c0] sm:$0xff]  ;;  %3440 = vmatpush.bf16.msra.mxu0 %v4995_v33 }
 0x14f   : > { %v2014_v51 = vpop.f32.mrf.mxu2  ;;  %3351 = vmatpush.bf16.msra.mxu3 %v4987_v43 }
 0x150   : > { %2542 = vmatmul.bf16.gmra.mxu3 %v4306_v17  ;;  %v2015_v12 = vadd.f32 %v2014_v51, %v1926_v56  ;;  %v1179_v55 = vld [vmem:[#allocation2 + $0x194] sm:$0x8]  ;;  %v4331_v56 = vld [vmem:[#allocation2 + $0x15c] sm:$0xf0] }
 0x151   : > { %2636 = vmatmul.bf16.gmra.mxu0 %v4322_v28  ;;  %v1180_v39 = vsel %vm5979_vm14, 0, %v1179_v55  ;;  %v4829_v28 = vld [vmem:[#allocation2 + $0x154] sm:$0xf]  ;;  %v4343_v55 = vld [vmem:[#allocation2 + $0x174] sm:$0xf0] }
 0x152   : > { %1181 = vst [vmem:[#allocation2 + $0x194] sm:$0x8] %v1180_v39  ;;  %v4334_v37 = vor.u32 %v4829_v28, %v4331_v56  ;;  %v4904_v28 = vld [vmem:[#allocation2 + $0x184] sm:$0xf]  ;;  %v4055_v56 = vld [vmem:[#allocation2 + $0x18c] sm:$0xf0] }
 0x153   : > { %v2503_v18 = vpop.f32.mrf.mxu3  ;;  %v1930_v14 = vpop.f32.mrf.mxu1 }
 0x154   : > { %v2504_v60 = vadd.f32 %v2503_v18, %v2015_v12  ;;  %v1931_v62 = vadd.f32 %v1930_v14, %v6096_v19  ;;  %v4049_v18 = vld [vmem:[#allocation2 + $0x170] sm:$0xf] }
 0x155   : > { %v4050_v33 = vor.u32 %v4903_v13, %v4049_v18  ;;  %v4933_v18 = vld [vmem:[#allocation2 + $0x40] sm:$0xf0] }
 0x156   : > { %1969 = vmatmul.bf16.gmra.mxu1 %v4034_v4  ;;  %v2599_v16 = vpop.f32.mrf.mxu0  ;;  %v6385_v27 = vadd.f32 %v6333_v54, %v2504_v60 }
 0x157   : > { %v2016_v26 = vpop.f32.mrf.mxu2 }
 0x158   : > { %v2017_v17 = vadd.f32 %v2016_v26, %v1928_v38 }
 0x15b   : > { %v2505_v49 = vpop.f32.mrf.mxu3  ;;  %v1932_v9 = vpop.f32.mrf.mxu1 }
 0x15c   : > { %v2506_v51 = vadd.f32 %v2505_v49, %v2017_v17  ;;  %2058 = vmatmul.bf16.gmra.mxu2 %v4038_v2  ;;  %v1933_v60 = vadd.f32 %v1932_v9, %v6122_v36  ;;  %v4330_v17 = vor.u32 %v4830_v22, %v4329_v1  ;;  %v4346_v2 = vor.u32 %v4832_v53, %v4343_v55  ;;  %v4169_v53 = vld [vmem:[#allocation2 + $0x8] sm:$0xf]  ;;  %v4789_v55 = vld [vmem:[#allocation2 + $0x10] sm:$0xf0] }
 0x15d   : > { %v4058_v9 = vor.u32 %v4904_v28, %v4055_v56 }
 0x15e   : > { %v2602_v32 = vpop.f32.mrf.mxu0  ;;  %v6389_v54 = vadd.f32 %v6344_v20, %v2506_v51 }
 0x15f   : > { %v2019_v5 = vpop.f32.mrf.mxu2 }
 0x160   : > { %2547 = vmatmul.bf16.gmra.mxu3 %v4318_v50  ;;  %v2020_v12 = vadd.f32 %v2019_v5, %v1931_v62  ;;  %v4061_v62 = vld [vmem:[#allocation2 + $0x188] sm:$0xf]  ;;  %v4906_v5 = vld [vmem:[#allocation2 + $0x190] sm:$0xf0] }
 0x161   : > { %2641 = vmatmul.bf16.gmra.mxu0 %v4334_v37 }
 0x163   : > { %v2508_v43 = vpop.f32.mrf.mxu3  ;;  %v1935_v11 = vpop.f32.mrf.mxu1 }
 0x164   : > { %v2509_v4 = vadd.f32 %v2508_v43, %v2020_v12  ;;  %v1936_v36 = vadd.f32 %v1935_v11, %v6140_v63  ;;  %v4341_v43 = vld [vmem:[#allocation2 + $0x168] sm:$0xf]  ;;  %v4833_v11 = vld [vmem:[#allocation2 + $0x170] sm:$0xf0] }
 0x166   : > { %1974 = vmatmul.bf16.gmra.mxu1 %v4046_v48  ;;  %v2604_v19 = vpop.f32.mrf.mxu0  ;;  %v6393_v14 = vadd.f32 %v6358_v0, %v2509_v4  ;;  %v4062_v48 = vor.u32 %v4906_v5, %v4061_v62  ;;  %v4505_v4 = vld [vmem:[#allocation2 + $0x38] sm:$0xf]  ;;  %v4936_v62 = vld [vmem:[#allocation2 + $0x58] sm:$0xf0] }
 0x167   : > { %v2021_v20 = vpop.f32.mrf.mxu2 }
 0x168   : > { %v2022_v21 = vadd.f32 %v2021_v20, %v1933_v60 }
 0x16b   : > { %v2510_v38 = vpop.f32.mrf.mxu3  ;;  %v1937_v39 = vpop.f32.mrf.mxu1 }
 0x16c   : > { %v2511_v26 = vadd.f32 %v2510_v38, %v2022_v21  ;;  %2063 = vmatmul.bf16.gmra.mxu2 %v4050_v33  ;;  %v1938_v34 = vadd.f32 %v1937_v39, %v6160_v61  ;;  %v4342_v21 = vor.u32 %v4833_v11, %v4341_v43  ;;  %v4506_v33 = vor.u32 %v4933_v18, %v4505_v4  ;;  %v4181_v4 = vld [vmem:[#allocation2 + $0x20] sm:$0xf]  ;;  %v4792_v18 = vld [vmem:[#allocation2 + $0x28] sm:$0xf0] }
 0x16d   : > { %v4170_v39 = vor.u32 %v4789_v55, %v4169_v53 }
 0x16e   : > { %v2607_v44 = vpop.f32.mrf.mxu0  ;;  %v6396_v3 = vadd.f32 %v2599_v16, %v2511_v26 }
 0x16f   : > { %v2024_v0 = vpop.f32.mrf.mxu2 }
 0x170   : > { %2552 = vmatmul.bf16.gmra.mxu3 %v4330_v17  ;;  %v2025_v49 = vadd.f32 %v2024_v0, %v1936_v36  ;;  %v4497_v36 = vld [vmem:[#allocation2 + $0x30] sm:$0xf]  ;;  %v4932_v0 = vld [vmem:[#allocation2 + $0x38] sm:$0xf0] }
 0x171   : > { %2646 = vmatmul.bf16.gmra.mxu0 %v4346_v2 }
 0x173   : > { %v2513_v51 = vpop.f32.mrf.mxu3  ;;  %v1940_v50 = vpop.f32.mrf.mxu1 }
 0x174   : > { %v2514_v37 = vadd.f32 %v2513_v51, %v2025_v49  ;;  %v1941_v1 = vadd.f32 %v1940_v50, %v6180_v52  ;;  %v4931_v51 = vld [vmem:[#allocation2 + $0x34] sm:$0xf]  ;;  %v4499_v50 = vld [vmem:[#allocation2 + $0x3c] sm:$0xf0] }
 0x176   : > { %1979 = vmatmul.bf16.gmra.mxu1 %v4058_v9  ;;  %v2609_v46 = vpop.f32.mrf.mxu0  ;;  %v6399_v63 = vadd.f32 %v2602_v32, %v2514_v37  ;;  %v4498_v9 = vor.u32 %v4932_v0, %v4497_v36  ;;  %v4517_v37 = vld [vmem:[#allocation2 + $0x50] sm:$0xf]  ;;  %v4939_v36 = vld [vmem:[#allocation2 + $0x70] sm:$0xf0] }
 0x177   : > { %v2026_v16 = vpop.f32.mrf.mxu2 }
 0x178   : > { %v2027_v12 = vadd.f32 %v2026_v16, %v1938_v34 }
 0x17b   : > { %v2515_v13 = vpop.f32.mrf.mxu3  ;;  %v1942_v60 = vpop.f32.mrf.mxu1 }
 0x17c   : > { %v2516_v20 = vadd.f32 %v2515_v13, %v2027_v12  ;;  %2068 = vmatmul.bf16.gmra.mxu2 %v4062_v48  ;;  %v1943_v28 = vadd.f32 %v1942_v60, %v6202_v45  ;;  %v4502_v12 = vor.u32 %v4931_v51, %v4499_v50  ;;  %v4518_v48 = vor.u32 %v4936_v62, %v4517_v37  ;;  %v4193_v37 = vld [vmem:[#allocation2 + $0x38] sm:$0xf]  ;;  %v4795_v62 = vld [vmem:[#allocation2 + $0x40] sm:$0xf0] }
 0x17d   : > { %v4182_v60 = vor.u32 %v4792_v18, %v4181_v4 }
 0x17e   : > { %v2612_v61 = vpop.f32.mrf.mxu0  ;;  %v6402_v22 = vadd.f32 %v2604_v19, %v2516_v20 }
 0x17f   : > { %v2029_v32 = vpop.f32.mrf.mxu2 }
 0x180   : > { %2557 = vmatmul.bf16.gmra.mxu3 %v4342_v21  ;;  %v2030_v38 = vadd.f32 %v2029_v32, %v1941_v1  ;;  %v4509_v1 = vld [vmem:[#allocation2 + $0x48] sm:$0xf]  ;;  %v4935_v32 = vld [vmem:[#allocation2 + $0x50] sm:$0xf0] }
 0x181   : > { %3441 = vmatmul.bf16.vlgmr.msra.gmra.mxu0 %v4506_v33 }
 0x183   : > { %v2518_v26 = vpop.f32.mrf.mxu3  ;;  %v1945_v17 = vpop.f32.mrf.mxu1 }
 0x184   : > { %v2519_v2 = vadd.f32 %v2518_v26, %v2030_v38  ;;  %v1946_v43 = vadd.f32 %v1945_v17, %v6082_v7  ;;  %v4934_v26 = vld [vmem:[#allocation2 + $0x4c] sm:$0xf]  ;;  %v4511_v17 = vld [vmem:[#allocation2 + $0x54] sm:$0xf0] }
 0x186   : > { %2660 = vmatmul.bf16.vlgmr.msra.gmra.mxu1 %v4170_v39  ;;  %v2614_v56 = vpop.f32.mrf.mxu0  ;;  %v6405_v52 = vadd.f32 %v2607_v44, %v2519_v2  ;;  %v4510_v39 = vor.u32 %v4935_v32, %v4509_v1  ;;  %v4529_v2 = vld [vmem:[#allocation2 + $0x68] sm:$0xf]  ;;  %v4942_v1 = vld [vmem:[#allocation2 + $0x88] sm:$0xf0] }
 0x187   : > { %v2031_v19 = vpop.f32.mrf.mxu2 }
 0x188   : > { %v2032_v49 = vadd.f32 %v2031_v19, %v1943_v28 }
 0x18b   : > { %v2520_v5 = vpop.f32.mrf.mxu3  ;;  %v1947_v34 = vpop.f32.mrf.mxu1 }
 0x18c   : > { %v2521_v16 = vadd.f32 %v2520_v5, %v2032_v49  ;;  %3263 = vmatmul.bf16.vlgmr.msra.gmra.mxu2 %v4498_v9  ;;  %v1948_v53 = vadd.f32 %v1947_v34, %v6100_v29  ;;  %v4514_v49 = vor.u32 %v4934_v26, %v4511_v17  ;;  %v4530_v9 = vor.u32 %v4939_v36, %v4529_v2  ;;  %v4205_v2 = vld [vmem:[#allocation2 + $0x50] sm:$0xf]  ;;  %v4798_v36 = vld [vmem:[#allocation2 + $0x58] sm:$0xf0] }
 0x18d   : > { %v4194_v34 = vor.u32 %v4795_v62, %v4193_v37 }
 0x18e   : > { %v2617_v45 = vpop.f32.mrf.mxu0  ;;  %v6408_v11 = vadd.f32 %v2609_v46, %v2521_v16 }
 0x18f   : > { %v2034_v44 = vpop.f32.mrf.mxu2 }
 0x190   : > { %3352 = vmatmul.bf16.vlgmr.msra.gmra.mxu3 %v4502_v12  ;;  %v2035_v13 = vadd.f32 %v2034_v44, %v1946_v43  ;;  %v4521_v43 = vld [vmem:[#allocation2 + $0x60] sm:$0xf]  ;;  %v4938_v44 = vld [vmem:[#allocation2 + $0x68] sm:$0xf0] }
 0x191   : > { %3446 = vmatmul.bf16.gmra.mxu0 %v4518_v48 }
 0x193   : > { %v2523_v20 = vpop.f32.mrf.mxu3  ;;  %v1950_v21 = vpop.f32.mrf.mxu1 }
 0x194   : > { %v2524_v33 = vadd.f32 %v2523_v20, %v2035_v13  ;;  %v1951_v51 = vadd.f32 %v1950_v21, %v6126_v8  ;;  %v4937_v20 = vld [vmem:[#allocation2 + $0x64] sm:$0xf]  ;;  %v4523_v21 = vld [vmem:[#allocation2 + $0x6c] sm:$0xf0] }
 0x196   : > { %2665 = vmatmul.bf16.gmra.mxu1 %v4182_v60  ;;  %v2619_v55 = vpop.f32.mrf.mxu0  ;;  %v6411_v7 = vadd.f32 %v2612_v61, %v2524_v33  ;;  %v4522_v60 = vor.u32 %v4938_v44, %v4521_v43  ;;  %v4541_v33 = vld [vmem:[#allocation2 + $0x80] sm:$0xf]  ;;  %v4945_v43 = vld [vmem:[#allocation2 + $0xa0] sm:$0xf0] }
 0x197   : > { %v2036_v46 = vpop.f32.mrf.mxu2 }
 0x198   : > { %v2037_v38 = vadd.f32 %v2036_v46, %v1948_v53 }
 0x19b   : > { %v2525_v0 = vpop.f32.mrf.mxu3  ;;  %v1952_v28 = vpop.f32.mrf.mxu1 }
 0x19c   : > { %v2526_v19 = vadd.f32 %v2525_v0, %v2037_v38  ;;  %3268 = vmatmul.bf16.gmra.mxu2 %v4510_v39  ;;  %v1953_v4 = vadd.f32 %v1952_v28, %v6146_v42  ;;  %v4526_v38 = vor.u32 %v4937_v20, %v4523_v21  ;;  %v4542_v39 = vor.u32 %v4942_v1, %v4541_v33  ;;  %v4217_v33 = vld [vmem:[#allocation2 + $0x68] sm:$0xf]  ;;  %v4801_v1 = vld [vmem:[#allocation2 + $0x70] sm:$0xf0] }
 0x19d   : > { %v4206_v28 = vor.u32 %v4798_v36, %v4205_v2 }
 0x19e   : > { %v2622_v29 = vpop.f32.mrf.mxu0  ;;  %v6414_v50 = vadd.f32 %v2614_v56, %v2526_v19 }
 0x19f   : > { %v2039_v61 = vpop.f32.mrf.mxu2 }
 0x1a0   : > { %3357 = vmatmul.bf16.gmra.mxu3 %v4514_v49  ;;  %v2040_v5 = vadd.f32 %v2039_v61, %v1951_v51  ;;  %v4533_v51 = vld [vmem:[#allocation2 + $0x78] sm:$0xf]  ;;  %v4941_v61 = vld [vmem:[#allocation2 + $0x80] sm:$0xf0] }
 0x1a1   : > { %3451 = vmatmul.bf16.gmra.mxu0 %v4530_v9 }
 0x1a3   : > { %v2528_v16 = vpop.f32.mrf.mxu3  ;;  %v1955_v12 = vpop.f32.mrf.mxu1 }
 0x1a4   : > { %v2529_v48 = vadd.f32 %v2528_v16, %v2040_v5  ;;  %v1956_v26 = vadd.f32 %v1955_v12, %v6162_v24  ;;  %v4940_v16 = vld [vmem:[#allocation2 + $0x7c] sm:$0xf]  ;;  %v4535_v12 = vld [vmem:[#allocation2 + $0x84] sm:$0xf0] }
 0x1a6   : > { %2670 = vmatmul.bf16.gmra.mxu1 %v4194_v34  ;;  %v2624_v18 = vpop.f32.mrf.mxu0  ;;  %v6417_v8 = vadd.f32 %v2617_v45, %v2529_v48  ;;  %v4534_v34 = vor.u32 %v4941_v61, %v4533_v51  ;;  %v4553_v48 = vld [vmem:[#allocation2 + $0x98] sm:$0xf]  ;;  %v4948_v51 = vld [vmem:[#allocation2 + $0xb8] sm:$0xf0] }
 0x1a7   : > { %v2041_v56 = vpop.f32.mrf.mxu2 }
 0x1a8   : > { %v2042_v13 = vadd.f32 %v2041_v56, %v1953_v4 }
 0x1ab   : > { %v2530_v32 = vpop.f32.mrf.mxu3  ;;  %v1957_v53 = vpop.f32.mrf.mxu1 }
 0x1ac   : > { %v2531_v46 = vadd.f32 %v2530_v32, %v2042_v13  ;;  %3273 = vmatmul.bf16.gmra.mxu2 %v4522_v60  ;;  %v1958_v37 = vadd.f32 %v1957_v53, %v6188_v47  ;;  %v4538_v13 = vor.u32 %v4940_v16, %v4535_v12  ;;  %v4554_v60 = vor.u32 %v4945_v43, %v4553_v48  ;;  %v4229_v48 = vld [vmem:[#allocation2 + $0x80] sm:$0xf]  ;;  %v4804_v43 = vld [vmem:[#allocation2 + $0x88] sm:$0xf0] }
 0x1ad   : > { %v4218_v53 = vor.u32 %v4801_v1, %v4217_v33 }
 0x1ae   : > { %v2627_v42 = vpop.f32.mrf.mxu0  ;;  %v6420_v17 = vadd.f32 %v2619_v55, %v2531_v46 }
 0x1af   : > { %v2044_v45 = vpop.f32.mrf.mxu2 }
 0x1b0   : > { %3362 = vmatmul.bf16.gmra.mxu3 %v4526_v38  ;;  %v2045_v0 = vadd.f32 %v2044_v45, %v1956_v26  ;;  %v4545_v26 = vld [vmem:[#allocation2 + $0x90] sm:$0xf]  ;;  %v4944_v45 = vld [vmem:[#allocation2 + $0x98] sm:$0xf0] }
 0x1b1   : > { %3456 = vmatmul.bf16.gmra.mxu0 %v4542_v39 }
 0x1b3   : > { %v2533_v19 = vpop.f32.mrf.mxu3  ;;  %v1960_v49 = vpop.f32.mrf.mxu1 }
 0x1b4   : > { %v2534_v9 = vadd.f32 %v2533_v19, %v2045_v0  ;;  %v1961_v20 = vadd.f32 %v1960_v49, %v6208_v59  ;;  %v4943_v19 = vld [vmem:[#allocation2 + $0x94] sm:$0xf]  ;;  %v4547_v49 = vld [vmem:[#allocation2 + $0x9c] sm:$0xf0] }
 0x1b6   : > { %2675 = vmatmul.bf16.gmra.mxu1 %v4206_v28  ;;  %v2629_v62 = vpop.f32.mrf.mxu0  ;;  %v6423_v24 = vadd.f32 %v2622_v29, %v2534_v9  ;;  %v4546_v28 = vor.u32 %v4944_v45, %v4545_v26  ;;  %v4565_v9 = vld [vmem:[#allocation2 + $0xb0] sm:$0xf]  ;;  %v4951_v26 = vld [vmem:[#allocation2 + $0xd0] sm:$0xf0] }
 0x1b7   : > { %v2046_v55 = vpop.f32.mrf.mxu2 }
 0x1b8   : > { %v2047_v5 = vadd.f32 %v2046_v55, %v1958_v37 }
 0x1bb   : > { %v2535_v44 = vpop.f32.mrf.mxu3  ;;  %v1962_v4 = vpop.f32.mrf.mxu1 }
 0x1bc   : > { %v2536_v56 = vadd.f32 %v2535_v44, %v2047_v5  ;;  %3278 = vmatmul.bf16.gmra.mxu2 %v4534_v34  ;;  %v1963_v2 = vadd.f32 %v1962_v4, %v6226_v58  ;;  %v4550_v5 = vor.u32 %v4943_v19, %v4547_v49  ;;  %v4566_v34 = vor.u32 %v4948_v51, %v4565_v9  ;;  %v4241_v9 = vld [vmem:[#allocation2 + $0x98] sm:$0xf]  ;;  %v4807_v51 = vld [vmem:[#allocation2 + $0xa0] sm:$0xf0] }
 0x1bd   : > { %v4230_v4 = vor.u32 %v4804_v43, %v4229_v48  ;;  %v6657_v48 = vld [vmem:[#allocation3_spill] sm:$0xff] }
 0x1be   : > { %v2632_v47 = vpop.f32.mrf.mxu0  ;;  %v6426_v21 = vadd.f32 %v2624_v18, %v2536_v56 }
 0x1bf   : > { %v2049_v29 = vpop.f32.mrf.mxu2 }
 0x1c0   : > { %3367 = vmatmul.bf16.gmra.mxu3 %v4538_v13  ;;  %v2050_v32 = vadd.f32 %v2049_v29, %v1961_v20  ;;  %v4557_v20 = vld [vmem:[#allocation2 + $0xa8] sm:$0xf]  ;;  %v4947_v29 = vld [vmem:[#allocation2 + $0xb0] sm:$0xf0] }
 0x1c1   : > { %3461 = vmatmul.bf16.gmra.mxu0 %v4554_v60 }
 0x1c3   : > { %v2538_v46 = vpop.f32.mrf.mxu3  ;;  %v1965_v38 = vpop.f32.mrf.mxu1 }
 0x1c4   : > { %v2539_v39 = vadd.f32 %v2538_v46, %v2050_v32  ;;  %v1966_v16 = vadd.f32 %v1965_v38, %v6094_v31  ;;  %v4946_v46 = vld [vmem:[#allocation2 + $0xac] sm:$0xf]  ;;  %v4559_v38 = vld [vmem:[#allocation2 + $0xb4] sm:$0xf0] }
 0x1c6   : > { %2680 = vmatmul.bf16.gmra.mxu1 %v4218_v53  ;;  %v2634_v36 = vpop.f32.mrf.mxu0  ;;  %v6429_v59 = vadd.f32 %v2627_v42, %v2539_v39  ;;  %v4558_v53 = vor.u32 %v4947_v29, %v4557_v20  ;;  %v4577_v39 = vld [vmem:[#allocation2 + $0xc8] sm:$0xf]  ;;  %v4589_v20 = vld [vmem:[#allocation2 + $0xe0] sm:$0xf]  ;;  %v4954_v29 = vld [vmem:[#allocation2 + $0xe8] sm:$0xf0] }
 0x1c7   : > { %v2051_v18 = vpop.f32.mrf.mxu2 }
 0x1c8   : > { %v2052_v0 = vadd.f32 %v2051_v18, %v1963_v2 }
 0x1cb   : > { %v2540_v61 = vpop.f32.mrf.mxu3  ;;  %v1967_v37 = vpop.f32.mrf.mxu1 }
 0x1cc   : > { %v2541_v55 = vadd.f32 %v2540_v61, %v2052_v0  ;;  %3283 = vmatmul.bf16.gmra.mxu2 %v4546_v28  ;;  %v1968_v33 = vadd.f32 %v1967_v37, %v6117_v35  ;;  %v4562_v0 = vor.u32 %v4946_v46, %v4559_v38  ;;  %v4578_v28 = vor.u32 %v4951_v26, %v4577_v39  ;;  %v6658_v38 = vld [vmem:[#allocation4_spill] sm:$0xff] }
 0x1cd   : > { %v4242_v37 = vor.u32 %v4807_v51, %v4241_v9  ;;  %v4590_v46 = vor.u32 %v4954_v29, %v4589_v20  ;;  %v4581_v51 = vld [vmem:[#allocation2 + $0xd8] sm:$0xf] }
 0x1ce   : > { %v2637_v58 = vpop.f32.mrf.mxu0  ;;  %v6432_v12 = vadd.f32 %v2629_v62, %v2541_v55 }
 0x1cf   : > { %v2054_v42 = vpop.f32.mrf.mxu2 }
 0x1d0   : > { %3372 = vmatmul.bf16.gmra.mxu3 %v4550_v5  ;;  %v2055_v44 = vadd.f32 %v2054_v42, %v1966_v16  ;;  %v4569_v16 = vld [vmem:[#allocation2 + $0xc0] sm:$0xf]  ;;  %v4950_v42 = vld [vmem:[#allocation2 + $0xc8] sm:$0xf0] }
 0x1d1   : > { %3466 = vmatmul.bf16.gmra.mxu0 %v4566_v34 }
 0x1d3   : > { %v2543_v56 = vpop.f32.mrf.mxu3  ;;  %v1970_v13 = vpop.f32.mrf.mxu1 }
 0x1d4   : > { %v2544_v60 = vadd.f32 %v2543_v56, %v2055_v44  ;;  %v1971_v19 = vadd.f32 %v1970_v13, %v6136_v25  ;;  %v4570_v56 = vor.u32 %v4950_v42, %v4569_v16  ;;  %v4949_v13 = vld [vmem:[#allocation2 + $0xc4] sm:$0xf] }
 0x1d6   : > { %2685 = vmatmul.bf16.gmra.mxu1 %v4230_v4  ;;  %v2639_v1 = vpop.f32.mrf.mxu0  ;;  %v6435_v31 = vadd.f32 %v2632_v47, %v2544_v60  ;;  %v4571_v60 = vld [vmem:[#allocation2 + $0xcc] sm:$0xf0] }
 0x1d7   : > { %v2056_v62 = vpop.f32.mrf.mxu2 }
 0x1d8   : > { %v2057_v32 = vadd.f32 %v2056_v62, %v1968_v33 }
 0x1db   : > { %v2545_v45 = vpop.f32.mrf.mxu3  ;;  %v1972_v2 = vpop.f32.mrf.mxu1 }
 0x1dc   : > { %v2546_v18 = vadd.f32 %v2545_v45, %v2057_v32  ;;  %3288 = vmatmul.bf16.gmra.mxu2 %v4558_v53  ;;  %v1973_v43 = vadd.f32 %v1972_v2, %v6657_v48  ;;  %v4574_v53 = vor.u32 %v4949_v13, %v4571_v60  ;;  %v4253_v2 = vld [vmem:[#allocation2 + $0xb0] sm:$0xf]  ;;  %v4952_v48 = vld [vmem:[#allocation2 + $0xdc] sm:$0xf] }
 0x1de   : > { %v2642_v35 = vpop.f32.mrf.mxu0  ;;  %v6438_v49 = vadd.f32 %v2634_v36, %v2546_v18  ;;  %v4810_v18 = vld [vmem:[#allocation2 + $0xb8] sm:$0xf0] }
 0x1df   : > { %v2059_v47 = vpop.f32.mrf.mxu2 }
 0x1e0   : > { %3377 = vmatmul.bf16.gmra.mxu3 %v4562_v0  ;;  %v2060_v61 = vadd.f32 %v2059_v47, %v1971_v19 }
 0x1e1   : > { %3471 = vmatmul.bf16.gmra.mxu0 %v4578_v28  ;;  %v4254_v28 = vor.u32 %v4810_v18, %v4253_v2 }
 0x1e3   : > { %v2548_v55 = vpop.f32.mrf.mxu3  ;;  %v1975_v5 = vpop.f32.mrf.mxu1 }
 0x1e4   : > { %v2549_v34 = vadd.f32 %v2548_v55, %v2060_v61  ;;  %v1976_v39 = vadd.f32 %v1975_v5, %v6658_v38  ;;  %v4953_v61 = vld [vmem:[#allocation2 + $0xe0] sm:$0xf0]  ;;  %v4813_v38 = vld [vmem:[#allocation2 + $0xd0] sm:$0xf0] }
 0x1e5   : > { %v4582_v42 = vor.u32 %v4953_v61, %v4581_v51 }
 0x1e6   : > { %2690 = vmatmul.bf16.gmra.mxu1 %v4242_v37  ;;  %v2644_v44 = vpop.f32.mrf.mxu0  ;;  %v6441_v25 = vadd.f32 %v2637_v58, %v2549_v34  ;;  %v6659_v37 = vld [vmem:[#allocation5_spill] sm:$0xff] }
 0x1e7   : > { %v2061_v36 = vpop.f32.mrf.mxu2 }
 0x1e8   : > { %v2062_v4 = vadd.f32 %v2061_v36, %v1973_v43  ;;  %v4583_v43 = vld [vmem:[#allocation2 + $0xe4] sm:$0xf0]  ;;  %v4601_v36 = vld [vmem:[#allocation2 + $0xf8] sm:$0xf] }
 0x1e9   : > { %v4586_v20 = vor.u32 %v4952_v48, %v4583_v43  ;;  %v4960_v48 = vld [vmem:[#allocation2 + $0x118] sm:$0xf0] }
 0x1eb   : > { %v2550_v33 = vpop.f32.mrf.mxu3  ;;  %v1977_v62 = vpop.f32.mrf.mxu1 }
 0x1ec   : > { %v2551_v32 = vadd.f32 %v2550_v33, %v2062_v4  ;;  %3293 = vmatmul.bf16.gmra.mxu2 %v4570_v56  ;;  %v1978_v55 = vadd.f32 %v1977_v62, %v6659_v37  ;;  %v4957_v4 = vld [vmem:[#allocation2 + $0x100] sm:$0xf0]  ;;  %v6660_v33 = vld [vmem:[#allocation6_spill] sm:$0xff] }
 0x1ed   : > { %v4602_v29 = vor.u32 %v4957_v4, %v4601_v36 }
 0x1ee   : > { %v2647_v26 = vpop.f32.mrf.mxu0  ;;  %v6444_v45 = vadd.f32 %v2639_v1, %v2551_v32 }
 0x1ef   : > { %v2064_v58 = vpop.f32.mrf.mxu2 }
 0x1f0   : > { %3382 = vmatmul.bf16.gmra.mxu3 %v4574_v53  ;;  %v2065_v0 = vadd.f32 %v2064_v58, %v1976_v39 }
 0x1f1   : > { %3476 = vmatmul.bf16.gmra.mxu0 %v4590_v46  ;;  %v4265_v46 = vld [vmem:[#allocation2 + $0xc8] sm:$0xf] }
 0x1f2   : > { %v4266_v58 = vor.u32 %v4813_v38, %v4265_v46  ;;  %v4605_v38 = vld [vmem:[#allocation2 + $0x108] sm:$0xf] }
 0x1f3   : > { %v2553_v19 = vpop.f32.mrf.mxu3  ;;  %v1980_v47 = vpop.f32.mrf.mxu1 }
 0x1f4   : > { %v2554_v9 = vadd.f32 %v2553_v19, %v2065_v0  ;;  %v1981_v32 = vadd.f32 %v1980_v47, %v6660_v33  ;;  %v4956_v19 = vld [vmem:[#allocation2 + $0xf8] sm:$0xf0]  ;;  %v4277_v33 = vld [vmem:[#allocation2 + $0xe0] sm:$0xf] }
 0x1f6   : > { %2695 = vmatmul.bf16.gmra.mxu1 %v4254_v28  ;;  %v2649_v34 = vpop.f32.mrf.mxu0  ;;  %v6447_v5 = vadd.f32 %v2642_v35, %v2554_v9  ;;  %v4593_v28 = vld [vmem:[#allocation2 + $0xf0] sm:$0xf] }
 0x1f7   : > { %v2066_v1 = vpop.f32.mrf.mxu2  ;;  %v6661_v9 = vld [vmem:[#allocation7_spill] sm:$0xff] }
 0x1f8   : > { %v2067_v16 = vadd.f32 %v2066_v1, %v1978_v55  ;;  %v4594_v55 = vor.u32 %v4956_v19, %v4593_v28  ;;  %v4955_v1 = vld [vmem:[#allocation2 + $0xf4] sm:$0xf]  ;;  %v4958_v19 = vld [vmem:[#allocation2 + $0x10c] sm:$0xf] }
 0x1fb   : > { %v2555_v56 = vpop.f32.mrf.mxu3  ;;  %v1982_v13 = vpop.f32.mrf.mxu1 }
 0x1fc   : > { %v2556_v60 = vadd.f32 %v2555_v56, %v2067_v16  ;;  %3298 = vmatmul.bf16.gmra.mxu2 %v4582_v42  ;;  %v1983_v51 = vadd.f32 %v1982_v13, %v6661_v9  ;;  %v4595_v16 = vld [vmem:[#allocation2 + $0xfc] sm:$0xf0]  ;;  %v4613_v42 = vld [vmem:[#allocation2 + $0x110] sm:$0xf]  ;;  %v4607_v9 = vld [vmem:[#allocation2 + $0x114] sm:$0xf0] }
 0x1fd   : > { %v4598_v56 = vor.u32 %v4955_v1, %v4595_v16 }
 0x1fe   : > { %v3442_v62 = vpop.f32.mrf.mxu0  ;;  %v6450_v53 = vadd.f32 %v2644_v44, %v2556_v60  ;;  %v4614_v60 = vor.u32 %v4960_v48, %v4613_v42  ;;  %v4610_v42 = vor.u32 %v4958_v19, %v4607_v9 }
 0x1ff   : > { %v2069_v35 = vpop.f32.mrf.mxu2 }
 0x200   : > { %3387 = vmatmul.bf16.gmra.mxu3 %v4586_v20  ;;  %v2070_v39 = vadd.f32 %v2069_v35, %v1981_v32 }
 0x201   : > { %3481 = vmatmul.bf16.gmra.mxu0 %v4602_v29 }
 0x203   : > { %v2558_v2 = vpop.f32.mrf.mxu3  ;;  %v2661_v18 = vpop.f32.mrf.mxu1 }
 0x204   : > { %v2559_v0 = vadd.f32 %v2558_v2, %v2070_v39  ;;  %v4959_v39 = vld [vmem:[#allocation2 + $0x110] sm:$0xf0]  ;;  %v2662_v1 = vadd.f32 %v2661_v18, %v6263_v30 }
 0x205   : > { %v4606_v28 = vor.u32 %v4959_v39, %v4605_v38 }
 0x206   : > { %2700 = vmatmul.bf16.gmra.mxu1 %v4266_v58  ;;  %v3444_v61 = vpop.f32.mrf.mxu0  ;;  %v6453_v47 = vadd.f32 %v2647_v26, %v2559_v0  ;;  %v4816_v26 = vld [vmem:[#allocation2 + $0xe8] sm:$0xf0] }
 0x207   : > { %v2071_v44 = vpop.f32.mrf.mxu2  ;;  %v4278_v32 = vor.u32 %v4816_v26, %v4277_v33  ;;  %v4819_v33 = vld [vmem:[#allocation2 + $0x100] sm:$0xf0] }
 0x208   : > { %v2072_v37 = vadd.f32 %v2071_v44, %v1983_v51  ;;  %v4963_v44 = vld [vmem:[#allocation2 + $0x130] sm:$0xf0] }
 0x20b   : > { %v2560_v43 = vpop.f32.mrf.mxu3  ;;  %v2663_v36 = vpop.f32.mrf.mxu1 }
 0x20c   : > { %v2561_v4 = vadd.f32 %v2560_v43, %v2072_v37  ;;  %3303 = vmatmul.bf16.gmra.mxu2 %v4594_v55 }
 0x20e   : > { %v3447_v20 = vpop.f32.mrf.mxu0  ;;  %v6455_v29 = vadd.f32 %v2649_v34, %v2561_v4  ;;  %v4625_v34 = vld [vmem:[#allocation2 + $0x128] sm:$0xf]  ;;  %v2664_v4 = vadd.f32 %v2663_v36, %v6271_v23 }
 0x20f   : > { %v3264_v13 = vpop.f32.mrf.mxu2  ;;  %v4626_v48 = vor.u32 %v4963_v44, %v4625_v34 }
 0x210   : > { %3392 = vmatmul.bf16.gmra.mxu3 %v4598_v56 }
 0x211   : > { %3486 = vmatmul.bf16.gmra.mxu0 %v4614_v60 }
 0x213   : > { %v3353_v35 = vpop.f32.mrf.mxu3  ;;  %v2666_v46 = vpop.f32.mrf.mxu1 }
 0x214   : > { %v3354_v58 = vadd.f32 %v3353_v35, %v3264_v13  ;;  %v4289_v13 = vld [vmem:[#allocation2 + $0xf8] sm:$0xf] }
 0x215   : > { %v4290_v30 = vor.u32 %v4819_v33, %v4289_v13 }
 0x216   : > { %2705 = vmatmul.bf16.gmra.mxu1 %v4278_v32  ;;  %v3449_v2 = vpop.f32.mrf.mxu0  ;;  %v3443_v51 = vadd.f32 %v3442_v62, %v3354_v58  ;;  %v4617_v58 = vld [vmem:[#allocation2 + $0x120] sm:$0xf] }
 0x217   : > { %v3266_v0 = vpop.f32.mrf.mxu2 }
 0x218   : > { %v3522_v43 = vadd.f32 %v3443_v51, %v2662_v1  ;;  %v4619_v1 = vld [vmem:[#allocation2 + $0x12c] sm:$0xf0] }
 0x21a   : > { %v3656_v18 = vmul.f32 %v3522_v43, %v3522_v43 }
 0x21b   : > { %v3355_v37 = vpop.f32.mrf.mxu3  ;;  %v2668_v55 = vpop.f32.mrf.mxu1 }
 0x21c   : > { %v3356_v16 = vadd.f32 %v3355_v37, %v3266_v0  ;;  %3308 = vmatmul.bf16.gmra.mxu2 %v4606_v28  ;;  %v4962_v0 = vld [vmem:[#allocation2 + $0x128] sm:$0xf0]  ;;  %v2667_v28 = vadd.f32 %v2666_v46, %v6289_v6  ;;  %v4961_v37 = vld [vmem:[#allocation2 + $0x124] sm:$0xf]  ;;  %v2669_v6 = vadd.f32 %v2668_v55, %v6298_v10 }
 0x21d   : > { %v4618_v44 = vor.u32 %v4962_v0, %v4617_v58 }
 0x21e   : > { %v3445_v56 = vadd.f32 %v3444_v61, %v3356_v16  ;;  %v3452_v60 = vpop.f32.mrf.mxu0 }
 0x21f   : > { %v3269_v26 = vpop.f32.mrf.mxu2 }
 0x220   : > { %v3523_v62 = vadd.f32 %v3445_v56, %v2664_v4  ;;  %3397 = vmatmul.bf16.gmra.mxu3 %v4610_v42 }
 0x221   : > { %3491 = vmatmul.bf16.gmra.mxu0 %v4626_v48  ;;  %v4637_v48 = vld [vmem:[#allocation2 + $0x140] sm:$0xf] }
 0x222   : > { %v5070_v32 = vpack.c.bf16 %v3523_v62, %v3522_v43  ;;  %v3618_v35 = vadd.f32 %v3523_v62, %v3522_v43  ;;  %v3657_v23 = vmul.f32 %v3523_v62, %v3523_v62  ;;  %v4966_v43 = vld [vmem:[#allocation2 + $0x148] sm:$0xf0] }
 0x223   : > { %v3358_v61 = vpop.f32.mrf.mxu3  ;;  %v2671_v36 = vpop.f32.mrf.mxu1  ;;  %v4638_v62 = vor.u32 %v4966_v43, %v4637_v48  ;;  %v4964_v48 = vld [vmem:[#allocation2 + $0x13c] sm:$0xf] }
 0x224   : > { %5071 = vst [vmem:[%s6464_s25] sm:$0xff] %v5070_v32   ;;  %v3688_v38 = vadd.f32 %v3657_v23, %v3656_v18  ;;  %v3359_v39 = vadd.f32 %v3358_v61, %v3269_v26  ;;  %v4622_v26 = vor.u32 %v4961_v37, %v4619_v1  ;;  %v4301_v18 = vld [vmem:[#allocation2 + $0x110] sm:$0xf]  ;;  %v4822_v32 = vld [vmem:[#allocation2 + $0x118] sm:$0xf0]  ;;  %v2672_v10 = vadd.f32 %v2671_v36, %v6328_v40 }
 0x225   : > { %v4302_v58 = vor.u32 %v4822_v32, %v4301_v18  ;;  %v4313_v32 = vld [vmem:[#allocation2 + $0x128] sm:$0xf] }
 0x226   : > { %v3448_v19 = vadd.f32 %v3447_v20, %v3359_v39  ;;  %2710 = vmatmul.bf16.gmra.mxu1 %v4290_v30  ;;  %v3454_v9 = vpop.f32.mrf.mxu0 }
 0x227   : > { %v3271_v51 = vpop.f32.mrf.mxu2 }
 0x228   : > { %v3524_v34 = vadd.f32 %v3448_v19, %v2667_v28 }
 0x22a   : > { %v3619_v16 = vadd.f32 %v3618_v35, %v3524_v34  ;;  %v3658_v42 = vmul.f32 %v3524_v34, %v3524_v34 }
 0x22b   : > { %v3360_v4 = vpop.f32.mrf.mxu3  ;;  %v2673_v56 = vpop.f32.mrf.mxu1 }
 0x22c   : > { %v3689_v13 = vadd.f32 %v3688_v38, %v3658_v42  ;;  %v3361_v33 = vadd.f32 %v3360_v4, %v3271_v51  ;;  %3313 = vmatmul.bf16.gmra.mxu2 %v4618_v44  ;;  %v4629_v51 = vld [vmem:[#allocation2 + $0x138] sm:$0xf]  ;;  %v4965_v44 = vld [vmem:[#allocation2 + $0x140] sm:$0xf0]  ;;  %v2674_v40 = vadd.f32 %v2673_v56, %v6336_v15 }
 0x22d   : > { %v4630_v42 = vor.u32 %v4965_v44, %v4629_v51  ;;  %v4649_v4 = vld [vmem:[#allocation2 + $0x158] sm:$0xf] }
 0x22e   : > { %v3450_v20 = vadd.f32 %v3449_v2, %v3361_v33  ;;  %v3457_v46 = vpop.f32.mrf.mxu0  ;;  %v4969_v33 = vld [vmem:[#allocation2 + $0x160] sm:$0xf0] }
 0x22f   : > { %v3274_v30 = vpop.f32.mrf.mxu2 }
 0x230   : > { %v3525_v23 = vadd.f32 %v3450_v20, %v2669_v6  ;;  %3402 = vmatmul.bf16.gmra.mxu3 %v4622_v26 }
 0x231   : > { %3496 = vmatmul.bf16.gmra.mxu0 %v4638_v62 }
 0x232   : > { %v5075_v35 = vpack.c.bf16 %v3525_v23, %v3524_v34  ;;  %v3620_v61 = vadd.f32 %v3619_v16, %v3525_v23  ;;  %v3659_v39 = vmul.f32 %v3525_v23, %v3525_v23  ;;  %v4631_v34 = vld [vmem:[#allocation2 + $0x144] sm:$0xf0]  ;;  %v4825_v23 = vld [vmem:[#allocation2 + $0x130] sm:$0xf0] }
 0x233   : > { %v3363_v38 = vpop.f32.mrf.mxu3  ;;  %v2676_v0 = vpop.f32.mrf.mxu1  ;;  %v4634_v20 = vor.u32 %v4964_v48, %v4631_v34  ;;  %v4967_v34 = vld [vmem:[#allocation2 + $0x154] sm:$0xf] }
 0x234   : > { %5162 = vst [vmem:[%s6464_s25 + $0x8] sm:$0xff] %v5075_v35   ;;  %v3690_v28 = vadd.f32 %v3689_v13, %v3659_v39  ;;  %v3364_v19 = vadd.f32 %v3363_v38, %v3274_v30  ;;  %v4650_v30 = vor.u32 %v4969_v33, %v4649_v4  ;;  %v4314_v38 = vor.u32 %v4825_v23, %v4313_v32  ;;  %v4661_v4 = vld [vmem:[#allocation2 + $0x170] sm:$0xf]  ;;  %v4972_v33 = vld [vmem:[#allocation2 + $0x178] sm:$0xf0] }
 0x235   : > { %v2677_v15 = vadd.f32 %v2676_v0, %v6353_v57  ;;  %v4828_v32 = vld [vmem:[#allocation2 + $0x148] sm:$0xf0] }
 0x236   : > { %v3453_v2 = vadd.f32 %v3452_v60, %v3364_v19  ;;  %2715 = vmatmul.bf16.gmra.mxu1 %v4302_v58  ;;  %v3459_v55 = vpop.f32.mrf.mxu0 }
 0x237   : > { %v3276_v37 = vpop.f32.mrf.mxu2 }
 0x238   : > { %v3526_v1 = vadd.f32 %v3453_v2, %v2672_v10  ;;  %v4641_v10 = vld [vmem:[#allocation2 + $0x150] sm:$0xf]  ;;  %v4968_v2 = vld [vmem:[#allocation2 + $0x158] sm:$0xf0] }
 0x239   : > { %v4642_v48 = vor.u32 %v4968_v2, %v4641_v10  ;;  %v4653_v10 = vld [vmem:[#allocation2 + $0x168] sm:$0xf]  ;;  %v4971_v2 = vld [vmem:[#allocation2 + $0x170] sm:$0xf0] }
 0x23a   : > { %v3621_v16 = vadd.f32 %v3620_v61, %v3526_v1  ;;  %v3660_v43 = vmul.f32 %v3526_v1, %v3526_v1 }
 0x23b   : > { %v3365_v26 = vpop.f32.mrf.mxu3  ;;  %v2678_v62 = vpop.f32.mrf.mxu1 }
 0x23c   : > { %v3691_v13 = vadd.f32 %v3690_v28, %v3660_v43  ;;  %v3366_v6 = vadd.f32 %v3365_v26, %v3276_v37  ;;  %3318 = vmatmul.bf16.gmra.mxu2 %v4630_v42  ;;  %v2679_v57 = vadd.f32 %v2678_v62, %v6361_v41 }
 0x23e   : > { %v3455_v60 = vadd.f32 %v3454_v9, %v3366_v6  ;;  %v3462_v36 = vpop.f32.mrf.mxu0 }
 0x23f   : > { %v3279_v18 = vpop.f32.mrf.mxu2 }
 0x240   : > { %v3527_v35 = vadd.f32 %v3455_v60, %v2674_v40  ;;  %3407 = vmatmul.bf16.gmra.mxu3 %v4634_v20  ;;  %v4662_v40 = vor.u32 %v4972_v33, %v4661_v4 }
 0x241   : > { %3501 = vmatmul.bf16.gmra.mxu0 %v4650_v30 }
 0x242   : > { %v5080_v61 = vpack.c.bf16 %v3527_v35, %v3526_v1  ;;  %v3622_v39 = vadd.f32 %v3621_v16, %v3527_v35  ;;  %v3661_v58 = vmul.f32 %v3527_v35, %v3527_v35  ;;  %v4643_v1 = vld [vmem:[#allocation2 + $0x15c] sm:$0xf0] }
 0x243   : > { %v3368_v28 = vpop.f32.mrf.mxu3  ;;  %v2681_v19 = vpop.f32.mrf.mxu1  ;;  %v4646_v30 = vor.u32 %v4967_v34, %v4643_v1 }
 0x244   : > { %5163 = vst [vmem:[%s6464_s25 + $0x10] sm:$0xff] %v5080_v61   ;;  %v3692_v51 = vadd.f32 %v3691_v13, %v3661_v58  ;;  %v3369_v44 = vadd.f32 %v3368_v28, %v3279_v18  ;;  %v4325_v18 = vld [vmem:[#allocation2 + $0x140] sm:$0xf]  ;;  %v2682_v41 = vadd.f32 %v2681_v19, %v6385_v27 }
 0x245   : > { %v4326_v58 = vor.u32 %v4828_v32, %v4325_v18 }
 0x246   : > { %v3458_v9 = vadd.f32 %v3457_v46, %v3369_v44  ;;  %2720 = vmatmul.bf16.gmra.mxu1 %v4314_v38  ;;  %v3464_v56 = vpop.f32.mrf.mxu0 }
 0x247   : > { %v3281_v37 = vpop.f32.mrf.mxu2 }
 0x248   : > { %v3528_v42 = vadd.f32 %v3458_v9, %v2677_v15 }
 0x24a   : > { %v3623_v16 = vadd.f32 %v3622_v39, %v3528_v42  ;;  %v3662_v43 = vmul.f32 %v3528_v42, %v3528_v42 }
 0x24b   : > { %v3370_v26 = vpop.f32.mrf.mxu3  ;;  %v2683_v6 = vpop.f32.mrf.mxu1 }
 0x24c   : > { %v3693_v13 = vadd.f32 %v3692_v51, %v3662_v43  ;;  %v3371_v20 = vadd.f32 %v3370_v26, %v3281_v37  ;;  %3323 = vmatmul.bf16.gmra.mxu2 %v4642_v48  ;;  %v4654_v37 = vor.u32 %v4971_v2, %v4653_v10  ;;  %v4970_v48 = vld [vmem:[#allocation2 + $0x16c] sm:$0xf]  ;;  %v4975_v43 = vld [vmem:[#allocation2 + $0x190] sm:$0xf0]  ;;  %v2684_v27 = vadd.f32 %v2683_v6, %v6389_v54 }
 0x24e   : > { %v3460_v46 = vadd.f32 %v3459_v55, %v3371_v20  ;;  %v3467_v0 = vpop.f32.mrf.mxu0 }
 0x24f   : > { %v3284_v60 = vpop.f32.mrf.mxu2 }
 0x250   : > { %v3529_v23 = vadd.f32 %v3460_v46, %v2679_v57  ;;  %3412 = vmatmul.bf16.gmra.mxu3 %v4646_v30  ;;  %v4337_v57 = vld [vmem:[#allocation2 + $0x158] sm:$0xf]  ;;  %v4831_v46 = vld [vmem:[#allocation2 + $0x160] sm:$0xf0] }
 0x251   : > { %3506 = vmatmul.bf16.gmra.mxu0 %v4662_v40 }
 0x252   : > { %v5085_v35 = vpack.c.bf16 %v3529_v23, %v3528_v42  ;;  %v3624_v61 = vadd.f32 %v3623_v16, %v3529_v23  ;;  %v3663_v39 = vmul.f32 %v3529_v23, %v3529_v23  ;;  %v4655_v42 = vld [vmem:[#allocation2 + $0x174] sm:$0xf0]  ;;  %v4673_v16 = vld [vmem:[#allocation2 + $0x188] sm:$0xf] }
 0x253   : > { %v3373_v38 = vpop.f32.mrf.mxu3  ;;  %v2686_v28 = vpop.f32.mrf.mxu1  ;;  %v4658_v20 = vor.u32 %v4970_v48, %v4655_v42  ;;  %v4674_v30 = vor.u32 %v4975_v43, %v4673_v16  ;;  %v4685_v48 = vld [vmem:[#allocation2 + $0x1a0] sm:$0xf]  ;;  %v4978_v42 = vld [vmem:[#allocation2 + $0x1a8] sm:$0xf0] }
 0x254   : > { %5164 = vst [vmem:[%s6464_s25 + $0x18] sm:$0xff] %v5085_v35   ;;  %v3694_v51 = vadd.f32 %v3693_v13, %v3663_v39  ;;  %v3374_v44 = vadd.f32 %v3373_v38, %v3284_v60  ;;  %v4338_v35 = vor.u32 %v4831_v46, %v4337_v57  ;;  %v2687_v54 = vadd.f32 %v2686_v28, %v6393_v14 }
 0x256   : > { %v3463_v55 = vadd.f32 %v3462_v36, %v3374_v44  ;;  %2725 = vmatmul.bf16.gmra.mxu1 %v4326_v58  ;;  %v3469_v62 = vpop.f32.mrf.mxu0  ;;  %v4974_v44 = vld [vmem:[#allocation2 + $0x188] sm:$0xf0] }
 0x257   : > { %v3286_v15 = vpop.f32.mrf.mxu2 }
 0x258   : > { %v3530_v9 = vadd.f32 %v3463_v55, %v2682_v41  ;;  %v4973_v55 = vld [vmem:[#allocation2 + $0x184] sm:$0xf] }
 0x25a   : > { %v3625_v34 = vadd.f32 %v3624_v61, %v3530_v9  ;;  %v3664_v1 = vmul.f32 %v3530_v9, %v3530_v9 }
 0x25b   : > { %v3375_v4 = vpop.f32.mrf.mxu3  ;;  %v2688_v33 = vpop.f32.mrf.mxu1 }
 0x25c   : > { %v3695_v26 = vadd.f32 %v3694_v51, %v3664_v1  ;;  %v3376_v13 = vadd.f32 %v3375_v4, %v3286_v15  ;;  %3328 = vmatmul.bf16.gmra.mxu2 %v4654_v37  ;;  %v4665_v51 = vld [vmem:[#allocation2 + $0x180] sm:$0xf]  ;;  %v4667_v15 = vld [vmem:[#allocation2 + $0x18c] sm:$0xf0]  ;;  %v2689_v14 = vadd.f32 %v2688_v33, %v6396_v3 }
 0x25d   : > { %v4666_v41 = vor.u32 %v4974_v44, %v4665_v51  ;;  %v4670_v4 = vor.u32 %v4973_v55, %v4667_v15  ;;  %v4976_v44 = vld [vmem:[#allocation2 + $0x19c] sm:$0xf] }
 0x25e   : > { %v3465_v36 = vadd.f32 %v3464_v56, %v3376_v13  ;;  %v3472_v19 = vpop.f32.mrf.mxu0 }
 0x25f   : > { %v3289_v40 = vpop.f32.mrf.mxu2 }
 0x260   : > { %v3531_v60 = vadd.f32 %v3465_v36, %v2684_v27  ;;  %3417 = vmatmul.bf16.gmra.mxu3 %v4658_v20  ;;  %v4349_v20 = vld [vmem:[#allocation2 + $0x170] sm:$0xf] }
 0x261   : > { %3511 = vmatmul.bf16.gmra.mxu0 %v4674_v30  ;;  %v4834_v30 = vld [vmem:[#allocation2 + $0x178] sm:$0xf0] }
 0x262   : > { %v5090_v18 = vpack.c.bf16 %v3531_v60, %v3530_v9  ;;  %v3626_v32 = vadd.f32 %v3625_v34, %v3531_v60  ;;  %v3665_v23 = vmul.f32 %v3531_v60, %v3531_v60  ;;  %v4350_v46 = vor.u32 %v4834_v30, %v4349_v20 }
 0x263   : > { %v3378_v61 = vpop.f32.mrf.mxu3  ;;  %v2691_v39 = vpop.f32.mrf.mxu1 }
 0x264   : > { %5165 = vst [vmem:[%s6464_s25 + $0x20] sm:$0xff] %v5090_v18   ;;  %v3696_v58 = vadd.f32 %v3695_v26, %v3665_v23  ;;  %v3379_v38 = vadd.f32 %v3378_v61, %v3289_v40  ;;  %v4686_v26 = vor.u32 %v4978_v42, %v4685_v48  ;;  %v4977_v61 = vld [vmem:[#allocation2 + $0x1a0] sm:$0xf0]  ;;  %v2692_v3 = vadd.f32 %v2691_v39, %v6399_v63 }
 0x266   : > { %v3468_v56 = vadd.f32 %v3467_v0, %v3379_v38  ;;  %2730 = vmatmul.bf16.gmra.mxu1 %v4338_v35  ;;  %v3474_v6 = vpop.f32.mrf.mxu0  ;;  %v4677_v35 = vld [vmem:[#allocation2 + $0x198] sm:$0xf] }
 0x267   : > { %v3291_v10 = vpop.f32.mrf.mxu2  ;;  %v4678_v51 = vor.u32 %v4977_v61, %v4677_v35 }
 0x268   : > { %v3532_v2 = vadd.f32 %v3468_v56, %v2687_v54  ;;  %v4679_v54 = vld [vmem:[#allocation2 + $0x1a4] sm:$0xf0] }
 0x26a   : > { %v3627_v9 = vadd.f32 %v3626_v32, %v3532_v2  ;;  %v3666_v37 = vmul.f32 %v3532_v2, %v3532_v2 }
 0x26b   : > { %v3380_v34 = vpop.f32.mrf.mxu3  ;;  %v2693_v1 = vpop.f32.mrf.mxu1 }
 0x26c   : > { %v3697_v16 = vadd.f32 %v3696_v58, %v3666_v37  ;;  %v3381_v43 = vadd.f32 %v3380_v34, %v3291_v10  ;;  %3333 = vmatmul.bf16.gmra.mxu2 %v4666_v41  ;;  %v2694_v37 = vadd.f32 %v2693_v1, %v6402_v22 }
 0x26e   : > { %v3470_v0 = vadd.f32 %v3469_v62, %v3381_v43  ;;  %v3477_v28 = vpop.f32.mrf.mxu0 }
 0x26f   : > { %v3294_v13 = vpop.f32.mrf.mxu2 }
 0x270   : > { %v3533_v27 = vadd.f32 %v3470_v0, %v2689_v14  ;;  %3422 = vmatmul.bf16.gmra.mxu3 %v4670_v4 }
 0x271   : > { %3516 = vmatmul.bf16.gmra.mxu0 %v4686_v26 }
 0x272   : > { %v5095_v36 = vpack.c.bf16 %v3533_v27, %v3532_v2  ;;  %v3628_v40 = vadd.f32 %v3627_v9, %v3533_v27  ;;  %v3667_v57 = vmul.f32 %v3533_v27, %v3533_v27  ;;  %v4682_v9 = vor.u32 %v4976_v44, %v4679_v54 }
 0x273   : > { %v3383_v60 = vpop.f32.mrf.mxu3  ;;  %v2696_v18 = vpop.f32.mrf.mxu1 }
 0x274   : > { %5166 = vst [vmem:[%s6464_s25 + $0x28] sm:$0xff] %v5095_v36   ;;  %v3698_v32 = vadd.f32 %v3697_v16, %v3667_v57  ;;  %v3384_v23 = vadd.f32 %v3383_v60, %v3294_v13  ;;  %v2697_v0 = vadd.f32 %v2696_v18, %v6405_v52 }
 0x276   : > { %v3473_v62 = vadd.f32 %v3472_v19, %v3384_v23  ;;  %2735 = vmatmul.bf16.gmra.mxu1 %v4350_v46  ;;  %v3479_v33 = vpop.f32.mrf.mxu0 }
 0x277   : > { %v3296_v58 = vpop.f32.mrf.mxu2 }
 0x278   : > { %v3534_v38 = vadd.f32 %v3473_v62, %v2692_v3 }
 0x27a   : > { %v3629_v56 = vadd.f32 %v3628_v40, %v3534_v38  ;;  %v3668_v10 = vmul.f32 %v3534_v38, %v3534_v38 }
 0x27b   : > { %v3385_v2 = vpop.f32.mrf.mxu3  ;;  %v2698_v41 = vpop.f32.mrf.mxu1 }
 0x27c   : > { %v3699_v55 = vadd.f32 %v3698_v32, %v3668_v10  ;;  %v3386_v15 = vadd.f32 %v3385_v2, %v3296_v58  ;;  %3338 = vmatmul.bf16.gmra.mxu2 %v4678_v51  ;;  %v2699_v46 = vadd.f32 %v2698_v41, %v6408_v11 }
 0x27e   : > { %v3475_v63 = vadd.f32 %v3474_v6, %v3386_v15  ;;  %v3482_v19 = vpop.f32.mrf.mxu0 }
 0x27f   : > { %v3299_v39 = vpop.f32.mrf.mxu2 }
 0x280   : > { %v3535_v48 = vadd.f32 %v3475_v63, %v2694_v37  ;;  %3427 = vmatmul.bf16.gmra.mxu3 %v4682_v9 }
 0x282   : > { %v5100_v42 = vpack.c.bf16 %v3535_v48, %v3534_v38  ;;  %v3630_v34 = vadd.f32 %v3629_v56, %v3535_v48  ;;  %v3669_v16 = vmul.f32 %v3535_v48, %v3535_v48 }
 0x283   : > { %v3388_v43 = vpop.f32.mrf.mxu3  ;;  %v2701_v4 = vpop.f32.mrf.mxu1 }
 0x284   : > { %5167 = vst [vmem:[%s6464_s25 + $0x30] sm:$0xff] %v5100_v42   ;;  %v3700_v26 = vadd.f32 %v3699_v55, %v3669_v16  ;;  %v3389_v14 = vadd.f32 %v3388_v43, %v3299_v39  ;;  %v2702_v38 = vadd.f32 %v2701_v4, %v6411_v7 }
 0x286   : > { %v3478_v13 = vadd.f32 %v3477_v28, %v3389_v14  ;;  %v3484_v20 = vpop.f32.mrf.mxu0 }
 0x287   : > { %v3301_v30 = vpop.f32.mrf.mxu2 }
 0x288   : > { %v3536_v27 = vadd.f32 %v3478_v13, %v2697_v0 }
 0x28a   : > { %v3631_v22 = vadd.f32 %v3630_v34, %v3536_v27  ;;  %v3670_v6 = vmul.f32 %v3536_v27, %v3536_v27 }
 0x28b   : > { %v3390_v1 = vpop.f32.mrf.mxu3  ;;  %v2703_v36 = vpop.f32.mrf.mxu1 }
 0x28c   : > { %v3701_v40 = vadd.f32 %v3700_v26, %v3670_v6  ;;  %v3391_v57 = vadd.f32 %v3390_v1, %v3301_v30  ;;  %v2704_v15 = vadd.f32 %v2703_v36, %v6414_v50 }
 0x28e   : > { %v3480_v60 = vadd.f32 %v3479_v33, %v3391_v57  ;;  %v3487_v32 = vpop.f32.mrf.mxu0 }
 0x28f   : > { %v3304_v23 = vpop.f32.mrf.mxu2 }
 0x290   : > { %v3537_v35 = vadd.f32 %v3480_v60, %v2699_v46 }
 0x292   : > { %v5105_v61 = vpack.c.bf16 %v3537_v35, %v3536_v27  ;;  %v3632_v3 = vadd.f32 %v3631_v22, %v3537_v35  ;;  %v3671_v52 = vmul.f32 %v3537_v35, %v3537_v35 }
 0x293   : > { %v3393_v28 = vpop.f32.mrf.mxu3  ;;  %v2706_v18 = vpop.f32.mrf.mxu1 }
 0x294   : > { %5168 = vst [vmem:[%s6464_s25 + $0x38] sm:$0xff] %v5105_v61   ;;  %v3702_v62 = vadd.f32 %v3701_v40, %v3671_v52  ;;  %v3394_v58 = vadd.f32 %v3393_v28, %v3304_v23  ;;  %v2707_v4 = vadd.f32 %v2706_v18, %v6417_v8 }
 0x296   : > { %v3483_v51 = vadd.f32 %v3482_v19, %v3394_v58  ;;  %v3489_v44 = vpop.f32.mrf.mxu0 }
 0x297   : > { %v3306_v54 = vpop.f32.mrf.mxu2 }
 0x298   : > { %v3538_v56 = vadd.f32 %v3483_v51, %v2702_v38 }
 0x29a   : > { %v3633_v10 = vadd.f32 %v3632_v3, %v3538_v56  ;;  %v3672_v11 = vmul.f32 %v3538_v56, %v3538_v56 }
 0x29b   : > { %v3395_v33 = vpop.f32.mrf.mxu3  ;;  %v2708_v2 = vpop.f32.mrf.mxu1 }
 0x29c   : > { %v3703_v41 = vadd.f32 %v3702_v62, %v3672_v11  ;;  %v3396_v55 = vadd.f32 %v3395_v33, %v3306_v54  ;;  %v2709_v1 = vadd.f32 %v2708_v2, %v6420_v17 }
 0x29e   : > { %v3485_v9 = vadd.f32 %v3484_v20, %v3396_v55  ;;  %v3492_v37 = vpop.f32.mrf.mxu0 }
 0x29f   : > { %v3309_v63 = vpop.f32.mrf.mxu2 }
 0x2a0   : > { %v3539_v39 = vadd.f32 %v3485_v9, %v2704_v15 }
 0x2a2   : > { %v5110_v48 = vpack.c.bf16 %v3539_v39, %v3538_v56  ;;  %v3634_v42 = vadd.f32 %v3633_v10, %v3539_v39  ;;  %v3673_v7 = vmul.f32 %v3539_v39, %v3539_v39 }
 0x2a3   : > { %v3398_v19 = vpop.f32.mrf.mxu3  ;;  %v2711_v34 = vpop.f32.mrf.mxu1 }
 0x2a4   : > { %5169 = vst [vmem:[%s6464_s25 + $0x40] sm:$0xff] %v5110_v48   ;;  %v3704_v16 = vadd.f32 %v3703_v41, %v3673_v7  ;;  %v3399_v43 = vadd.f32 %v3398_v19, %v3309_v63  ;;  %v2712_v52 = vadd.f32 %v2711_v34, %v6423_v24 }
 0x2a6   : > { %v3488_v26 = vadd.f32 %v3487_v32, %v3399_v43  ;;  %v3494_v13 = vpop.f32.mrf.mxu0 }
 0x2a7   : > { %v3311_v14 = vpop.f32.mrf.mxu2 }
 0x2a8   : > { %v3540_v0 = vadd.f32 %v3488_v26, %v2707_v4 }
 0x2aa   : > { %v3635_v30 = vadd.f32 %v3634_v42, %v3540_v0  ;;  %v3674_v50 = vmul.f32 %v3540_v0, %v3540_v0 }
 0x2ab   : > { %v3400_v20 = vpop.f32.mrf.mxu3  ;;  %v2713_v27 = vpop.f32.mrf.mxu1 }
 0x2ac   : > { %v3705_v22 = vadd.f32 %v3704_v16, %v3674_v50  ;;  %v3401_v6 = vadd.f32 %v3400_v20, %v3311_v14  ;;  %v2714_v10 = vadd.f32 %v2713_v27, %v6426_v21 }
 0x2ae   : > { %v3490_v36 = vadd.f32 %v3489_v44, %v3401_v6  ;;  %v3497_v8 = vpop.f32.mrf.mxu0 }
 0x2af   : > { %v3314_v40 = vpop.f32.mrf.mxu2 }
 0x2b0   : > { %v3541_v57 = vadd.f32 %v3490_v36, %v2709_v1 }
 0x2b2   : > { %v5115_v46 = vpack.c.bf16 %v3541_v57, %v3540_v0  ;;  %v3636_v60 = vadd.f32 %v3635_v30, %v3541_v57  ;;  %v3675_v23 = vmul.f32 %v3541_v57, %v3541_v57 }
 0x2b3   : > { %v3403_v32 = vpop.f32.mrf.mxu3  ;;  %v2716_v35 = vpop.f32.mrf.mxu1 }
 0x2b4   : > { %5170 = vst [vmem:[%s6464_s25 + $0x48] sm:$0xff] %v5115_v46   ;;  %v3706_v61 = vadd.f32 %v3705_v22, %v3675_v23  ;;  %v3404_v3 = vadd.f32 %v3403_v32, %v3314_v40  ;;  %v2717_v39 = vadd.f32 %v2716_v35, %v6429_v59 }
 0x2b6   : > { %v3493_v28 = vadd.f32 %v3492_v37, %v3404_v3  ;;  %v3499_v56 = vpop.f32.mrf.mxu0 }
 0x2b7   : > { %v3316_v18 = vpop.f32.mrf.mxu2 }
 0x2b8   : > { %v3542_v62 = vadd.f32 %v3493_v28, %v2712_v52 }
 0x2ba   : > { %v3637_v58 = vadd.f32 %v3636_v60, %v3542_v62  ;;  %v3676_v17 = vmul.f32 %v3542_v62, %v3542_v62 }
 0x2bb   : > { %v3405_v38 = vpop.f32.mrf.mxu3  ;;  %v2718_v51 = vpop.f32.mrf.mxu1 }
 0x2bc   : > { %v3707_v44 = vadd.f32 %v3706_v61, %v3676_v17  ;;  %v3406_v54 = vadd.f32 %v3405_v38, %v3316_v18  ;;  %v2719_v26 = vadd.f32 %v2718_v51, %v6432_v12 }
 0x2be   : > { %v3495_v11 = vadd.f32 %v3494_v13, %v3406_v54  ;;  %v3502_v7 = vpop.f32.mrf.mxu0 }
 0x2bf   : > { %v3319_v33 = vpop.f32.mrf.mxu2 }
 0x2c0   : > { %v3543_v2 = vadd.f32 %v3495_v11, %v2714_v10 }
 0x2c2   : > { %v5120_v41 = vpack.c.bf16 %v3543_v2, %v3542_v62  ;;  %v3638_v55 = vadd.f32 %v3637_v58, %v3543_v2  ;;  %v3677_v15 = vmul.f32 %v3543_v2, %v3543_v2 }
 0x2c3   : > { %v3408_v24 = vpop.f32.mrf.mxu3  ;;  %v2721_v63 = vpop.f32.mrf.mxu1 }
 0x2c4   : > { %5171 = vst [vmem:[%s6464_s25 + $0x50] sm:$0xff] %v5120_v41   ;;  %v3708_v9 = vadd.f32 %v3707_v44, %v3677_v15  ;;  %v3409_v37 = vadd.f32 %v3408_v24, %v3319_v33  ;;  %v2722_v36 = vadd.f32 %v2721_v63, %v6435_v31 }
 0x2c6   : > { %v3498_v48 = vadd.f32 %v3497_v8, %v3409_v37  ;;  %v3504_v50 = vpop.f32.mrf.mxu0 }
 0x2c7   : > { %v3321_v42 = vpop.f32.mrf.mxu2 }
 0x2c8   : > { %v3544_v19 = vadd.f32 %v3498_v48, %v2717_v39 }
 0x2ca   : > { %v3639_v34 = vadd.f32 %v3638_v55, %v3544_v19  ;;  %v3678_v21 = vmul.f32 %v3544_v19, %v3544_v19 }
 0x2cb   : > { %v3410_v16 = vpop.f32.mrf.mxu3  ;;  %v2723_v13 = vpop.f32.mrf.mxu1 }
 0x2cc   : > { %v3709_v43 = vadd.f32 %v3708_v9, %v3678_v21  ;;  %v3411_v4 = vadd.f32 %v3410_v16, %v3321_v42  ;;  %v2724_v3 = vadd.f32 %v2723_v13, %v6438_v49 }
 0x2ce   : > { %v3500_v14 = vadd.f32 %v3499_v56, %v3411_v4  ;;  %v3507_v32 = vpop.f32.mrf.mxu0 }
 0x2cf   : > { %v3324_v0 = vpop.f32.mrf.mxu2 }
 0x2d0   : > { %v3545_v30 = vadd.f32 %v3500_v14, %v2719_v26 }
 0x2d2   : > { %v5125_v20 = vpack.c.bf16 %v3545_v30, %v3544_v19  ;;  %v3640_v27 = vadd.f32 %v3639_v34, %v3545_v30  ;;  %v3679_v59 = vmul.f32 %v3545_v30, %v3545_v30 }
 0x2d3   : > { %v3413_v22 = vpop.f32.mrf.mxu3  ;;  %v2726_v60 = vpop.f32.mrf.mxu1 }
 0x2d4   : > { %5172 = vst [vmem:[%s6464_s25 + $0x58] sm:$0xff] %v5125_v20   ;;  %v3710_v6 = vadd.f32 %v3709_v43, %v3679_v59  ;;  %v3414_v1 = vadd.f32 %v3413_v22, %v3324_v0  ;;  %v2727_v56 = vadd.f32 %v2726_v60, %v6441_v25 }
 0x2d6   : > { %v3503_v40 = vadd.f32 %v3502_v7, %v3414_v1  ;;  %v3509_v54 = vpop.f32.mrf.mxu0 }
 0x2d7   : > { %v3326_v57 = vpop.f32.mrf.mxu2 }
 0x2d8   : > { %v3546_v46 = vadd.f32 %v3503_v40, %v2722_v36 }
 0x2da   : > { %v3641_v12 = vadd.f32 %v3640_v27, %v3546_v46  ;;  %v3680_v23 = vmul.f32 %v3546_v46, %v3546_v46 }
 0x2db   : > { %v3415_v8 = vpop.f32.mrf.mxu3  ;;  %v2728_v38 = vpop.f32.mrf.mxu1 }
 0x2dc   : > { %v3711_v35 = vadd.f32 %v3710_v6, %v3680_v23  ;;  %v3416_v61 = vadd.f32 %v3415_v8, %v3326_v57  ;;  %v2729_v9 = vadd.f32 %v2728_v38, %v6444_v45  ;;  %v5224_v57 = vmov 0.0  }
 0x2dd   : > { %3726 = vst [vmem:[%s6512_s28 + $0x2] sm:$0x3f] %v5224_v57 }
 0x2de   : > { %v3505_v52 = vadd.f32 %v3504_v50, %v3416_v61  ;;  %v3512_v63 = vpop.f32.mrf.mxu0 }
 0x2df   : > { %v3329_v28 = vpop.f32.mrf.mxu2 }
 0x2e0   : > { %v3547_v18 = vadd.f32 %v3505_v52, %v2724_v3 }
 0x2e2   : > { %v5130_v62 = vpack.c.bf16 %v3547_v18, %v3546_v46  ;;  %v3642_v58 = vadd.f32 %v3641_v12, %v3547_v18  ;;  %v3681_v17 = vmul.f32 %v3547_v18, %v3547_v18 }
 0x2e3   : > { %v3418_v31 = vpop.f32.mrf.mxu3  ;;  %v2731_v24 = vpop.f32.mrf.mxu1 }
 0x2e4   : > { %5173 = vst [vmem:[%s6464_s25 + $0x60] sm:$0xff] %v5130_v62   ;;  %v3712_v51 = vadd.f32 %v3711_v35, %v3681_v17  ;;  %v3419_v44 = vadd.f32 %v3418_v31, %v3329_v28  ;;  %v2732_v16 = vadd.f32 %v2731_v24, %v6447_v5 }
 0x2e6   : > { %v3508_v10 = vadd.f32 %v3507_v32, %v3419_v44  ;;  %v3514_v0 = vpop.f32.mrf.mxu0 }
 0x2e7   : > { %v3331_v11 = vpop.f32.mrf.mxu2 }
 0x2e8   : > { %v3548_v33 = vadd.f32 %v3508_v10, %v2727_v56 }
 0x2ea   : > { %v3643_v2 = vadd.f32 %v3642_v58, %v3548_v33  ;;  %v3682_v49 = vmul.f32 %v3548_v33, %v3548_v33 }
 0x2eb   : > { %v3420_v41 = vpop.f32.mrf.mxu3  ;;  %v2733_v4 = vpop.f32.mrf.mxu1 }
 0x2ec   : > { %v3713_v55 = vadd.f32 %v3712_v51, %v3682_v49  ;;  %v3421_v15 = vadd.f32 %v3420_v41, %v3331_v11  ;;  %v2734_v27 = vadd.f32 %v2733_v4, %v6450_v53 }
 0x2ee   : > { %v3510_v37 = vadd.f32 %v3509_v54, %v3421_v15  ;;  %v3517_v46 = vpop.f32.mrf.mxu0 }
 0x2ef   : > { %v3334_v39 = vpop.f32.mrf.mxu2 }
 0x2f0   : > { %v3549_v48 = vadd.f32 %v3510_v37, %v2729_v9 }
 0x2f2   : > { %v5135_v42 = vpack.c.bf16 %v3549_v48, %v3548_v33  ;;  %v3644_v7 = vadd.f32 %v3643_v2, %v3549_v48  ;;  %v3683_v19 = vmul.f32 %v3549_v48, %v3549_v48 }
 0x2f3   : > { %v3423_v25 = vpop.f32.mrf.mxu3  ;;  %v2736_v1 = vpop.f32.mrf.mxu1 }
 0x2f4   : > { %5174 = vst [vmem:[%s6464_s25 + $0x68] sm:$0xff] %v5135_v42   ;;  %v3714_v34 = vadd.f32 %v3713_v55, %v3683_v19  ;;  %v3424_v21 = vadd.f32 %v3423_v25, %v3334_v39  ;;  %v2737_v23 = vadd.f32 %v2736_v1, %v6453_v47 }
 0x2f6   : > { %v3513_v43 = vadd.f32 %v3512_v63, %v3424_v21  ;;  %v3519_v58 = vpop.f32.mrf.mxu0 }
 0x2f7   : > { %v3336_v26 = vpop.f32.mrf.mxu2 }
 0x2f8   : > { %v3550_v14 = vadd.f32 %v3513_v43, %v2732_v16 }
 0x2fa   : > { %v3645_v45 = vadd.f32 %v3644_v7, %v3550_v14  ;;  %v3684_v13 = vmul.f32 %v3550_v14, %v3550_v14 }
 0x2fb   : > { %v3425_v30 = vpop.f32.mrf.mxu3  ;;  %v2738_v52 = vpop.f32.mrf.mxu1 }
 0x2fc   : > { %v3715_v50 = vadd.f32 %v3714_v34, %v3684_v13  ;;  %v3426_v20 = vadd.f32 %v3425_v30, %v3336_v26  ;;  %v2739_v17 = vadd.f32 %v2738_v52, %v6455_v29 }
 0x2fe   : > { %v3515_v59 = vadd.f32 %v3514_v0, %v3426_v20 }
 0x2ff   : > { %v3339_v22 = vpop.f32.mrf.mxu2 }
 0x300   : > { %v3551_v6 = vadd.f32 %v3515_v59, %v2734_v27 }
 0x302   : > { %v5140_v5 = vpack.c.bf16 %v3551_v6, %v3550_v14  ;;  %v3646_v36 = vadd.f32 %v3645_v45, %v3551_v6  ;;  %v3685_v40 = vmul.f32 %v3551_v6, %v3551_v6 }
 0x303   : > { %v3428_v60 = vpop.f32.mrf.mxu3 }
 0x304   : > { %5175 = vst [vmem:[%s6464_s25 + $0x70] sm:$0xff] %v5140_v5   ;;  %v3716_v53 = vadd.f32 %v3715_v50, %v3685_v40  ;;  %v3429_v12 = vadd.f32 %v3428_v60, %v3339_v22 }
 0x306   : > { %v3518_v8 = vadd.f32 %v3517_v46, %v3429_v12 }
 0x307   : > { %v3341_v35 = vpop.f32.mrf.mxu2 }
 0x308   : > { %v3552_v32 = vadd.f32 %v3518_v8, %v2737_v23 }
 0x30a   : > { %v3647_v61 = vadd.f32 %v3646_v36, %v3552_v32  ;;  %v3686_v3 = vmul.f32 %v3552_v32, %v3552_v32 }
 0x30b   : > { %v3430_v28 = vpop.f32.mrf.mxu3 }
 0x30c   : > { %v3717_v18 = vadd.f32 %v3716_v53, %v3686_v3  ;;  %v3431_v62 = vadd.f32 %v3430_v28, %v3341_v35 }
 0x30e   : > { %v3520_v31 = vadd.f32 %v3519_v58, %v3431_v62 }
 0x310   : > { %v3553_v38 = vadd.f32 %v3520_v31, %v2739_v17 }
 0x312   : > { %v5145_v51 = vpack.c.bf16 %v3553_v38, %v3552_v32  ;;  %v3648_v44 = vadd.f32 %v3647_v61, %v3553_v38  ;;  %v3687_v54 = vmul.f32 %v3553_v38, %v3553_v38 }
 0x314   : > { %5176 = vst [vmem:[%s6464_s25 + $0x78] sm:$0xff] %v5145_v51   ;;  %v3649_v47 = vrot.slane %v3648_v44, 4  ;;  %v3718_v56 = vadd.f32 %v3717_v18, %v3687_v54 }
 0x316   : > { %v3650_v10 = vadd.f32 %v3649_v47, %v3648_v44  ;;  %v3719_v11 = vrot.slane %v3718_v56, 4 }
 0x318   : > { %v3651_v33 = vrot.slane %v3650_v10, 2  ;;  %v3720_v2 = vadd.f32 %v3719_v11, %v3718_v56 }
 0x31a   : > { %v3652_v49 = vadd.f32 %v3651_v33, %v3650_v10  ;;  %v3721_v41 = vrot.slane %v3720_v2, 2 }
 0x31c   : > { %v3653_v55 = vrot.slane %v3652_v49, 1  ;;  %v3722_v15 = vadd.f32 %v3721_v41, %v3720_v2 }
 0x31e   : > { %v3654_v24 = vadd.f32 %v3653_v55, %v3652_v49  ;;  %v3723_v29 = vrot.slane %v3722_v15, 1 }
 0x320   : > { %3655 = vst [vmem:[%s6512_s28] sm:$0x1] %v3654_v24  ;;  %v3724_v9 = vadd.f32 %v3723_v29, %v3722_v15 }
 0x322   : > { %3725 = vst [vmem:[%s6512_s28 + $0x1] sm:$0x1] %v3724_v9 }
 0x323 PF: > { %s16_s18 = sadd.s32 1, %s5221_s18  }
 0x324   : > { %p13_p4 = scmp.ge.s32.totalorder %s16_s18, 4  }
 0x326   :  { %15 = sbr.rel (!%p13_p4) target bundleno = 1 (0x1), region = 83 }

</bundles_post_ra>
